<compile_context>
chip_gen: v5e
topology: v5e:2x2
jax: 0.10.0
libtpu: 0.0.40
codegen_flags: <defaults>
</compile_context>

<pallas_src>
import functools
import math

import jax
import jax.numpy as jnp
from jax.experimental import pallas as pl
from jax.experimental.pallas import tpu as pltpu

_NEG = -3.0e38  # only used by the pure-JAX max-pool reference


def _round_up(x, m):
    return (x + m - 1) // m * m


def _vmem_limit_bytes():
    """Generation-aware scoped-VMEM budget (v5e/v6e: 128 MiB phys, v7x: 64 MiB)."""
    cap = 64 * 1024 * 1024
    try:
        info = pltpu.get_tpu_info()
        cap = int(getattr(info, "vmem_capacity_bytes", cap))
    except Exception:
        pass
    # ~75% of physical, capped at 96 MiB (v5e/v6e), floored at the old 32 MiB default.
    return max(32 * 1024 * 1024, min(3 * cap // 4, 96 * 1024 * 1024))


def _pick_frames(total, per_frame_bytes, budget):
    """Largest divisor F of `total` with F*per_frame_bytes <= budget and grid >= 2."""
    best = 1
    for f in range(1, total + 1):
        if total % f:
            continue
        if f * per_frame_bytes > budget:
            continue
        if total // f >= 2:
            best = f
    return best


# ----------------------------- Pallas kernels ------------------------------

def _conv1_bn_relu_pool_ready_kernel(x_ref, w_ref, b_ref, o_ref, patch_ref,
                                     *, F, Ho, Wo):
    """Fused conv1_my + BatchNorm3d(eval) + ReLU for F frames; output is written in
    the zero-bordered, phase-split layout the maxpool(2,3,3) kernel consumes.

    x_ref:     (F, Ho+3, Wo+3, 32) bf16  stride-2 phase-split padded input
                                         (last axis = (ph, pw, cin padded to 8)).
    w_ref:     (512, 64)           bf16  im2col weights (K = 16 taps x 32), BN folded.
    b_ref:     (1, 64)             f32   BN shift (beta - mean*scale).
    o_ref:     (F, 4, Po+1, Qo+1, 64) bf16  pool-ready layout: axis1 = 2*ph + pw of
                                            the (pad=1) zero-bordered feature map.
    patch_ref: (F*Ho*Wo, 512)      bf16  VMEM scratch for the im2col patch matrix.
    """
    M = F * Ho * Wo

    # --- assemble the (M, 512) patch matrix in VMEM (16 taps x 32 channels) ------
    for ah in range(4):
        for aw in range(4):
            tap = 4 * ah + aw
            patch_ref[:, tap * 32:(tap + 1) * 32] = (
                x_ref[:, ah:ah + Ho, aw:aw + Wo, :].reshape(M, 32))

    # --- one K=512 MXU matmul (bf16 in, f32 accumulate) + BN shift + ReLU --------
    acc = jnp.dot(patch_ref[...], w_ref[...], preferred_element_type=jnp.float32)
    y = jnp.maximum(acc + b_ref[...], 0.0).reshape(F, Ho, Wo, 64)

    # --- epilogue: maxpool(2,3,3)-ready phase-split layout, bf16, zero borders ----
    # (post-ReLU values are >= 0, so padding the pool window with 0 is exact)
    Ho2, Wo2 = Ho // 2, Wo // 2
    o_ref[...] = jnp.zeros_like(o_ref)
    t = y.reshape(F, Ho2, 2, Wo, 64)
    for hh in range(2):                      # conv output row parity
        ph = 1 - hh                          # padded-row phase; dst rows start at hh
        th = t[:, :, hh, :, :].reshape(F, Ho2, Wo2, 2, 64)
        for ww in range(2):                  # conv output col parity
            pw = 1 - ww
            sub = th[:, :, :, ww, :].astype(o_ref.dtype)      # (F, Ho2, Wo2, 64)
            o_ref[:, 2 * ph + pw, hh:hh + Ho2, ww:ww + Wo2, :] = sub


def _maxpool233_kernel(x_ref, o_ref, *, Fp, Po, Qo):
    """MaxPool3d k=(2,3,3) s=2 p=(0,1,1) on the pool-ready phase-split layout.

    x_ref: (2*Fp, 4, Po+1, Qo+1, 64) bf16  axis1 = 2*ph + pw, zero borders.
    o_ref: (Fp, Po, Qo, 64)          bf16
    All 18 window reads are plain (sublane) slices — no lane-offset slicing.
    """
    for fp in range(Fp):
        m = None
        for kd in range(2):
            for ph in range(2):
                for pw in range(2):
                    for ah in range(2 - ph):          # kh = 2*ah + ph in {0,1,2}
                        for aw in range(2 - pw):      # kw = 2*aw + pw in {0,1,2}
                            v = x_ref[2 * fp + kd, 2 * ph + pw,
                                      ah:ah + Po, aw:aw + Qo, :]
                            m = v if m is None else jnp.maximum(m, v)
        o_ref[fp] = m


def _pairmax_kernel(x_ref, o_ref):
    """MaxPool3d k=(2,1,1) s=(2,1,1): elementwise max over a frame pair."""
    x = x_ref[...]                                    # (1, 2, TS)
    o_ref[...] = jnp.maximum(x[:, 0:1, :], x[:, 1:2, :])


def _conv_mask_sigmoid_kernel(x_ref, w_ref, o_ref, *, C):
    """sigmoid(1x1x1 conv, 16->1) on the VPU; weights come from SMEM scalars.

    x_ref: (1, C, TL) f32 ; w_ref: (C,) f32 in SMEM ; o_ref: (1, 1, TL) f32.
    """
    x = x_ref[0]                                      # (C, TL)
    acc = x[0:1, :] * w_ref[0]
    for c in range(1, C):
        acc = acc + x[c:c + 1, :] * w_ref[c]
    o_ref[0] = jax.nn.sigmoid(acc)


# -------------------------- forward-pass building blocks -------------------

def conv1_bn_relu_pool_ready(x_ncdhw, w_conv1, gamma, beta, mean, var, eps=1e-5):
    """relu(bn1(conv1_my(x))) emitted directly in the maxpool(2,3,3)-ready layout.

    x_ncdhw: (N, 7, D, H, W); w_conv1: PyTorch (64, 7, 1, 7, 7).
    Returns (N*D, 4, Po+1, Qo+1, 64) bf16 (axis1 = 2*ph + pw of the padded map).
    """
    N, C, D, H, W = x_ncdhw.shape
    assert C == 7
    Ho = (H - 1) // 2 + 1
    Wo = (W - 1) // 2 + 1
    # TODO(synk): odd conv output extents would need a tail-column/row path.
    assert Ho % 2 == 0 and Wo % 2 == 0, "phase-split epilogue assumes even Ho/Wo"
    Hh, Wh = Ho + 3, Wo + 3
    Po, Qo = Ho // 2, Wo // 2
    Hh_p, Wh_p = Po + 1, Qo + 1

    # input: channels-last, conv pad + alignment pad, stride-2 phase split (one pass)
    xt = jnp.transpose(x_ncdhw, (0, 2, 3, 4, 1))                       # (N,D,H,W,C)
    xt = jnp.pad(xt, ((0, 0), (0, 0),
                      (3, 2 * Hh - H - 3), (3, 2 * Wh - W - 3), (0, 8 - C)))
    xt = xt.reshape(N, D, Hh, 2, Wh, 2, 8)
    xt = jnp.transpose(xt, (0, 1, 2, 4, 3, 5, 6))                      # (...,ph,pw,c)
    x4 = xt.reshape(N * D, Hh, Wh, 32).astype(jnp.bfloat16)

    # weights: fold BN scale, zero-pad (c,kh,kw) to 8, regroup to K = tap*(ph,pw,c8)
    scale = gamma * jax.lax.rsqrt(var + eps)                           # (64,)
    shift = (beta - mean * scale).reshape(1, 64).astype(jnp.float32)
    w = w_conv1[:, :, 0, :, :] * scale[:, None, None, None]            # (64,7,7,7)
    w = jnp.pad(w, ((0, 0), (0, 8 - C), (0, 1), (0, 1)))               # (64,8,8,8)
    w = w.reshape(64, 8, 4, 2, 4, 2)                                   # co,c,ah,ph,aw,pw
    w = jnp.transpose(w, (2, 4, 3, 5, 1, 0))                           # ah,aw,ph,pw,c,co
    w_mat = w.reshape(512, 64).astype(jnp.bfloat16)

    vlim = _vmem_limit_bytes()
    per_frame = (Hh * Wh * 32 * 2) + (4 * Hh_p * Wh_p * 64 * 2) + (Ho * Wo * 512 * 2)
    F = _pick_frames(N * D, per_frame, vlim // 8)

    out = pl.pallas_call(
        functools.partial(_conv1_bn_relu_pool_ready_kernel, F=F, Ho=Ho, Wo=Wo),
        out_shape=jax.ShapeDtypeStruct((N * D, 4, Hh_p, Wh_p, 64), jnp.bfloat16),
        grid=(N * D // F,),
        in_specs=[pl.BlockSpec((F, Hh, Wh, 32), lambda i: (i, 0, 0, 0)),
                  pl.BlockSpec((512, 64), lambda i: (0, 0)),
                  pl.BlockSpec((1, 64), lambda i: (0, 0))],
        out_specs=pl.BlockSpec((F, 4, Hh_p, Wh_p, 64), lambda i: (i, 0, 0, 0, 0)),
        scratch_shapes=[pltpu.VMEM((F * Ho * Wo, 512), jnp.bfloat16)],
        compiler_params=pltpu.CompilerParams(
            dimension_semantics=("parallel",), vmem_limit_bytes=vlim),
    )(x4, w_mat, shift)
    return out


def conv_features_from_pool_ready(pr, N, D, Ho, Wo):
    """Recover the plain (N, D, Ho, Wo, 64) conv1+bn+relu feature map (skip path)."""
    ND, p4, Hh_p, Wh_p, C = pr.shape
    assert p4 == 4 and ND == N * D
    y = pr.reshape(ND, 2, 2, Hh_p, Wh_p, C)                            # (f,ph,pw,a,b,c)
    y = jnp.transpose(y, (0, 3, 1, 4, 2, 5)).reshape(ND, 2 * Hh_p, 2 * Wh_p, C)
    return y[:, 1:1 + Ho, 1:1 + Wo, :].reshape(N, D, Ho, Wo, C)


def maxpool_233_from_pool_ready(pr, N, D):
    """MaxPool3d(kernel=(2,3,3), stride=2, padding=(0,1,1)) on the pool-ready layout."""
    ND, p4, Hh_p, Wh_p, C = pr.shape
    assert p4 == 4 and ND == N * D
    assert D % 2 == 0  # TODO(synk): odd temporal extents would need a tail path
    Do = D // 2
    Po, Qo = Hh_p - 1, Wh_p - 1

    vlim = _vmem_limit_bytes()
    itm = pr.dtype.itemsize
    per_pair = 2 * 4 * Hh_p * Wh_p * C * itm + Po * Qo * C * itm
    Fp = _pick_frames(N * Do, per_pair, vlim // 8)

    out = pl.pallas_call(
        functools.partial(_maxpool233_kernel, Fp=Fp, Po=Po, Qo=Qo),
        out_shape=jax.ShapeDtypeStruct((N * Do, Po, Qo, C), pr.dtype),
        grid=(N * Do // Fp,),
        in_specs=[pl.BlockSpec((2 * Fp, 4, Hh_p, Wh_p, C),
                               lambda i: (i, 0, 0, 0, 0))],
        out_specs=pl.BlockSpec((Fp, Po, Qo, C), lambda i: (i, 0, 0, 0)),
        compiler_params=pltpu.CompilerParams(
            dimension_semantics=("parallel",), vmem_limit_bytes=vlim),
    )(pr)
    return out.reshape(N, Do, Po, Qo, C)


def maxpool_211(x):
    """MaxPool3d(kernel=(2,1,1), stride=(2,1,1), padding=0) on (N,D,H,W,C)."""
    N, D, H, W, C = x.shape
    Do = (D - 2) // 2 + 1
    S = H * W * C
    TS = min(8192, _round_up(S, 128))
    S_pad = _round_up(S, TS)
    xr = x[:, :2 * Do].reshape(N * Do, 2, S)
    if S_pad != S:
        xr = jnp.pad(xr, ((0, 0), (0, 0), (0, S_pad - S)))   # tail sliced off below
    vlim = _vmem_limit_bytes()
    out = pl.pallas_call(
        _pairmax_kernel,
        out_shape=jax.ShapeDtypeStruct((N * Do, 1, S_pad), x.dtype),
        grid=(N * Do, S_pad // TS),
        in_specs=[pl.BlockSpec((1, 2, TS), lambda i, j: (i, 0, j))],
        out_specs=pl.BlockSpec((1, 1, TS), lambda i, j: (i, 0, j)),
        compiler_params=pltpu.CompilerParams(
            dimension_semantics=("parallel", "parallel"), vmem_limit_bytes=vlim),
    )(xr)
    return out[:, 0, :S].reshape(N, Do, H, W, C)


def conv_mask_sigmoid(x_ncdhw, w_mask):
    """sigmoid(Conv3d(16, 1, kernel_size=1, bias=False)(x)); NCDHW in, NCDHW out."""
    N, C, D, H, W = x_ncdhw.shape
    S = D * H * W
    TL = min(4096, _round_up(S, 128))
    S_pad = _round_up(S, TL)
    xr = x_ncdhw.reshape(N, C, S).astype(jnp.float32)
    if S_pad != S:
        xr = jnp.pad(xr, ((0, 0), (0, 0), (0, S_pad - S)))
    w_vec = w_mask[:, :, 0, 0, 0].reshape(C).astype(jnp.float32)
    vlim = _vmem_limit_bytes()
    out = pl.pallas_call(
        functools.partial(_conv_mask_sigmoid_kernel, C=C),
        out_shape=jax.ShapeDtypeStruct((N, 1, S_pad), jnp.float32),
        grid=(N, S_pad // TL),
        in_specs=[pl.BlockSpec((1, C, TL), lambda i, j: (i, 0, j)),
                  pl.BlockSpec(memory_space=pltpu.MemorySpace.SMEM)],
        out_specs=pl.BlockSpec((1, 1, TL), lambda i, j: (i, 0, j)),
        compiler_params=pltpu.CompilerParams(
            dimension_semantics=("parallel", "parallel"), vmem_limit_bytes=vlim),
    )(xr, w_vec)
    return out[:, :, :S].reshape(N, 1, D, H, W)


# ------------------------ pure-JAX references (self-check) ------------------

def _conv1_reference(x_ncdhw, w_conv1, gamma, beta, mean, var, eps=1e-5):
    x = jnp.transpose(x_ncdhw, (0, 2, 3, 4, 1))
    N, D, H, W, C = x.shape
    Ho = (H - 1) // 2 + 1
    Wo = (W - 1) // 2 + 1
    xp = jnp.pad(x, ((0, 0), (0, 0), (3, 3), (3, 3), (0, 0)))
    cols = []
    for kh in range(7):
        for kw in range(7):
            cols.append(xp[:, :, kh:kh + 2 * Ho:2, kw:kw + 2 * Wo:2, :])
    patches = jnp.concatenate(cols, axis=-1).reshape(-1, 49 * C)
    w_mat = jnp.transpose(w_conv1[:, :, 0, :, :], (2, 3, 1, 0)).reshape(49 * C, 64)
    y = patches @ w_mat
    scale = gamma / jnp.sqrt(var + eps)
    y = jnp.maximum(y * scale + (beta - mean * scale), 0.0)
    return y.reshape(N, D, Ho, Wo, 64)


def _maxpool233_reference(x):
    N, D, H, W, C = x.shape
    Do = (D - 2) // 2 + 1
    Po = (H - 1) // 2 + 1
    Qo = (W - 1) // 2 + 1
    xp = jnp.pad(x, ((0, 0), (0, 0), (1, 1), (1, 1), (0, 0)), constant_values=_NEG)
    wins = []
    for kd in range(2):
        for kh in range(3):
            for kw in range(3):
                wins.append(xp[:, kd:kd + 2 * Do:2,
                               kh:kh + 2 * Po:2, kw:kw + 2 * Qo:2, :])
    return jnp.max(jnp.stack(wins, axis=0), axis=0)


def _maxpool211_reference(x):
    D = x.shape[1]
    Do = (D - 2) // 2 + 1
    return jnp.maximum(x[:, 0:2 * Do:2], x[:, 1:2 * Do:2])


def _conv_mask_reference(x_ncdhw, w_mask):
    y = jnp.einsum('ncdhw,oc->nodhw', x_ncdhw, w_mask[:, :, 0, 0, 0])
    return jax.nn.sigmoid(y)


# ------------------------------------ main ---------------------------------

if __name__ == "__main__":
    key = jax.random.PRNGKey(0)
    k_w1, k_wm, k_x, k_tail = jax.random.split(key, 4)

    # conv1_my hard-codes in_channels=7 regardless of `modality`.
    N, Cin, D, H, W = 2, 7, 4, 16, 16
    x = jax.random.normal(k_x, (N, Cin, D, H, W), jnp.float32)         # NCDHW (PyTorch)

    # Parameter init mirroring the module __init__ (Conv3d: normal(0, sqrt(2/n)),
    # n = k[0]*k[1]*out_channels; BatchNorm3d: weight=1, bias=0; eval-mode stats).
    w_conv1 = math.sqrt(2.0 / (1 * 7 * 64)) * jax.random.normal(
        k_w1, (64, 7, 1, 7, 7), jnp.float32)
    w_mask = math.sqrt(2.0 / (1 * 1 * 1)) * jax.random.normal(
        k_wm, (1, 16, 1, 1, 1), jnp.float32)
    gamma = jnp.ones((64,), jnp.float32)
    beta = jnp.zeros((64,), jnp.float32)
    run_mean = jnp.zeros((64,), jnp.float32)
    run_var = jnp.ones((64,), jnp.float32)

    Ho = (H - 1) // 2 + 1
    Wo = (W - 1) // 2 + 1

    # ---- head: x = relu(bn1(conv1_my(x))); x = maxpool(x) ----
    head_pr = conv1_bn_relu_pool_ready(x, w_conv1, gamma, beta, run_mean, run_var)
    fea = conv_features_from_pool_ready(head_pr, N, D, Ho, Wo).astype(jnp.float32)
    fea_ref = _conv1_reference(x, w_conv1, gamma, beta, run_mean, run_var)
    # bf16 matmul inputs + bf16 feature map give ~1e-2 scale quantization noise.
    assert float(jnp.max(jnp.abs(fea - fea_ref))) < 0.25, "conv1+bn+relu mismatch"

    pooled = maxpool_233_from_pool_ready(head_pr, N, D)                # (2,2,4,4,64) bf16
    pooled_ref = _maxpool233_reference(fea)
    assert float(jnp.max(jnp.abs(pooled.astype(jnp.float32) - pooled_ref))) < 1e-5, \
        "maxpool(2,3,3) mismatch"

    # TODO(synk): layer1/layer2/layer3 (`block`) and skip3/skip2/skip1/skip0/skipf
    # (`skip_connection`) are external classes not defined in network_seg.py —
    # untranslatable here. maxpool_2 (applied after layer1/layer2 in the real
    # forward) is exercised on the head features instead.
    pooled2 = maxpool_211(pooled)                                      # (2,1,4,4,64)
    p2_ref = _maxpool211_reference(pooled)
    assert float(jnp.max(jnp.abs(pooled2.astype(jnp.float32)
                                 - p2_ref.astype(jnp.float32)))) < 1e-5, \
        "maxpool(2,1,1) mismatch"

    # ---- tail: seg_map = sigmoid(conv_mask(x)), x is the 16-channel skipf output ----
    x16 = jax.random.normal(k_tail, (N, 16, 2, 8, 8), jnp.float32)     # placeholder NCDHW
    seg_map = conv_mask_sigmoid(x16, w_mask)                           # (2,1,2,8,8)
    assert float(jnp.max(jnp.abs(seg_map - _conv_mask_reference(x16, w_mask)))) < 1e-5, \
        "conv_mask+sigmoid mismatch"

    jax.block_until_ready((head_pr, fea, pooled, pooled2, seg_map))
    assert fea.shape == (N, D, Ho, Wo, 64)
    assert pooled.shape == (N, D // 2, Ho // 2, Wo // 2, 64)
    assert pooled2.shape == (N, 1, Ho // 2, Wo // 2, 64)
    assert seg_map.shape == (N, 1, 2, 8, 8)
    print("KERNEL_OK")
</pallas_src>

<mosaic_0001>
module attributes {stable_mosaic.version = 11 : i64} {
  func.func @_conv1_bn_relu_pool_ready_kernel(%arg0: i32, %arg1: memref<4x11x11x32xbf16, #tpu.memory_space<vmem>>, %arg2: memref<512x64xbf16, #tpu.memory_space<vmem>>, %arg3: memref<1x64xf32, #tpu.memory_space<vmem>>, %arg4: memref<4x4x5x5x64xbf16, #tpu.memory_space<vmem>>, %arg5: memref<256x512xbf16, #tpu.memory_space<vmem>>) attributes {dimension_semantics = [#tpu.dimension_semantics<parallel>], iteration_bounds = array<i64: 2>, scalar_prefetch = 0 : i64, scratch_operands = 1 : i64, tpu.core_type = #tpu.core_type<tc>, window_params = [{transform_indices = @transform_0, window_bounds = array<i64: 4, 11, 11, 32>}, {pipeline_mode = #tpu.pipeline_mode<synchronous>, transform_indices = @transform_1, window_bounds = array<i64: 512, 64>}, {pipeline_mode = #tpu.pipeline_mode<synchronous>, transform_indices = @transform_2, window_bounds = array<i64: 1, 64>}, {transform_indices = @transform_3, window_bounds = array<i64: 4, 4, 5, 5, 64>}]} {
    %c0 = arith.constant 0 : index
    %c0_0 = arith.constant 0 : index
    %c0_1 = arith.constant 0 : index
    %c0_2 = arith.constant 0 : index
    %0 = vector.load %arg1[%c0, %c0_0, %c0_1, %c0_2] : memref<4x11x11x32xbf16, #tpu.memory_space<vmem>>, vector<4x8x8x32xbf16>
    %1 = vector.shape_cast %0 : vector<4x8x8x32xbf16> to vector<256x32xbf16>
    %c0_3 = arith.constant 0 : index
    %c0_4 = arith.constant 0 : index
    %2 = vector.load %arg5[%c0_3, %c0_4] : memref<256x512xbf16, #tpu.memory_space<vmem>>, vector<256x32xbf16>
    tpu.vector_store %arg5[%c0_3, %c0_4], %1 {strides = array<i32>} : memref<256x512xbf16, #tpu.memory_space<vmem>>, vector<256x32xbf16>,
    %c0_5 = arith.constant 0 : index
    %c0_6 = arith.constant 0 : index
    %c1 = arith.constant 1 : index
    %c0_7 = arith.constant 0 : index
    %3 = vector.load %arg1[%c0_5, %c0_6, %c1, %c0_7] : memref<4x11x11x32xbf16, #tpu.memory_space<vmem>>, vector<4x8x8x32xbf16>
    %4 = vector.shape_cast %3 : vector<4x8x8x32xbf16> to vector<256x32xbf16>
    %c0_8 = arith.constant 0 : index
    %c32 = arith.constant 32 : index
    %5 = vector.load %arg5[%c0_8, %c32] : memref<256x512xbf16, #tpu.memory_space<vmem>>, vector<256x32xbf16>
    tpu.vector_store %arg5[%c0_8, %c32], %4 {strides = array<i32>} : memref<256x512xbf16, #tpu.memory_space<vmem>>, vector<256x32xbf16>,
    %c0_9 = arith.constant 0 : index
    %c0_10 = arith.constant 0 : index
    %c2 = arith.constant 2 : index
    %c0_11 = arith.constant 0 : index
    %6 = vector.load %arg1[%c0_9, %c0_10, %c2, %c0_11] : memref<4x11x11x32xbf16, #tpu.memory_space<vmem>>, vector<4x8x8x32xbf16>
    %7 = vector.shape_cast %6 : vector<4x8x8x32xbf16> to vector<256x32xbf16>
    %c0_12 = arith.constant 0 : index
    %c64 = arith.constant 64 : index
    %8 = vector.load %arg5[%c0_12, %c64] : memref<256x512xbf16, #tpu.memory_space<vmem>>, vector<256x32xbf16>
    tpu.vector_store %arg5[%c0_12, %c64], %7 {strides = array<i32>} : memref<256x512xbf16, #tpu.memory_space<vmem>>, vector<256x32xbf16>,
    %c0_13 = arith.constant 0 : index
    %c0_14 = arith.constant 0 : index
    %c3 = arith.constant 3 : index
    %c0_15 = arith.constant 0 : index
    %9 = vector.load %arg1[%c0_13, %c0_14, %c3, %c0_15] : memref<4x11x11x32xbf16, #tpu.memory_space<vmem>>, vector<4x8x8x32xbf16>
    %10 = vector.shape_cast %9 : vector<4x8x8x32xbf16> to vector<256x32xbf16>
    %c0_16 = arith.constant 0 : index
    %c96 = arith.constant 96 : index
    %11 = vector.load %arg5[%c0_16, %c96] : memref<256x512xbf16, #tpu.memory_space<vmem>>, vector<256x32xbf16>
    tpu.vector_store %arg5[%c0_16, %c96], %10 {strides = array<i32>} : memref<256x512xbf16, #tpu.memory_space<vmem>>, vector<256x32xbf16>,
    %c0_17 = arith.constant 0 : index
    %c1_18 = arith.constant 1 : index
    %c0_19 = arith.constant 0 : index
    %c0_20 = arith.constant 0 : index
    %12 = vector.load %arg1[%c0_17, %c1_18, %c0_19, %c0_20] : memref<4x11x11x32xbf16, #tpu.memory_space<vmem>>, vector<4x8x8x32xbf16>
    %13 = vector.shape_cast %12 : vector<4x8x8x32xbf16> to vector<256x32xbf16>
    %c0_21 = arith.constant 0 : index
    %c128 = arith.constant 128 : index
    %14 = vector.load %arg5[%c0_21, %c128] : memref<256x512xbf16, #tpu.memory_space<vmem>>, vector<256x32xbf16>
    tpu.vector_store %arg5[%c0_21, %c128], %13 {strides = array<i32>} : memref<256x512xbf16, #tpu.memory_space<vmem>>, vector<256x32xbf16>,
    %c0_22 = arith.constant 0 : index
    %c1_23 = arith.constant 1 : index
    %c1_24 = arith.constant 1 : index
    %c0_25 = arith.constant 0 : index
    %15 = vector.load %arg1[%c0_22, %c1_23, %c1_24, %c0_25] : memref<4x11x11x32xbf16, #tpu.memory_space<vmem>>, vector<4x8x8x32xbf16>
    %16 = vector.shape_cast %15 : vector<4x8x8x32xbf16> to vector<256x32xbf16>
    %c0_26 = arith.constant 0 : index
    %c160 = arith.constant 160 : index
    %17 = vector.load %arg5[%c0_26, %c160] : memref<256x512xbf16, #tpu.memory_space<vmem>>, vector<256x32xbf16>
    tpu.vector_store %arg5[%c0_26, %c160], %16 {strides = array<i32>} : memref<256x512xbf16, #tpu.memory_space<vmem>>, vector<256x32xbf16>,
    %c0_27 = arith.constant 0 : index
    %c1_28 = arith.constant 1 : index
    %c2_29 = arith.constant 2 : index
    %c0_30 = arith.constant 0 : index
    %18 = vector.load %arg1[%c0_27, %c1_28, %c2_29, %c0_30] : memref<4x11x11x32xbf16, #tpu.memory_space<vmem>>, vector<4x8x8x32xbf16>
    %19 = vector.shape_cast %18 : vector<4x8x8x32xbf16> to vector<256x32xbf16>
    %c0_31 = arith.constant 0 : index
    %c192 = arith.constant 192 : index
    %20 = vector.load %arg5[%c0_31, %c192] : memref<256x512xbf16, #tpu.memory_space<vmem>>, vector<256x32xbf16>
    tpu.vector_store %arg5[%c0_31, %c192], %19 {strides = array<i32>} : memref<256x512xbf16, #tpu.memory_space<vmem>>, vector<256x32xbf16>,
    %c0_32 = arith.constant 0 : index
    %c1_33 = arith.constant 1 : index
    %c3_34 = arith.constant 3 : index
    %c0_35 = arith.constant 0 : index
    %21 = vector.load %arg1[%c0_32, %c1_33, %c3_34, %c0_35] : memref<4x11x11x32xbf16, #tpu.memory_space<vmem>>, vector<4x8x8x32xbf16>
    %22 = vector.shape_cast %21 : vector<4x8x8x32xbf16> to vector<256x32xbf16>
    %c0_36 = arith.constant 0 : index
    %c224 = arith.constant 224 : index
    %23 = vector.load %arg5[%c0_36, %c224] : memref<256x512xbf16, #tpu.memory_space<vmem>>, vector<256x32xbf16>
    tpu.vector_store %arg5[%c0_36, %c224], %22 {strides = array<i32>} : memref<256x512xbf16, #tpu.memory_space<vmem>>, vector<256x32xbf16>,
    %c0_37 = arith.constant 0 : index
    %c2_38 = arith.constant 2 : index
    %c0_39 = arith.constant 0 : index
    %c0_40 = arith.constant 0 : index
    %24 = vector.load %arg1[%c0_37, %c2_38, %c0_39, %c0_40] : memref<4x11x11x32xbf16, #tpu.memory_space<vmem>>, vector<4x8x8x32xbf16>
    %25 = vector.shape_cast %24 : vector<4x8x8x32xbf16> to vector<256x32xbf16>
    %c0_41 = arith.constant 0 : index
    %c256 = arith.constant 256 : index
    %26 = vector.load %arg5[%c0_41, %c256] : memref<256x512xbf16, #tpu.memory_space<vmem>>, vector<256x32xbf16>
    tpu.vector_store %arg5[%c0_41, %c256], %25 {strides = array<i32>} : memref<256x512xbf16, #tpu.memory_space<vmem>>, vector<256x32xbf16>,
    %c0_42 = arith.constant 0 : index
    %c2_43 = arith.constant 2 : index
    %c1_44 = arith.constant 1 : index
    %c0_45 = arith.constant 0 : index
    %27 = vector.load %arg1[%c0_42, %c2_43, %c1_44, %c0_45] : memref<4x11x11x32xbf16, #tpu.memory_space<vmem>>, vector<4x8x8x32xbf16>
    %28 = vector.shape_cast %27 : vector<4x8x8x32xbf16> to vector<256x32xbf16>
    %c0_46 = arith.constant 0 : index
    %c288 = arith.constant 288 : index
    %29 = vector.load %arg5[%c0_46, %c288] : memref<256x512xbf16, #tpu.memory_space<vmem>>, vector<256x32xbf16>
    tpu.vector_store %arg5[%c0_46, %c288], %28 {strides = array<i32>} : memref<256x512xbf16, #tpu.memory_space<vmem>>, vector<256x32xbf16>,
    %c0_47 = arith.constant 0 : index
    %c2_48 = arith.constant 2 : index
    %c2_49 = arith.constant 2 : index
    %c0_50 = arith.constant 0 : index
    %30 = vector.load %arg1[%c0_47, %c2_48, %c2_49, %c0_50] : memref<4x11x11x32xbf16, #tpu.memory_space<vmem>>, vector<4x8x8x32xbf16>
    %31 = vector.shape_cast %30 : vector<4x8x8x32xbf16> to vector<256x32xbf16>
    %c0_51 = arith.constant 0 : index
    %c320 = arith.constant 320 : index
    %32 = vector.load %arg5[%c0_51, %c320] : memref<256x512xbf16, #tpu.memory_space<vmem>>, vector<256x32xbf16>
    tpu.vector_store %arg5[%c0_51, %c320], %31 {strides = array<i32>} : memref<256x512xbf16, #tpu.memory_space<vmem>>, vector<256x32xbf16>,
    %c0_52 = arith.constant 0 : index
    %c2_53 = arith.constant 2 : index
    %c3_54 = arith.constant 3 : index
    %c0_55 = arith.constant 0 : index
    %33 = vector.load %arg1[%c0_52, %c2_53, %c3_54, %c0_55] : memref<4x11x11x32xbf16, #tpu.memory_space<vmem>>, vector<4x8x8x32xbf16>
    %34 = vector.shape_cast %33 : vector<4x8x8x32xbf16> to vector<256x32xbf16>
    %c0_56 = arith.constant 0 : index
    %c352 = arith.constant 352 : index
    %35 = vector.load %arg5[%c0_56, %c352] : memref<256x512xbf16, #tpu.memory_space<vmem>>, vector<256x32xbf16>
    tpu.vector_store %arg5[%c0_56, %c352], %34 {strides = array<i32>} : memref<256x512xbf16, #tpu.memory_space<vmem>>, vector<256x32xbf16>,
    %c0_57 = arith.constant 0 : index
    %c3_58 = arith.constant 3 : index
    %c0_59 = arith.constant 0 : index
    %c0_60 = arith.constant 0 : index
    %36 = vector.load %arg1[%c0_57, %c3_58, %c0_59, %c0_60] : memref<4x11x11x32xbf16, #tpu.memory_space<vmem>>, vector<4x8x8x32xbf16>
    %37 = vector.shape_cast %36 : vector<4x8x8x32xbf16> to vector<256x32xbf16>
    %c0_61 = arith.constant 0 : index
    %c384 = arith.constant 384 : index
    %38 = vector.load %arg5[%c0_61, %c384] : memref<256x512xbf16, #tpu.memory_space<vmem>>, vector<256x32xbf16>
    tpu.vector_store %arg5[%c0_61, %c384], %37 {strides = array<i32>} : memref<256x512xbf16, #tpu.memory_space<vmem>>, vector<256x32xbf16>,
    %c0_62 = arith.constant 0 : index
    %c3_63 = arith.constant 3 : index
    %c1_64 = arith.constant 1 : index
    %c0_65 = arith.constant 0 : index
    %39 = vector.load %arg1[%c0_62, %c3_63, %c1_64, %c0_65] : memref<4x11x11x32xbf16, #tpu.memory_space<vmem>>, vector<4x8x8x32xbf16>
    %40 = vector.shape_cast %39 : vector<4x8x8x32xbf16> to vector<256x32xbf16>
    %c0_66 = arith.constant 0 : index
    %c416 = arith.constant 416 : index
    %41 = vector.load %arg5[%c0_66, %c416] : memref<256x512xbf16, #tpu.memory_space<vmem>>, vector<256x32xbf16>
    tpu.vector_store %arg5[%c0_66, %c416], %40 {strides = array<i32>} : memref<256x512xbf16, #tpu.memory_space<vmem>>, vector<256x32xbf16>,
    %c0_67 = arith.constant 0 : index
    %c3_68 = arith.constant 3 : index
    %c2_69 = arith.constant 2 : index
    %c0_70 = arith.constant 0 : index
    %42 = vector.load %arg1[%c0_67, %c3_68, %c2_69, %c0_70] : memref<4x11x11x32xbf16, #tpu.memory_space<vmem>>, vector<4x8x8x32xbf16>
    %43 = vector.shape_cast %42 : vector<4x8x8x32xbf16> to vector<256x32xbf16>
    %c0_71 = arith.constant 0 : index
    %c448 = arith.constant 448 : index
    %44 = vector.load %arg5[%c0_71, %c448] : memref<256x512xbf16, #tpu.memory_space<vmem>>, vector<256x32xbf16>
    tpu.vector_store %arg5[%c0_71, %c448], %43 {strides = array<i32>} : memref<256x512xbf16, #tpu.memory_space<vmem>>, vector<256x32xbf16>,
    %c0_72 = arith.constant 0 : index
    %c3_73 = arith.constant 3 : index
    %c3_74 = arith.constant 3 : index
    %c0_75 = arith.constant 0 : index
    %45 = vector.load %arg1[%c0_72, %c3_73, %c3_74, %c0_75] : memref<4x11x11x32xbf16, #tpu.memory_space<vmem>>, vector<4x8x8x32xbf16>
    %46 = vector.shape_cast %45 : vector<4x8x8x32xbf16> to vector<256x32xbf16>
    %c0_76 = arith.constant 0 : index
    %c480 = arith.constant 480 : index
    %47 = vector.load %arg5[%c0_76, %c480] : memref<256x512xbf16, #tpu.memory_space<vmem>>, vector<256x32xbf16>
    tpu.vector_store %arg5[%c0_76, %c480], %46 {strides = array<i32>} : memref<256x512xbf16, #tpu.memory_space<vmem>>, vector<256x32xbf16>,
    %c0_77 = arith.constant 0 : index
    %c0_78 = arith.constant 0 : index
    %48 = vector.load %arg5[%c0_77, %c0_78] : memref<256x512xbf16, #tpu.memory_space<vmem>>, vector<256x512xbf16>
    %c0_79 = arith.constant 0 : index
    %c0_80 = arith.constant 0 : index
    %49 = vector.load %arg2[%c0_79, %c0_80] : memref<512x64xbf16, #tpu.memory_space<vmem>>, vector<512x64xbf16>
    %cst = arith.constant dense<0.000000e+00> : vector<256x64xf32>
    %50 = tpu.matmul %48, %49, %cst {dimension_numbers = #tpu.dot_dimension_numbers<[1], [0], [0], [1], [0, 0, 1, 1], [], []>} : vector<256x512xbf16>, vector<512x64xbf16>, vector<256x64xf32> -> vector<256x64xf32>
    %c0_81 = arith.constant 0 : index
    %c0_82 = arith.constant 0 : index
    %51 = vector.load %arg3[%c0_81, %c0_82] : memref<1x64xf32, #tpu.memory_space<vmem>>, vector<1x64xf32>
    %52 = vector.broadcast %51 : vector<1x64xf32> to vector<256x64xf32>
    %53 = arith.addf %50, %52 : vector<256x64xf32>
    %cst_83 = arith.constant 0.000000e+00 : f32
    %54 = vector.broadcast %cst_83 : f32 to vector<256x64xf32>
    %55 = arith.maximumf %53, %54 : vector<256x64xf32>
    %56 = vector.shape_cast %55 : vector<256x64xf32> to vector<4x8x8x64xf32>
    %cst_84 = arith.constant 0.000000e+00 : bf16
    %57 = vector.broadcast %cst_84 : bf16 to vector<4x4x5x5x64xbf16>
    %c0_85 = arith.constant 0 : index
    %c0_86 = arith.constant 0 : index
    %c0_87 = arith.constant 0 : index
    %c0_88 = arith.constant 0 : index
    %c0_89 = arith.constant 0 : index
    %58 = vector.load %arg4[%c0_85, %c0_86, %c0_87, %c0_88, %c0_89] : memref<4x4x5x5x64xbf16, #tpu.memory_space<vmem>>, vector<4x4x5x5x64xbf16>
    tpu.vector_store %arg4[%c0_85, %c0_86, %c0_87, %c0_88, %c0_89], %57 {strides = array<i32>} : memref<4x4x5x5x64xbf16, #tpu.memory_space<vmem>>, vector<4x4x5x5x64xbf16>,
    %59 = vector.shape_cast %56 : vector<4x8x8x64xf32> to vector<4x4x2x8x64xf32>
    %60 = vector.extract_strided_slice %59 {offsets = [0, 0, 0, 0, 0], sizes = [4, 4, 1, 8, 64], strides = [1, 1, 1, 1, 1]} : vector<4x4x2x8x64xf32> to vector<4x4x1x8x64xf32>
    %61 = vector.shape_cast %60 : vector<4x4x1x8x64xf32> to vector<4x4x8x64xf32>
    %62 = vector.shape_cast %61 : vector<4x4x8x64xf32> to vector<4x4x4x2x64xf32>
    %63 = vector.extract_strided_slice %62 {offsets = [0, 0, 0, 0, 0], sizes = [4, 4, 4, 1, 64], strides = [1, 1, 1, 1, 1]} : vector<4x4x4x2x64xf32> to vector<4x4x4x1x64xf32>
    %64 = vector.shape_cast %63 : vector<4x4x4x1x64xf32> to vector<4x4x4x64xf32>
    %65 = arith.truncf %64 : vector<4x4x4x64xf32> to vector<4x4x4x64xbf16>
    %c0_90 = arith.constant 0 : index
    %c3_91 = arith.constant 3 : index
    %c0_92 = arith.constant 0 : index
    %c0_93 = arith.constant 0 : index
    %c0_94 = arith.constant 0 : index
    %66 = vector.load %arg4[%c0_90, %c3_91, %c0_92, %c0_93, %c0_94] : memref<4x4x5x5x64xbf16, #tpu.memory_space<vmem>>, vector<4x1x4x4x64xbf16>
    %67 = vector.shape_cast %66 : vector<4x1x4x4x64xbf16> to vector<4x4x4x64xbf16>
    %68 = vector.shape_cast %65 : vector<4x4x4x64xbf16> to vector<4x1x4x4x64xbf16>
    tpu.vector_store %arg4[%c0_90, %c3_91, %c0_92, %c0_93, %c0_94], %68 {strides = array<i32>} : memref<4x4x5x5x64xbf16, #tpu.memory_space<vmem>>, vector<4x1x4x4x64xbf16>,
    %69 = vector.extract_strided_slice %62 {offsets = [0, 0, 0, 1, 0], sizes = [4, 4, 4, 1, 64], strides = [1, 1, 1, 1, 1]} : vector<4x4x4x2x64xf32> to vector<4x4x4x1x64xf32>
    %70 = vector.shape_cast %69 : vector<4x4x4x1x64xf32> to vector<4x4x4x64xf32>
    %71 = arith.truncf %70 : vector<4x4x4x64xf32> to vector<4x4x4x64xbf16>
    %c0_95 = arith.constant 0 : index
    %c2_96 = arith.constant 2 : index
    %c0_97 = arith.constant 0 : index
    %c1_98 = arith.constant 1 : index
    %c0_99 = arith.constant 0 : index
    %72 = vector.load %arg4[%c0_95, %c2_96, %c0_97, %c1_98, %c0_99] : memref<4x4x5x5x64xbf16, #tpu.memory_space<vmem>>, vector<4x1x4x4x64xbf16>
    %73 = vector.shape_cast %72 : vector<4x1x4x4x64xbf16> to vector<4x4x4x64xbf16>
    %74 = vector.shape_cast %71 : vector<4x4x4x64xbf16> to vector<4x1x4x4x64xbf16>
    tpu.vector_store %arg4[%c0_95, %c2_96, %c0_97, %c1_98, %c0_99], %74 {strides = array<i32>} : memref<4x4x5x5x64xbf16, #tpu.memory_space<vmem>>, vector<4x1x4x4x64xbf16>,
    %75 = vector.extract_strided_slice %59 {offsets = [0, 0, 1, 0, 0], sizes = [4, 4, 1, 8, 64], strides = [1, 1, 1, 1, 1]} : vector<4x4x2x8x64xf32> to vector<4x4x1x8x64xf32>
    %76 = vector.shape_cast %75 : vector<4x4x1x8x64xf32> to vector<4x4x8x64xf32>
    %77 = vector.shape_cast %76 : vector<4x4x8x64xf32> to vector<4x4x4x2x64xf32>
    %78 = vector.extract_strided_slice %77 {offsets = [0, 0, 0, 0, 0], sizes = [4, 4, 4, 1, 64], strides = [1, 1, 1, 1, 1]} : vector<4x4x4x2x64xf32> to vector<4x4x4x1x64xf32>
    %79 = vector.shape_cast %78 : vector<4x4x4x1x64xf32> to vector<4x4x4x64xf32>
    %80 = arith.truncf %79 : vector<4x4x4x64xf32> to vector<4x4x4x64xbf16>
    %c0_100 = arith.constant 0 : index
    %c1_101 = arith.constant 1 : index
    %c1_102 = arith.constant 1 : index
    %c0_103 = arith.constant 0 : index
    %c0_104 = arith.constant 0 : index
    %81 = vector.load %arg4[%c0_100, %c1_101, %c1_102, %c0_103, %c0_104] : memref<4x4x5x5x64xbf16, #tpu.memory_space<vmem>>, vector<4x1x4x4x64xbf16>
    %82 = vector.shape_cast %81 : vector<4x1x4x4x64xbf16> to vector<4x4x4x64xbf16>
    %83 = vector.shape_cast %80 : vector<4x4x4x64xbf16> to vector<4x1x4x4x64xbf16>
    tpu.vector_store %arg4[%c0_100, %c1_101, %c1_102, %c0_103, %c0_104], %83 {strides = array<i32>} : memref<4x4x5x5x64xbf16, #tpu.memory_space<vmem>>, vector<4x1x4x4x64xbf16>,
    %84 = vector.extract_strided_slice %77 {offsets = [0, 0, 0, 1, 0], sizes = [4, 4, 4, 1, 64], strides = [1, 1, 1, 1, 1]} : vector<4x4x4x2x64xf32> to vector<4x4x4x1x64xf32>
    %85 = vector.shape_cast %84 : vector<4x4x4x1x64xf32> to vector<4x4x4x64xf32>
    %86 = arith.truncf %85 : vector<4x4x4x64xf32> to vector<4x4x4x64xbf16>
    %c0_105 = arith.constant 0 : index
    %c0_106 = arith.constant 0 : index
    %c1_107 = arith.constant 1 : index
    %c1_108 = arith.constant 1 : index
    %c0_109 = arith.constant 0 : index
    %87 = vector.load %arg4[%c0_105, %c0_106, %c1_107, %c1_108, %c0_109] : memref<4x4x5x5x64xbf16, #tpu.memory_space<vmem>>, vector<4x1x4x4x64xbf16>
    %88 = vector.shape_cast %87 : vector<4x1x4x4x64xbf16> to vector<4x4x4x64xbf16>
    %89 = vector.shape_cast %86 : vector<4x4x4x64xbf16> to vector<4x1x4x4x64xbf16>
    tpu.vector_store %arg4[%c0_105, %c0_106, %c1_107, %c1_108, %c0_109], %89 {strides = array<i32>} : memref<4x4x5x5x64xbf16, #tpu.memory_space<vmem>>, vector<4x1x4x4x64xbf16>,
    return
  }
  func.func @transform_0(%arg0: i32) -> (i32, i32, i32, i32) {
    %c0_i32 = arith.constant 0 : i32
    %c0_i32_0 = arith.constant 0 : i32
    %c0_i32_1 = arith.constant 0 : i32
    %c0_i32_2 = arith.constant 0 : i32
    return %arg0, %c0_i32, %c0_i32_0, %c0_i32_1 : i32, i32, i32, i32
  }
  func.func @transform_1(%arg0: i32) -> (i32, i32) {
    %c0_i32 = arith.constant 0 : i32
    %c0_i32_0 = arith.constant 0 : i32
    %c0_i32_1 = arith.constant 0 : i32
    return %c0_i32, %c0_i32_0 : i32, i32
  }
  func.func @transform_2(%arg0: i32) -> (i32, i32) {
    %c0_i32 = arith.constant 0 : i32
    %c0_i32_0 = arith.constant 0 : i32
    %c0_i32_1 = arith.constant 0 : i32
    return %c0_i32, %c0_i32_0 : i32, i32
  }
  func.func @transform_3(%arg0: i32) -> (i32, i32, i32, i32, i32) {
    %c0_i32 = arith.constant 0 : i32
    %c0_i32_0 = arith.constant 0 : i32
    %c0_i32_1 = arith.constant 0 : i32
    %c0_i32_2 = arith.constant 0 : i32
    %c0_i32_3 = arith.constant 0 : i32
    return %arg0, %c0_i32, %c0_i32_0, %c0_i32_1, %c0_i32_2 : i32, i32, i32, i32, i32
  }
}

</mosaic_0001>

<bundles_post_ra>
// kernel: tpu_custom_call.1
= control target key start
LH: loop header
LB: loop body
LE: loop exit
PB: predicated region body
PF: predicated region fallthrough
CT: control target
= control target key end

     0   :  { %s11550_s12 = smov 0   ;;  %s16195_s0 = inlined_call_operand.vmem [shape: bf16[8,11,11,32], index: 0, kind: input, shape index: {}]   ;;  %s16196_s1 = inlined_call_operand.vmem [shape: bf16[512,64], index: 1, kind: input, shape index: {}]   ;;  %s16197_s2 = inlined_call_operand.vmem [shape: f32[1,64], index: 2, kind: input, shape index: {}]   ;;  %s16198_s3 = inlined_call_operand.vmem [shape: bf16[8,4,5,5,64], index: 3, kind: output, shape index: {}]  }
   0x1 LB: > { %s10115_s13 = sadd.s32 4294967295, %s11525_s12   ;;  %p10119_p0 = scmp.ge.s32.totalorder %s11525_s12, 1  ;;  %s11525_s12 = sphi %s11550_s12, %s13_s12  }
   0x2   : > { %p139_p1 = scmp.lt.s32.totalorder %s11525_s12, 3 }
   0x4   : > { %p140_p2 = pnand %p10119_p0, %p139_p1 }
   0x5   : > { %s10120_s14 = sshll.u32 (!%p140_p2), %s10115_s13, 2  ;;  %s11527_s19 = smov (!%p140_p2), 32  }
   0x6   : > { %143 = sbr.rel (%p140_p2) target bundleno = 1390 (0x56e), region = 32  ;;  %p166_p3 = scmp.lt.s32.totalorder (!%p140_p2), %s10120_s14, 7 }
   0x7   : > { %s11528_s20 = smov (!%p140_p2), 64   ;;  %s11529_s21 = smov (!%p140_p2), 96  }
   0xb   : > { %s16210_s14 = smov (!%p166_p3, %s10120_s14), 7  ;;  %vm309_vm0 = vsmask.f32 3328  ;;  %vm310_vm1 = vsmask.f32 7440  ;;  %vm1017_vm3 = vcmask 1042432  }
   0xc   : > { %s11502_s15 = smul.u32 88, %s16210_s14  ;;  %vm11577_vm2 = vmor %vm309_vm0, %vm310_vm1  ;;  %vm1018_vm4 = vcmask 1046532   ;;  %vm212_vm5 = vcmask 257024   ;;  %vm856_vm7 = vcmask 519424   ;;  %vm1341_vm8 = vsmask.f32 2304 }
   0xd   : > { %vm11738_vm6 = vmor %vm1017_vm3, %vm1018_vm4  ;;  %vm1342_vm9 = vsmask.f32 6416  ;;  %vm1244_vm11 = vcmask 781824   ;;  %vm2016_vm12 = vcmask 1044224   ;;  %s11503_s25 = smul.u32 80, %s16210_s14  ;;  %vm8652_vm13 = vcmask 518144  }
   0xe   : > { %s11564_s18 = scalar_lea.vmem %s16195_s0, %s11502_s15  ;;  %vm12136_vm10 = vmor %vm1341_vm8, %vm1342_vm9  ;;  %vm9199_vm15 = vcmask 1041409   ;;  %vm9202_vm0 = vcmask 1042434   ;;  %vm9205_vm1 = vcmask 1043459   ;;  %vm9429_vm3 = vsmask.f32 2306 }
   0xf   : > { %v249_v0 = vld [vmem:[%s11564_s18 + $0x10] sm:$0xf]  ;;  %v250_v1 = vld [vmem:[%s11564_s18 + $0x14] sm:$0x1]  ;;  %v245_v2 = vld [vmem:[%s11564_s18] sm:$0xf]  ;;  %s14770_s27 = scalar_lea.vmem %s16198_s3, %s11503_s25 }
  0x10   : > { %v341_v3 = vshrl.u32 %v249_v0, 16  ;;  %v344_v4 = vshll.u32 %v249_v0, 16  ;;  %v350_v5 = vshll.u32 %v250_v1, 16  ;;  %v246_v6 = vld [vmem:[%s11564_s18 + $0x4] sm:$0x1]  ;;  %v313_v7 = vshrl.u32 %v245_v2, 16  ;;  %vm14787_vm14 = vmand %vm8652_vm13, %vm1341_vm8 }
  0x11   : > { %v316_v8 = vshll.u32 %v245_v2, 16  ;;  %v322_v9 = vshll.u32 %v246_v6, 16  ;;  %v251_v10 = vld [vmem:[%s11564_s18 + $0x18] sm:$0xf]  ;;  %v247_v14 = vld [vmem:[%s11564_s18 + $0x8] sm:$0xf]  ;;  %vm14910_vm9 = vmand %vm8652_vm13, %vm9429_vm3 }
  0x12   : > { %v343_v11 = vrot.slane %v341_v3, 4  ;;  %v346_v12 = vrot.slane %v344_v4, 5  ;;  %v315_v13 = vrot.slane %v313_v7, 4  ;;  %v352_v15 = vrot.slane %v350_v5, 5  ;;  %v252_v17 = vld [vmem:[%s11564_s18 + $0x1c] sm:$0x1] }
  0x13   : > { %v318_v16 = vrot.slane %v316_v8, 5  ;;  %v355_v18 = vshrl.u32 %v251_v10, 16  ;;  %v358_v19 = vshll.u32 %v251_v10, 16  ;;  %v248_v21 = vld [vmem:[%s11564_s18 + $0xc] sm:$0x1]  ;;  %v327_v22 = vshrl.u32 %v247_v14, 16 }
  0x14   : > { %v347_v20 = vor.u32 %v346_v12, %v343_v11  ;;  %v330_v23 = vshll.u32 %v247_v14, 16  ;;  %v259_v24 = vld [vmem:[%s11564_s18 + $0x38] sm:$0xf]  ;;  %v324_v27 = vrot.slane %v322_v9, 5  ;;  %v364_v31 = vshll.u32 %v252_v17, 16 }
  0x15   : > { %v319_v26 = vor.u32 %v318_v16, %v315_v13  ;;  %v357_v28 = vrot.slane %v355_v18, 4  ;;  %v360_v29 = vrot.slane %v358_v19, 5  ;;  %v329_v32 = vrot.slane %v327_v22, 4  ;;  %v257_v34 = vld [vmem:[%s11564_s18 + $0x30] sm:$0xf] }
  0x16   : > { %v348_v30 = vrot.slane %v347_v20, 4  ;;  %v332_v33 = vrot.slane %v330_v23, 5  ;;  %v336_v37 = vshll.u32 %v248_v21, 16  ;;  %v411_v38 = vshrl.u32 %v259_v24, 16  ;;  %v260_v41 = vld [vmem:[%s11564_s18 + $0x3c] sm:$0x1] }
  0x17   : > { %v320_v35 = vrot.slane %v319_v26, 4  ;;  %v361_v36 = vor.u32 %v360_v29, %v357_v28  ;;  %v414_v42 = vshll.u32 %v259_v24, 16  ;;  %v253_v43 = vld [vmem:[%s11564_s18 + $0x20] sm:$0xf]  ;;  %v258_v46 = vld [vmem:[%s11564_s18 + $0x34] sm:$0x1] }
  0x18   : > { %v353_v39 = vsel %vm11577_vm2, %v348_v30, %v352_v15  ;;  %v333_v40 = vor.u32 %v332_v33, %v329_v32  ;;  %v413_v45 = vrot.slane %v411_v38, 4  ;;  %v397_v47 = vshrl.u32 %v257_v34, 16  ;;  %v254_v48 = vld [vmem:[%s11564_s18 + $0x24] sm:$0x1]  ;;  %v265_v53 = vld [vmem:[%s11564_s18 + $0x68] sm:$0xf] }
  0x19   : > { %764 = vrot.lane.b32.xlu1 %v353_v39, %s11527_s19  ;;  %v325_v44 = vsel %vm11577_vm2, %v320_v35, %v324_v27  ;;  %v362_v49 = vrot.slane %v361_v36, 4  ;;  %v366_v50 = vrot.slane %v364_v31, 5  ;;  %v416_v51 = vrot.slane %v414_v42, 5  ;;  %v263_v62 = vld [vmem:[%s11564_s18 + $0x60] sm:$0xf] }
  0x1a   : > { %760 = vrot.lane.b32.xlu0 %v325_v44, %s11527_s19  ;;  %v400_v52 = vshll.u32 %v257_v34, 16  ;;  %v334_v54 = vrot.slane %v333_v40, 4  ;;  %v338_v55 = vrot.slane %v336_v37, 5  ;;  %v399_v56 = vrot.slane %v397_v47, 4  ;;  %v266_v8 = vld [vmem:[%s11564_s18 + $0x6c] sm:$0x1] }
  0x1b   : > { %v369_v57 = vshrl.u32 %v253_v43, 16  ;;  %v420_v58 = vshll.u32 %v260_v41, 16  ;;  %v406_v60 = vshll.u32 %v258_v46, 16  ;;  %v372_v61 = vshll.u32 %v253_v43, 16  ;;  %v255_v10 = vld [vmem:[%s11564_s18 + $0x28] sm:$0xf] }
  0x1c   : > { %v402_v59 = vrot.slane %v400_v52, 5  ;;  %v417_v63 = vor.u32 %v416_v51, %v413_v45  ;;  %v378_v1 = vshll.u32 %v254_v48, 16  ;;  %v453_v2 = vshrl.u32 %v265_v53, 16  ;;  %v256_v15 = vld [vmem:[%s11564_s18 + $0x2c] sm:$0x1] }
  0x1d   : > { %v371_v0 = vrot.slane %v369_v57, 4  ;;  %v367_v3 = vsel %vm11577_vm2, %v362_v49, %v366_v50  ;;  %v374_v5 = vrot.slane %v372_v61, 5  ;;  %v456_v6 = vshll.u32 %v265_v53, 16  ;;  %v264_v19 = vld [vmem:[%s11564_s18 + $0x64] sm:$0x1] }
  0x1e   : > { %v403_v4 = vor.u32 %v402_v59, %v399_v56  ;;  %v339_v7 = vsel %vm11577_vm2, %v334_v54, %v338_v55  ;;  %v439_v9 = vshrl.u32 %v263_v62, 16  ;;  %v380_v12 = vrot.slane %v378_v1, 5  ;;  %v271_v26 = vld [vmem:[%s11564_s18 + $0x80] sm:$0xf]  ;;  %v269_v35 = vld [vmem:[%s11564_s18 + $0x78] sm:$0xf] }
  0x1f   : > { %v375_v11 = vor.u32 %v374_v5, %v371_v0  ;;  %v455_v13 = vrot.slane %v453_v2, 4  ;;  %v458_v14 = vrot.slane %v456_v6, 5  ;;  %v418_v16 = vrot.slane %v417_v63, 4  ;;  %v261_v39 = vld [vmem:[%s11564_s18 + $0x58] sm:$0xf] }
  0x20   : > { %v422_v17 = vrot.slane %v420_v58, 5  ;;  %v408_v18 = vrot.slane %v406_v60, 5  ;;  %v442_v20 = vshll.u32 %v263_v62, 16  ;;  %v404_v21 = vrot.slane %v403_v4, 4  ;;  %v272_v43 = vld [vmem:[%s11564_s18 + $0x84] sm:$0x1] }
  0x21   : > { %766 = vrot.lane.b32.xlu1 %v367_v3, %s11527_s19  ;;  %v376_v22 = vrot.slane %v375_v11, 4  ;;  %v441_v23 = vrot.slane %v439_v9, 4  ;;  %v383_v24 = vshrl.u32 %v255_v10, 16  ;;  %v462_v27 = vshll.u32 %v266_v8, 16  ;;  %v262_v48 = vld [vmem:[%s11564_s18 + $0x5c] sm:$0x1] }
  0x22   : > { %762 = vrot.lane.b32.xlu0 %v339_v7, %s11527_s19  ;;  %v444_v28 = vrot.slane %v442_v20, 5  ;;  %v386_v29 = vshll.u32 %v255_v10, 16  ;;  %v392_v30 = vshll.u32 %v256_v15, 16  ;;  %v459_v32 = vor.u32 %v458_v14, %v455_v13  ;;  %v277_v57 = vld [vmem:[%s11564_s18 + $0xb0] sm:$0xf] }
  0x23   : > { %v381_v31 = vsel %vm11577_vm2, %v376_v22, %v380_v12  ;;  %v448_v33 = vshll.u32 %v264_v19, 16  ;;  %v385_v34 = vrot.slane %v383_v24, 4  ;;  %v495_v37 = vshrl.u32 %v271_v26, 16  ;;  %v270_v63 = vld [vmem:[%s11564_s18 + $0x7c] sm:$0x1] }
  0x24   : > { %768 = vrot.lane.b32.xlu2 %v381_v31, %s11527_s19  ;;  %v388_v36 = vrot.slane %v386_v29, 5  ;;  %v498_v38 = vshll.u32 %v271_v26, 16  ;;  %v423_v40 = vsel %vm11577_vm2, %v418_v16, %v422_v17  ;;  %v409_v41 = vsel %vm11577_vm2, %v404_v21, %v408_v18  ;;  %v275_v2 = vld [vmem:[%s11564_s18 + $0x90] sm:$0xf]  ;;  %v278_v14 = vld [vmem:[%s11564_s18 + $0xb4] sm:$0x1] }
  0x25   : > { %v445_v42 = vor.u32 %v444_v28, %v441_v23  ;;  %v394_v45 = vrot.slane %v392_v30, 5  ;;  %v481_v46 = vshrl.u32 %v269_v35, 16  ;;  %v484_v47 = vshll.u32 %v269_v35, 16  ;;  %v267_v6 = vld [vmem:[%s11564_s18 + $0x70] sm:$0xf] }
  0x26   : > { %v389_v44 = vor.u32 %v388_v36, %v385_v34  ;;  %v460_v49 = vrot.slane %v459_v32, 4  ;;  %v464_v50 = vrot.slane %v462_v27, 5  ;;  %v450_v51 = vrot.slane %v448_v33, 5  ;;  %v268_v15 = vld [vmem:[%s11564_s18 + $0x74] sm:$0x1] }
  0x27   : > { %v425_v52 = vshrl.u32 %v261_v39, 16  ;;  %v497_v54 = vrot.slane %v495_v37, 4  ;;  %v500_v55 = vrot.slane %v498_v38, 5  ;;  %v504_v56 = vshll.u32 %v272_v43, 16  ;;  %v283_v29 = vld [vmem:[%s11564_s18 + $0xc8] sm:$0xf] }
  0x28   : > { %v390_v53 = vrot.slane %v389_v44, 4  ;;  %v446_v58 = vrot.slane %v445_v42, 4  ;;  %v428_v60 = vshll.u32 %v261_v39, 16  ;;  %v434_v61 = vshll.u32 %v262_v48, 16  ;;  %v281_v32 = vld [vmem:[%s11564_s18 + $0xc0] sm:$0xf] }
  0x29   : > { %774 = vrot.lane.b32.xlu1 %v423_v40, %s11527_s19  ;;  %v427_v59 = vrot.slane %v425_v52, 4  ;;  %v483_v0 = vrot.slane %v481_v46, 4  ;;  %v486_v1 = vrot.slane %v484_v47, 5  ;;  %v537_v4 = vshrl.u32 %v277_v57, 16  ;;  %v273_v37 = vld [vmem:[%s11564_s18 + $0x88] sm:$0xf] }
  0x2a   : > { %772 = vrot.lane.b32.xlu0 %v409_v41, %s11527_s19  ;;  %v395_v62 = vsel %vm11577_vm2, %v390_v53, %v394_v45  ;;  %v430_v3 = vrot.slane %v428_v60, 5  ;;  %v540_v5 = vshll.u32 %v277_v57, 16  ;;  %v465_v7 = vsel %vm11577_vm2, %v460_v49, %v464_v50  ;;  %v276_v39 = vld [vmem:[%s11564_s18 + $0x94] sm:$0x1]  ;;  %v274_v53 = vld [vmem:[%s11564_s18 + $0x8c] sm:$0x1] }
  0x2b   : > { %v501_v8 = vor.u32 %v500_v55, %v497_v54  ;;  %v506_v9 = vrot.slane %v504_v56, 5  ;;  %v451_v10 = vsel %vm11577_vm2, %v446_v58, %v450_v51  ;;  %v490_v11 = vshll.u32 %v270_v63, 16  ;;  %v284_v56 = vld [vmem:[%s11564_s18 + $0xcc] sm:$0x1]  ;;  %v282_v60 = vld [vmem:[%s11564_s18 + $0xc4] sm:$0x1] }
  0x2c   : > { %770 = vrot.lane.b32.xlu2 %v395_v62, %s11527_s19  ;;  %v431_v12 = vor.u32 %v430_v3, %v427_v59  ;;  %v436_v13 = vrot.slane %v434_v61, 5  ;;  %v487_v16 = vor.u32 %v486_v1, %v483_v0  ;;  %v523_v17 = vshrl.u32 %v275_v2, 16  ;;  %v289_v62 = vld [vmem:[%s11564_s18 + $0xe0] sm:$0xf]  ;;  %v279_v3 = vld [vmem:[%s11564_s18 + $0xb8] sm:$0xf] }
  0x2d   : > { %v526_v18 = vshll.u32 %v275_v2, 16  ;;  %v467_v19 = vshrl.u32 %v267_v6, 16  ;;  %v539_v21 = vrot.slane %v537_v4, 4  ;;  %v542_v22 = vrot.slane %v540_v5, 5 }
  0x2e   : > { %v432_v20 = vrot.slane %v431_v12, 4  ;;  %v470_v23 = vshll.u32 %v267_v6, 16  ;;  %v502_v24 = vrot.slane %v501_v8, 4  ;;  %v546_v26 = vshll.u32 %v278_v14, 16 }
  0x2f   : > { %v469_v27 = vrot.slane %v467_v19, 4  ;;  %v476_v28 = vshll.u32 %v268_v15, 16  ;;  %v488_v33 = vrot.slane %v487_v16, 4  ;;  %v492_v34 = vrot.slane %v490_v11, 5 }
  0x30   : > { %v437_v30 = vsel %vm11577_vm2, %v432_v20, %v436_v13  ;;  %v472_v31 = vrot.slane %v470_v23, 5  ;;  %v525_v35 = vrot.slane %v523_v17, 4  ;;  %v528_v36 = vrot.slane %v526_v18, 5  ;;  %v290_v20 = vld [vmem:[%s11564_s18 + $0xe4] sm:$0x1] }
  0x31   : > { %780 = vrot.lane.b32.xlu1 %v465_v7, %s11527_s19  ;;  %v543_v38 = vor.u32 %v542_v22, %v539_v21  ;;  %v579_v41 = vshrl.u32 %v283_v29, 16  ;;  %v582_v42 = vshll.u32 %v283_v29, 16  ;;  %v507_v43 = vsel %vm11577_vm2, %v502_v24, %v506_v9  ;;  %v280_v23 = vld [vmem:[%s11564_s18 + $0xbc] sm:$0x1]  ;;  %v285_v29 = vld [vmem:[%s11564_s18 + $0xd0] sm:$0xf] }
  0x32   : > { %778 = vrot.lane.b32.xlu0 %v451_v10, %s11527_s19  ;;  %v473_v40 = vor.u32 %v472_v31, %v469_v27  ;;  %v548_v44 = vrot.slane %v546_v26, 5  ;;  %v478_v45 = vrot.slane %v476_v28, 5  ;;  %v565_v47 = vshrl.u32 %v281_v32, 16  ;;  %v287_v10 = vld [vmem:[%s11564_s18 + $0xd8] sm:$0xf] }
  0x33   : > { %v568_v48 = vshll.u32 %v281_v32, 16  ;;  %v509_v49 = vshrl.u32 %v273_v37, 16  ;;  %v493_v50 = vsel %vm11577_vm2, %v488_v33, %v492_v34  ;;  %v529_v51 = vor.u32 %v528_v36, %v525_v35  ;;  %v288_v33 = vld [vmem:[%s11564_s18 + $0xdc] sm:$0x1] }
  0x34   : > { %776 = vrot.lane.b32.xlu2 %v437_v30, %s11527_s19  ;;  %v474_v46 = vrot.slane %v473_v40, 4  ;;  %v532_v52 = vshll.u32 %v276_v39, 16  ;;  %v512_v54 = vshll.u32 %v273_v37, 16  ;;  %v544_v55 = vrot.slane %v543_v38, 4  ;;  %v295_v38 = vld [vmem:[%s11564_s18 + $0x110] sm:$0xf] }
  0x35   : > { %v581_v57 = vrot.slane %v579_v41, 4  ;;  %v584_v58 = vrot.slane %v582_v42, 5  ;;  %v511_v59 = vrot.slane %v509_v49, 4  ;;  %v567_v0 = vrot.slane %v565_v47, 4 }
  0x36   : > { %v514_v61 = vrot.slane %v512_v54, 5  ;;  %v479_v63 = vsel %vm11577_vm2, %v474_v46, %v478_v45  ;;  %v570_v1 = vrot.slane %v568_v48, 5  ;;  %v518_v2 = vshll.u32 %v274_v53, 16  ;;  %v293_v45 = vld [vmem:[%s11564_s18 + $0x108] sm:$0xf] }
  0x37   : > { %v530_v4 = vrot.slane %v529_v51, 4  ;;  %v534_v5 = vrot.slane %v532_v52, 5  ;;  %v549_v7 = vsel %vm11577_vm2, %v544_v55, %v548_v44  ;;  %v585_v8 = vor.u32 %v584_v58, %v581_v57  ;;  %v286_v53 = vld [vmem:[%s11564_s18 + $0xd4] sm:$0x1] }
  0x38   : > { %v515_v6 = vor.u32 %v514_v61, %v511_v59  ;;  %v588_v9 = vshll.u32 %v284_v56, 16  ;;  %v574_v11 = vshll.u32 %v282_v60, 16  ;;  %v621_v12 = vshrl.u32 %v289_v62, 16  ;;  %v291_v59 = vld [vmem:[%s11564_s18 + $0xe8] sm:$0xf] }
  0x39   : > { %786 = vrot.lane.b32.xlu1 %v507_v43, %s11527_s19  ;;  %v624_v13 = vshll.u32 %v289_v62, 16  ;;  %v551_v14 = vshrl.u32 %v279_v3, 16  ;;  %v571_v15 = vor.u32 %v570_v1, %v567_v0  ;;  %v520_v17 = vrot.slane %v518_v2, 5  ;;  %v301_v1 = vld [vmem:[%s11564_s18 + $0x128] sm:$0xf] }
  0x3a   : > { %784 = vrot.lane.b32.xlu0 %v493_v50, %s11527_s19  ;;  %v516_v16 = vrot.slane %v515_v6, 4  ;;  %v554_v18 = vshll.u32 %v279_v3, 16  ;;  %v535_v19 = vsel %vm11577_vm2, %v530_v4, %v534_v5  ;;  %v607_v21 = vshrl.u32 %v287_v10, 16  ;;  %v296_v3 = vld [vmem:[%s11564_s18 + $0x114] sm:$0x1] }
  0x3b   : > { %v610_v22 = vshll.u32 %v287_v10, 16  ;;  %v553_v24 = vrot.slane %v551_v14, 4  ;;  %v586_v26 = vrot.slane %v585_v8, 4  ;;  %v590_v27 = vrot.slane %v588_v9, 5  ;;  %v294_v8 = vld [vmem:[%s11564_s18 + $0x10c] sm:$0x1] }
  0x3c   : > { %782 = vrot.lane.b32.xlu2 %v479_v63, %s11527_s19  ;;  %v556_v28 = vrot.slane %v554_v18, 5  ;;  %v576_v30 = vrot.slane %v574_v11, 5  ;;  %v623_v31 = vrot.slane %v621_v12, 4  ;;  %v626_v32 = vrot.slane %v624_v13, 5  ;;  %v299_v14 = vld [vmem:[%s11564_s18 + $0x120] sm:$0xf] }
  0x3d   : > { %v572_v34 = vrot.slane %v571_v15, 4  ;;  %v521_v35 = vsel %vm11577_vm2, %v516_v16, %v520_v17  ;;  %v560_v37 = vshll.u32 %v280_v23, 16  ;;  %v609_v39 = vrot.slane %v607_v21, 4  ;;  %v292_v23 = vld [vmem:[%s11564_s18 + $0xec] sm:$0x1] }
  0x3e   : > { %v557_v36 = vor.u32 %v556_v28, %v553_v24  ;;  %v612_v40 = vrot.slane %v610_v22, 5  ;;  %v593_v41 = vshrl.u32 %v285_v29, 16  ;;  %v591_v42 = vsel %vm11577_vm2, %v586_v26, %v590_v27 }
  0x3f   : > { %v630_v43 = vshll.u32 %v290_v20, 16  ;;  %v616_v44 = vshll.u32 %v288_v33, 16  ;;  %v627_v46 = vor.u32 %v626_v32, %v623_v31  ;;  %v663_v47 = vshrl.u32 %v295_v38, 16  ;;  %v302_v33 = vld [vmem:[%s11564_s18 + $0x12c] sm:$0x1] }
  0x40   : > { %v666_v48 = vshll.u32 %v295_v38, 16  ;;  %v596_v49 = vshll.u32 %v285_v29, 16  ;;  %v577_v50 = vsel %vm11577_vm2, %v572_v34, %v576_v30  ;;  %v558_v51 = vrot.slane %v557_v36, 4  ;;  %v297_v29 = vld [vmem:[%s11564_s18 + $0x118] sm:$0xf] }
  0x41   : > { %792 = vrot.lane.b32.xlu1 %v549_v7, %s11527_s19  ;;  %v562_v52 = vrot.slane %v560_v37, 5  ;;  %v595_v54 = vrot.slane %v593_v41, 4  ;;  %v613_v55 = vor.u32 %v612_v40, %v609_v39  ;;  %v649_v56 = vshrl.u32 %v293_v45, 16  ;;  %v307_v38 = vld [vmem:[%s11564_s18 + $0x140] sm:$0xf] }
  0x42   : > { %790 = vrot.lane.b32.xlu0 %v535_v19, %s11527_s19  ;;  %v652_v57 = vshll.u32 %v293_v45, 16  ;;  %v598_v58 = vrot.slane %v596_v49, 5  ;;  %v632_v60 = vrot.slane %v630_v43, 5  ;;  %v628_v61 = vrot.slane %v627_v46, 4  ;;  %v300_v43 = vld [vmem:[%s11564_s18 + $0x124] sm:$0x1] }
  0x43   : > { %v618_v62 = vrot.slane %v616_v44, 5  ;;  %v665_v63 = vrot.slane %v663_v47, 4  ;;  %v668_v0 = vrot.slane %v666_v48, 5  ;;  %v563_v2 = vsel %vm11577_vm2, %v558_v51, %v562_v52  ;;  %v305_v48 = vld [vmem:[%s11564_s18 + $0x138] sm:$0xf] }
  0x44   : > { %788 = vrot.lane.b32.xlu2 %v521_v35, %s11527_s19  ;;  %v599_v4 = vor.u32 %v598_v58, %v595_v54  ;;  %v602_v5 = vshll.u32 %v286_v53, 16  ;;  %v635_v6 = vshrl.u32 %v291_v59, 16  ;;  %v614_v7 = vrot.slane %v613_v55, 4 }
  0x45   : > { %v651_v9 = vrot.slane %v649_v56, 4  ;;  %v654_v10 = vrot.slane %v652_v57, 5  ;;  %v638_v11 = vshll.u32 %v291_v59, 16  ;;  %v705_v12 = vshrl.u32 %v301_v1, 16 }
  0x46   : > { %v708_v13 = vshll.u32 %v301_v1, 16  ;;  %v633_v15 = vsel %vm11577_vm2, %v628_v61, %v632_v60  ;;  %v672_v16 = vshll.u32 %v296_v3, 16  ;;  %v637_v17 = vrot.slane %v635_v6, 4  ;;  %v298_v61 = vld [vmem:[%s11564_s18 + $0x11c] sm:$0x1] }
  0x47   : > { %v640_v18 = vrot.slane %v638_v11, 5  ;;  %v669_v19 = vor.u32 %v668_v0, %v665_v63  ;;  %v658_v20 = vshll.u32 %v294_v8, 16  ;;  %v600_v21 = vrot.slane %v599_v4, 4  ;;  %v308_v4 = vld [vmem:[%s11564_s18 + $0x144] sm:$0x1] }
  0x48   : > { %v604_v22 = vrot.slane %v602_v5, 5  ;;  %v619_v24 = vsel %vm11577_vm2, %v614_v7, %v618_v62  ;;  %v655_v26 = vor.u32 %v654_v10, %v651_v9  ;;  %v691_v27 = vshrl.u32 %v299_v14, 16  ;;  %v303_v62 = vld [vmem:[%s11564_s18 + $0x130] sm:$0xf] }
  0x49   : > { %798 = vrot.lane.b32.xlu1 %v591_v42, %s11527_s19  ;;  %v694_v28 = vshll.u32 %v299_v14, 16  ;;  %v707_v30 = vrot.slane %v705_v12, 4  ;;  %v710_v31 = vrot.slane %v708_v13, 5  ;;  %v674_v32 = vrot.slane %v672_v16, 5  ;;  %v306_v13 = vld [vmem:[%s11564_s18 + $0x13c] sm:$0x1] }
  0x4a   : > { %796 = vrot.lane.b32.xlu0 %v577_v50, %s11527_s19  ;;  %v641_v34 = vor.u32 %v640_v18, %v637_v17  ;;  %v644_v35 = vshll.u32 %v292_v23, 16  ;;  %v670_v36 = vrot.slane %v669_v19, 4  ;;  %v605_v37 = vsel %vm11577_vm2, %v600_v21, %v604_v22 }
  0x4b   : > { %v677_v39 = vshrl.u32 %v297_v29, 16  ;;  %v680_v40 = vshll.u32 %v297_v29, 16  ;;  %v656_v41 = vrot.slane %v655_v26, 4  ;;  %v660_v42 = vrot.slane %v658_v20, 5 }
  0x4c   : > { %794 = vrot.lane.b32.xlu2 %v563_v2, %s11527_s19  ;;  %v693_v44 = vrot.slane %v691_v27, 4  ;;  %v696_v45 = vrot.slane %v694_v28, 5  ;;  %v711_v46 = vor.u32 %v710_v31, %v707_v30  ;;  %v714_v47 = vshll.u32 %v302_v33, 16  ;;  %v893_v33 = vld [vmem:[%s11564_s18 + $0x10] sm:$0xe] }
  0x4d   : > { %v642_v49 = vrot.slane %v641_v34, 4  ;;  %v646_v50 = vrot.slane %v644_v35, 5  ;;  %v747_v51 = vshrl.u32 %v307_v38, 16  ;;  %v750_v52 = vshll.u32 %v307_v38, 16  ;;  %v894_v35 = vld [vmem:[%s11564_s18 + $0x14] sm:$0x1] }
  0x4e   : > { %v675_v53 = vsel %vm11577_vm2, %v670_v36, %v674_v32  ;;  %v700_v54 = vshll.u32 %v300_v43, 16  ;;  %v679_v55 = vrot.slane %v677_v39, 4  ;;  %v682_v56 = vrot.slane %v680_v40, 5  ;;  %v891_v36 = vld [vmem:[%s11564_s18 + $0x8] sm:$0xe] }
  0x4f   : > { %v661_v57 = vsel %vm11577_vm2, %v656_v41, %v660_v42  ;;  %v697_v58 = vor.u32 %v696_v45, %v693_v44  ;;  %v733_v59 = vshrl.u32 %v305_v48, 16  ;;  %v736_v60 = vshll.u32 %v305_v48, 16  ;;  %v892_v40 = vld [vmem:[%s11564_s18 + $0xc] sm:$0x1]  ;;  %v889_v44 = vld [vmem:[%s11564_s18] sm:$0xe] }
  0x50   : > { %v716_v63 = vrot.slane %v714_v47, 5  ;;  %v712_v0 = vrot.slane %v711_v46, 4  ;;  %v647_v1 = vsel %vm11577_vm2, %v642_v49, %v646_v50  ;;  %v749_v2 = vrot.slane %v747_v51, 4  ;;  %v890_v47 = vld [vmem:[%s11564_s18 + $0x4] sm:$0x1] }
  0x51   : > { %804 = vrot.lane.b32.xlu1 %v633_v15, %s11527_s19  ;;  %v752_v3 = vrot.slane %v750_v52, 5  ;;  %v683_v5 = vor.u32 %v682_v56, %v679_v55  ;;  %v686_v6 = vshll.u32 %v298_v61, 16  ;;  %v719_v7 = vshrl.u32 %v303_v62, 16  ;;  %v184_v48 = vld [vmem:[%s11564_s18 + $0x20] sm:$0xf] }
  0x52   : > { %802 = vrot.lane.b32.xlu0 %v619_v24, %s11527_s19  ;;  %v722_v8 = vshll.u32 %v303_v62, 16  ;;  %v698_v9 = vrot.slane %v697_v58, 4  ;;  %v702_v10 = vrot.slane %v700_v54, 5  ;;  %v735_v11 = vrot.slane %v733_v59, 4  ;;  %v304_v24 = vld [vmem:[%s11564_s18 + $0x134] sm:$0x1] }
  0x53   : > { %v738_v12 = vrot.slane %v736_v60, 5  ;;  %v717_v14 = vsel %vm11577_vm2, %v712_v0, %v716_v63  ;;  %v753_v15 = vor.u32 %v752_v3, %v749_v2  ;;  %v756_v16 = vshll.u32 %v308_v4, 16  ;;  %217 = vst.msk [vmem:[#allocation2 + $0x40] sm:$0xf] %vm212_vm5, %v184_v48  ;;  %v182_v50 = vld [vmem:[%s11564_s18 + $0x10] sm:$0xf] }
  0x54   : > { %800 = vrot.lane.b32.xlu2 %v605_v37, %s11527_s19  ;;  %v684_v17 = vrot.slane %v683_v5, 4  ;;  %v688_v18 = vrot.slane %v686_v6, 5  ;;  %v721_v19 = vrot.slane %v719_v7, 4  ;;  %v724_v20 = vrot.slane %v722_v8, 5  ;;  %v180_v51 = vld [vmem:[%s11564_s18] sm:$0xf] }
  0x55   : > { %v703_v21 = vsel %vm11577_vm2, %v698_v9, %v702_v10  ;;  %v739_v22 = vor.u32 %v738_v12, %v735_v11  ;;  %v742_v23 = vshll.u32 %v306_v13, 16  ;;  %v758_v26 = vrot.slane %v756_v16, 5  ;;  %215 = vst.msk [vmem:[#allocation2 + $0x20] sm:$0xf] %vm212_vm5, %v182_v50  ;;  %v899_v52 = vld [vmem:[%s11564_s18 + $0x28] sm:$0xe] }
  0x56   : > { %v754_v27 = vrot.slane %v753_v15, 4  ;;  %v689_v28 = vsel %vm11577_vm2, %v684_v17, %v688_v18  ;;  %v725_v29 = vor.u32 %v724_v20, %v721_v19  ;;  %v728_v30 = vshll.u32 %v304_v24, 16  ;;  %213 = vst.msk [vmem:[#allocation2] sm:$0xf] %vm212_vm5, %v180_v51  ;;  %v897_v55 = vld [vmem:[%s11564_s18 + $0x20] sm:$0xe] }
  0x57   : > { %v740_v31 = vrot.slane %v739_v22, 4  ;;  %v744_v32 = vrot.slane %v742_v23, 5  ;;  %v10126_v41 = vrot.slane %v893_v33, 9  ;;  %v1030_v42 = vrot.slane %v894_v35, 5  ;;  %v898_v56 = vld [vmem:[%s11564_s18 + $0x24] sm:$0x1] }
  0x58   : > { %v759_v34 = vsel %vm11577_vm2, %v754_v27, %v758_v26  ;;  %v726_v37 = vrot.slane %v725_v29, 4  ;;  %v730_v38 = vrot.slane %v728_v30, 5  ;;  %v10125_v43 = vrot.slane %v891_v36, 9  ;;  %v896_v2 = vld [vmem:[%s11564_s18 + $0x1c] sm:$0x1] }
  0x59   : > { %810 = vrot.lane.b32.xlu1 %v675_v53, %s11527_s19  ;;  %v745_v39 = vsel %vm11577_vm2, %v740_v31, %v744_v32  ;;  %v1026_v45 = vrot.slane %v892_v40, 5  ;;  %v900_v53 = vld [vmem:[%s11564_s18 + $0x2c] sm:$0x1]  ;;  %v1031_v54 = vsel %vm11738_vm6, %v10126_v41, %v1030_v42  ;;  %v1022_v58 = vrot.slane %v890_v47, 5  ;;  %v185_v3 = vld [vmem:[%s11564_s18 + $0x28] sm:$0xf] }
  0x5a   : > { %808 = vrot.lane.b32.xlu0 %v661_v57, %s11527_s19  ;;  %v731_v46 = vsel %vm11577_vm2, %v726_v37, %v730_v38  ;;  %v10124_v57 = vrot.slane %v889_v44, 9  ;;  %v10129_v60 = vrot.slane %v899_v52, 9  ;;  %v1042_v61 = vrot.slane %v900_v53, 5  ;;  %218 = vst.msk [vmem:[#allocation2 + $0x50] sm:$0xf] %vm212_vm5, %v185_v3 }
  0x5b   : > { %v1027_v59 = vsel %vm11738_vm6, %v10125_v43, %v1026_v45  ;;  %v10128_v62 = vrot.slane %v897_v55, 9  ;;  %v1038_v63 = vrot.slane %v898_v56, 5  ;;  %v183_v4 = vld [vmem:[%s11564_s18 + $0x18] sm:$0xf]  ;;  %v181_v5 = vld [vmem:[%s11564_s18 + $0x8] sm:$0xf] }
  0x5c   : > { %806 = vrot.lane.b32.xlu2 %v647_v1, %s11527_s19  ;;  %v1023_v0 = vsel %vm11738_vm6, %v10124_v57, %v1022_v58  ;;  %v895_v1 = vld [vmem:[%s11564_s18 + $0x18] sm:$0xe]  ;;  %216 = vst.msk [vmem:[#allocation2 + $0x30] sm:$0xf] %vm212_vm5, %v183_v4  ;;  %v906_v7 = vld [vmem:[%s11564_s18 + $0x5c] sm:$0x1]  ;;  %v1043_v8 = vsel %vm11738_vm6, %v10129_v60, %v1042_v61 }
  0x5d   : > { %v905_v6 = vld [vmem:[%s11564_s18 + $0x58] sm:$0xe]  ;;  %214 = vst.msk [vmem:[#allocation2 + $0x10] sm:$0xf] %vm212_vm5, %v181_v5  ;;  %v904_v10 = vld [vmem:[%s11564_s18 + $0x3c] sm:$0x1]  ;;  %v1039_v13 = vsel %vm11738_vm6, %v10128_v62, %v1038_v63 }
  0x5e   : > { %v903_v9 = vld [vmem:[%s11564_s18 + $0x38] sm:$0xe]  ;;  %v10127_v11 = vrot.slane %v895_v1, 9  ;;  %v1034_v12 = vrot.slane %v896_v2, 5  ;;  %v1054_v15 = vrot.slane %v906_v7, 5  ;;  %v1050_v17 = vrot.slane %v904_v10, 5 }
  0x5f   : > { %v10131_v16 = vrot.slane %v903_v9, 9  ;;  %v901_v19 = vld [vmem:[%s11564_s18 + $0x30] sm:$0xe]  ;;  %v902_v20 = vld [vmem:[%s11564_s18 + $0x34] sm:$0x1]  ;;  %vm9349_vm4 = vcmask 1044484  }
  0x60   : > { %v1035_v18 = vsel %vm11738_vm6, %v10127_v11, %v1034_v12  ;;  %v187_v22 = vld [vmem:[%s11564_s18 + $0x38] sm:$0xf]  ;;  %v186_v23 = vld [vmem:[%s11564_s18 + $0x30] sm:$0xf]  ;;  %v912_v26 = vld [vmem:[%s11564_s18 + $0x74] sm:$0x1] }
  0x61   : > { %816 = vrot.lane.b32.xlu1 %v717_v14, %s11527_s19  ;;  %v10132_v14 = vrot.slane %v905_v6, 9  ;;  %v911_v24 = vld [vmem:[%s11564_s18 + $0x70] sm:$0xe]  ;;  %220 = vst.msk [vmem:[#allocation2 + $0x70] sm:$0xf] %vm212_vm5, %v187_v22  ;;  %v10130_v30 = vrot.slane %v901_v19, 9  ;;  %v1051_v32 = vsel %vm11738_vm6, %v10131_v16, %v1050_v17 }
  0x62   : > { %814 = vrot.lane.b32.xlu0 %v703_v21, %s11527_s19  ;;  %v188_v21 = vld [vmem:[%s11564_s18 + $0x58] sm:$0xf]  ;;  %219 = vst.msk [vmem:[#allocation2 + $0x60] sm:$0xf] %vm212_vm5, %v186_v23  ;;  %v910_v29 = vld [vmem:[%s11564_s18 + $0x6c] sm:$0x1] }
  0x63   : > { %221 = vst.msk [vmem:[#allocation2 + $0x80] sm:$0xf] %vm212_vm5, %v188_v21  ;;  %v1055_v27 = vsel %vm11738_vm6, %v10132_v14, %v1054_v15  ;;  %v1046_v31 = vrot.slane %v902_v20, 5  ;;  %v1066_v35 = vrot.slane %v912_v26, 5  ;;  %v1062_v37 = vrot.slane %v910_v29, 5 }
  0x64   : > { %812 = vrot.lane.b32.xlu2 %v689_v28, %s11527_s19  ;;  %v909_v28 = vld [vmem:[%s11564_s18 + $0x68] sm:$0xe]  ;;  %v908_v40 = vld [vmem:[%s11564_s18 + $0x64] sm:$0x1]  ;;  %v191_v41 = vld [vmem:[%s11564_s18 + $0x70] sm:$0xf] }
  0x65   : > { %v10134_v36 = vrot.slane %v909_v28, 9  ;;  %v1047_v38 = vsel %vm11738_vm6, %v10130_v30, %v1046_v31  ;;  %224 = vst.msk [vmem:[#allocation2 + $0xb0] sm:$0xf] %vm212_vm5, %v191_v41  ;;  %v190_v42 = vld [vmem:[%s11564_s18 + $0x68] sm:$0xf]  ;;  %v1058_v48 = vrot.slane %v908_v40, 5 }
  0x66   : > { %v189_v43 = vld [vmem:[%s11564_s18 + $0x60] sm:$0xf]  ;;  %223 = vst.msk [vmem:[#allocation2 + $0xa0] sm:$0xf] %vm212_vm5, %v190_v42  ;;  %v917_v45 = vld [vmem:[%s11564_s18 + $0x88] sm:$0xe] }
  0x67   : > { %222 = vst.msk [vmem:[#allocation2 + $0x90] sm:$0xf] %vm212_vm5, %v189_v43  ;;  %v1063_v50 = vsel %vm11738_vm6, %v10134_v36, %v1062_v37  ;;  %v915_v51 = vld [vmem:[%s11564_s18 + $0x80] sm:$0xe]  ;;  %v916_v52 = vld [vmem:[%s11564_s18 + $0x84] sm:$0x1] }
  0x68   : > { %v914_v55 = vld [vmem:[%s11564_s18 + $0x7c] sm:$0x1]  ;;  %v10138_v56 = vrot.slane %v917_v45, 9  ;;  %v10137_v58 = vrot.slane %v915_v51, 9  ;;  %v923_v61 = vld [vmem:[%s11564_s18 + $0xb8] sm:$0xe] }
  0x69   : > { %822 = vrot.lane.b32.xlu1 %v759_v34, %s11527_s19  ;;  %v10135_v34 = vrot.slane %v911_v24, 9  ;;  %v194_v62 = vld [vmem:[%s11564_s18 + $0x88] sm:$0xf]  ;;  %v921_v1 = vld [vmem:[%s11564_s18 + $0xb0] sm:$0xe]  ;;  %v1070_v4 = vrot.slane %v914_v55, 5 }
  0x6a   : > { %820 = vrot.lane.b32.xlu0 %v745_v39, %s11527_s19  ;;  %v907_v39 = vld [vmem:[%s11564_s18 + $0x60] sm:$0xe]  ;;  %v922_v2 = vld [vmem:[%s11564_s18 + $0xb4] sm:$0x1]  ;;  %227 = vst.msk [vmem:[#allocation2 + $0xe0] sm:$0xf] %vm212_vm5, %v194_v62 }
  0x6b   : > { %v1067_v44 = vsel %vm11738_vm6, %v10135_v34, %v1066_v35  ;;  %v10133_v47 = vrot.slane %v907_v39, 9  ;;  %v193_v5 = vld [vmem:[%s11564_s18 + $0x80] sm:$0xf]  ;;  %v11836_v7 = vld [vmem:[%s11564_s18 + $0xd0] sm:$0xe]  ;;  %v10141_v15 = vrot.slane %v923_v61, 9 }
  0x6c   : > { %818 = vrot.lane.b32.xlu2 %v731_v46, %s11527_s19  ;;  %v918_v46 = vld [vmem:[%s11564_s18 + $0x8c] sm:$0x1]  ;;  %v11842_v9 = vld [vmem:[%s11564_s18 + $0xd4] sm:$0x1]  ;;  %v11845_v10 = vld [vmem:[%s11564_s18 + $0xc8] sm:$0xe] }
  0x6d   : > { %v1078_v57 = vrot.slane %v918_v46, 5  ;;  %v1059_v60 = vsel %vm11738_vm6, %v10133_v47, %v1058_v48  ;;  %v919_v12 = vld [vmem:[%s11564_s18 + $0x90] sm:$0xe]  ;;  %226 = vst.msk [vmem:[#allocation2 + $0xd0] sm:$0xf] %vm212_vm5, %v193_v5  ;;  %v1086_v19 = vrot.slane %v922_v2, 5 }
  0x6e   : > { %v10144_v20 = vrot.slane %v11836_v7, 9  ;;  %v1102_v21 = vrot.slane %v11842_v9, 5  ;;  %v10143_v22 = vrot.slane %v11845_v10, 9  ;;  %v10139_v23 = vrot.slane %v919_v12, 9  ;;  %v11865_v28 = vld [vmem:[%s11564_s18 + $0xe8] sm:$0xe] }
  0x6f   : > { %v1079_v11 = vsel %vm11738_vm6, %v10138_v56, %v1078_v57  ;;  %v11868_v29 = vld [vmem:[%s11564_s18 + $0xec] sm:$0x1]  ;;  %v11871_v30 = vld [vmem:[%s11564_s18 + $0xe0] sm:$0xe]  ;;  %v197_v31 = vld [vmem:[%s11564_s18 + $0xb8] sm:$0xf] }
  0x70   : > { %230 = vst.msk [vmem:[#allocation2 + $0x110] sm:$0xf] %vm212_vm5, %v197_v31  ;;  %v196_v34 = vld [vmem:[%s11564_s18 + $0xb0] sm:$0xf]  ;;  %v11881_v36 = vld [vmem:[%s11564_s18 + $0xc0] sm:$0xe]  ;;  %v1103_v12 = vsel %vm11738_vm6, %v10144_v20, %v1102_v21 }
  0x71   : > { %1152 = vrot.lane.b32.xlu1 %v1031_v54, %s11528_s20  ;;  %v913_v54 = vld [vmem:[%s11564_s18 + $0x78] sm:$0xe]  ;;  %v195_v37 = vld [vmem:[%s11564_s18 + $0x90] sm:$0xf]  ;;  %v11897_v42 = vld [vmem:[%s11564_s18 + $0x11c] sm:$0x1] }
  0x72   : > { %1150 = vrot.lane.b32.xlu0 %v1027_v59, %s11528_s20  ;;  %v1074_v59 = vrot.slane %v916_v52, 5  ;;  %v10136_v3 = vrot.slane %v913_v54, 9  ;;  %v11890_v39 = vld [vmem:[%s11564_s18 + $0x118] sm:$0xe]  ;;  %v11900_v43 = vld [vmem:[%s11564_s18 + $0x110] sm:$0xe] }
  0x73   : > { %229 = vst.msk [vmem:[#allocation2 + $0x100] sm:$0xf] %vm212_vm5, %v196_v34  ;;  %v10147_v46 = vrot.slane %v11865_v28, 9  ;;  %v1114_v47 = vrot.slane %v11868_v29, 5  ;;  %v10146_v48 = vrot.slane %v11871_v30, 9  ;;  %v10142_v51 = vrot.slane %v11881_v36, 9 }
  0x74   : > { %1148 = vrot.lane.b32.xlu2 %v1023_v0, %s11528_s20  ;;  %v924_v0 = vld [vmem:[%s11564_s18 + $0xbc] sm:$0x1]  ;;  %v1075_v14 = vsel %vm11738_vm6, %v10137_v58, %v1074_v59  ;;  %v1071_v26 = vsel %vm11738_vm6, %v10136_v3, %v1070_v4  ;;  %228 = vst.msk [vmem:[#allocation2 + $0xf0] sm:$0xf] %vm212_vm5, %v195_v37  ;;  %v1126_v54 = vrot.slane %v11897_v42, 5  ;;  %v10149_v56 = vrot.slane %v11900_v43, 9 }
  0x75   : > { %v1090_v17 = vrot.slane %v924_v0, 5  ;;  %v11915_v55 = vld [vmem:[%s11564_s18 + $0x114] sm:$0x1]  ;;  %v11919_v57 = vld [vmem:[%s11564_s18 + $0xd8] sm:$0xe]  ;;  %vm9330_vm8 = vcmask 517120  }
  0x76   : > { %v11925_v59 = vld [vmem:[%s11564_s18 + $0xdc] sm:$0x1]  ;;  %v11931_v61 = vld [vmem:[%s11564_s18 + $0x134] sm:$0x1]  ;;  %v200_v62 = vld [vmem:[%s11564_s18 + $0xd0] sm:$0xf] }
  0x77   : > { %v1091_v40 = vsel %vm11738_vm6, %v10141_v15, %v1090_v17  ;;  %233 = vst.msk [vmem:[#allocation2 + $0x140] sm:$0xf] %vm212_vm5, %v200_v62  ;;  %v199_v2 = vld [vmem:[%s11564_s18 + $0xc8] sm:$0xf]  ;;  %v11942_v4 = vld [vmem:[%s11564_s18 + $0x12c] sm:$0x1]  ;;  %v1115_v62 = vsel %vm11738_vm6, %v10147_v46, %v1114_v47 }
  0x78   : > { %v198_v5 = vld [vmem:[%s11564_s18 + $0xc0] sm:$0xf]  ;;  %v10145_v15 = vrot.slane %v11919_v57, 9  ;;  %232 = vst.msk [vmem:[#allocation2 + $0x130] sm:$0xf] %vm212_vm5, %v199_v2  ;;  %v1106_v7 = vrot.slane %v11925_v59, 5 }
  0x79   : > { %1158 = vrot.lane.b32.xlu1 %v1043_v8, %s11528_s20  ;;  %v192_v8 = vld [vmem:[%s11564_s18 + $0x78] sm:$0xf]  ;;  %v1138_v10 = vrot.slane %v11931_v61, 5  ;;  %231 = vst.msk [vmem:[#allocation2 + $0x120] sm:$0xf] %vm212_vm5, %v198_v5 }
  0x7a   : > { %1156 = vrot.lane.b32.xlu0 %v1039_v13, %s11528_s20  ;;  %v920_v13 = vld [vmem:[%s11564_s18 + $0x94] sm:$0x1]  ;;  %225 = vst.msk [vmem:[#allocation2 + $0xc0] sm:$0xf] %vm212_vm5, %v192_v8  ;;  %v11972_v20 = vld [vmem:[%s11564_s18 + $0x10c] sm:$0x1] }
  0x7b   : > { %v1082_v24 = vrot.slane %v920_v13, 5  ;;  %v203_v34 = vld [vmem:[%s11564_s18 + $0xe8] sm:$0xf]  ;;  %v1118_v37 = vrot.slane %v11972_v20, 5  ;;  %v12018_v28 = vld [vmem:[%s11564_s18 + $0x124] sm:$0x1] }
  0x7c   : > { %1154 = vrot.lane.b32.xlu2 %v1035_v18, %s11528_s20  ;;  %v10140_v18 = vrot.slane %v921_v1, 9  ;;  %v11936_v1 = vld [vmem:[%s11564_s18 + $0x128] sm:$0xe]  ;;  %236 = vst.msk [vmem:[#allocation2 + $0x170] sm:$0xf] %vm212_vm5, %v203_v34 }
  0x7d   : > { %v1083_v58 = vsel %vm11738_vm6, %v10139_v23, %v1082_v24  ;;  %v1281_v47 = vld [vmem:[%s11564_s18 + $0x10] sm:$0xe]  ;;  %v1287_v43 = vld [vmem:[%s11564_s18 + $0x28] sm:$0xe] }
  0x7e   : > { %v769_v33 = vpop.permute.xlu2 %768  ;;  %v1087_v41 = vsel %vm11738_vm6, %v10140_v18, %v1086_v19  ;;  %v10152_v18 = vrot.slane %v11936_v1, 9  ;;  %v1134_v19 = vrot.slane %v11942_v4, 5  ;;  %v209_v20 = vld [vmem:[%s11564_s18 + $0x130] sm:$0xf]  ;;  %v10693_v49 = vld [vmem:[%s11564_s18 + $0x128] sm:$0xf] }
  0x7f   : > { %861 = vst.msk [vmem:[#allocation2 + $0x40] sm:$0xf] %vm856_vm7, %v769_v33  ;;  %v11875_v33 = vld [vmem:[%s11564_s18 + $0xe4] sm:$0x1] }
  0x80   : > { %242 = vst.msk [vmem:[#allocation2 + $0x1d0] sm:$0xf] %vm212_vm5, %v209_v20  ;;  %v1285_v20 = vld [vmem:[%s11564_s18 + $0x20] sm:$0xe] }
  0x81   : > { %1164 = vrot.lane.b32.xlu1 %v1055_v27, %s11528_s20  ;;  %v928_v27 = vld [vmem:[%s11564_s18 + $0xcc] sm:$0x1]  ;;  %5821 = vst.msk [vmem:[#allocation2 + $0x19c] sm:$0xf] %vm212_vm5, %v10693_v49 }
  0x82   : > { %1162 = vrot.lane.b32.xlu0 %v1051_v32, %s11528_s20 }
  0x84   : > { %1160 = vrot.lane.b32.xlu2 %v1047_v38, %s11528_s20  ;;  %v11887_v38 = vld [vmem:[%s11564_s18 + $0xc4] sm:$0x1] }
  0x85   : > { %v1094_v52 = vrot.slane %v11887_v38, 5  ;;  %v202_v38 = vld [vmem:[%s11564_s18 + $0xe0] sm:$0xf] }
  0x86   : > { %v771_v53 = vpop.permute.xlu2 %770  ;;  %235 = vst.msk [vmem:[#allocation2 + $0x160] sm:$0xf] %vm212_vm5, %v202_v38  ;;  %v204_v38 = vld [vmem:[%s11564_s18 + $0x108] sm:$0xf] }
  0x87   : > { %862 = vst.msk [vmem:[#allocation2 + $0x50] sm:$0xf] %vm856_vm7, %v771_v53  ;;  %v10150_v53 = vrot.slane %v11890_v39, 9  ;;  %v1095_v31 = vsel %vm11738_vm6, %v10142_v51, %v1094_v52 }
  0x88   : > { %237 = vst.msk [vmem:[#allocation2 + $0x180] sm:$0xf] %vm212_vm5, %v204_v38 }
  0x89   : > { %1170 = vrot.lane.b32.xlu1 %v1067_v44, %s11528_s20  ;;  %v1098_v44 = vrot.slane %v928_v27, 5  ;;  %v1283_v27 = vld [vmem:[%s11564_s18 + $0x18] sm:$0xe] }
  0x8a   : > { %1168 = vrot.lane.b32.xlu0 %v1063_v50, %s11528_s20  ;;  %v1110_v50 = vrot.slane %v11875_v33, 5  ;;  %v1402_v51 = vshll.u32 %v1283_v27, 16 }
  0x8b   : > { %v765_v63 = vpop.permute.xlu1 %764  ;;  %v1099_v13 = vsel %vm11738_vm6, %v10143_v22, %v1098_v44 }
  0x8c   : > { %859 = vst.msk [vmem:[#allocation2 + $0x20] sm:$0xf] %vm856_vm7, %v765_v63  ;;  %v761_v6 = vpop.permute.xlu0 %760  ;;  %1166 = vrot.lane.b32.xlu2 %v1059_v60, %s11528_s20  ;;  %v11928_v60 = vld [vmem:[%s11564_s18 + $0x130] sm:$0xe]  ;;  %v1277_v63 = vld [vmem:[%s11564_s18] sm:$0xe] }
  0x8d   : > { %857 = vst.msk [vmem:[#allocation2] sm:$0xf] %vm856_vm7, %v761_v6  ;;  %v1278_v6 = vld [vmem:[%s11564_s18 + $0x4] sm:$0x3]  ;;  %v1345_v8 = vshrl.u32 %v1277_v63, 16  ;;  %v10153_v17 = vrot.slane %v11928_v60, 9 }
  0x8e   : > { %v777_v16 = vpop.permute.xlu2 %776  ;;  %v1354_v21 = vshrl.u32 %v1278_v6, 16  ;;  %v1404_v29 = vrot.slane %v1402_v51, 6  ;;  %v12057_v51 = vld [vmem:[%s11564_s18 + $0x138] sm:$0xe]  ;;  %v1280_v60 = vld [vmem:[%s11564_s18 + $0xc] sm:$0x3] }
  0x8f   : > { %865 = vst.msk [vmem:[#allocation2 + $0x80] sm:$0xf] %vm856_vm7, %v777_v16  ;;  %v11962_v16 = vld [vmem:[%s11564_s18 + $0x108] sm:$0xe]  ;;  %v1347_v23 = vrot.slane %v1345_v8, 5  ;;  %v1107_v8 = vsel %vm11738_vm6, %v10145_v15, %v1106_v7 }
  0x90   : > { %v10148_v22 = vrot.slane %v11962_v16, 9  ;;  %v11989_v44 = vrot.slane %v1354_v21, 5  ;;  %v1289_v21 = vld [vmem:[%s11564_s18 + $0x30] sm:$0xe] }
  0x91   : > { %1176 = vrot.lane.b32.xlu1 %v1079_v11, %s11528_s20  ;;  %v1348_v11 = vshll.u32 %v1277_v63, 16  ;;  %v12008_v63 = vld [vmem:[%s11564_s18 + $0x120] sm:$0xe] }
  0x92   : > { %1174 = vrot.lane.b32.xlu0 %v1075_v14, %s11528_s20  ;;  %v1122_v14 = vrot.slane %v11915_v55, 5 }
  0x93   : > { %v767_v32 = vpop.permute.xlu1 %766  ;;  %v1350_v24 = vrot.slane %v1348_v11, 6  ;;  %v10151_v11 = vrot.slane %v12008_v63, 9 }
  0x94   : > { %860 = vst.msk [vmem:[#allocation2 + $0x30] sm:$0xf] %vm856_vm7, %v767_v32  ;;  %v763_v35 = vpop.permute.xlu0 %762  ;;  %1172 = vrot.lane.b32.xlu2 %v1071_v26, %s11528_s20  ;;  %v1357_v26 = vshll.u32 %v1278_v6, 16  ;;  %v11981_v32 = vld [vmem:[%s11564_s18 + $0x140] sm:$0xe]  ;;  %v1123_v39 = vsel %vm11738_vm6, %v10149_v56, %v1122_v14  ;;  %v1119_v56 = vsel %vm11738_vm6, %v10148_v22, %v1118_v37 }
  0x95   : > { %858 = vst.msk [vmem:[#allocation2 + $0x10] sm:$0xf] %vm856_vm7, %v763_v35  ;;  %v1284_v35 = vld [vmem:[%s11564_s18 + $0x1c] sm:$0x3]  ;;  %v1351_v52 = vor.u32 %v1350_v24, %v1347_v23  ;;  %v10155_v59 = vrot.slane %v11981_v32, 9 }
  0x96   : > { %v783_v45 = vpop.permute.xlu2 %782  ;;  %v11994_v57 = vrot.slane %v1357_v26, 6  ;;  %v1408_v2 = vshrl.u32 %v1284_v35, 16  ;;  %v1411_v46 = vshll.u32 %v1284_v35, 16  ;;  %v1282_v6 = vld [vmem:[%s11564_s18 + $0x14] sm:$0x3] }
  0x97   : > { %868 = vst.msk [vmem:[#allocation2 + $0xb0] sm:$0xf] %vm856_vm7, %v783_v45  ;;  %v201_v45 = vld [vmem:[%s11564_s18 + $0xd8] sm:$0xf]  ;;  %v12024_v33 = vrot.slane %v1351_v52, 4  ;;  %v1453_v52 = vshrl.u32 %v1289_v21, 16 }
  0x98   : > { %234 = vst.msk [vmem:[#allocation2 + $0x150] sm:$0xf] %vm212_vm5, %v201_v45  ;;  %v12036_v7 = vrot.slane %v1408_v2, 5  ;;  %v12038_v34 = vrot.slane %v1411_v46, 6  ;;  %v205_v35 = vld [vmem:[%s11564_s18 + $0x110] sm:$0xf]  ;;  %v1360_v61 = vor.u32 %v11994_v57, %v11989_v44 }
  0x99   : > { %1182 = vrot.lane.b32.xlu1 %v1091_v40, %s11528_s20  ;;  %v1399_v40 = vshrl.u32 %v1283_v27, 16  ;;  %v1390_v27 = vshrl.u32 %v1282_v6, 16  ;;  %238 = vst.msk [vmem:[#allocation2 + $0x190] sm:$0xf] %vm212_vm5, %v205_v35  ;;  %v10154_v2 = vrot.slane %v12057_v51, 9  ;;  %v12090_v46 = vrot.slane %v1453_v52, 5 }
  0x9a   : > { %1180 = vrot.lane.b32.xlu0 %v1087_v41, %s11528_s20  ;;  %v208_v22 = vld [vmem:[%s11564_s18 + $0x128] sm:$0xf]  ;;  %v1414_v4 = vor.u32 %v12038_v34, %v12036_v7  ;;  %v1295_v44 = vld [vmem:[%s11564_s18 + $0x60] sm:$0xe] }
  0x9b   : > { %v775_v0 = vpop.permute.xlu1 %774  ;;  %241 = vst.msk [vmem:[#allocation2 + $0x1c0] sm:$0xf] %vm212_vm5, %v208_v22  ;;  %v1507_v34 = vshrl.u32 %v1295_v44, 16  ;;  %v1510_v38 = vshll.u32 %v1295_v44, 16 }
  0x9c   : > { %864 = vst.msk [vmem:[#allocation2 + $0x70] sm:$0xf] %vm856_vm7, %v775_v0  ;;  %v773_v3 = vpop.permute.xlu0 %772  ;;  %1178 = vrot.lane.b32.xlu2 %v1083_v58, %s11528_s20  ;;  %v11997_v58 = vld [vmem:[%s11564_s18 + $0x144] sm:$0x1]  ;;  %v1401_v0 = vrot.slane %v1399_v40, 5 }
  0x9d   : > { %863 = vst.msk [vmem:[#allocation2 + $0x60] sm:$0xf] %vm856_vm7, %v773_v3  ;;  %v1111_v3 = vsel %vm11738_vm6, %v10146_v48, %v1110_v50  ;;  %v1146_v30 = vrot.slane %v11997_v58, 5  ;;  %v1381_v48 = vshrl.u32 %v1281_v47, 16  ;;  %v1384_v50 = vshll.u32 %v1281_v47, 16 }
  0x9e   : > { %v789_v9 = vpop.permute.xlu2 %788  ;;  %v12045_v40 = vld [vmem:[%s11564_s18 + $0x34] sm:$0x3]  ;;  %v1435_v47 = vshrl.u32 %v1287_v43, 16 }
  0x9f   : > { %871 = vst.msk [vmem:[#allocation2 + $0xe0] sm:$0xf] %vm856_vm7, %v789_v9  ;;  %v206_v9 = vld [vmem:[%s11564_s18 + $0x118] sm:$0xf]  ;;  %v1383_v24 = vrot.slane %v1381_v48, 5  ;;  %v1386_v26 = vrot.slane %v1384_v50, 6 }
  0xa0   : > { %239 = vst.msk [vmem:[#allocation2 + $0x1a0] sm:$0xf] %vm212_vm5, %v206_v9  ;;  %v1462_v55 = vshrl.u32 %v12045_v40, 16  ;;  %v1465_v16 = vshll.u32 %v12045_v40, 16 }
  0xa1   : > { %1188 = vrot.lane.b32.xlu1 %v1103_v12, %s11528_s20  ;;  %v1130_v12 = vrot.slane %v12018_v28, 5 }
  0xa2   : > { %1186 = vrot.lane.b32.xlu0 %v1099_v13, %s11528_s20  ;;  %v1405_v13 = vor.u32 %v1404_v29, %v1401_v0  ;;  %v1456_v0 = vshll.u32 %v1289_v21, 16  ;;  %v1467_v63 = vrot.slane %v1465_v16, 6 }
  0xa3   : > { %v781_v36 = vpop.permute.xlu1 %780  ;;  %v1131_v1 = vsel %vm11738_vm6, %v10151_v11, %v1130_v12  ;;  %v15785_v11 = vld [vmem:[%s16197_s2] ss:$0 sm:$0xff] }
  0xa4   : > { %867 = vst.msk [vmem:[#allocation2 + $0xa0] sm:$0xf] %vm856_vm7, %v781_v36  ;;  %v779_v41 = vpop.permute.xlu0 %778  ;;  %1184 = vrot.lane.b32.xlu2 %v1095_v31, %s11528_s20  ;;  %v1393_v31 = vshll.u32 %v1282_v6, 16  ;;  %v1387_v36 = vor.u32 %v1386_v26, %v1383_v24  ;;  %v12053_v45 = vrot.slane %v1405_v13, 4  ;;  %v1438_v6 = vshll.u32 %v1287_v43, 16 }
  0xa5   : > { %866 = vst.msk [vmem:[#allocation2 + $0x90] sm:$0xf] %vm856_vm7, %v779_v41  ;;  %v1127_v41 = vsel %vm11738_vm6, %v10150_v53, %v1126_v54  ;;  %v12065_v53 = vrot.slane %v1390_v27, 5  ;;  %v12097_v13 = vrot.slane %v1462_v55, 5  ;;  %v1437_v24 = vrot.slane %v1435_v47, 5 }
  0xa6   : > { %v795_v5 = vpop.permute.xlu2 %794  ;;  %v12067_v54 = vrot.slane %v1393_v31, 6  ;;  %v12083_v14 = vrot.slane %v1387_v36, 4  ;;  %v1440_v26 = vrot.slane %v1438_v6, 6  ;;  %v207_v27 = vld [vmem:[%s11564_s18 + $0x120] sm:$0xf]  ;;  %v1135_v31 = vsel %vm11738_vm6, %v10152_v18, %v1134_v19 }
  0xa7   : > { %874 = vst.msk [vmem:[#allocation2 + $0x110] sm:$0xf] %vm856_vm7, %v795_v5  ;;  %v1279_v5 = vld [vmem:[%s11564_s18 + $0x8] sm:$0xe]  ;;  %v1372_v18 = vshrl.u32 %v1280_v60, 16  ;;  %v1375_v19 = vshll.u32 %v1280_v60, 16  ;;  %v1468_v47 = vor.u32 %v1467_v63, %v12097_v13  ;;  %v12167_v32 = vsel %vm12136_vm10, %v12053_v45, %v1414_v4 }
  0xa8   : > { %v1363_v37 = vshrl.u32 %v1279_v5, 16  ;;  %240 = vst.msk [vmem:[#allocation2 + $0x1b0] sm:$0xf] %vm212_vm5, %v207_v27  ;;  %v1396_v57 = vor.u32 %v12067_v54, %v12065_v53  ;;  %v1296_v36 = vld [vmem:[%s11564_s18 + $0x64] sm:$0x3]  ;;  %v1441_v12 = vor.u32 %v1440_v26, %v1437_v24  ;;  %v1512_v55 = vrot.slane %v1510_v38, 6 }
  0xa9   : > { %1194 = vrot.lane.b32.xlu1 %v1115_v62, %s11528_s20  ;;  %v12071_v62 = vld [vmem:[%s11564_s18 + $0x13c] sm:$0x1]  ;;  %v12145_v52 = vrot.slane %v1372_v18, 5  ;;  %v1377_v54 = vrot.slane %v1375_v19, 6  ;;  %v1519_v43 = vshll.u32 %v1296_v36, 16  ;;  %v1417_v45 = vshrl.u32 %v1285_v20, 16 }
  0xaa   : > { %1192 = vrot.lane.b32.xlu0 %v1111_v3, %s11528_s20  ;;  %v1288_v3 = vld [vmem:[%s11564_s18 + $0x2c] sm:$0x3]  ;;  %v1142_v29 = vrot.slane %v12071_v62, 5  ;;  %v1294_v6 = vld [vmem:[%s11564_s18 + $0x5c] sm:$0x3]  ;;  %v1442_v16 = vrot.slane %v1441_v12, 4  ;;  %v12172_v58 = vsel %vm12136_vm10, %v12083_v14, %v1396_v57 }
  0xab   : > { %v787_v23 = vpop.permute.xlu1 %786  ;;  %v1444_v9 = vshrl.u32 %v1288_v3, 16  ;;  %v1447_v21 = vshll.u32 %v1288_v3, 16  ;;  %v12178_v13 = vrot.slane %v1519_v43, 6  ;;  %v1286_v24 = vld [vmem:[%s11564_s18 + $0x24] sm:$0x3]  ;;  %v1420_v26 = vshll.u32 %v1285_v20, 16 }
  0xac   : > { %870 = vst.msk [vmem:[#allocation2 + $0xd0] sm:$0xf] %vm856_vm7, %v787_v23  ;;  %v785_v15 = vpop.permute.xlu0 %784  ;;  %1190 = vrot.lane.b32.xlu2 %v1107_v8, %s11528_s20  ;;  %v1458_v8 = vrot.slane %v1456_v0, 6  ;;  %v1139_v23 = vsel %vm11738_vm6, %v10153_v17, %v1138_v10  ;;  %v1365_v17 = vrot.slane %v1363_v37, 5  ;;  %v1366_v10 = vshll.u32 %v1279_v5, 16 }
  0xad   : > { %869 = vst.msk [vmem:[#allocation2 + $0xc0] sm:$0xf] %vm856_vm7, %v785_v15  ;;  %v12140_v7 = vrot.slane %v1444_v9, 5  ;;  %v12143_v40 = vrot.slane %v1447_v21, 6  ;;  %v1509_v0 = vrot.slane %v1507_v34, 5  ;;  %v1361_v5 = vsel %vm12136_vm10, %v12024_v33, %v1360_v61 }
  0xae   : > { %v801_v42 = vpop.permute.xlu2 %800  ;;  %v1459_v28 = vor.u32 %v1458_v8, %v12090_v46  ;;  %v1368_v35 = vrot.slane %v1366_v10, 6  ;;  %v1147_v46 = vsel %vm11738_vm6, %v10155_v59, %v1146_v30  ;;  %v210_v37 = vld [vmem:[%s11564_s18 + $0x138] sm:$0xf]  ;;  %v1498_v9 = vshrl.u32 %v1294_v6, 16  ;;  %v1302_v10 = vld [vmem:[%s11564_s18 + $0x7c] sm:$0x3] }
  0xaf   : > { %877 = vst.msk [vmem:[#allocation2 + $0x140] sm:$0xf] %vm856_vm7, %v801_v42  ;;  %v1293_v42 = vld [vmem:[%s11564_s18 + $0x58] sm:$0xe]  ;;  %v1513_v8 = vor.u32 %v1512_v55, %v1509_v0  ;;  %v1450_v14 = vor.u32 %v12143_v40, %v12140_v7  ;;  %v1378_v21 = vor.u32 %v1377_v54, %v12145_v52  ;;  %v1143_v27 = vsel %vm11738_vm6, %v10154_v2, %v1142_v29  ;;  %v1299_v4 = vld [vmem:[%s11564_s18 + $0x70] sm:$0xe] }
  0xb0   : > { %v1489_v33 = vshrl.u32 %v1293_v42, 16  ;;  %v1492_v30 = vshll.u32 %v1293_v42, 16  ;;  %243 = vst.msk [vmem:[#allocation2 + $0x1e0] sm:$0xf] %vm212_vm5, %v210_v37  ;;  %v1419_v60 = vrot.slane %v1417_v45, 5  ;;  %v1422_v62 = vrot.slane %v1420_v26, 6 }
  0xb1   : > { %1200 = vrot.lane.b32.xlu1 %v1127_v41, %s11528_s20  ;;  %v1369_v41 = vor.u32 %v1368_v35, %v1365_v17  ;;  %v1301_v17 = vld [vmem:[%s11564_s18 + $0x78] sm:$0xe]  ;;  %v1429_v51 = vshll.u32 %v1286_v24, 16  ;;  %v12205_v2 = vrot.slane %v1513_v8, 4  ;;  %v12207_v29 = vrot.slane %v1498_v9, 5 }
  0xb2   : > { %1198 = vrot.lane.b32.xlu0 %v1123_v39, %s11528_s20  ;;  %v1516_v39 = vshrl.u32 %v1296_v36, 16  ;;  %v12197_v61 = vrot.slane %v1489_v33, 5  ;;  %v1561_v19 = vshrl.u32 %v1301_v17, 16  ;;  %v1564_v44 = vshll.u32 %v1301_v17, 16  ;;  %v1300_v12 = vld [vmem:[%s11564_s18 + $0x74] sm:$0x3] }
  0xb3   : > { %v793_v48 = vpop.permute.xlu1 %792  ;;  %v1370_v22 = vrot.slane %v1369_v41, 4  ;;  %v1570_v36 = vshrl.u32 %v1302_v10, 16  ;;  %v1423_v34 = vor.u32 %v1422_v62, %v1419_v60  ;;  %v1573_v38 = vshll.u32 %v1302_v10, 16  ;;  %v1291_v41 = vld [vmem:[%s11564_s18 + $0x38] sm:$0xe] }
  0xb4   : > { %873 = vst.msk [vmem:[#allocation2 + $0x100] sm:$0xf] %vm856_vm7, %v793_v48  ;;  %v791_v50 = vpop.permute.xlu0 %790  ;;  %1196 = vrot.lane.b32.xlu2 %v1119_v56, %s11528_s20  ;;  %v211_v56 = vld [vmem:[%s11564_s18 + $0x140] sm:$0xf]  ;;  %v1460_v48 = vrot.slane %v1459_v28, 4  ;;  %v12174_v59 = vrot.slane %v1516_v39, 5  ;;  %v12212_v28 = vsel %vm12136_vm10, %v1442_v16, %v1450_v14 }
  0xb5   : > { %872 = vst.msk [vmem:[#allocation2 + $0xf0] sm:$0xf] %vm856_vm7, %v791_v50  ;;  %v1379_v63 = vsel %vm12136_vm10, %v1370_v22, %v1378_v21  ;;  %v1543_v40 = vshrl.u32 %v1299_v4, 16  ;;  %v1431_v42 = vrot.slane %v1429_v51, 6  ;;  %v1292_v54 = vld [vmem:[%s11564_s18 + $0x3c] sm:$0x3] }
  0xb6   : > { %v807_v15 = vpop.permute.xlu2 %806  ;;  %244 = vst.msk [vmem:[#allocation2 + $0x1f0] sm:$0xf] %vm212_vm5, %v211_v56  ;;  %v1522_v7 = vor.u32 %v12178_v13, %v12174_v59  ;;  %v1563_v55 = vrot.slane %v1561_v19, 5  ;;  %v1566_v43 = vrot.slane %v1564_v44, 6  ;;  %v1552_v56 = vshrl.u32 %v1300_v12, 16 }
  0xb7   : > { %880 = vst.msk [vmem:[#allocation2 + $0x170] sm:$0xf] %vm856_vm7, %v807_v15  ;;  %v12202_v15 = vrot.slane %v1492_v30, 6  ;;  %v1471_v20 = vshrl.u32 %v1291_v41, 16  ;;  %v12233_v16 = vrot.slane %v1573_v38, 6  ;;  %v1474_v22 = vshll.u32 %v1291_v41, 16 }
  0xb8   : > { %v1480_v33 = vshrl.u32 %v1292_v54, 16  ;;  %v1308_v8 = vld [vmem:[%s11564_s18 + $0x94] sm:$0x3]  ;;  %v1567_v14 = vor.u32 %v1566_v43, %v1563_v55  ;;  %v12238_v21 = vrot.slane %v1552_v56, 5  ;;  %v1297_v19 = vld [vmem:[%s11564_s18 + $0x68] sm:$0xe] }
  0xb9   : > { %1206 = vrot.lane.b32.xlu1 %v1139_v23, %s11528_s20  ;;  %v1501_v23 = vshll.u32 %v1294_v6, 16  ;;  %v1495_v52 = vor.u32 %v12202_v15, %v12197_v61  ;;  %v1473_v37 = vrot.slane %v1471_v20, 5  ;;  %v1624_v15 = vshrl.u32 %v1308_v8, 16  ;;  %v1313_v56 = vld [vmem:[%s11564_s18 + $0xc0] sm:$0xe] }
  0xba   : > { %1204 = vrot.lane.b32.xlu0 %v1135_v31, %s11528_s20  ;;  %v12195_v31 = vsel %vm12136_vm10, %v1460_v48, %v1468_v47  ;;  %v1545_v47 = vrot.slane %v1543_v40, 5  ;;  %v1424_v48 = vrot.slane %v1423_v34, 4  ;;  %v1482_v17 = vrot.slane %v1480_v33, 5  ;;  %v1314_v13 = vld [vmem:[%s11564_s18 + $0xc4] sm:$0x3] }
  0xbb   : > { %v799_v53 = vpop.permute.xlu1 %798  ;;  %v12216_v35 = vrot.slane %v1501_v23, 6  ;;  %v1627_v62 = vshll.u32 %v1308_v8, 16  ;;  %v1626_v38 = vrot.slane %v1624_v15, 5  ;;  %v1681_v15 = vshll.u32 %v1314_v13, 16 }
  0xbc   : > { %876 = vst.msk [vmem:[#allocation2 + $0x130] sm:$0xf] %vm856_vm7, %v799_v53  ;;  %v797_v3 = vpop.permute.xlu0 %796  ;;  %1202 = vrot.lane.b32.xlu2 %v1131_v1, %s11528_s20  ;;  %v1426_v1 = vshrl.u32 %v1286_v24, 16  ;;  %v1546_v53 = vshll.u32 %v1299_v4, 16  ;;  %v1305_v24 = vld [vmem:[%s11564_s18 + $0x88] sm:$0xe] }
  0xbd   : > { %875 = vst.msk [vmem:[#allocation2 + $0x120] sm:$0xf] %vm856_vm7, %v797_v3  ;;  %v1555_v3 = vshll.u32 %v1300_v12, 16  ;;  %v1298_v12 = vld [vmem:[%s11564_s18 + $0x6c] sm:$0x3]  ;;  %v1629_v40 = vrot.slane %v1627_v62, 6 }
  0xbe   : > { %v813_v50 = vpop.permute.xlu2 %812  ;;  %v1428_v39 = vrot.slane %v1426_v1, 5  ;;  %v1548_v6 = vrot.slane %v1546_v53, 6  ;;  %v1496_v1 = vrot.slane %v1495_v52, 4  ;;  %v1600_v41 = vshll.u32 %v1305_v24, 16 }
  0xbf   : > { %883 = vst.msk [vmem:[#allocation2 + $0x1a0] sm:$0xf] %vm856_vm7, %v813_v50  ;;  %v1483_v50 = vshll.u32 %v1292_v54, 16  ;;  %v12240_v23 = vrot.slane %v1555_v3, 6  ;;  %v1528_v53 = vshll.u32 %v1297_v19, 16 }
  0xc0   : > { %v1432_v30 = vor.u32 %v1431_v42, %v1428_v39  ;;  %v1525_v42 = vshrl.u32 %v1297_v19, 16 }
  0xc1   : > { %1920 = vrot.lane.b32.xlu1 %v1361_v5, %s11529_s21  ;;  %v1307_v5 = vld [vmem:[%s11564_s18 + $0x90] sm:$0xe]  ;;  %v1485_v10 = vrot.slane %v1483_v50, 6 }
  0xc2   : > { %1210 = vrot.lane.b32.xlu0 %v1147_v46, %s11528_s20  ;;  %v12229_v46 = vrot.slane %v1570_v36, 5  ;;  %v1615_v9 = vshrl.u32 %v1307_v5, 16  ;;  %v1618_v60 = vshll.u32 %v1307_v5, 16  ;;  %v1306_v36 = vld [vmem:[%s11564_s18 + $0x8c] sm:$0x3]  ;;  %v1527_v5 = vrot.slane %v1525_v42, 5 }
  0xc3   : > { %v805_v18 = vpop.permute.xlu1 %804  ;;  %v1486_v39 = vor.u32 %v1485_v10, %v1482_v17  ;;  %v1606_v55 = vshrl.u32 %v1306_v36, 16  ;;  %v1609_v43 = vshll.u32 %v1306_v36, 16  ;;  %v12314_v42 = vrot.slane %v1681_v15, 6 }
  0xc4   : > { %879 = vst.msk [vmem:[#allocation2 + $0x160] sm:$0xf] %vm856_vm7, %v805_v18  ;;  %v803_v57 = vpop.permute.xlu0 %802  ;;  %1208 = vrot.lane.b32.xlu2 %v1143_v27, %s11528_s20  ;;  %v1549_v27 = vor.u32 %v1548_v6, %v1545_v47  ;;  %v1617_v61 = vrot.slane %v1615_v9, 5  ;;  %v1620_v4 = vrot.slane %v1618_v60, 6  ;;  %v1597_v18 = vshrl.u32 %v1305_v24, 16 }
  0xc5   : > { %878 = vst.msk [vmem:[#allocation2 + $0x150] sm:$0xf] %vm856_vm7, %v803_v57  ;;  %v1568_v57 = vrot.slane %v1567_v14, 4  ;;  %v1534_v47 = vshrl.u32 %v1298_v12, 16  ;;  %v12290_v50 = vrot.slane %v1606_v55, 5  ;;  %v12292_v8 = vrot.slane %v1609_v43, 6 }
  0xc6   : > { %v819_v0 = vpop.permute.xlu2 %818  ;;  %v1621_v34 = vor.u32 %v1620_v4, %v1617_v61  ;;  %v1550_v52 = vrot.slane %v1549_v27, 4  ;;  %v1312_v9 = vld [vmem:[%s11564_s18 + $0xbc] sm:$0x3]  ;;  %v1303_v24 = vld [vmem:[%s11564_s18 + $0x80] sm:$0xe]  ;;  %v1678_v27 = vshrl.u32 %v1314_v13, 16 }
  0xc7   : > { %886 = vst.msk [vmem:[#allocation2 + $0x1d0] sm:$0xf] %vm856_vm7, %v819_v0  ;;  %v12262_v0 = vrot.slane %v1597_v18, 5  ;;  %v1304_v60 = vld [vmem:[%s11564_s18 + $0x84] sm:$0x3]  ;;  %v1660_v62 = vshrl.u32 %v1312_v9, 16 }
  0xc8   : > { %v1622_v20 = vrot.slane %v1621_v34, 4  ;;  %v1663_v18 = vshll.u32 %v1312_v9, 16  ;;  %v1579_v19 = vshrl.u32 %v1303_v24, 16  ;;  %v1588_v36 = vshrl.u32 %v1304_v60, 16 }
  0xc9   : > { %1926 = vrot.lane.b32.xlu1 %v12167_v32, %s11529_s21  ;;  %v1476_v32 = vrot.slane %v1474_v22, 6  ;;  %v1311_v22 = vld [vmem:[%s11564_s18 + $0xb8] sm:$0xe] }
  0xca   : > { %1924 = vrot.lane.b32.xlu0 %v12172_v58, %s11529_s21  ;;  %v1504_v58 = vor.u32 %v12216_v35, %v12207_v29  ;;  %v1433_v29 = vsel %vm12136_vm10, %v1424_v48, %v1432_v30  ;;  %v1576_v35 = vor.u32 %v12233_v16, %v12229_v46  ;;  %v1530_v46 = vrot.slane %v1528_v53, 6 }
  0xcb   : > { %v811_v45 = vpop.permute.xlu1 %810  ;;  %v1477_v51 = vor.u32 %v1476_v32, %v1473_v37  ;;  %v1630_v48 = vor.u32 %v1629_v40, %v1626_v38  ;;  %v12272_v16 = vrot.slane %v1600_v41, 6  ;;  %v1651_v32 = vshrl.u32 %v1311_v22, 16 }
  0xcc   : > { %882 = vst.msk [vmem:[#allocation2 + $0x190] sm:$0xf] %vm856_vm7, %v811_v45  ;;  %v809_v26 = vpop.permute.xlu0 %808  ;;  %1922 = vrot.lane.b32.xlu2 %v1379_v63, %s11529_s21  ;;  %v1558_v63 = vor.u32 %v12240_v23, %v12238_v21  ;;  %v1505_v33 = vsel %vm12136_vm10, %v1496_v1, %v1504_v58  ;;  %v12281_v59 = vsel %vm12136_vm10, %v1568_v57, %v1576_v35  ;;  %v1536_v21 = vrot.slane %v1534_v47, 5  ;;  %v1319_v1 = vld [vmem:[%s11564_s18 + $0xd8] sm:$0xe] }
  0xcd   : > { %881 = vst.msk [vmem:[#allocation2 + $0x180] sm:$0xf] %vm856_vm7, %v809_v26  ;;  %v1478_v54 = vrot.slane %v1477_v51, 4  ;;  %v1531_v14 = vor.u32 %v1530_v46, %v1527_v5  ;;  %v12299_v26 = vsel %vm12136_vm10, %v1622_v20, %v1630_v48  ;;  %v1603_v58 = vor.u32 %v12272_v16, %v12262_v0 }
  0xce   : > { %v1149_v44 = vpop.permute.xlu2 %1148  ;;  %v12286_v30 = vsel %vm12136_vm10, %v1550_v52, %v1558_v63  ;;  %v1654_v61 = vshll.u32 %v1311_v22, 16  ;;  %v1653_v51 = vrot.slane %v1651_v32, 5  ;;  %v1582_v63 = vshll.u32 %v1303_v24, 16 }
  0xcf   : > { %1245 = vst.msk [vmem:[#allocation2] sm:$0xf] %vm1244_vm11, %v1149_v44  ;;  %v1487_v37 = vsel %vm12136_vm10, %v1478_v54, %v1486_v39  ;;  %v1320_v44 = vld [vmem:[%s11564_s18 + $0xdc] sm:$0x3]  ;;  %v1532_v57 = vrot.slane %v1531_v14, 4  ;;  %v12310_v38 = vrot.slane %v1678_v27, 5 }
  0xd0   : > { %v1656_v4 = vrot.slane %v1654_v61, 6  ;;  %v1581_v40 = vrot.slane %v1579_v19, 5  ;;  %v1591_v41 = vshll.u32 %v1304_v60, 16  ;;  %v1723_v52 = vshrl.u32 %v1319_v1, 16  ;;  %v1310_v14 = vld [vmem:[%s11564_s18 + $0xb4] sm:$0x3] }
  0xd1   : > { %1932 = vrot.lane.b32.xlu1 %v12195_v31, %s11529_s21  ;;  %v1537_v31 = vshll.u32 %v1298_v12, 16  ;;  %v1317_v12 = vld [vmem:[%s11564_s18 + $0xd0] sm:$0xe]  ;;  %v12316_v53 = vrot.slane %v1660_v62, 5  ;;  %v1584_v54 = vrot.slane %v1582_v63, 6  ;;  %v12318_v55 = vrot.slane %v1663_v18, 6 }
  0xd2   : > { %1930 = vrot.lane.b32.xlu0 %v12212_v28, %s11529_s21  ;;  %v1523_v28 = vsel %vm12136_vm10, %v12205_v2, %v1522_v7  ;;  %v1669_v2 = vshrl.u32 %v1313_v56, 16  ;;  %v1672_v7 = vshll.u32 %v1313_v56, 16  ;;  %v1657_v0 = vor.u32 %v1656_v4, %v1653_v51  ;;  %v1325_v60 = vld [vmem:[%s11564_s18 + $0x108] sm:$0xe] }
  0xd3   : > { %v817_v3 = vpop.permute.xlu1 %816  ;;  %v1539_v23 = vrot.slane %v1537_v31, 6  ;;  %v1725_v43 = vrot.slane %v1723_v52, 5  ;;  %v1726_v56 = vshll.u32 %v1319_v1, 16  ;;  %v1590_v5 = vrot.slane %v1588_v36, 5  ;;  %v1323_v19 = vld [vmem:[%s11564_s18 + $0xe8] sm:$0xe] }
  0xd4   : > { %885 = vst.msk [vmem:[#allocation2 + $0x1c0] sm:$0xf] %vm856_vm7, %v817_v3  ;;  %v815_v6 = vpop.permute.xlu0 %814  ;;  %1928 = vrot.lane.b32.xlu2 %v1433_v29, %s11529_s21  ;;  %v1671_v17 = vrot.slane %v1669_v2, 5  ;;  %v1674_v10 = vrot.slane %v1672_v7, 6  ;;  %v1732_v46 = vshrl.u32 %v1320_v44, 16  ;;  %v1735_v47 = vshll.u32 %v1320_v44, 16 }
  0xd5   : > { %884 = vst.msk [vmem:[#allocation2 + $0x1b0] sm:$0xf] %vm856_vm7, %v815_v6  ;;  %v1540_v35 = vor.u32 %v1539_v23, %v1536_v21  ;;  %v1705_v31 = vshrl.u32 %v1317_v12, 16  ;;  %v1309_v6 = vld [vmem:[%s11564_s18 + $0xb0] sm:$0xe]  ;;  %v1593_v20 = vrot.slane %v1591_v41, 6  ;;  %v1684_v2 = vor.u32 %v12314_v42, %v12310_v38 }
  0xd6   : > { %v1155_v45 = vpop.permute.xlu2 %1154  ;;  %v1675_v39 = vor.u32 %v1674_v10, %v1671_v17  ;;  %v1728_v48 = vrot.slane %v1726_v56, 6  ;;  %v1708_v16 = vshll.u32 %v1317_v12, 16  ;;  %v1604_v22 = vrot.slane %v1603_v58, 4  ;;  %v1318_v21 = vld [vmem:[%s11564_s18 + $0xd4] sm:$0x3] }
  0xd7   : > { %1248 = vst.msk [vmem:[#allocation2 + $0x30] sm:$0xf] %vm1244_vm11, %v1155_v45  ;;  %v1541_v13 = vsel %vm12136_vm10, %v1532_v57, %v1540_v35  ;;  %v1734_v9 = vrot.slane %v1732_v46, 5  ;;  %v1737_v45 = vrot.slane %v1735_v47, 6  ;;  %v1707_v23 = vrot.slane %v1705_v31, 5 }
  0xd8   : > { %v1676_v7 = vrot.slane %v1675_v39, 4  ;;  %v1710_v32 = vrot.slane %v1708_v16, 6  ;;  %v1658_v58 = vrot.slane %v1657_v0, 4  ;;  %v1594_v61 = vor.u32 %v1593_v20, %v1590_v5  ;;  %v1326_v35 = vld [vmem:[%s11564_s18 + $0x10c] sm:$0x3] }
  0xd9   : > { %1938 = vrot.lane.b32.xlu1 %v1523_v28, %s11529_s21  ;;  %v1585_v28 = vor.u32 %v1584_v54, %v1581_v40  ;;  %v1642_v15 = vshrl.u32 %v1310_v14, 16  ;;  %v1645_v62 = vshll.u32 %v1310_v14, 16  ;;  %v1738_v51 = vor.u32 %v1737_v45, %v1734_v9  ;;  %v1324_v39 = vld [vmem:[%s11564_s18 + $0xec] sm:$0x3]  ;;  %v1331_v31 = vld [vmem:[%s11564_s18 + $0x120] sm:$0xe] }
  0xda   : > { %1936 = vrot.lane.b32.xlu0 %v1505_v33, %s11529_s21  ;;  %v1612_v33 = vor.u32 %v12292_v8, %v12290_v50  ;;  %v1633_v50 = vshrl.u32 %v1309_v6, 16  ;;  %v1636_v8 = vshll.u32 %v1309_v6, 16  ;;  %v1714_v4 = vshrl.u32 %v1318_v21, 16  ;;  %v1329_v14 = vld [vmem:[%s11564_s18 + $0x118] sm:$0xe] }
  0xdb   : > { %v823_v29 = vpop.permute.xlu1 %822  ;;  %v1586_v27 = vrot.slane %v1585_v28, 4  ;;  %v1717_v18 = vshll.u32 %v1318_v21, 16  ;;  %v1711_v57 = vor.u32 %v1710_v32, %v1707_v23  ;;  %v1777_v63 = vshrl.u32 %v1325_v60, 16 }
  0xdc   : > { %888 = vst.msk [vmem:[#allocation2 + $0x1f0] sm:$0xf] %vm856_vm7, %v823_v29  ;;  %v821_v34 = vpop.permute.xlu0 %820  ;;  %1934 = vrot.lane.b32.xlu2 %v1487_v37, %s11529_s21  ;;  %v1729_v37 = vor.u32 %v1728_v48, %v1725_v43  ;;  %v1635_v17 = vrot.slane %v1633_v50, 5  ;;  %v1638_v10 = vrot.slane %v1636_v8, 6  ;;  %v1613_v44 = vsel %vm12136_vm10, %v1604_v22, %v1612_v33  ;;  %v1316_v43 = vld [vmem:[%s11564_s18 + $0xcc] sm:$0x3] }
  0xdd   : > { %887 = vst.msk [vmem:[#allocation2 + $0x1e0] sm:$0xf] %vm856_vm7, %v821_v34  ;;  %v1644_v12 = vrot.slane %v1642_v15, 5  ;;  %v1647_v34 = vrot.slane %v1645_v62, 6  ;;  %v1780_v38 = vshll.u32 %v1325_v60, 16  ;;  %v1685_v40 = vsel %vm12136_vm10, %v1676_v7, %v1684_v2 }
  0xde   : > { %v1161_v3 = vpop.permute.xlu2 %1160  ;;  %v1730_v1 = vrot.slane %v1729_v37, 4  ;;  %v1639_v36 = vor.u32 %v1638_v10, %v1635_v17  ;;  %v1595_v52 = vsel %vm12136_vm10, %v1586_v27, %v1594_v61  ;;  %v1759_v42 = vshrl.u32 %v1323_v19, 16  ;;  %v1332_v50 = vld [vmem:[%s11564_s18 + $0x124] sm:$0x3]  ;;  %v1330_v10 = vld [vmem:[%s11564_s18 + $0x11c] sm:$0x3] }
  0xdf   : > { %1251 = vst.msk [vmem:[#allocation2 + $0x60] sm:$0xf] %vm1244_vm11, %v1161_v3  ;;  %v12362_v0 = vrot.slane %v1717_v18, 6  ;;  %v12365_v3 = vrot.slane %v1711_v57, 4  ;;  %v12367_v5 = vrot.slane %v1777_v63, 5  ;;  %v1786_v46 = vshrl.u32 %v1326_v35, 16 }
  0xe0   : > { %v12358_v54 = vsel %vm12136_vm10, %v1730_v1, %v1738_v51  ;;  %v1789_v47 = vshll.u32 %v1326_v35, 16  ;;  %v1640_v28 = vrot.slane %v1639_v36, 4  ;;  %v1648_v20 = vor.u32 %v1647_v34, %v1644_v12  ;;  %v1321_v18 = vld [vmem:[%s11564_s18 + $0xe0] sm:$0xe]  ;;  %v1322_v63 = vld [vmem:[%s11564_s18 + $0xe4] sm:$0x3] }
  0xe1   : > { %1944 = vrot.lane.b32.xlu1 %v12281_v59, %s11529_s21  ;;  %v1782_v48 = vrot.slane %v1780_v38, 6  ;;  %v1761_v22 = vrot.slane %v1759_v42, 5  ;;  %v1768_v33 = vshrl.u32 %v1324_v39, 16  ;;  %v1696_v2 = vshrl.u32 %v1316_v43, 16 }
  0xe2   : > { %1942 = vrot.lane.b32.xlu0 %v12286_v30, %s11529_s21  ;;  %v1666_v30 = vor.u32 %v12318_v55, %v12316_v53  ;;  %v1315_v53 = vld [vmem:[%s11564_s18 + $0xc8] sm:$0xe]  ;;  %v1762_v55 = vshll.u32 %v1323_v19, 16  ;;  %v1771_v37 = vshll.u32 %v1324_v39, 16  ;;  %v1699_v45 = vshll.u32 %v1316_v43, 16 }
  0xe3   : > { %v1153_v59 = vpop.permute.xlu1 %1152  ;;  %v1687_v16 = vshrl.u32 %v1315_v53, 16  ;;  %v1698_v32 = vrot.slane %v1696_v2, 5  ;;  %v1831_v8 = vshrl.u32 %v1331_v31, 16  ;;  %v1834_v27 = vshll.u32 %v1331_v31, 16  ;;  %v1337_v31 = vld [vmem:[%s11564_s18 + $0x138] sm:$0xe] }
  0xe4   : > { %1247 = vst.msk [vmem:[#allocation2 + $0x20] sm:$0xf] %vm1244_vm11, %v1153_v59  ;;  %v1151_v24 = vpop.permute.xlu0 %1150  ;;  %1940 = vrot.lane.b32.xlu2 %v1541_v13, %s11529_s21  ;;  %v1667_v41 = vsel %vm12136_vm10, %v1658_v58, %v1666_v30  ;;  %v1690_v13 = vshll.u32 %v1315_v53, 16  ;;  %v1764_v7 = vrot.slane %v1762_v55, 6  ;;  %v1791_v58 = vrot.slane %v1789_v47, 6 }
  0xe5   : > { %1246 = vst.msk [vmem:[#allocation2 + $0x10] sm:$0xf] %vm1244_vm11, %v1151_v24  ;;  %v1689_v9 = vrot.slane %v1687_v16, 5  ;;  %v12378_v24 = vrot.slane %v1786_v46, 5  ;;  %v1701_v30 = vrot.slane %v1699_v45, 6  ;;  %v1649_v61 = vsel %vm12136_vm10, %v1640_v28, %v1648_v20 }
  0xe6   : > { %v1167_v29 = vpop.permute.xlu2 %1166  ;;  %v1692_v23 = vrot.slane %v1690_v13, 6  ;;  %v1783_v60 = vor.u32 %v1782_v48, %v12367_v5  ;;  %v1813_v15 = vshrl.u32 %v1329_v14, 16  ;;  %v1765_v62 = vor.u32 %v1764_v7, %v1761_v22 }
  0xe7   : > { %1254 = vst.msk [vmem:[#allocation2 + $0x90] sm:$0xf] %vm1244_vm11, %v1167_v29  ;;  %v1770_v1 = vrot.slane %v1768_v33, 5  ;;  %v1773_v51 = vrot.slane %v1771_v37, 6  ;;  %v1833_v29 = vrot.slane %v1831_v8, 5  ;;  %v1840_v57 = vshrl.u32 %v1332_v50, 16 }
  0xe8   : > { %v1693_v17 = vor.u32 %v1692_v23, %v1689_v9  ;;  %v1843_v35 = vshll.u32 %v1332_v50, 16  ;;  %v1836_v34 = vrot.slane %v1834_v27, 6  ;;  %v1815_v38 = vrot.slane %v1813_v15, 5  ;;  %v1335_v9 = vld [vmem:[%s11564_s18 + $0x130] sm:$0xe] }
  0xe9   : > { %1950 = vrot.lane.b32.xlu1 %v12299_v26, %s11529_s21  ;;  %v12360_v26 = vrot.slane %v1714_v4, 5  ;;  %v1816_v4 = vshll.u32 %v1329_v14, 16  ;;  %v1741_v39 = vshrl.u32 %v1321_v18, 16  ;;  %v1744_v42 = vshll.u32 %v1321_v18, 16 }
  0xea   : > { %1948 = vrot.lane.b32.xlu0 %v1613_v44, %s11529_s21  ;;  %v1702_v44 = vor.u32 %v1701_v30, %v1698_v32  ;;  %v1694_v12 = vrot.slane %v1693_v17, 4  ;;  %v1774_v55 = vor.u32 %v1773_v51, %v1770_v1  ;;  %v1750_v46 = vshrl.u32 %v1322_v63, 16  ;;  %v11477_v17 = vld [vmem:[%s16196_s1 + $0x38] sm:$0xff] }
  0xeb   : > { %v1159_v56 = vpop.permute.xlu1 %1158  ;;  %v1720_v59 = vor.u32 %v12362_v0, %v12360_v26  ;;  %v1784_v26 = vrot.slane %v1783_v60, 4  ;;  %v1792_v0 = vor.u32 %v1791_v58, %v12378_v24  ;;  %v1746_v5 = vrot.slane %v1744_v42, 6  ;;  %v1328_v58 = vld [vmem:[%s11564_s18 + $0x114] sm:$0x3]  ;;  %8264 = vmatpush.bf16.msra.mxu0 %v11477_v17  ;;  %v10194_v17 = vld [vmem:[%s11564_s18 + $0x20] sm:$0xf] }
  0xec   : > { %1250 = vst.msk [vmem:[#allocation2 + $0x50] sm:$0xf] %vm1244_vm11, %v1159_v56  ;;  %v1157_v6 = vpop.permute.xlu0 %1156  ;;  %1946 = vrot.lane.b32.xlu2 %v1595_v52, %s11529_s21  ;;  %v1825_v52 = vshll.u32 %v1330_v10, 16  ;;  %v1743_v56 = vrot.slane %v1741_v39, 5  ;;  %v1753_v47 = vshll.u32 %v1322_v63, 16  ;;  %v1837_v28 = vor.u32 %v1836_v34, %v1833_v29 }
  0xed   : > { %1249 = vst.msk [vmem:[#allocation2 + $0x40] sm:$0xf] %vm1244_vm11, %v1157_v6  ;;  %v1721_v53 = vsel %vm12136_vm10, %v12365_v3, %v1720_v59  ;;  %v1766_v6 = vrot.slane %v1765_v62, 4  ;;  %v1842_v20 = vrot.slane %v1840_v57, 5  ;;  %v1845_v48 = vrot.slane %v1843_v35, 6 }
  0xee   : > { %v1173_v21 = vpop.permute.xlu2 %1172  ;;  %v1703_v3 = vsel %vm12136_vm10, %v1694_v12, %v1702_v44  ;;  %v1827_v33 = vrot.slane %v1825_v52, 6  ;;  %v1747_v13 = vor.u32 %v1746_v5, %v1743_v56  ;;  %v1752_v2 = vrot.slane %v1750_v46, 5  ;;  %v1338_v59 = vld [vmem:[%s11564_s18 + $0x13c] sm:$0x3]  ;;  %v10190_v29 = vld [vmem:[%s11564_s18 + $0x10] sm:$0xf] }
  0xef   : > { %1257 = vst.msk [vmem:[#allocation2 + $0xc0] sm:$0xf] %vm1244_vm11, %v1173_v21  ;;  %v1755_v7 = vrot.slane %v1753_v47, 6  ;;  %v1885_v37 = vshrl.u32 %v1337_v31, 16  ;;  %v1793_v14 = vsel %vm12136_vm10, %v1784_v26, %v1792_v0  ;;  %v1327_v21 = vld [vmem:[%s11564_s18 + $0x110] sm:$0xe]  ;;  %v1775_v32 = vsel %vm12136_vm10, %v1766_v6, %v1774_v55 }
  0xf0   : > { %v1838_v50 = vrot.slane %v1837_v28, 4  ;;  %v1846_v8 = vor.u32 %v1845_v48, %v1842_v20  ;;  %v1888_v24 = vshll.u32 %v1337_v31, 16  ;;  %v1870_v60 = vshll.u32 %v1335_v9, 16  ;;  %v11476_v26 = vld [vmem:[%s16196_s1 + $0x30] sm:$0xff]  ;;  %v1333_v46 = vld [vmem:[%s11564_s18 + $0x128] sm:$0xe] }
  0xf1   : > { %1956 = vrot.lane.b32.xlu1 %v1685_v40, %s11529_s21  ;;  %v1818_v40 = vrot.slane %v1816_v4, 6  ;;  %v1756_v15 = vor.u32 %v1755_v7, %v1752_v2  ;;  %v12419_v62 = vrot.slane %v1885_v37, 5  ;;  %v1795_v1 = vshrl.u32 %v1327_v21, 16  ;;  %v1334_v47 = vld [vmem:[%s11564_s18 + $0x12c] sm:$0x3]  ;;  %8265 = vmatpush.bf16.msra.mxu0 %v11476_v26 }
  0xf2   : > { %1954 = vrot.lane.b32.xlu0 %v1667_v41, %s11529_s21  ;;  %v1822_v41 = vshrl.u32 %v1330_v10, 16  ;;  %v1748_v10 = vrot.slane %v1747_v13, 4  ;;  %v1894_v4 = vshrl.u32 %v1338_v59, 16  ;;  %v1897_v18 = vshll.u32 %v1338_v59, 16  ;;  %v10191_v7 = vld [vmem:[%s11564_s18 + $0x14] sm:$0x1] }
  0xf3   : > { %v1165_v19 = vpop.permute.xlu1 %1164  ;;  %v1819_v16 = vor.u32 %v1818_v40, %v1815_v38  ;;  %v1804_v44 = vshrl.u32 %v1328_v58, 16  ;;  %v1890_v57 = vrot.slane %v1888_v24, 6  ;;  %v1797_v63 = vrot.slane %v1795_v1, 5 }
  0xf4   : > { %1253 = vst.msk [vmem:[#allocation2 + $0x80] sm:$0xf] %vm1244_vm11, %v1165_v19  ;;  %v1163_v36 = vpop.permute.xlu0 %1162  ;;  %1952 = vrot.lane.b32.xlu2 %v1649_v61, %s11529_s21  ;;  %v1824_v22 = vrot.slane %v1822_v41, 5  ;;  %v1867_v61 = vshrl.u32 %v1335_v9, 16  ;;  %v1798_v19 = vshll.u32 %v1327_v21, 16  ;;  %v1872_v34 = vrot.slane %v1870_v60, 6 }
  0xf5   : > { %1252 = vst.msk [vmem:[#allocation2 + $0x70] sm:$0xf] %vm1244_vm11, %v1163_v36  ;;  %v1820_v30 = vrot.slane %v1819_v16, 4  ;;  %v1807_v36 = vshll.u32 %v1328_v58, 16  ;;  %v10188_v41 = vld [vmem:[%s11564_s18 + $0x8] sm:$0xf]  ;;  %v1847_v52 = vsel %vm12136_vm10, %v1838_v50, %v1846_v8  ;;  %v1757_v39 = vsel %vm12136_vm10, %v1748_v10, %v1756_v15 }
  0xf6   : > { %v1179_v43 = vpop.permute.xlu2 %1178  ;;  %v1828_v27 = vor.u32 %v1827_v33, %v1824_v22  ;;  %v12425_v12 = vrot.slane %v1867_v61, 5  ;;  %v1800_v40 = vrot.slane %v1798_v19, 6  ;;  %v1806_v42 = vrot.slane %v1804_v44, 5  ;;  %v10189_v21 = vld [vmem:[%s11564_s18 + $0xc] sm:$0x1] }
  0xf7   : > { %1260 = vst.msk [vmem:[#allocation2 + $0xf0] sm:$0xf] %vm1244_vm11, %v1179_v43  ;;  %v2193_v56 = vshrl.u32 %v10190_v29, 16  ;;  %v2196_v5 = vshll.u32 %v10190_v29, 16  ;;  %v12442_v6 = vrot.slane %v1894_v4, 5  ;;  %v12444_v28 = vrot.slane %v1897_v18, 6 }
  0xf8   : > { %v1829_v55 = vsel %vm12136_vm10, %v1820_v30, %v1828_v27  ;;  %v1801_v43 = vor.u32 %v1800_v40, %v1797_v63  ;;  %v2179_v20 = vshrl.u32 %v10188_v41, 16  ;;  %v2182_v48 = vshll.u32 %v10188_v41, 16  ;;  %v10196_v60 = vld [vmem:[%s11564_s18 + $0x28] sm:$0xf]  ;;  %v11474_v4 = vld [vmem:[%s16196_s1 + $0x20] sm:$0xff] }
  0xf9   : > { %1962 = vrot.lane.b32.xlu1 %v12358_v54, %s11529_s21  ;;  %v12407_v54 = vld [vmem:[%s11564_s18 + $0x134] sm:$0x3]  ;;  %v1873_v16 = vor.u32 %v1872_v34, %v12425_v12  ;;  %v1849_v37 = vshrl.u32 %v1333_v46, 16  ;;  %v1852_v9 = vshll.u32 %v1333_v46, 16  ;;  %v2195_v59 = vrot.slane %v2193_v56, 4 }
  0xfa   : > { %1960 = vrot.lane.b32.xlu0 %v1721_v53, %s11529_s21  ;;  %v1876_v35 = vshrl.u32 %v12407_v54, 16  ;;  %v1879_v38 = vshll.u32 %v12407_v54, 16  ;;  %v1809_v53 = vrot.slane %v1807_v36, 6  ;;  %v1802_v13 = vrot.slane %v1801_v43, 4  ;;  %v10197_v56 = vld [vmem:[%s11564_s18 + $0x2c] sm:$0x1] }
  0xfb   : > { %v1171_v45 = vpop.permute.xlu1 %1170  ;;  %v2198_v54 = vrot.slane %v2196_v5, 5  ;;  %v2181_v50 = vrot.slane %v2179_v20, 4  ;;  %v2184_v8 = vrot.slane %v2182_v48, 5  ;;  %v1851_v24 = vrot.slane %v1849_v37, 5 }
  0xfc   : > { %1256 = vst.msk [vmem:[#allocation2 + $0xb0] sm:$0xf] %vm1244_vm11, %v1171_v45  ;;  %v1169_v23 = vpop.permute.xlu0 %1168  ;;  %1958 = vrot.lane.b32.xlu2 %v1703_v3, %s11529_s21  ;;  %v1891_v3 = vor.u32 %v1890_v57, %v12419_v62  ;;  %v1878_v22 = vrot.slane %v1876_v35, 5  ;;  %v1881_v33 = vrot.slane %v1879_v38, 6  ;;  %v1810_v2 = vor.u32 %v1809_v53, %v1806_v42  ;;  %v11475_v45 = vld [vmem:[%s16196_s1 + $0x28] sm:$0xff]  ;;  %v11473_v42 = vld [vmem:[%s16196_s1 + $0x18] sm:$0xff] }
  0xfd   : > { %1255 = vst.msk [vmem:[#allocation2 + $0xa0] sm:$0xf] %vm1244_vm11, %v1169_v23  ;;  %v1858_v23 = vshrl.u32 %v1334_v47, 16  ;;  %v1854_v58 = vrot.slane %v1852_v9, 6  ;;  %8266 = vmatpush.bf16.msra.mxu0 %v11475_v45  ;;  %v1900_v30 = vor.u32 %v12444_v28, %v12442_v6  ;;  %v1874_v19 = vrot.slane %v1873_v16, 4  ;;  %v11472_v45 = vld [vmem:[%s16196_s1 + $0x10] sm:$0xff] }
  0xfe   : > { %v1185_v51 = vpop.permute.xlu2 %1184  ;;  %v1892_v10 = vrot.slane %v1891_v3, 4  ;;  %v1882_v15 = vor.u32 %v1881_v33, %v1878_v22  ;;  %v1811_v62 = vsel %vm12136_vm10, %v1802_v13, %v1810_v2  ;;  %v2199_v44 = vor.u32 %v2198_v54, %v2195_v59  ;;  %v1340_v35 = vld [vmem:[%s11564_s18 + $0x144] sm:$0x3]  ;;  %v10202_v33 = vld [vmem:[%s11564_s18 + $0x40] sm:$0xf] }
  0xff   : > { %1263 = vst.msk [vmem:[#allocation2 + $0x120] sm:$0xf] %vm1244_vm11, %v1185_v51  ;;  %v1860_v27 = vrot.slane %v1858_v23, 5  ;;  %v1855_v1 = vor.u32 %v1854_v58, %v1851_v24  ;;  %v1339_v51 = vld [vmem:[%s11564_s18 + $0x140] sm:$0xe]  ;;  %v2202_v29 = vshll.u32 %v10191_v7, 16  ;;  %v2185_v36 = vor.u32 %v2184_v8, %v2181_v50 }
 0x100   : > { %v2188_v57 = vshll.u32 %v10189_v21, 16  ;;  %v2235_v12 = vshrl.u32 %v10196_v60, 16  ;;  %v2238_v34 = vshll.u32 %v10196_v60, 16  ;;  %v2221_v38 = vshrl.u32 %v10194_v17, 16  ;;  %v10192_v9 = vld [vmem:[%s11564_s18 + $0x18] sm:$0xf] }
 0x101   : > { %1968 = vrot.lane.b32.xlu1 %v1793_v14, %s11529_s21  ;;  %8267 = vmatpush.bf16.msra.mxu0 %v11474_v4  ;;  %v1856_v40 = vrot.slane %v1855_v1, 4  ;;  %v1901_v53 = vsel %vm12136_vm10, %v1892_v10, %v1900_v30  ;;  %v2224_v26 = vshll.u32 %v10194_v17, 16  ;;  %v2204_v6 = vrot.slane %v2202_v29, 5  ;;  %v10195_v59 = vld [vmem:[%s11564_s18 + $0x24] sm:$0x1] }
 0x102   : > { %1966 = vrot.lane.b32.xlu0 %v1775_v32, %s11529_s21  ;;  %v1861_v32 = vshll.u32 %v1334_v47, 16  ;;  %v1915_v47 = vshll.u32 %v1340_v35, 16  ;;  %v2186_v28 = vrot.slane %v2185_v36, 4  ;;  %v2190_v20 = vrot.slane %v2188_v57, 5  ;;  %v10200_v54 = vld [vmem:[%s11564_s18 + $0x38] sm:$0xf] }
 0x103   : > { %v1177_v0 = vpop.permute.xlu1 %1176  ;;  %v2237_v3 = vrot.slane %v2235_v12, 4  ;;  %v2240_v16 = vrot.slane %v2238_v34, 5  ;;  %v2223_v22 = vrot.slane %v2221_v38, 4  ;;  %v2226_v13 = vrot.slane %v2224_v26, 5  ;;  %v10193_v4 = vld [vmem:[%s11564_s18 + $0x1c] sm:$0x1] }
 0x104   : > { %1259 = vst.msk [vmem:[#allocation2 + $0xe0] sm:$0xf] %vm1244_vm11, %v1177_v0  ;;  %v1175_v31 = vpop.permute.xlu0 %1174  ;;  %1964 = vrot.lane.b32.xlu2 %v1757_v39, %s11529_s21  ;;  %v1863_v61 = vrot.slane %v1861_v32, 6  ;;  %v1906_v39 = vshll.u32 %v1339_v51, 16  ;;  %v1912_v0 = vshrl.u32 %v1340_v35, 16  ;;  %v1917_v37 = vrot.slane %v1915_v47, 6 }
 0x105   : > { %1258 = vst.msk [vmem:[#allocation2 + $0xd0] sm:$0xf] %vm1244_vm11, %v1175_v31  ;;  %v2200_v31 = vrot.slane %v2199_v44, 4  ;;  %8268 = vmatpush.bf16.msra.mxu0 %v11473_v42  ;;  %v2244_v32 = vshll.u32 %v10197_v56, 16  ;;  %v2277_v50 = vshrl.u32 %v10202_v33, 16  ;;  %v2280_v8 = vshll.u32 %v10202_v33, 16 }
 0x106   : > { %v1191_v14 = vpop.permute.xlu2 %1190  ;;  %v1864_v41 = vor.u32 %v1863_v61, %v1860_v27  ;;  %v1908_v46 = vrot.slane %v1906_v39, 6  ;;  %v1914_v7 = vrot.slane %v1912_v0, 5  ;;  %v2191_v24 = vsel %vm11577_vm2, %v2186_v28, %v2190_v20  ;;  %v11471_v61 = vld [vmem:[%s16196_s1 + $0x8] sm:$0xff]  ;;  %v10198_v36 = vld [vmem:[%s11564_s18 + $0x30] sm:$0xf] }
 0x107   : > { %1266 = vst.msk [vmem:[#allocation2 + $0x150] sm:$0xf] %vm1244_vm11, %v1191_v14  ;;  %v2205_v23 = vsel %vm11577_vm2, %v2200_v31, %v2204_v6  ;;  %v2241_v58 = vor.u32 %v2240_v16, %v2237_v3  ;;  %v2207_v30 = vshrl.u32 %v10192_v9, 16  ;;  %v2210_v27 = vshll.u32 %v10192_v9, 16  ;;  %v10201_v34 = vld [vmem:[%s11564_s18 + $0x3c] sm:$0x1] }
 0x108   : > { %v1865_v48 = vsel %vm12136_vm10, %v1856_v40, %v1864_v41  ;;  %v2227_v60 = vor.u32 %v2226_v13, %v2223_v22  ;;  %v2230_v17 = vshll.u32 %v10195_v59, 16  ;;  %v2263_v1 = vshrl.u32 %v10200_v54, 16  ;;  %v10208_v41 = vld [vmem:[%s11564_s18 + $0x70] sm:$0xf]  ;;  %v10199_v9 = vld [vmem:[%s11564_s18 + $0x34] sm:$0x1] }
 0x109   : > { %1974 = vrot.lane.b32.xlu1 %v1847_v52, %s11529_s21  ;;  %v1903_v52 = vshrl.u32 %v1339_v51, 16  ;;  %8269 = vmatpush.bf16.msra.mxu0 %v11472_v45  ;;  %v2266_v51 = vshll.u32 %v10200_v54, 16  ;;  %v2279_v44 = vrot.slane %v2277_v50, 4  ;;  %v2282_v29 = vrot.slane %v2280_v8, 5  ;;  %v10204_v45 = vld [vmem:[%s11564_s18 + $0x60] sm:$0xf] }
 0x10a   : > { %1972 = vrot.lane.b32.xlu0 %v1829_v55, %s11529_s21  ;;  %v1883_v55 = vsel %vm12136_vm10, %v1874_v19, %v1882_v15  ;;  %v1918_v15 = vor.u32 %v1917_v37, %v1914_v7  ;;  %v2212_v19 = vrot.slane %v2210_v27, 5  ;;  %v2242_v57 = vrot.slane %v2241_v58, 4  ;;  %v10209_v8 = vld [vmem:[%s11564_s18 + $0x74] sm:$0x1] }
 0x10b   : > { %v1183_v18 = vpop.permute.xlu1 %1182  ;;  %v1905_v5 = vrot.slane %v1903_v52, 5  ;;  %v2246_v35 = vrot.slane %v2244_v32, 5  ;;  %v2216_v40 = vshll.u32 %v10193_v4, 16  ;;  %v11470_v52 = vld [vmem:[%s16196_s1] sm:$0xff]  ;;  %v2228_v42 = vrot.slane %v2227_v60, 4 }
 0x10c   : > { %1262 = vst.msk [vmem:[#allocation2 + $0x110] sm:$0xf] %vm1244_vm11, %v1183_v18  ;;  %v1181_v63 = vpop.permute.xlu0 %1180  ;;  %1970 = vrot.lane.b32.xlu2 %v1811_v62, %s11529_s21  ;;  %v2209_v18 = vrot.slane %v2207_v30, 4  ;;  %v2265_v26 = vrot.slane %v2263_v1, 4  ;;  %v2268_v0 = vrot.slane %v2266_v51, 5  ;;  %v2283_v56 = vor.u32 %v2282_v29, %v2279_v44 }
 0x10d   : > { %1261 = vst.msk [vmem:[#allocation2 + $0x100] sm:$0xf] %vm1244_vm11, %v1181_v63  ;;  %v1909_v2 = vor.u32 %v1908_v46, %v1905_v5  ;;  %8270 = vmatpush.bf16.msra.mxu0 %v11471_v61  ;;  %v10203_v63 = vld [vmem:[%s11564_s18 + $0x44] sm:$0x1]  ;;  %v2249_v46 = vshrl.u32 %v10198_v36, 16  ;;  %v2252_v47 = vshll.u32 %v10198_v36, 16  ;;  %v2247_v31 = vsel %vm11577_vm2, %v2242_v57, %v2246_v35 }
 0x10e   : > { %v1197_v43 = vpop.permute.xlu2 %1196  ;;  %v2213_v38 = vor.u32 %v2212_v19, %v2209_v18  ;;  %v2286_v5 = vshll.u32 %v10203_v63, 16  ;;  %v2272_v6 = vshll.u32 %v10201_v34, 16  ;;  %v2319_v28 = vshrl.u32 %v10208_v41, 16  ;;  %v10214_v32 = vld [vmem:[%s11564_s18 + $0x88] sm:$0xf] }
 0x10f   : > { %1269 = vst.msk [vmem:[#allocation2 + $0x180] sm:$0xf] %vm1244_vm11, %v1197_v43  ;;  %v1910_v10 = vrot.slane %v1909_v2, 4  ;;  %v2322_v20 = vshll.u32 %v10208_v41, 16  ;;  %v2218_v3 = vrot.slane %v2216_v40, 5  ;;  %v2251_v16 = vrot.slane %v2249_v46, 4 }
 0x110   : > { %v2254_v22 = vrot.slane %v2252_v47, 5  ;;  %v2269_v13 = vor.u32 %v2268_v0, %v2265_v26  ;;  %v2288_v59 = vrot.slane %v2286_v5, 5  ;;  %v2274_v54 = vrot.slane %v2272_v6, 5  ;;  %v10212_v18 = vld [vmem:[%s11564_s18 + $0x80] sm:$0xf] }
 0x111   : > { %1980 = vrot.lane.b32.xlu1 %v1901_v53, %s11529_s21  ;;  %v1919_v12 = vsel %vm12136_vm10, %v1910_v10, %v1918_v15  ;;  %v2232_v53 = vrot.slane %v2230_v17, 5  ;;  %8271 = vmatpush.bf16.msra.mxu0 %v11470_v52  ;;  %v2258_v30 = vshll.u32 %v10199_v9, 16  ;;  %v2291_v27 = vshrl.u32 %v10204_v45, 16  ;;  %v10221_v9 = vld [vmem:[%s11564_s18 + $0xbc] sm:$0x1] }
 0x112   : > { %1978 = vrot.lane.b32.xlu0 %v1883_v55, %s11529_s21  ;;  %v10206_v55 = vld [vmem:[%s11564_s18 + $0x68] sm:$0xf]  ;;  %v2255_v58 = vor.u32 %v2254_v22, %v2251_v16  ;;  %v2270_v60 = vrot.slane %v2269_v13, 4  ;;  %v2294_v15 = vshll.u32 %v10204_v45, 16  ;;  %v2361_v51 = vshrl.u32 %v10214_v32, 16 }
 0x113   : > { %v1189_v14 = vpop.permute.xlu1 %1188  ;;  %v2233_v33 = vsel %vm11577_vm2, %v2228_v42, %v2232_v53  ;;  %v2305_v7 = vshrl.u32 %v10206_v55, 16  ;;  %v2308_v37 = vshll.u32 %v10206_v55, 16  ;;  %v2364_v4 = vshll.u32 %v10214_v32, 16  ;;  %v10215_v42 = vld [vmem:[%s11564_s18 + $0x8c] sm:$0x1] }
 0x114   : > { %1265 = vst.msk [vmem:[#allocation2 + $0x140] sm:$0xf] %vm1244_vm11, %v1189_v14  ;;  %v1187_v21 = vpop.permute.xlu0 %1186  ;;  %1976 = vrot.lane.b32.xlu2 %v1865_v48, %s11529_s21  ;;  %v2214_v48 = vrot.slane %v2213_v38, 4  ;;  %v2284_v14 = vrot.slane %v2283_v56, 4  ;;  %v2328_v44 = vshll.u32 %v10209_v8, 16  ;;  %v2256_v57 = vrot.slane %v2255_v58, 4 }
 0x115   : > { %1264 = vst.msk [vmem:[#allocation2 + $0x130] sm:$0xf] %vm1244_vm11, %v1187_v21  ;;  %v2321_v21 = vrot.slane %v2319_v28, 4  ;;  %v2307_v17 = vrot.slane %v2305_v7, 4  ;;  %v2310_v10 = vrot.slane %v2308_v37, 5  ;;  %v2260_v35 = vrot.slane %v2258_v30, 5 }
 0x116   : > { %v1203_v62 = vpop.permute.xlu2 %1202  ;;  %v2219_v50 = vsel %vm11577_vm2, %v2214_v48, %v2218_v3  ;;  %v2289_v1 = vsel %vm11577_vm2, %v2284_v14, %v2288_v59  ;;  %v2293_v63 = vrot.slane %v2291_v27, 4  ;;  %v2296_v36 = vrot.slane %v2294_v15, 5  ;;  %v10213_v3 = vld [vmem:[%s11564_s18 + $0x84] sm:$0x1]  ;;  %v10218_v37 = vld [vmem:[%s11564_s18 + $0x98] sm:$0xf] }
 0x117   : > { %1272 = vst.msk [vmem:[#allocation2 + $0x1b0] sm:$0xf] %vm1244_vm11, %v1203_v62  ;;  %v2275_v34 = vsel %vm11577_vm2, %v2270_v60, %v2274_v54  ;;  %v2311_v38 = vor.u32 %v2310_v10, %v2307_v17  ;;  %v2347_v41 = vshrl.u32 %v10212_v18, 16  ;;  %v2350_v52 = vshll.u32 %v10212_v18, 16  ;;  %v10211_v32 = vld [vmem:[%s11564_s18 + $0x7c] sm:$0x1] }
 0x118   : > { %v2363_v53 = vrot.slane %v2361_v51, 4  ;;  %v2366_v26 = vrot.slane %v2364_v4, 5  ;;  %v2330_v0 = vrot.slane %v2328_v44, 5  ;;  %v2261_v47 = vsel %vm11577_vm2, %v2256_v57, %v2260_v35  ;;  %v10219_v58 = vld [vmem:[%s11564_s18 + $0x9c] sm:$0x1] }
 0x119   : > { %2628 = vrot.lane.b32.xlu1 %v2205_v23, %s11527_s19  ;;  %v2324_v23 = vrot.slane %v2322_v20, 5  ;;  %v2312_v20 = vrot.slane %v2311_v38, 4  ;;  %v2370_v48 = vshll.u32 %v10215_v42, 16  ;;  %v2349_v16 = vrot.slane %v2347_v41, 4  ;;  %v10226_v4 = vld [vmem:[%s11564_s18 + $0xd0] sm:$0xf] }
 0x11a   : > { %2626 = vrot.lane.b32.xlu0 %v2191_v24, %s11527_s19  ;;  %v10207_v24 = vld [vmem:[%s11564_s18 + $0x6c] sm:$0x1]  ;;  %v2352_v22 = vrot.slane %v2350_v52, 5  ;;  %v2367_v13 = vor.u32 %v2366_v26, %v2363_v53  ;;  %v2356_v54 = vshll.u32 %v10213_v3, 16  ;;  %v2389_v30 = vshrl.u32 %v10218_v37, 16 }
 0x11b   : > { %v1195_v39 = vpop.permute.xlu1 %1194  ;;  %v2325_v19 = vor.u32 %v2324_v23, %v2321_v21  ;;  %v2314_v29 = vshll.u32 %v10207_v24, 16  ;;  %v2392_v27 = vshll.u32 %v10218_v37, 16  ;;  %v2372_v17 = vrot.slane %v2370_v48, 5  ;;  %v10224_v44 = vld [vmem:[%s11564_s18 + $0xc8] sm:$0xf] }
 0x11c   : > { %1268 = vst.msk [vmem:[#allocation2 + $0x170] sm:$0xf] %vm1244_vm11, %v1195_v39  ;;  %v1193_v43 = vpop.permute.xlu0 %1192  ;;  %1982 = vrot.lane.b32.xlu2 %v1919_v12, %s11529_s21  ;;  %v10210_v12 = vld [vmem:[%s11564_s18 + $0x78] sm:$0xf]  ;;  %v10205_v39 = vld [vmem:[%s11564_s18 + $0x64] sm:$0x1]  ;;  %v2353_v8 = vor.u32 %v2352_v22, %v2349_v16 }
 0x11d   : > { %1267 = vst.msk [vmem:[#allocation2 + $0x160] sm:$0xf] %vm1244_vm11, %v1193_v43  ;;  %v2316_v55 = vrot.slane %v2314_v29, 5  ;;  %v10220_v43 = vld [vmem:[%s11564_s18 + $0xb8] sm:$0xf]  ;;  %v2333_v56 = vshrl.u32 %v10210_v12, 16 }
 0x11e   : > { %v1209_v2 = vpop.permute.xlu2 %1208  ;;  %v2336_v5 = vshll.u32 %v10210_v12, 16  ;;  %v2326_v46 = vrot.slane %v2325_v19, 4  ;;  %v2300_v6 = vshll.u32 %v10205_v39, 16  ;;  %v2406_v7 = vshll.u32 %v10220_v43, 16  ;;  %v10227_v52 = vld [vmem:[%s11564_s18 + $0xd4] sm:$0x1] }
 0x11f   : > { %1275 = vst.msk [vmem:[#allocation2 + $0x1e0] sm:$0xf] %vm1244_vm11, %v1209_v2  ;;  %v2403_v2 = vshrl.u32 %v10220_v43, 16  ;;  %v2335_v45 = vrot.slane %v2333_v56, 4  ;;  %v2368_v60 = vrot.slane %v2367_v13, 4  ;;  %v2342_v51 = vshll.u32 %v10211_v32, 16 }
 0x120   : > { %v2338_v14 = vrot.slane %v2336_v5, 5  ;;  %v2331_v59 = vsel %vm11577_vm2, %v2326_v46, %v2330_v0  ;;  %v2302_v23 = vrot.slane %v2300_v6, 5  ;;  %v2408_v15 = vrot.slane %v2406_v7, 5  ;;  %v10225_v5 = vld [vmem:[%s11564_s18 + $0xcc] sm:$0x1] }
 0x121   : > { %2634 = vrot.lane.b32.xlu1 %v2247_v31, %s11527_s19  ;;  %v2297_v31 = vor.u32 %v2296_v36, %v2293_v63  ;;  %v2405_v10 = vrot.slane %v2403_v2, 4  ;;  %v2398_v19 = vshll.u32 %v10219_v58, 16  ;;  %v2354_v63 = vrot.slane %v2353_v8, 4  ;;  %v10232_v48 = vld [vmem:[%s11564_s18 + $0xe8] sm:$0xf] }
 0x122   : > { %2632 = vrot.lane.b32.xlu0 %v2233_v33, %s11527_s19  ;;  %v2358_v36 = vrot.slane %v2356_v54, 5  ;;  %v2391_v12 = vrot.slane %v2389_v30, 4  ;;  %v2445_v39 = vshrl.u32 %v10226_v4, 16  ;;  %v2448_v42 = vshll.u32 %v10226_v4, 16  ;;  %v10222_v3 = vld [vmem:[%s11564_s18 + $0xc0] sm:$0xf] }
 0x123   : > { %v1201_v61 = vpop.permute.xlu1 %1200  ;;  %v2298_v21 = vrot.slane %v2297_v31, 4  ;;  %v2409_v41 = vor.u32 %v2408_v15, %v2405_v10  ;;  %v2344_v26 = vrot.slane %v2342_v51, 5  ;;  %v2431_v0 = vshrl.u32 %v10224_v44, 16 }
 0x124   : > { %1271 = vst.msk [vmem:[#allocation2 + $0x1a0] sm:$0xf] %vm1244_vm11, %v1201_v61  ;;  %v1199_v62 = vpop.permute.xlu0 %1198  ;;  %2630 = vrot.lane.b32.xlu2 %v2219_v50, %s11527_s19  ;;  %v2317_v50 = vsel %vm11577_vm2, %v2312_v20, %v2316_v55  ;;  %v10216_v61 = vld [vmem:[%s11564_s18 + $0x90] sm:$0xf]  ;;  %v2434_v55 = vshll.u32 %v10224_v44, 16  ;;  %v12576_v56 = vrot.slane %v2398_v19, 5  ;;  %v2359_v31 = vsel %vm11577_vm2, %v2354_v63, %v2358_v36 }
 0x125   : > { %1270 = vst.msk [vmem:[#allocation2 + $0x190] sm:$0xf] %vm1244_vm11, %v1199_v62  ;;  %v2412_v62 = vshll.u32 %v10221_v9, 16  ;;  %v2303_v18 = vsel %vm11577_vm2, %v2298_v21, %v2302_v23  ;;  %v2375_v29 = vshrl.u32 %v10216_v61, 16  ;;  %v2378_v57 = vshll.u32 %v10216_v61, 16 }
 0x126   : > { %v1923_v40 = vpop.permute.xlu2 %1922  ;;  %v10217_v20 = vld [vmem:[%s11564_s18 + $0x94] sm:$0x1]  ;;  %v2410_v16 = vrot.slane %v2409_v41, 4  ;;  %v2447_v22 = vrot.slane %v2445_v39, 4  ;;  %v2454_v13 = vshll.u32 %v10227_v52, 16  ;;  %v2433_v37 = vrot.slane %v2431_v0, 4 }
 0x127   : > { %2018 = vst.msk [vmem:[#allocation2 + $0x10] sm:$0xf] %vm2016_vm12, %v1923_v40  ;;  %v2373_v40 = vsel %vm11577_vm2, %v2368_v60, %v2372_v17  ;;  %v2414_v43 = vrot.slane %v2412_v62, 5  ;;  %v2377_v46 = vrot.slane %v2375_v29, 4  ;;  %v2436_v9 = vrot.slane %v2434_v55, 5 }
 0x128   : > { %v2417_v54 = vshrl.u32 %v10222_v3, 16  ;;  %v2420_v21 = vshll.u32 %v10222_v3, 16  ;;  %v2440_v8 = vshll.u32 %v10225_v5, 16  ;;  %v2490_v58 = vshll.u32 %v10232_v48, 16 }
 0x129   : > { %2640 = vrot.lane.b32.xlu1 %v2289_v1, %s11527_s19  ;;  %v2339_v1 = vor.u32 %v2338_v14, %v2335_v45  ;;  %v10230_v45 = vld [vmem:[%s11564_s18 + $0xe0] sm:$0xf]  ;;  %v2415_v17 = vsel %vm11577_vm2, %v2410_v16, %v2414_v43  ;;  %v2456_v15 = vrot.slane %v2454_v13, 5  ;;  %v2437_v62 = vor.u32 %v2436_v9, %v2433_v37 }
 0x12a   : > { %2638 = vrot.lane.b32.xlu0 %v2275_v34, %s11527_s19  ;;  %v2394_v34 = vrot.slane %v2392_v27, 5  ;;  %v2473_v61 = vshrl.u32 %v10230_v45, 16  ;;  %v2476_v60 = vshll.u32 %v10230_v45, 16  ;;  %v2419_v19 = vrot.slane %v2417_v54, 4  ;;  %v10229_v54 = vld [vmem:[%s11564_s18 + $0xdc] sm:$0x1] }
 0x12b   : > { %v1207_v28 = vpop.permute.xlu1 %1206  ;;  %v2340_v53 = vrot.slane %v2339_v1, 4  ;;  %v10233_v1 = vld [vmem:[%s11564_s18 + $0xec] sm:$0x1]  ;;  %v2422_v44 = vrot.slane %v2420_v21, 5  ;;  %v2492_v36 = vrot.slane %v2490_v58, 5  ;;  %v2438_v52 = vrot.slane %v2437_v62, 4 }
 0x12c   : > { %1274 = vst.msk [vmem:[#allocation2 + $0x1d0] sm:$0xf] %vm1244_vm11, %v1207_v28  ;;  %v1205_v33 = vpop.permute.xlu0 %1204  ;;  %2636 = vrot.lane.b32.xlu2 %v2261_v47, %s11527_s19  ;;  %v2380_v47 = vrot.slane %v2378_v57, 5  ;;  %v2395_v6 = vor.u32 %v2394_v34, %v2391_v12  ;;  %v2442_v57 = vrot.slane %v2440_v8, 5  ;;  %v10228_v12 = vld [vmem:[%s11564_s18 + $0xd8] sm:$0xf] }
 0x12d   : > { %1273 = vst.msk [vmem:[#allocation2 + $0x1c0] sm:$0xf] %vm1244_vm11, %v1205_v33  ;;  %v2450_v33 = vrot.slane %v2448_v42, 5  ;;  %v2345_v7 = vsel %vm11577_vm2, %v2340_v53, %v2344_v26  ;;  %v10231_v34 = vld [vmem:[%s11564_s18 + $0xe4] sm:$0x1]  ;;  %v2496_v39 = vshll.u32 %v10233_v1, 16  ;;  %v2423_v0 = vor.u32 %v2422_v44, %v2419_v19 }
 0x12e   : > { %v1929_v24 = vpop.permute.xlu2 %1928  ;;  %v11408_v2 = vld [vmem:[#allocation2 + $0xc] sm:$0xf0]  ;;  %v2381_v14 = vor.u32 %v2380_v47, %v2377_v46  ;;  %v10238_v53 = vld [vmem:[%s11564_s18 + $0x118] sm:$0xf]  ;;  %v2459_v55 = vshrl.u32 %v10228_v12, 16  ;;  %v2462_v43 = vshll.u32 %v10228_v12, 16 }
 0x12f   : > { %2021 = vst.msk [vmem:[#allocation2 + $0x40] sm:$0xf] %vm2016_vm12, %v1929_v24  ;;  %v2487_v24 = vshrl.u32 %v10232_v48, 16  ;;  %v2451_v10 = vor.u32 %v2450_v33, %v2447_v22  ;;  %v2482_v46 = vshll.u32 %v10231_v34, 16  ;;  %v2443_v48 = vsel %vm11577_vm2, %v2438_v52, %v2442_v57  ;;  %v10242_v44 = vld [vmem:[%s11564_s18 + $0x128] sm:$0xf] }
 0x130   : > { %v2382_v51 = vrot.slane %v2381_v14, 4  ;;  %v2498_v3 = vrot.slane %v2496_v39, 5  ;;  %v2424_v22 = vrot.slane %v2423_v0, 4  ;;  %v2532_v33 = vshll.u32 %v10238_v53, 16 }
 0x131   : > { %2646 = vrot.lane.b32.xlu1 %v2331_v59, %s11527_s19  ;;  %v2384_v59 = vshll.u32 %v10217_v20, 16  ;;  %v2489_v63 = vrot.slane %v2487_v24, 4  ;;  %v2452_v41 = vrot.slane %v2451_v10, 4  ;;  %v2461_v13 = vrot.slane %v2459_v55, 4 }
 0x132   : > { %2644 = vrot.lane.b32.xlu0 %v2317_v50, %s11527_s19  ;;  %v2396_v50 = vrot.slane %v2395_v6, 4  ;;  %v2529_v6 = vshrl.u32 %v10238_v53, 16  ;;  %v2484_v9 = vrot.slane %v2482_v46, 5  ;;  %v2560_v53 = vshll.u32 %v10242_v44, 16 }
 0x133   : > { %v1921_v35 = vpop.permute.xlu1 %1920  ;;  %v2386_v4 = vrot.slane %v2384_v59, 5  ;;  %v2493_v5 = vor.u32 %v2492_v36, %v2489_v63  ;;  %v2457_v20 = vsel %vm11577_vm2, %v2452_v41, %v2456_v15  ;;  %v10237_v15 = vld [vmem:[%s11564_s18 + $0x114] sm:$0x1] }
 0x134   : > { %2017 = vst.msk [vmem:[#allocation2] sm:$0xf] %vm2016_vm12, %v1921_v35  ;;  %v1211_v38 = vpop.permute.xlu0 %1210  ;;  %2642 = vrot.lane.b32.xlu2 %v2303_v18, %s11527_s19  ;;  %v10223_v18 = vld [vmem:[%s11564_s18 + $0xc4] sm:$0x1]  ;;  %v2401_v29 = vsel %vm11577_vm2, %v2396_v50, %v12576_v56  ;;  %v2524_v52 = vshll.u32 %v10237_v15, 16 }
 0x135   : > { %1276 = vst.msk [vmem:[#allocation2 + $0x1f0] sm:$0xf] %vm1244_vm11, %v1211_v38  ;;  %v2475_v38 = vrot.slane %v2473_v61, 4  ;;  %v2426_v42 = vshll.u32 %v10223_v18, 16  ;;  %v2387_v26 = vsel %vm11577_vm2, %v2382_v51, %v2386_v4  ;;  %v2494_v37 = vrot.slane %v2493_v5, 4 }
 0x136   : > { %v1935_v28 = vpop.permute.xlu2 %1934  ;;  %v2534_v61 = vrot.slane %v2532_v33, 5 }
 0x137   : > { %2024 = vst.msk [vmem:[#allocation2 + $0x70] sm:$0xf] %vm2016_vm12, %v1935_v28  ;;  %v10236_v28 = vld [vmem:[%s11564_s18 + $0x110] sm:$0xf]  ;;  %v2428_v16 = vrot.slane %v2426_v42, 5  ;;  %v2557_v42 = vshrl.u32 %v10242_v44, 16 }
 0x138   : > { %v2515_v14 = vshrl.u32 %v10236_v28, 16  ;;  %v2518_v59 = vshll.u32 %v10236_v28, 16 }
 0x139   : > { %2652 = vrot.lane.b32.xlu1 %v2373_v40, %s11527_s19  ;;  %v2478_v40 = vrot.slane %v2476_v60, 5  ;;  %v2559_v33 = vrot.slane %v2557_v42, 4 }
 0x13a   : > { %2650 = vrot.lane.b32.xlu0 %v2359_v31, %s11527_s19  ;;  %v2517_v62 = vrot.slane %v2515_v14, 4  ;;  %v2520_v1 = vrot.slane %v2518_v59, 5 }
 0x13b   : > { %v1927_v23 = vpop.permute.xlu1 %1926  ;;  %v10926_v32 = vld [vmem:[#allocation2] sm:$0xf]  ;;  %v2479_v31 = vor.u32 %v2478_v40, %v2475_v38  ;;  %v10235_v40 = vld [vmem:[%s11564_s18 + $0xf4] sm:$0x1] }
 0x13c   : > { %2020 = vst.msk [vmem:[#allocation2 + $0x30] sm:$0xf] %vm2016_vm12, %v1927_v23  ;;  %v1925_v30 = vpop.permute.xlu0 %1924  ;;  %v10927_v27 = vor.u32 %v11408_v2, %v10926_v32  ;;  %2648 = vrot.lane.b32.xlu2 %v2345_v7, %s11527_s19  ;;  %v2464_v2 = vrot.slane %v2462_v43, 5  ;;  %v10234_v7 = vld [vmem:[%s11564_s18 + $0xf0] sm:$0xf]  ;;  %v2531_v23 = vrot.slane %v2529_v6, 4  ;;  %v2521_v41 = vor.u32 %v2520_v1, %v2517_v62 }
 0x13d   : > { %2019 = vst.msk [vmem:[#allocation2 + $0x20] sm:$0xf] %vm2016_vm12, %v1925_v30  ;;  %v2480_v21 = vrot.slane %v2479_v31, 4  ;;  %v10244_v32 = vld [vmem:[%s11564_s18 + $0x130] sm:$0xf]  ;;  %v2501_v24 = vshrl.u32 %v10234_v7, 16  ;;  %v2429_v30 = vsel %vm11577_vm2, %v2424_v22, %v2428_v16 }
 0x13e   : > { %8272 = vmatmul.bf16.vlgmr.msra.gmra.mxu0 %v10927_v27  ;;  %v1941_v35 = vpop.permute.xlu2 %1940  ;;  %v2504_v58 = vshll.u32 %v10234_v7, 16  ;;  %v10239_v27 = vld [vmem:[%s11564_s18 + $0x11c] sm:$0x1]  ;;  %v2465_v60 = vor.u32 %v2464_v2, %v2461_v13  ;;  %v2571_v18 = vshrl.u32 %v10244_v32, 16  ;;  %v2574_v19 = vshll.u32 %v10244_v32, 16 }
 0x13f   : > { %2027 = vst.msk [vmem:[#allocation2 + $0xa0] sm:$0xf] %vm2016_vm12, %v1941_v35  ;;  %v2538_v57 = vshll.u32 %v10239_v27, 16  ;;  %v2503_v35 = vrot.slane %v2501_v24, 4  ;;  %v2485_v36 = vsel %vm11577_vm2, %v2480_v21, %v2484_v9  ;;  %v2535_v12 = vor.u32 %v2534_v61, %v2531_v23  ;;  %v10250_v6 = vld [vmem:[%s11564_s18 + $0x148] sm:$0xf] }
 0x140   : > { %v2506_v63 = vrot.slane %v2504_v58, 5  ;;  %v2466_v34 = vrot.slane %v2465_v60, 4  ;;  %v2573_v0 = vrot.slane %v2571_v18, 4  ;;  %v2576_v55 = vrot.slane %v2574_v19, 5  ;;  %v10243_v22 = vld [vmem:[%s11564_s18 + $0x12c] sm:$0x1] }
 0x141   : > { %2658 = vrot.lane.b32.xlu1 %v2415_v17, %s11527_s19  ;;  %v2468_v17 = vshll.u32 %v10229_v54, 16  ;;  %v2540_v43 = vrot.slane %v2538_v57, 5  ;;  %v2510_v46 = vshll.u32 %v10235_v40, 16  ;;  %v2526_v16 = vrot.slane %v2524_v52, 5  ;;  %v10248_v9 = vld [vmem:[%s11564_s18 + $0x140] sm:$0xf] }
 0x142   : > { %2656 = vrot.lane.b32.xlu0 %v2401_v29, %s11527_s19  ;;  %v2499_v29 = vsel %vm11577_vm2, %v2494_v37, %v2498_v3  ;;  %v2507_v5 = vor.u32 %v2506_v63, %v2503_v35  ;;  %v2522_v3 = vrot.slane %v2521_v41, 4  ;;  %v2562_v13 = vrot.slane %v2560_v53, 5  ;;  %v10241_v61 = vld [vmem:[%s11564_s18 + $0x124] sm:$0x1]  ;;  %v10246_v60 = vld [vmem:[%s11564_s18 + $0x138] sm:$0xf] }
 0x143   : > { %v1933_v56 = vpop.permute.xlu1 %1932  ;;  %v11412_v8 = vld [vmem:[#allocation2 + $0x2c] sm:$0xf0]  ;;  %v2470_v38 = vrot.slane %v2468_v17, 5  ;;  %v2577_v7 = vor.u32 %v2576_v55, %v2573_v0  ;;  %v2512_v14 = vrot.slane %v2510_v46, 5  ;;  %v2613_v59 = vshrl.u32 %v10250_v6, 16 }
 0x144   : > { %2023 = vst.msk [vmem:[#allocation2 + $0x60] sm:$0xf] %vm2016_vm12, %v1933_v56  ;;  %v1931_v47 = vpop.permute.xlu0 %1930  ;;  %2654 = vrot.lane.b32.xlu2 %v2387_v26, %s11527_s19  ;;  %v10942_v50 = vld [vmem:[#allocation2 + $0x20] sm:$0xf]  ;;  %v10245_v56 = vld [vmem:[%s11564_s18 + $0x134] sm:$0x1]  ;;  %v2563_v24 = vor.u32 %v2562_v13, %v2559_v33 }
 0x145   : > { %2022 = vst.msk [vmem:[#allocation2 + $0x50] sm:$0xf] %vm2016_vm12, %v1931_v47  ;;  %v10943_v4 = vor.u32 %v11412_v8, %v10942_v50  ;;  %v10240_v26 = vld [vmem:[%s11564_s18 + $0x120] sm:$0xf]  ;;  %v2536_v47 = vrot.slane %v2535_v12, 4  ;;  %v2471_v31 = vsel %vm11577_vm2, %v2466_v34, %v2470_v38  ;;  %v2580_v37 = vshll.u32 %v10245_v56, 16 }
 0x146   : > { %v1947_v45 = vpop.permute.xlu2 %1946  ;;  %v2543_v28 = vshrl.u32 %v10240_v26, 16  ;;  %v2616_v54 = vshll.u32 %v10250_v6, 16  ;;  %v2566_v23 = vshll.u32 %v10243_v22, 16  ;;  %v2527_v8 = vsel %vm11577_vm2, %v2522_v3, %v2526_v16  ;;  %v10958_v35 = vld [vmem:[#allocation2 + $0x40] sm:$0xf] }
 0x147   : > { %2030 = vst.msk [vmem:[#allocation2 + $0xd0] sm:$0xf] %vm2016_vm12, %v1947_v45  ;;  %v2508_v45 = vrot.slane %v2507_v5, 4  ;;  %v2541_v21 = vsel %vm11577_vm2, %v2536_v47, %v2540_v43  ;;  %v2602_v27 = vshll.u32 %v10248_v9, 16  ;;  %v2582_v17 = vrot.slane %v2580_v37, 5 }
 0x148   : > { %v2545_v32 = vrot.slane %v2543_v28, 4  ;;  %v2578_v15 = vrot.slane %v2577_v7, 4  ;;  %v2615_v1 = vrot.slane %v2613_v59, 4  ;;  %v2552_v19 = vshll.u32 %v10241_v61, 16  ;;  %v10249_v41 = vld [vmem:[%s11564_s18 + $0x144] sm:$0x1] }
 0x149   : > { %2664 = vrot.lane.b32.xlu1 %v2457_v20, %s11527_s19  ;;  %v2546_v20 = vshll.u32 %v10240_v26, 16  ;;  %v2513_v62 = vsel %vm11577_vm2, %v2508_v45, %v2512_v14  ;;  %v2585_v44 = vshrl.u32 %v10246_v60, 16  ;;  %v2564_v63 = vrot.slane %v2563_v24, 4  ;;  %v10247_v47 = vld [vmem:[%s11564_s18 + $0x13c] sm:$0x1] }
 0x14a   : > { %2662 = vrot.lane.b32.xlu0 %v2443_v48, %s11527_s19  ;;  %v2604_v34 = vrot.slane %v2602_v27, 5  ;;  %v2583_v52 = vsel %vm11577_vm2, %v2578_v15, %v2582_v17  ;;  %v2554_v26 = vrot.slane %v2552_v19, 5  ;;  %v2608_v5 = vshll.u32 %v10249_v41, 16  ;;  %v10257_v7 = vld [vmem:[%s11564_s18 + $0x1c] sm:$0x1] }
 0x14b   : > { %v1939_v10 = vpop.permute.xlu1 %1938  ;;  %v2548_v50 = vrot.slane %v2546_v20, 5  ;;  %v2587_v0 = vrot.slane %v2585_v44, 4  ;;  %v10254_v14 = vld [vmem:[%s11564_s18 + $0x10] sm:$0xe]  ;;  %v10255_v59 = vld [vmem:[%s11564_s18 + $0x14] sm:$0x1] }
 0x14c   : > { %2026 = vst.msk [vmem:[#allocation2 + $0x90] sm:$0xf] %vm2016_vm12, %v1939_v10  ;;  %v1937_v51 = vpop.permute.xlu0 %1936  ;;  %2660 = vrot.lane.b32.xlu2 %v2429_v30, %s11527_s19  ;;  %v2599_v30 = vshrl.u32 %v10248_v9, 16  ;;  %v11416_v10 = vld [vmem:[#allocation2 + $0x4c] sm:$0xf0]  ;;  %v2610_v22 = vrot.slane %v2608_v5, 5 }
 0x14d   : > { %2025 = vst.msk [vmem:[#allocation2 + $0x80] sm:$0xf] %vm2016_vm12, %v1937_v51  ;;  %v2618_v51 = vrot.slane %v2616_v54, 5  ;;  %v2549_v18 = vor.u32 %v2548_v50, %v2545_v32  ;;  %v10959_v40 = vor.u32 %v11416_v10, %v10958_v35  ;;  %v2892_v50 = vrot.slane %v10257_v7, 5  ;;  %v10158_v27 = vld [vmem:[%s11564_s18 + $0x18] sm:$0xf] }
 0x14e   : > { %8277 = vmatmul.bf16.gmra.mxu0 %v10943_v4  ;;  %v1953_v39 = vpop.permute.xlu2 %1952  ;;  %v10251_v4 = vld [vmem:[%s11564_s18 + $0x14c] sm:$0x1]  ;;  %v2601_v12 = vrot.slane %v2599_v30, 4  ;;  %v2888_v24 = vrot.slane %v10255_v59, 5  ;;  %v10252_v30 = vld [vmem:[%s11564_s18 + $0x8] sm:$0xe] }
 0x14f   : > { %2033 = vst.msk [vmem:[#allocation2 + $0x100] sm:$0xf] %vm2016_vm12, %v1953_v39  ;;  %v2619_v39 = vor.u32 %v2618_v51, %v2615_v1  ;;  %v2622_v42 = vshll.u32 %v10251_v4, 16  ;;  %v2550_v53 = vrot.slane %v2549_v18, 4  ;;  %v10157_v17 = vld [vmem:[%s11564_s18 + $0x10] sm:$0xf] }
 0x150   : > { %v2605_v56 = vor.u32 %v2604_v34, %v2601_v12  ;;  %2084 = vst.msk [vmem:[#allocation2 + $0x24] sm:$0xf] %vm212_vm5, %v10158_v27  ;;  %v10262_v1 = vld [vmem:[%s11564_s18 + $0x30] sm:$0xe]  ;;  %v10263_v4 = vld [vmem:[%s11564_s18 + $0x34] sm:$0x1] }
 0x151   : > { %2670 = vrot.lane.b32.xlu1 %v2499_v29, %s11527_s19  ;;  %v2588_v29 = vshll.u32 %v10246_v60, 16  ;;  %v2620_v6 = vrot.slane %v2619_v39, 4  ;;  %v2555_v28 = vsel %vm11577_vm2, %v2550_v53, %v2554_v26  ;;  %v10253_v60 = vld [vmem:[%s11564_s18 + $0xc] sm:$0x1]  ;;  %v10316_v18 = vrot.slane %v10252_v30, 9 }
 0x152   : > { %2668 = vrot.lane.b32.xlu0 %v2485_v36, %s11527_s19  ;;  %v2568_v36 = vrot.slane %v2566_v23, 5  ;;  %v2606_v16 = vrot.slane %v2605_v56, 4  ;;  %v11420_v23 = vld [vmem:[#allocation2 + $0x6c] sm:$0xf0]  ;;  %v2884_v19 = vrot.slane %v10253_v60, 5 }
 0x153   : > { %v1945_v48 = vpop.permute.xlu1 %1944  ;;  %v2590_v55 = vrot.slane %v2588_v29, 5  ;;  %2083 = vst.msk [vmem:[#allocation2 + $0x14] sm:$0xf] %vm212_vm5, %v10157_v17  ;;  %v10260_v29 = vld [vmem:[%s11564_s18 + $0x28] sm:$0xe] }
 0x154   : > { %2029 = vst.msk [vmem:[#allocation2 + $0xc0] sm:$0xf] %vm2016_vm12, %v1945_v48  ;;  %v1943_v2 = vpop.permute.xlu0 %1942  ;;  %2666 = vrot.lane.b32.xlu2 %v2471_v31, %s11527_s19  ;;  %v2569_v43 = vsel %vm11577_vm2, %v2564_v63, %v2568_v36  ;;  %v2624_v31 = vrot.slane %v2622_v42, 5  ;;  %v2594_v48 = vshll.u32 %v10247_v47, 16  ;;  %v2611_v45 = vsel %vm11577_vm2, %v2606_v16, %v2610_v22  ;;  %v10161_v41 = vld [vmem:[%s11564_s18 + $0x30] sm:$0xf] }
 0x155   : > { %2028 = vst.msk [vmem:[#allocation2 + $0xb0] sm:$0xf] %vm2016_vm12, %v1943_v2  ;;  %v2591_v20 = vor.u32 %v2590_v55, %v2587_v0  ;;  %v10256_v2 = vld [vmem:[%s11564_s18 + $0x18] sm:$0xe]  ;;  %v10321_v63 = vrot.slane %v10262_v1, 9  ;;  %v2904_v36 = vrot.slane %v10263_v4, 5 }
 0x156   : > { %v1959_v58 = vpop.permute.xlu2 %1958  ;;  %v2625_v13 = vsel %vm11577_vm2, %v2620_v6, %v2624_v31  ;;  %v2596_v9 = vrot.slane %v2594_v48, 5  ;;  %v10318_v32 = vrot.slane %v10256_v2, 9  ;;  %v10320_v12 = vrot.slane %v10260_v29, 9  ;;  %v10259_v39 = vld [vmem:[%s11564_s18 + $0x24] sm:$0x1] }
 0x157   : > { %2036 = vst.msk [vmem:[#allocation2 + $0x130] sm:$0xf] %vm2016_vm12, %v1959_v58  ;;  %v2592_v37 = vrot.slane %v2591_v20, 4  ;;  %v10160_v42 = vld [vmem:[%s11564_s18 + $0x28] sm:$0xf]  ;;  %v2905_v55 = vsel %vm11738_vm6, %v10321_v63, %v2904_v36  ;;  %v2896_v5 = vrot.slane %v10259_v39, 5 }
 0x158   : > { %v2893_v51 = vsel %vm11738_vm6, %v10318_v32, %v2892_v50  ;;  %2087 = vst.msk [vmem:[#allocation2 + $0x54] sm:$0xf] %vm212_vm5, %v10161_v41  ;;  %v10159_v26 = vld [vmem:[%s11564_s18 + $0x20] sm:$0xf]  ;;  %v10267_v31 = vld [vmem:[%s11564_s18 + $0x44] sm:$0x1] }
 0x159   : > { %2676 = vrot.lane.b32.xlu1 %v2541_v21, %s11527_s19  ;;  %v10974_v21 = vld [vmem:[#allocation2 + $0x60] sm:$0xf]  ;;  %v2597_v58 = vsel %vm11577_vm2, %v2592_v37, %v2596_v9  ;;  %2086 = vst.msk [vmem:[#allocation2 + $0x44] sm:$0xf] %vm212_vm5, %v10160_v42  ;;  %v11424_v20 = vld [vmem:[#allocation2 + $0x8c] sm:$0xf0] }
 0x15a   : > { %2674 = vrot.lane.b32.xlu0 %v2527_v8, %s11527_s19  ;;  %v10317_v8 = vrot.slane %v10254_v14, 9  ;;  %v10975_v15 = vor.u32 %v11420_v23, %v10974_v21  ;;  %v10268_v0 = vld [vmem:[%s11564_s18 + $0x60] sm:$0xe]  ;;  %2085 = vst.msk [vmem:[#allocation2 + $0x34] sm:$0xf] %vm212_vm5, %v10159_v26  ;;  %v2912_v22 = vrot.slane %v10267_v31, 5 }
 0x15b   : > { %v1951_v57 = vpop.permute.xlu1 %1950  ;;  %v10266_v47 = vld [vmem:[%s11564_s18 + $0x40] sm:$0xe]  ;;  %v10324_v48 = vrot.slane %v10268_v0, 9  ;;  %v10265_v37 = vld [vmem:[%s11564_s18 + $0x3c] sm:$0x1] }
 0x15c   : > { %2032 = vst.msk [vmem:[#allocation2 + $0xf0] sm:$0xf] %vm2016_vm12, %v1951_v57  ;;  %v1949_v38 = vpop.permute.xlu0 %1948  ;;  %2672 = vrot.lane.b32.xlu2 %v2513_v62, %s11527_s19  ;;  %v10156_v62 = vld [vmem:[%s11564_s18 + $0x8] sm:$0xf]  ;;  %v2889_v44 = vsel %vm11738_vm6, %v10317_v8, %v2888_v24  ;;  %v10261_v57 = vld [vmem:[%s11564_s18 + $0x2c] sm:$0x1] }
 0x15d   : > { %2031 = vst.msk [vmem:[#allocation2 + $0xe0] sm:$0xf] %vm2016_vm12, %v1949_v38  ;;  %v2900_v34 = vrot.slane %v10261_v57, 5  ;;  %v2885_v38 = vsel %vm11738_vm6, %v10316_v18, %v2884_v19  ;;  %v10323_v16 = vrot.slane %v10266_v47, 9  ;;  %v10164_v2 = vld [vmem:[%s11564_s18 + $0x60] sm:$0xf] }
 0x15e   : > { %8282 = vmatmul.bf16.gmra.mxu0 %v10959_v40  ;;  %v1965_v46 = vpop.permute.xlu2 %1964  ;;  %2082 = vst.msk [vmem:[#allocation2 + $0x4] sm:$0xf] %vm212_vm5, %v10156_v62  ;;  %v10258_v40 = vld [vmem:[%s11564_s18 + $0x20] sm:$0xe]  ;;  %v10162_v59 = vld [vmem:[%s11564_s18 + $0x38] sm:$0xf] }
 0x15f   : > { %2039 = vst.msk [vmem:[#allocation2 + $0x160] sm:$0xf] %vm2016_vm12, %v1965_v46  ;;  %v10319_v56 = vrot.slane %v10258_v40, 9  ;;  %v2901_v46 = vsel %vm11738_vm6, %v10320_v12, %v2900_v34  ;;  %v10163_v9 = vld [vmem:[%s11564_s18 + $0x40] sm:$0xf]  ;;  %v2908_v50 = vrot.slane %v10265_v37, 5  ;;  %v2913_v8 = vsel %vm11738_vm6, %v10323_v16, %v2912_v22 }
 0x160   : > { %2090 = vst.msk [vmem:[#allocation2 + $0x84] sm:$0xf] %vm212_vm5, %v10164_v2  ;;  %v10275_v23 = vld [vmem:[%s11564_s18 + $0x7c] sm:$0x1]  ;;  %v10272_v24 = vld [vmem:[%s11564_s18 + $0x70] sm:$0xe] }
 0x161   : > { %2682 = vrot.lane.b32.xlu1 %v2583_v52, %s11527_s19  ;;  %2089 = vst.msk [vmem:[#allocation2 + $0x74] sm:$0xf] %vm212_vm5, %v10163_v9  ;;  %v10326_v60 = vrot.slane %v10272_v24, 9  ;;  %v10167_v62 = vld [vmem:[%s11564_s18 + $0x78] sm:$0xf] }
 0x162   : > { %2680 = vrot.lane.b32.xlu0 %v2569_v43, %s11527_s19  ;;  %v10269_v43 = vld [vmem:[%s11564_s18 + $0x64] sm:$0x1]  ;;  %2088 = vst.msk [vmem:[#allocation2 + $0x64] sm:$0xf] %vm212_vm5, %v10162_v59  ;;  %v10166_v4 = vld [vmem:[%s11564_s18 + $0x70] sm:$0xf] }
 0x163   : > { %v1957_v3 = vpop.permute.xlu1 %1956  ;;  %2093 = vst.msk [vmem:[#allocation2 + $0xb4] sm:$0xf] %vm212_vm5, %v10167_v62  ;;  %v10165_v19 = vld [vmem:[%s11564_s18 + $0x68] sm:$0xf]  ;;  %v10281_v57 = vld [vmem:[%s11564_s18 + $0x94] sm:$0x1] }
 0x164   : > { %2035 = vst.msk [vmem:[#allocation2 + $0x120] sm:$0xf] %vm2016_vm12, %v1957_v3  ;;  %v1955_v33 = vpop.permute.xlu0 %1954  ;;  %2678 = vrot.lane.b32.xlu2 %v2555_v28, %s11527_s19  ;;  %v10990_v28 = vld [vmem:[#allocation2 + $0x80] sm:$0xf]  ;;  %v2916_v3 = vrot.slane %v10269_v43, 5  ;;  %v2940_v39 = vrot.slane %v10281_v57, 5 }
 0x165   : > { %2034 = vst.msk [vmem:[#allocation2 + $0x110] sm:$0xf] %vm2016_vm12, %v1955_v33  ;;  %v2897_v33 = vsel %vm11738_vm6, %v10319_v56, %v2896_v5  ;;  %v10991_v14 = vor.u32 %v11424_v20, %v10990_v28  ;;  %v10278_v12 = vld [vmem:[%s11564_s18 + $0x88] sm:$0xe]  ;;  %v10279_v34 = vld [vmem:[%s11564_s18 + $0x8c] sm:$0x1] }
 0x166   : > { %v1971_v54 = vpop.permute.xlu2 %1970  ;;  %v2917_v21 = vsel %vm11738_vm6, %v10324_v48, %v2916_v3  ;;  %2092 = vst.msk [vmem:[#allocation2 + $0xa4] sm:$0xf] %vm212_vm5, %v10166_v4  ;;  %v11006_v40 = vld [vmem:[#allocation2 + $0xa0] sm:$0xf]  ;;  %v11428_v41 = vld [vmem:[#allocation2 + $0xac] sm:$0xf0] }
 0x167   : > { %2042 = vst.msk [vmem:[#allocation2 + $0x190] sm:$0xf] %vm2016_vm12, %v1971_v54  ;;  %v10274_v54 = vld [vmem:[%s11564_s18 + $0x78] sm:$0xe]  ;;  %v10329_v42 = vrot.slane %v10278_v12, 9  ;;  %v11007_v47 = vor.u32 %v11428_v41, %v11006_v40 }
 0x168   : > { %v10327_v27 = vrot.slane %v10274_v54, 9  ;;  %2091 = vst.msk [vmem:[#allocation2 + $0x94] sm:$0xf] %vm212_vm5, %v10165_v19  ;;  %v10276_v0 = vld [vmem:[%s11564_s18 + $0x80] sm:$0xe] }
 0x169   : > { %2688 = vrot.lane.b32.xlu1 %v2625_v13, %s11527_s19  ;;  %v10264_v13 = vld [vmem:[%s11564_s18 + $0x38] sm:$0xe]  ;;  %v10277_v56 = vld [vmem:[%s11564_s18 + $0x84] sm:$0x1]  ;;  %v10169_v5 = vld [vmem:[%s11564_s18 + $0x88] sm:$0xf] }
 0x16a   : > { %2686 = vrot.lane.b32.xlu0 %v2611_v45, %s11527_s19  ;;  %v10322_v32 = vrot.slane %v10264_v13, 9  ;;  %v10286_v31 = vld [vmem:[%s11564_s18 + $0xc0] sm:$0xe]  ;;  %v10287_v28 = vld [vmem:[%s11564_s18 + $0xc4] sm:$0x1]  ;;  %v10328_v16 = vrot.slane %v10276_v0, 9 }
 0x16b   : > { %v1963_v61 = vpop.permute.xlu1 %1962  ;;  %v10284_v20 = vld [vmem:[%s11564_s18 + $0xb8] sm:$0xe]  ;;  %v10285_v3 = vld [vmem:[%s11564_s18 + $0xbc] sm:$0x1]  ;;  %v2932_v22 = vrot.slane %v10277_v56, 5  ;;  %v10333_v2 = vrot.slane %v10286_v31, 9 }
 0x16c   : > { %2038 = vst.msk [vmem:[#allocation2 + $0x150] sm:$0xf] %vm2016_vm12, %v1963_v61  ;;  %v1961_v10 = vpop.permute.xlu0 %1960  ;;  %2684 = vrot.lane.b32.xlu2 %v2597_v58, %s11527_s19  ;;  %v10273_v58 = vld [vmem:[%s11564_s18 + $0x74] sm:$0x1]  ;;  %v2928_v61 = vrot.slane %v10275_v23, 5  ;;  %v10332_v37 = vrot.slane %v10284_v20, 9 }
 0x16d   : > { %2037 = vst.msk [vmem:[#allocation2 + $0x140] sm:$0xf] %vm2016_vm12, %v1961_v10  ;;  %v2924_v17 = vrot.slane %v10273_v58, 5  ;;  %v2909_v10 = vsel %vm11738_vm6, %v10322_v32, %v2908_v50  ;;  %v2948_v9 = vrot.slane %v10285_v3, 5  ;;  %v2933_v59 = vsel %vm11738_vm6, %v10328_v16, %v2932_v22  ;;  %v10290_v54 = vld [vmem:[%s11564_s18 + $0xd0] sm:$0xe] }
 0x16e   : > { %8287 = vmatmul.bf16.gmra.mxu0 %v10975_v15  ;;  %v1977_v35 = vpop.permute.xlu2 %1976  ;;  %v10270_v15 = vld [vmem:[%s11564_s18 + $0x68] sm:$0xe]  ;;  %v2929_v29 = vsel %vm11738_vm6, %v10327_v27, %v2928_v61  ;;  %2095 = vst.msk [vmem:[#allocation2 + $0xd4] sm:$0xf] %vm212_vm5, %v10169_v5  ;;  %v10282_v23 = vld [vmem:[%s11564_s18 + $0x98] sm:$0xe] }
 0x16f   : > { %2045 = vst.msk [vmem:[#allocation2 + $0x1c0] sm:$0xf] %vm2016_vm12, %v1977_v35  ;;  %v10325_v35 = vrot.slane %v10270_v15, 9  ;;  %v2925_v36 = vsel %vm11738_vm6, %v10326_v60, %v2924_v17  ;;  %v10283_v32 = vld [vmem:[%s11564_s18 + $0x9c] sm:$0x1]  ;;  %v2949_v17 = vsel %vm11738_vm6, %v10332_v37, %v2948_v9  ;;  %v10331_v62 = vrot.slane %v10282_v23, 9 }
 0x170   : > { %v10173_v50 = vld [vmem:[%s11564_s18 + $0xc0] sm:$0xf]  ;;  %v12822_v24 = vld [vmem:[%s11564_s18 + $0xf0] sm:$0xe]  ;;  %v10172_v58 = vld [vmem:[%s11564_s18 + $0xb8] sm:$0xf] }
 0x171   : > { %3014 = vrot.lane.b32.xlu1 %v2893_v51, %s11528_s20  ;;  %v10271_v51 = vld [vmem:[%s11564_s18 + $0x6c] sm:$0x1]  ;;  %2099 = vst.msk [vmem:[#allocation2 + $0x114] sm:$0xf] %vm212_vm5, %v10173_v50  ;;  %v12828_v27 = vld [vmem:[%s11564_s18 + $0xf4] sm:$0x1] }
 0x172   : > { %3012 = vrot.lane.b32.xlu0 %v2889_v44, %s11528_s20  ;;  %v10280_v44 = vld [vmem:[%s11564_s18 + $0x90] sm:$0xe]  ;;  %v2920_v63 = vrot.slane %v10271_v51, 5  ;;  %v10171_v61 = vld [vmem:[%s11564_s18 + $0x98] sm:$0xf]  ;;  %v2976_v57 = vrot.slane %v12828_v27, 5 }
 0x173   : > { %v1969_v52 = vpop.permute.xlu1 %1968  ;;  %2098 = vst.msk [vmem:[#allocation2 + $0x104] sm:$0xf] %vm212_vm5, %v10172_v58  ;;  %v11022_v51 = vld [vmem:[#allocation2 + $0xc0] sm:$0xf]  ;;  %v11432_v4 = vld [vmem:[#allocation2 + $0xcc] sm:$0xf0] }
 0x174   : > { %2041 = vst.msk [vmem:[#allocation2 + $0x180] sm:$0xf] %vm2016_vm12, %v1969_v52  ;;  %v1967_v53 = vpop.permute.xlu0 %1966  ;;  %3010 = vrot.lane.b32.xlu2 %v2885_v38, %s11528_s20  ;;  %v10330_v52 = vrot.slane %v10280_v44, 9  ;;  %v2921_v26 = vsel %vm11738_vm6, %v10325_v35, %v2920_v63  ;;  %v12845_v35 = vld [vmem:[%s11564_s18 + $0xe8] sm:$0xe] }
 0x175   : > { %2040 = vst.msk [vmem:[#allocation2 + $0x170] sm:$0xf] %vm2016_vm12, %v1967_v53  ;;  %v2936_v53 = vrot.slane %v10279_v34, 5  ;;  %v12848_v63 = vld [vmem:[%s11564_s18 + $0xec] sm:$0x1]  ;;  %v10338_v5 = vrot.slane %v12845_v35, 9 }
 0x176   : > { %v1983_v6 = vpop.permute.xlu2 %1982  ;;  %v2941_v48 = vsel %vm11738_vm6, %v10330_v52, %v2940_v39  ;;  %2097 = vst.msk [vmem:[#allocation2 + $0xf4] sm:$0xf] %vm212_vm5, %v10171_v61  ;;  %v10289_v12 = vld [vmem:[%s11564_s18 + $0xcc] sm:$0x1]  ;;  %v12854_v34 = vld [vmem:[%s11564_s18 + $0x120] sm:$0xe] }
 0x177   : > { %2048 = vst.msk [vmem:[#allocation2 + $0x1f0] sm:$0xf] %vm2016_vm12, %v1983_v6  ;;  %v10168_v6 = vld [vmem:[%s11564_s18 + $0x80] sm:$0xf]  ;;  %v12863_v41 = vld [vmem:[%s11564_s18 + $0x118] sm:$0xe] }
 0x178   : > { %2094 = vst.msk [vmem:[#allocation2 + $0xc4] sm:$0xf] %vm212_vm5, %v10168_v6  ;;  %v12866_v52 = vld [vmem:[%s11564_s18 + $0x11c] sm:$0x1]  ;;  %v10176_v39 = vld [vmem:[%s11564_s18 + $0xd8] sm:$0xf] }
 0x179   : > { %3020 = vrot.lane.b32.xlu1 %v2905_v55, %s11528_s20  ;;  %v10170_v55 = vld [vmem:[%s11564_s18 + $0x90] sm:$0xf]  ;;  %2102 = vst.msk [vmem:[#allocation2 + $0x144] sm:$0xf] %vm212_vm5, %v10176_v39  ;;  %v10174_v56 = vld [vmem:[%s11564_s18 + $0xc8] sm:$0xf] }
 0x17a   : > { %3018 = vrot.lane.b32.xlu0 %v2901_v46, %s11528_s20  ;;  %2096 = vst.msk [vmem:[#allocation2 + $0xe4] sm:$0xf] %vm212_vm5, %v10170_v55  ;;  %v11023_v55 = vor.u32 %v11432_v4, %v11022_v51  ;;  %v2956_v31 = vrot.slane %v10289_v12, 5  ;;  %v10342_v20 = vrot.slane %v12854_v34, 9  ;;  %v10348_v3 = vld [vmem:[%s11564_s18 + $0x8] sm:$0xe] }
 0x17b   : > { %v1975_v7 = vpop.permute.xlu1 %1974  ;;  %v10341_v22 = vrot.slane %v12863_v41, 9  ;;  %2100 = vst.msk [vmem:[#allocation2 + $0x124] sm:$0xf] %vm212_vm5, %v10174_v56  ;;  %v12901_v37 = vld [vmem:[%s11564_s18 + $0x13c] sm:$0x1] }
 0x17c   : > { %2044 = vst.msk [vmem:[#allocation2 + $0x1b0] sm:$0xf] %vm2016_vm12, %v1975_v7  ;;  %v1973_v45 = vpop.permute.xlu0 %1972  ;;  %3016 = vrot.lane.b32.xlu2 %v2897_v33, %s11528_s20  ;;  %v2937_v33 = vsel %vm11738_vm6, %v10329_v42, %v2936_v53  ;;  %v2952_v7 = vrot.slane %v10287_v28, 5  ;;  %v12870_v53 = vld [vmem:[%s11564_s18 + $0xe0] sm:$0xe] }
 0x17d   : > { %2043 = vst.msk [vmem:[#allocation2 + $0x1a0] sm:$0xf] %vm2016_vm12, %v1973_v45  ;;  %v12808_v45 = vld [vmem:[%s11564_s18 + $0xd8] sm:$0xe]  ;;  %v12905_v9 = vld [vmem:[%s11564_s18 + $0x130] sm:$0xe] }
 0x17e   : > { %8292 = vmatmul.bf16.gmra.mxu0 %v10991_v14  ;;  %v2631_v30 = vpop.permute.xlu2 %2630  ;;  %v12811_v14 = vld [vmem:[%s11564_s18 + $0xdc] sm:$0x1]  ;;  %v2953_v60 = vsel %vm11738_vm6, %v10333_v2, %v2952_v7  ;;  %v12898_v7 = vld [vmem:[%s11564_s18 + $0x138] sm:$0xe]  ;;  %v10349_v23 = vld [vmem:[%s11564_s18 + $0xc] sm:$0x3] }
 0x17f   : > { %2724 = vst.msk [vmem:[#allocation2 + $0x24] sm:$0xf] %vm856_vm7, %v2631_v30  ;;  %v2964_v15 = vrot.slane %v12811_v14, 5  ;;  %v3203_v14 = vshrl.u32 %v10348_v3, 16  ;;  %v10178_v58 = vld [vmem:[%s11564_s18 + $0xe8] sm:$0xf] }
 0x180   : > { %v10345_v61 = vrot.slane %v12898_v7, 9  ;;  %2104 = vst.msk [vmem:[#allocation2 + $0x164] sm:$0xf] %vm212_vm5, %v10178_v58  ;;  %v11038_v27 = vld [vmem:[#allocation2 + $0xe0] sm:$0xf] }
 0x181   : > { %3026 = vrot.lane.b32.xlu1 %v2917_v21, %s11528_s20  ;;  %v10291_v21 = vld [vmem:[%s11564_s18 + $0xd4] sm:$0x1]  ;;  %v11436_v35 = vld [vmem:[#allocation2 + $0xec] sm:$0xf0]  ;;  %v12946_v12 = vld [vmem:[%s11564_s18 + $0x148] sm:$0xe] }
 0x182   : > { %3024 = vrot.lane.b32.xlu0 %v2913_v8, %s11528_s20  ;;  %v2960_v19 = vrot.slane %v10291_v21, 5  ;;  %v12914_v21 = vld [vmem:[%s11564_s18 + $0x110] sm:$0xe] }
 0x183   : > { %v1981_v1 = vpop.permute.xlu1 %1980 }
 0x184   : > { %2047 = vst.msk [vmem:[#allocation2 + $0x1e0] sm:$0xf] %vm2016_vm12, %v1981_v1  ;;  %v1979_v18 = vpop.permute.xlu0 %1978  ;;  %3022 = vrot.lane.b32.xlu2 %v2909_v10, %s11528_s20  ;;  %v10336_v10 = vrot.slane %v12808_v45, 9  ;;  %v2944_v1 = vrot.slane %v10283_v32, 5  ;;  %v12908_v45 = vld [vmem:[%s11564_s18 + $0x134] sm:$0x1] }
 0x185   : > { %2046 = vst.msk [vmem:[#allocation2 + $0x1d0] sm:$0xf] %vm2016_vm12, %v1979_v18  ;;  %v10335_v18 = vrot.slane %v10290_v54, 9  ;;  %v10179_v32 = vld [vmem:[%s11564_s18 + $0xf0] sm:$0xf] }
 0x186   : > { %v2637_v38 = vpop.permute.xlu2 %2636  ;;  %v2945_v40 = vsel %vm11738_vm6, %v10331_v62, %v2944_v1  ;;  %v2965_v6 = vsel %vm11738_vm6, %v10336_v10, %v2964_v15  ;;  %2105 = vst.msk [vmem:[#allocation2 + $0x174] sm:$0xf] %vm212_vm5, %v10179_v32  ;;  %v10344_v10 = vrot.slane %v12905_v9, 9  ;;  %v2996_v15 = vrot.slane %v12908_v45, 5  ;;  %v10351_v9 = vld [vmem:[%s11564_s18 + $0x14] sm:$0x3] }
 0x187   : > { %2727 = vst.msk [vmem:[#allocation2 + $0x54] sm:$0xf] %vm856_vm7, %v2637_v38  ;;  %v12857_v38 = vld [vmem:[%s11564_s18 + $0x124] sm:$0x1]  ;;  %v2961_v28 = vsel %vm11738_vm6, %v10335_v18, %v2960_v19  ;;  %v3212_v62 = vshrl.u32 %v10349_v23, 16  ;;  %v3215_v1 = vshll.u32 %v10349_v23, 16 }
 0x188   : > { %v10340_v18 = vrot.slane %v12914_v21, 9  ;;  %v2997_v7 = vsel %vm11738_vm6, %v10344_v10, %v2996_v15 }
 0x189   : > { %3032 = vrot.lane.b32.xlu1 %v2929_v29, %s11528_s20  ;;  %v10339_v29 = vrot.slane %v12822_v24, 9  ;;  %v12950_v39 = vrot.slane %v3212_v62, 5  ;;  %v12995_v62 = vld [vmem:[#allocation2 + $0x12c] sm:$0xf0] }
 0x18a   : > { %3030 = vrot.lane.b32.xlu0 %v2925_v36, %s11528_s20  ;;  %v10288_v36 = vld [vmem:[%s11564_s18 + $0xc8] sm:$0xe] }
 0x18b   : > { %v2629_v43 = vpop.permute.xlu1 %2628  ;;  %v2977_v51 = vsel %vm11738_vm6, %v10339_v29, %v2976_v57 }
 0x18c   : > { %2723 = vst.msk [vmem:[#allocation2 + $0x14] sm:$0xf] %vm856_vm7, %v2629_v43  ;;  %v2627_v46 = vpop.permute.xlu0 %2626  ;;  %3028 = vrot.lane.b32.xlu2 %v2921_v26, %s11528_s20  ;;  %v10175_v26 = vld [vmem:[%s11564_s18 + $0xd0] sm:$0xf]  ;;  %v12876_v43 = vld [vmem:[%s11564_s18 + $0xe4] sm:$0x1] }
 0x18d   : > { %2722 = vst.msk [vmem:[#allocation2 + $0x4] sm:$0xf] %vm856_vm7, %v2627_v46  ;;  %v2972_v46 = vrot.slane %v12848_v63, 5  ;;  %v2968_v2 = vrot.slane %v12876_v43, 5  ;;  %v3205_v63 = vrot.slane %v3203_v14, 5 }
 0x18e   : > { %8297 = vmatmul.bf16.gmra.mxu0 %v11007_v47  ;;  %v2643_v13 = vpop.permute.xlu2 %2642  ;;  %v10334_v47 = vrot.slane %v10288_v36, 9  ;;  %2101 = vst.msk [vmem:[#allocation2 + $0x134] sm:$0xf] %vm212_vm5, %v10175_v26  ;;  %v10355_v26 = vld [vmem:[%s11564_s18 + $0x24] sm:$0x3] }
 0x18f   : > { %2730 = vst.msk [vmem:[#allocation2 + $0x84] sm:$0xf] %vm856_vm7, %v2643_v13  ;;  %v10337_v13 = vrot.slane %v12870_v53, 9  ;;  %v2973_v4 = vsel %vm11738_vm6, %v10338_v5, %v2972_v46  ;;  %v12955_v53 = vld [vmem:[%s11564_s18 + $0x14c] sm:$0x1]  ;;  %v3266_v14 = vshrl.u32 %v10355_v26, 16 }
 0x190   : > { %v2957_v54 = vsel %vm11738_vm6, %v10334_v47, %v2956_v31  ;;  %v10353_v5 = vld [vmem:[%s11564_s18 + $0x1c] sm:$0x3]  ;;  %v10182_v46 = vld [vmem:[%s11564_s18 + $0x120] sm:$0xf]  ;;  %v3269_v23 = vshll.u32 %v10355_v26, 16  ;;  %v3008_v34 = vrot.slane %v12955_v53, 5 }
 0x191   : > { %3038 = vrot.lane.b32.xlu1 %v2941_v48, %s11528_s20  ;;  %v2988_v48 = vrot.slane %v12857_v38, 5  ;;  %2108 = vst.msk [vmem:[#allocation2 + $0x1a4] sm:$0xf] %vm212_vm5, %v10182_v46  ;;  %v3248_v32 = vshrl.u32 %v10353_v5, 16  ;;  %v12990_v38 = vld [vmem:[%s11564_s18 + $0x12c] sm:$0x1] }
 0x192   : > { %3036 = vrot.lane.b32.xlu0 %v2937_v33, %s11528_s20  ;;  %v2984_v33 = vrot.slane %v12866_v52, 5 }
 0x193   : > { %v2635_v8 = vpop.permute.xlu1 %2634  ;;  %v13025_v21 = vrot.slane %v3248_v32, 5 }
 0x194   : > { %2726 = vst.msk [vmem:[#allocation2 + $0x44] sm:$0xf] %vm856_vm7, %v2635_v8  ;;  %v2633_v30 = vpop.permute.xlu0 %2632  ;;  %3034 = vrot.lane.b32.xlu2 %v2933_v59, %s11528_s20  ;;  %v3206_v59 = vshll.u32 %v10348_v3, 16  ;;  %v12919_v8 = vld [vmem:[%s11564_s18 + $0x114] sm:$0x1]  ;;  %v2985_v58 = vsel %vm11738_vm6, %v10341_v22, %v2984_v33 }
 0x195   : > { %2725 = vst.msk [vmem:[#allocation2 + $0x34] sm:$0xf] %vm856_vm7, %v2633_v30  ;;  %v2980_v19 = vrot.slane %v12919_v8, 5  ;;  %v10181_v3 = vld [vmem:[%s11564_s18 + $0x118] sm:$0xf]  ;;  %v13023_v8 = vrot.slane %v3269_v23, 6 }
 0x196   : > { %v2649_v44 = vpop.permute.xlu2 %2648  ;;  %v3208_v36 = vrot.slane %v3206_v59, 6  ;;  %v10180_v59 = vld [vmem:[%s11564_s18 + $0x110] sm:$0xf]  ;;  %2107 = vst.msk [vmem:[#allocation2 + $0x194] sm:$0xf] %vm212_vm5, %v10181_v3 }
 0x197   : > { %2733 = vst.msk [vmem:[#allocation2 + $0xb4] sm:$0xf] %vm856_vm7, %v2649_v44  ;;  %v10354_v44 = vld [vmem:[%s11564_s18 + $0x20] sm:$0xe] }
 0x198   : > { %v3257_v29 = vshrl.u32 %v10354_v44, 16  ;;  %v3260_v57 = vshll.u32 %v10354_v44, 16  ;;  %v3209_v31 = vor.u32 %v3208_v36, %v3205_v63  ;;  %2106 = vst.msk [vmem:[#allocation2 + $0x184] sm:$0xf] %vm212_vm5, %v10180_v59  ;;  %v13006_v44 = vld [vmem:[#allocation2 + $0x100] sm:$0xf] }
 0x199   : > { %3044 = vrot.lane.b32.xlu1 %v2953_v60, %s11528_s20  ;;  %v3000_v60 = vrot.slane %v12901_v37, 5  ;;  %v13017_v36 = vld [vmem:[#allocation2 + $0x16c] sm:$0xf0]  ;;  %v13057_v23 = vld [vmem:[%s11564_s18 + $0x140] sm:$0xe] }
 0x19a   : > { %3042 = vrot.lane.b32.xlu0 %v2949_v17, %s11528_s20  ;;  %v10177_v17 = vld [vmem:[%s11564_s18 + $0xe0] sm:$0xf]  ;;  %v3259_v43 = vrot.slane %v3257_v29, 5  ;;  %v3262_v56 = vrot.slane %v3260_v57, 6  ;;  %v12997_v41 = vrot.slane %v3209_v31, 4  ;;  %v2992_v29 = vrot.slane %v12990_v38, 5 }
 0x19b   : > { %v2641_v42 = vpop.permute.xlu1 %2640  ;;  %2103 = vst.msk [vmem:[#allocation2 + $0x154] sm:$0xf] %vm212_vm5, %v10177_v17  ;;  %v12993_v17 = vld [vmem:[#allocation2 + $0x120] sm:$0xf]  ;;  %v13021_v57 = vrot.slane %v3266_v14, 5 }
 0x19c   : > { %2729 = vst.msk [vmem:[#allocation2 + $0x74] sm:$0xf] %vm856_vm7, %v2641_v42  ;;  %v2639_v0 = vpop.permute.xlu0 %2638  ;;  %3040 = vrot.lane.b32.xlu2 %v2945_v40, %s11528_s20  ;;  %v10352_v40 = vld [vmem:[%s11564_s18 + $0x18] sm:$0xe]  ;;  %v12952_v42 = vrot.slane %v3215_v1, 6  ;;  %v11071_v46 = vor.u32 %v12995_v62, %v12993_v17 }
 0x19d   : > { %2728 = vst.msk [vmem:[#allocation2 + $0x64] sm:$0xf] %vm856_vm7, %v2639_v0  ;;  %v2969_v0 = vsel %vm11738_vm6, %v10337_v13, %v2968_v2  ;;  %v11039_v13 = vor.u32 %v11436_v35, %v11038_v27  ;;  %v10347_v2 = vrot.slane %v12946_v12, 9  ;;  %v2981_v27 = vsel %vm11738_vm6, %v10340_v18, %v2980_v19  ;;  %v13015_v35 = vld [vmem:[%s11564_s18 + $0x3c] sm:$0x3] }
 0x19e   : > { %8302 = vmatmul.bf16.gmra.mxu0 %v11023_v55  ;;  %v2655_v16 = vpop.permute.xlu2 %2654  ;;  %v12962_v55 = vld [vmem:[%s11564_s18 + $0x128] sm:$0xe]  ;;  %v3323_v31 = vshll.u32 %v13015_v35, 16  ;;  %v10184_v14 = vld [vmem:[%s11564_s18 + $0x130] sm:$0xf]  ;;  %v3218_v37 = vor.u32 %v12952_v42, %v12950_v39  ;;  %v3272_v45 = vor.u32 %v13023_v8, %v13021_v57  ;;  %v10346_v8 = vrot.slane %v13057_v23, 9 }
 0x19f   : > { %2736 = vst.msk [vmem:[#allocation2 + $0xe4] sm:$0xf] %vm856_vm7, %v2655_v16  ;;  %v10343_v22 = vrot.slane %v12962_v55, 9  ;;  %v10185_v55 = vld [vmem:[%s11564_s18 + $0x138] sm:$0xf] }
 0x1a0   : > { %2111 = vst.msk [vmem:[#allocation2 + $0x1d4] sm:$0xf] %vm212_vm5, %v10185_v55  ;;  %v10313_v57 = vld [vmem:[%s11564_s18 + $0x144] sm:$0x1]  ;;  %v3219_v12 = vsel %vm12136_vm10, %v12997_v41, %v3218_v37  ;;  %v10186_v37 = vld [vmem:[%s11564_s18 + $0x140] sm:$0xf] }
 0x1a1   : > { %3050 = vrot.lane.b32.xlu1 %v2965_v6, %s11528_s20  ;;  %v3239_v6 = vshrl.u32 %v10352_v40, 16  ;;  %2110 = vst.msk [vmem:[#allocation2 + $0x1c4] sm:$0xf] %vm212_vm5, %v10184_v14  ;;  %v10187_v14 = vld [vmem:[%s11564_s18 + $0x148] sm:$0xf] }
 0x1a2   : > { %3048 = vrot.lane.b32.xlu0 %v2961_v28, %s11528_s20  ;;  %v3242_v28 = vshll.u32 %v10352_v40, 16  ;;  %v10358_v40 = vld [vmem:[%s11564_s18 + $0x30] sm:$0xe]  ;;  %2113 = vst.msk [vmem:[#allocation2 + $0x1f4] sm:$0xf] %vm212_vm5, %v10187_v14 }
 0x1a3   : > { %v2647_v50 = vpop.permute.xlu1 %2646  ;;  %v3241_v33 = vrot.slane %v3239_v6, 5  ;;  %v3293_v26 = vshrl.u32 %v10358_v40, 16  ;;  %v10359_v6 = vld [vmem:[%s11564_s18 + $0x34] sm:$0x3]  ;;  %2112 = vst.msk [vmem:[#allocation2 + $0x1e4] sm:$0xf] %vm212_vm5, %v10186_v37 }
 0x1a4   : > { %2732 = vst.msk [vmem:[#allocation2 + $0xa4] sm:$0xf] %vm856_vm7, %v2647_v50  ;;  %v2645_v30 = vpop.permute.xlu0 %2644  ;;  %3046 = vrot.lane.b32.xlu2 %v2957_v54, %s11528_s20  ;;  %v2989_v54 = vsel %vm11738_vm6, %v10342_v20, %v2988_v48  ;;  %v10360_v50 = vld [vmem:[%s11564_s18 + $0x38] sm:$0xe]  ;;  %v3263_v20 = vor.u32 %v3262_v56, %v3259_v43  ;;  %v3251_v48 = vshll.u32 %v10353_v5, 16  ;;  %v3244_v1 = vrot.slane %v3242_v28, 6 }
 0x1a5   : > { %2731 = vst.msk [vmem:[#allocation2 + $0x94] sm:$0xf] %vm856_vm7, %v2645_v30  ;;  %v12986_v30 = vld [vmem:[#allocation2 + $0x10c] sm:$0xf0]  ;;  %v3314_v63 = vshll.u32 %v10360_v50, 16  ;;  %v3295_v32 = vrot.slane %v3293_v26, 5 }
 0x1a6   : > { %v2661_v24 = vpop.permute.xlu2 %2660  ;;  %v13029_v18 = vrot.slane %v3263_v20, 4  ;;  %v13031_v19 = vrot.slane %v3251_v48, 6  ;;  %v13034_v43 = vld [vmem:[#allocation2 + $0x160] sm:$0xf]  ;;  %v11055_v5 = vor.u32 %v12986_v30, %v13006_v44  ;;  %v3245_v3 = vor.u32 %v3244_v1, %v3241_v33  ;;  %v10350_v20 = vld [vmem:[%s11564_s18 + $0x10] sm:$0xe] }
 0x1a7   : > { %2739 = vst.msk [vmem:[#allocation2 + $0x114] sm:$0xf] %vm856_vm7, %v2661_v24  ;;  %v3311_v24 = vshrl.u32 %v10360_v50, 16  ;;  %v11103_v38 = vor.u32 %v13017_v36, %v13034_v43  ;;  %v3221_v10 = vshrl.u32 %v10350_v20, 16  ;;  %v3224_v15 = vshll.u32 %v10350_v20, 16 }
 0x1a8   : > { %v3246_v39 = vrot.slane %v3245_v3, 4  ;;  %v3254_v42 = vor.u32 %v13031_v19, %v13025_v21  ;;  %v3230_v33 = vshrl.u32 %v10351_v9, 16  ;;  %v3233_v1 = vshll.u32 %v10351_v9, 16  ;;  %v10362_v14 = vld [vmem:[%s11564_s18 + $0x40] sm:$0xe] }
 0x1a9   : > { %3056 = vrot.lane.b32.xlu1 %v2977_v51, %s11528_s20  ;;  %v13001_v51 = vld [vmem:[#allocation2 + $0x140] sm:$0xf]  ;;  %v3325_v26 = vrot.slane %v3323_v31, 6  ;;  %v10363_v37 = vld [vmem:[%s11564_s18 + $0x44] sm:$0x3] }
 0x1aa   : > { %3054 = vrot.lane.b32.xlu0 %v2973_v4, %s11528_s20  ;;  %v13003_v4 = vld [vmem:[#allocation2 + $0x14c] sm:$0xf0]  ;;  %v13118_v30 = vsel %vm12136_vm10, %v3246_v39, %v3254_v42 }
 0x1ab   : > { %v2653_v47 = vpop.permute.xlu1 %2652  ;;  %v11087_v59 = vor.u32 %v13003_v4, %v13001_v51 }
 0x1ac   : > { %2735 = vst.msk [vmem:[#allocation2 + $0xd4] sm:$0xf] %vm856_vm7, %v2653_v47  ;;  %v2651_v16 = vpop.permute.xlu0 %2650  ;;  %3052 = vrot.lane.b32.xlu2 %v2969_v0, %s11528_s20  ;;  %v3296_v0 = vshll.u32 %v10358_v40, 16  ;;  %v3320_v47 = vshrl.u32 %v13015_v35, 16  ;;  %v3223_v35 = vrot.slane %v3221_v10, 5 }
 0x1ad   : > { %2734 = vst.msk [vmem:[#allocation2 + $0xc4] sm:$0xf] %vm856_vm7, %v2651_v16  ;;  %v3313_v16 = vrot.slane %v3311_v24, 5  ;;  %v3226_v24 = vrot.slane %v3224_v15, 6 }
 0x1ae   : > { %8307 = vmatmul.bf16.gmra.mxu0 %v11039_v13  ;;  %v2667_v52 = vpop.permute.xlu2 %2666  ;;  %v3316_v13 = vrot.slane %v3314_v63, 6  ;;  %v3298_v50 = vrot.slane %v3296_v0, 6  ;;  %v10366_v63 = vld [vmem:[%s11564_s18 + $0x68] sm:$0xe]  ;;  %v3322_v40 = vrot.slane %v3320_v47, 5  ;;  %v3009_v47 = vsel %vm11738_vm6, %v10347_v2, %v3008_v34 }
 0x1af   : > { %2742 = vst.msk [vmem:[#allocation2 + $0x144] sm:$0xf] %vm856_vm7, %v2667_v52  ;;  %v2993_v52 = vsel %vm11738_vm6, %v10343_v22, %v2992_v29  ;;  %v10367_v29 = vld [vmem:[%s11564_s18 + $0x6c] sm:$0x3]  ;;  %v3365_v21 = vshrl.u32 %v10366_v63, 16  ;;  %v3227_v31 = vor.u32 %v3226_v24, %v3223_v35  ;;  %v13109_v2 = vsel %vm12136_vm10, %v13029_v18, %v3272_v45 }
 0x1b0   : > { %v3317_v22 = vor.u32 %v3316_v13, %v3313_v16  ;;  %v3368_v16 = vshll.u32 %v10366_v63, 16  ;;  %v3374_v13 = vshrl.u32 %v10367_v29, 16  ;;  %v3377_v53 = vshll.u32 %v10367_v29, 16 }
 0x1b1   : > { %3062 = vrot.lane.b32.xlu1 %v2989_v54, %s11528_s20  ;;  %v3001_v54 = vsel %vm11738_vm6, %v10345_v61, %v3000_v60  ;;  %v3302_v61 = vshrl.u32 %v10359_v6, 16  ;;  %v3305_v60 = vshll.u32 %v10359_v6, 16  ;;  %v3235_v6 = vrot.slane %v3233_v1, 6 }
 0x1b2   : > { %3060 = vrot.lane.b32.xlu0 %v2985_v58, %s11528_s20  ;;  %v10183_v58 = vld [vmem:[%s11564_s18 + $0x128] sm:$0xf]  ;;  %v3318_v23 = vrot.slane %v3317_v22, 4  ;;  %v13111_v34 = vrot.slane %v3365_v21, 5  ;;  %v3228_v18 = vrot.slane %v3227_v31, 4  ;;  %v13124_v20 = vrot.slane %v3368_v16, 6 }
 0x1b3   : > { %v2659_v56 = vpop.permute.xlu1 %2658  ;;  %2109 = vst.msk [vmem:[#allocation2 + $0x1b4] sm:$0xf] %vm212_vm5, %v10183_v58  ;;  %v3304_v0 = vrot.slane %v3302_v61, 5  ;;  %v3307_v55 = vrot.slane %v3305_v60, 6  ;;  %v10356_v61 = vld [vmem:[%s11564_s18 + $0x28] sm:$0xe] }
 0x1b4   : > { %2738 = vst.msk [vmem:[#allocation2 + $0x104] sm:$0xf] %vm856_vm7, %v2659_v56  ;;  %v2657_v28 = vpop.permute.xlu0 %2656  ;;  %3058 = vrot.lane.b32.xlu2 %v2981_v27, %s11528_s20  ;;  %v3299_v27 = vor.u32 %v3298_v50, %v3295_v32  ;;  %v3232_v56 = vrot.slane %v3230_v33, 5  ;;  %v10365_v50 = vld [vmem:[%s11564_s18 + $0x64] sm:$0x3]  ;;  %v13129_v45 = vrot.slane %v3377_v53, 6 }
 0x1b5   : > { %2737 = vst.msk [vmem:[#allocation2 + $0xf4] sm:$0xf] %vm856_vm7, %v2657_v28  ;;  %v13088_v28 = vld [vmem:[%s11564_s18 + $0x60] sm:$0xe]  ;;  %v10357_v60 = vld [vmem:[%s11564_s18 + $0x2c] sm:$0x3] }
 0x1b6   : > { %v2673_v48 = vpop.permute.xlu2 %2672  ;;  %v3300_v32 = vrot.slane %v3299_v27, 4  ;;  %v3347_v58 = vshrl.u32 %v13088_v28, 16  ;;  %v3236_v41 = vor.u32 %v3235_v6, %v3232_v56  ;;  %v3350_v9 = vshll.u32 %v13088_v28, 16  ;;  %v10372_v22 = vld [vmem:[%s11564_s18 + $0x80] sm:$0xe] }
 0x1b7   : > { %2745 = vst.msk [vmem:[#allocation2 + $0x174] sm:$0xf] %vm856_vm7, %v2673_v48  ;;  %v13126_v48 = vrot.slane %v3374_v13, 5  ;;  %v3278_v10 = vshll.u32 %v10356_v61, 16  ;;  %v3284_v15 = vshrl.u32 %v10357_v60, 16  ;;  %v3356_v33 = vshrl.u32 %v10365_v50, 16 }
 0x1b8   : > { %v13136_v42 = vrot.slane %v3347_v58, 5  ;;  %v3287_v29 = vshll.u32 %v10357_v60, 16  ;;  %v3359_v21 = vshll.u32 %v10365_v50, 16  ;;  %v3352_v6 = vrot.slane %v3350_v9, 6  ;;  %v10378_v9 = vld [vmem:[%s11564_s18 + $0x98] sm:$0xe] }
 0x1b9   : > { %3068 = vrot.lane.b32.xlu1 %v3001_v54, %s11528_s20  ;;  %v3004_v54 = vrot.slane %v10313_v57, 5  ;;  %v3280_v63 = vrot.slane %v3278_v10, 6  ;;  %v10373_v57 = vld [vmem:[%s11564_s18 + $0x84] sm:$0x3]  ;;  %v3380_v56 = vor.u32 %v13129_v45, %v13126_v48  ;;  %v3286_v28 = vrot.slane %v3284_v15, 5 }
 0x1ba   : > { %3066 = vrot.lane.b32.xlu0 %v2997_v7, %s11528_s20  ;;  %v3308_v7 = vor.u32 %v3307_v55, %v3304_v0  ;;  %v3422_v0 = vshll.u32 %v10372_v22, 16  ;;  %v3371_v55 = vor.u32 %v13124_v20, %v13111_v34  ;;  %v3428_v31 = vshrl.u32 %v10373_v57, 16 }
 0x1bb   : > { %v2665_v19 = vpop.permute.xlu1 %2664  ;;  %v3005_v39 = vsel %vm11738_vm6, %v10346_v8, %v3004_v54  ;;  %v3431_v16 = vshll.u32 %v10373_v57, 16  ;;  %v13161_v34 = vrot.slane %v3356_v33, 5  ;;  %v13163_v50 = vrot.slane %v3359_v21, 6  ;;  %v10379_v33 = vld [vmem:[%s11564_s18 + $0x9c] sm:$0x3] }
 0x1bc   : > { %2741 = vst.msk [vmem:[#allocation2 + $0x134] sm:$0xf] %vm856_vm7, %v2665_v19  ;;  %v2663_v3 = vpop.permute.xlu0 %2662  ;;  %3064 = vrot.lane.b32.xlu2 %v2993_v52, %s11528_s20  ;;  %v3275_v52 = vshrl.u32 %v10356_v61, 16  ;;  %v13145_v24 = vsel %vm12136_vm10, %v3300_v32, %v3308_v7  ;;  %v3419_v19 = vshrl.u32 %v10372_v22, 16  ;;  %v3424_v53 = vrot.slane %v3422_v0, 6 }
 0x1bd   : > { %2740 = vst.msk [vmem:[#allocation2 + $0x124] sm:$0xf] %vm856_vm7, %v2663_v3  ;;  %v10371_v3 = vld [vmem:[%s11564_s18 + $0x7c] sm:$0x3]  ;;  %v3329_v61 = vshrl.u32 %v10362_v14, 16  ;;  %v13173_v20 = vrot.slane %v3431_v16, 6 }
 0x1be   : > { %8312 = vmatmul.bf16.gmra.mxu0 %v11055_v5  ;;  %v2679_v44 = vpop.permute.xlu2 %2678  ;;  %v3326_v5 = vor.u32 %v3325_v26, %v3322_v40  ;;  %v3277_v1 = vrot.slane %v3275_v52, 5  ;;  %v10370_v40 = vld [vmem:[%s11564_s18 + $0x78] sm:$0xe]  ;;  %v3237_v26 = vsel %vm12136_vm10, %v3228_v18, %v3236_v41  ;;  %v3421_v32 = vrot.slane %v3419_v19, 5 }
 0x1bf   : > { %2748 = vst.msk [vmem:[#allocation2 + $0x1a4] sm:$0xf] %vm856_vm7, %v2679_v44  ;;  %v3401_v13 = vshrl.u32 %v10370_v40, 16  ;;  %v3410_v58 = vshrl.u32 %v10371_v3, 16  ;;  %v3413_v44 = vshll.u32 %v10371_v3, 16  ;;  %v13171_v18 = vrot.slane %v3428_v31, 5 }
 0x1c0   : > { %v13141_v35 = vsel %vm12136_vm10, %v3318_v23, %v3326_v5  ;;  %v3289_v23 = vrot.slane %v3287_v29, 6  ;;  %v3353_v5 = vor.u32 %v3352_v6, %v13136_v42  ;;  %v3332_v52 = vshll.u32 %v10362_v14, 16  ;;  %v10377_v31 = vld [vmem:[%s11564_s18 + $0x94] sm:$0x3] }
 0x1c1   : > { %3778 = vrot.lane.b32.xlu1 %v3219_v12, %s11529_s21  ;;  %v3404_v12 = vshll.u32 %v10370_v40, 16  ;;  %v3403_v7 = vrot.slane %v3401_v13, 5  ;;  %v3425_v15 = vor.u32 %v3424_v53, %v3421_v32  ;;  %v3331_v42 = vrot.slane %v3329_v61, 5  ;;  %v10368_v13 = vld [vmem:[%s11564_s18 + $0x70] sm:$0xe] }
 0x1c2   : > { %3072 = vrot.lane.b32.xlu0 %v3009_v47, %s11528_s20  ;;  %v3281_v47 = vor.u32 %v3280_v63, %v3277_v1  ;;  %v10376_v1 = vld [vmem:[%s11564_s18 + $0x90] sm:$0xe]  ;;  %v3338_v63 = vshrl.u32 %v10363_v37, 16  ;;  %v3341_v29 = vshll.u32 %v10363_v37, 16  ;;  %v3372_v57 = vrot.slane %v3371_v55, 4 }
 0x1c3   : > { %v2671_v27 = vpop.permute.xlu1 %2670  ;;  %v3406_v41 = vrot.slane %v3404_v12, 6  ;;  %v3362_v40 = vor.u32 %v13163_v50, %v13161_v34  ;;  %v3473_v21 = vshrl.u32 %v10378_v9, 16  ;;  %v3354_v19 = vrot.slane %v3353_v5, 4  ;;  %v10384_v61 = vld [vmem:[%s11564_s18 + $0xc8] sm:$0xe] }
 0x1c4   : > { %2744 = vst.msk [vmem:[#allocation2 + $0x164] sm:$0xf] %vm856_vm7, %v2671_v27  ;;  %v2669_v8 = vpop.permute.xlu0 %2668  ;;  %3070 = vrot.lane.b32.xlu2 %v3005_v39, %s11528_s20  ;;  %v3282_v60 = vrot.slane %v3281_v47, 4  ;;  %v13176_v39 = vrot.slane %v3410_v58, 5  ;;  %v13181_v27 = vrot.slane %v3413_v44, 6  ;;  %v3476_v6 = vshll.u32 %v10378_v9, 16 }
 0x1c5   : > { %2743 = vst.msk [vmem:[#allocation2 + $0x154] sm:$0xf] %vm856_vm7, %v2669_v8  ;;  %v3407_v8 = vor.u32 %v3406_v41, %v3403_v7  ;;  %v3434_v55 = vor.u32 %v13173_v20, %v13171_v18  ;;  %v3455_v16 = vshrl.u32 %v10376_v1, 16  ;;  %v3340_v62 = vrot.slane %v3338_v63, 5  ;;  %v10369_v58 = vld [vmem:[%s11564_s18 + $0x74] sm:$0x3] }
 0x1c6   : > { %v2685_v54 = vpop.permute.xlu2 %2684  ;;  %v3416_v17 = vor.u32 %v13181_v27, %v13176_v39  ;;  %v3485_v14 = vshll.u32 %v10379_v33, 16  ;;  %v3478_v32 = vrot.slane %v3476_v6, 6  ;;  %v3458_v53 = vshll.u32 %v10376_v1, 16  ;;  %v10382_v9 = vld [vmem:[%s11564_s18 + $0xc0] sm:$0xe] }
 0x1c7   : > { %2751 = vst.msk [vmem:[#allocation2 + $0x1d4] sm:$0xf] %vm856_vm7, %v2685_v54  ;;  %v3408_v54 = vrot.slane %v3407_v8, 4  ;;  %v3457_v50 = vrot.slane %v3455_v16, 5  ;;  %v3383_v44 = vshrl.u32 %v10368_v13, 16  ;;  %v3464_v41 = vshrl.u32 %v10377_v31, 16 }
 0x1c8   : > { %v3460_v7 = vrot.slane %v3458_v53, 6  ;;  %v3467_v37 = vshll.u32 %v10377_v31, 16  ;;  %v13213_v20 = vrot.slane %v3485_v14, 6  ;;  %v3395_v39 = vshll.u32 %v10369_v58, 16  ;;  %v10375_v16 = vld [vmem:[%s11564_s18 + $0x8c] sm:$0x3] }
 0x1c9   : > { %3784 = vrot.lane.b32.xlu1 %v13109_v2, %s11529_s21  ;;  %v3290_v2 = vor.u32 %v3289_v23, %v3286_v28  ;;  %v3482_v28 = vshrl.u32 %v10379_v33, 16  ;;  %v3475_v23 = vrot.slane %v3473_v21, 5  ;;  %v3363_v48 = vsel %vm12136_vm10, %v3354_v19, %v3362_v40  ;;  %v10374_v19 = vld [vmem:[%s11564_s18 + $0x88] sm:$0xe] }
 0x1ca   : > { %3782 = vrot.lane.b32.xlu0 %v13118_v30, %s11529_s21  ;;  %v3334_v30 = vrot.slane %v3332_v52, 6  ;;  %v3385_v52 = vrot.slane %v3383_v44, 5  ;;  %v3530_v33 = vshll.u32 %v10384_v61, 16  ;;  %v13225_v1 = vsel %vm12136_vm10, %v3408_v54, %v3416_v17  ;;  %v10390_v54 = vld [vmem:[%s11564_s18 + $0xe0] sm:$0xe] }
 0x1cb   : > { %v2677_v10 = vpop.permute.xlu1 %2676  ;;  %v3291_v47 = vsel %vm12136_vm10, %v3282_v60, %v3290_v2  ;;  %v13203_v34 = vrot.slane %v3482_v28, 5  ;;  %v3461_v27 = vor.u32 %v3460_v7, %v3457_v50  ;;  %v13229_v63 = vrot.slane %v3467_v37, 6 }
 0x1cc   : > { %2747 = vst.msk [vmem:[#allocation2 + $0x194] sm:$0xf] %vm856_vm7, %v2677_v10  ;;  %v2675_v22 = vpop.permute.xlu0 %2674  ;;  %3780 = vrot.lane.b32.xlu2 %v3237_v26, %s11529_s21  ;;  %v3335_v0 = vor.u32 %v3334_v30, %v3331_v42  ;;  %v3426_v26 = vrot.slane %v3425_v15, 4  ;;  %v3479_v10 = vor.u32 %v3478_v32, %v3475_v23  ;;  %v3392_v15 = vshrl.u32 %v10369_v58, 16 }
 0x1cd   : > { %2746 = vst.msk [vmem:[#allocation2 + $0x184] sm:$0xf] %vm856_vm7, %v2675_v22  ;;  %v3527_v42 = vshrl.u32 %v10384_v61, 16  ;;  %v13227_v30 = vrot.slane %v3464_v41, 5  ;;  %v3488_v40 = vor.u32 %v13213_v20, %v13203_v34  ;;  %v3509_v21 = vshrl.u32 %v10382_v9, 16 }
 0x1ce   : > { %8317 = vmatmul.bf16.gmra.mxu0 %v11071_v46  ;;  %v3011_v3 = vpop.permute.xlu2 %3010  ;;  %v3343_v46 = vrot.slane %v3341_v29, 6  ;;  %v3336_v12 = vrot.slane %v3335_v0, 4  ;;  %v3435_v45 = vsel %vm12136_vm10, %v3426_v26, %v3434_v55  ;;  %v10383_v29 = vld [vmem:[%s11564_s18 + $0xc4] sm:$0x3]  ;;  %v3480_v0 = vrot.slane %v3479_v10, 4 }
 0x1cf   : > { %3106 = vst.msk [vmem:[#allocation2 + $0x4] sm:$0xf] %vm1244_vm11, %v3011_v3  ;;  %v3394_v6 = vrot.slane %v3392_v15, 5  ;;  %v3397_v28 = vrot.slane %v3395_v39, 6  ;;  %v3532_v26 = vrot.slane %v3530_v33, 6  ;;  %v3512_v31 = vshll.u32 %v10382_v9, 16 }
 0x1d0   : > { %v3344_v18 = vor.u32 %v3343_v46, %v3340_v62  ;;  %v3462_v17 = vrot.slane %v3461_v27, 4  ;;  %v3470_v62 = vor.u32 %v13229_v63, %v13227_v30  ;;  %v3518_v46 = vshrl.u32 %v10383_v29, 16  ;;  %v10391_v61 = vld [vmem:[%s11564_s18 + $0xe4] sm:$0x3]  ;;  %v10388_v9 = vld [vmem:[%s11564_s18 + $0xd8] sm:$0xe] }
 0x1d1   : > { %3790 = vrot.lane.b32.xlu1 %v13141_v35, %s11529_s21  ;;  %v3386_v35 = vshll.u32 %v10368_v13, 16  ;;  %v3437_v14 = vshrl.u32 %v10374_v19, 16  ;;  %v3511_v53 = vrot.slane %v3509_v21, 5  ;;  %v3521_v34 = vshll.u32 %v10383_v29, 16 }
 0x1d2   : > { %3788 = vrot.lane.b32.xlu0 %v13145_v24, %s11529_s21  ;;  %v3381_v24 = vsel %vm12136_vm10, %v3372_v57, %v3380_v56  ;;  %v10385_v56 = vld [vmem:[%s11564_s18 + $0xcc] sm:$0x3]  ;;  %v3345_v57 = vsel %vm12136_vm10, %v3336_v12, %v3344_v18  ;;  %v3514_v12 = vrot.slane %v3512_v31, 6  ;;  %v3398_v50 = vor.u32 %v3397_v28, %v3394_v6 }
 0x1d3   : > { %v2683_v5 = vpop.permute.xlu1 %2682  ;;  %v3388_v2 = vrot.slane %v3386_v35, 6  ;;  %v3536_v3 = vshrl.u32 %v10385_v56, 16  ;;  %v3539_v55 = vshll.u32 %v10385_v56, 16  ;;  %v3439_v44 = vrot.slane %v3437_v14, 5  ;;  %v10389_v56 = vld [vmem:[%s11564_s18 + $0xdc] sm:$0x3] }
 0x1d4   : > { %2750 = vst.msk [vmem:[#allocation2 + $0x1c4] sm:$0xf] %vm856_vm7, %v2683_v5  ;;  %v2681_v60 = vpop.permute.xlu0 %2680  ;;  %3786 = vrot.lane.b32.xlu2 %v3291_v47, %s11529_s21  ;;  %v3529_v47 = vrot.slane %v3527_v42, 5  ;;  %v3440_v5 = vshll.u32 %v10374_v19, 16  ;;  %v3446_v37 = vshrl.u32 %v10375_v16, 16  ;;  %v3449_v35 = vshll.u32 %v10375_v16, 16 }
 0x1d5   : > { %2749 = vst.msk [vmem:[#allocation2 + $0x1b4] sm:$0xf] %vm856_vm7, %v2681_v60  ;;  %v3389_v8 = vor.u32 %v3388_v2, %v3385_v52  ;;  %v13247_v58 = vrot.slane %v3536_v3, 5  ;;  %v13252_v41 = vrot.slane %v3539_v55, 6  ;;  %v3581_v20 = vshrl.u32 %v10390_v54, 16 }
 0x1d6   : > { %v3017_v22 = vpop.permute.xlu2 %3016  ;;  %v3533_v7 = vor.u32 %v3532_v26, %v3529_v47  ;;  %v3442_v18 = vrot.slane %v3440_v5, 6  ;;  %v3584_v52 = vshll.u32 %v10390_v54, 16  ;;  %v3515_v10 = vor.u32 %v3514_v12, %v3511_v53  ;;  %v10396_v55 = vld [vmem:[%s11564_s18 + $0x110] sm:$0xe]  ;;  %v13295_v12 = vpop.f32.mrf.mxu0 }
 0x1d7   : > { %3109 = vst.msk [vmem:[#allocation2 + $0x34] sm:$0xf] %vm1244_vm11, %v3017_v22  ;;  %v3390_v32 = vrot.slane %v3389_v8, 4  ;;  %v13259_v2 = vrot.slane %v3521_v34, 6  ;;  %v3448_v51 = vrot.slane %v3446_v37, 5  ;;  %v3451_v4 = vrot.slane %v3449_v35, 6 }
 0x1d8   : > { %v13262_v15 = vrot.slane %v3581_v20, 5  ;;  %v13264_v39 = vrot.slane %v3584_v52, 6  ;;  %v3489_v42 = vsel %vm12136_vm10, %v3480_v0, %v3488_v40  ;;  %v3593_v22 = vshll.u32 %v10391_v61, 16  ;;  %v10380_v8 = vld [vmem:[%s11564_s18 + $0xb8] sm:$0xe] }
 0x1d9   : > { %3796 = vrot.lane.b32.xlu1 %v3381_v24, %s11529_s21  ;;  %v13255_v24 = vrot.slane %v3518_v46, 5  ;;  %v3399_v33 = vsel %vm12136_vm10, %v3390_v32, %v3398_v50  ;;  %v3471_v30 = vsel %vm12136_vm10, %v3462_v17, %v3470_v62  ;;  %v3534_v63 = vrot.slane %v3533_v7, 4  ;;  %v10397_v62 = vld [vmem:[%s11564_s18 + $0x114] sm:$0x3]  ;;  %v10394_v53 = vld [vmem:[%s11564_s18 + $0xf0] sm:$0xe] }
 0x1da   : > { %3794 = vrot.lane.b32.xlu0 %v3363_v48, %s11529_s21  ;;  %v3590_v48 = vshrl.u32 %v10391_v61, 16  ;;  %v3542_v29 = vor.u32 %v13252_v41, %v13247_v58  ;;  %v3516_v21 = vrot.slane %v3515_v10, 4  ;;  %v3572_v0 = vshrl.u32 %v10389_v56, 16  ;;  %v10395_v10 = vld [vmem:[%s11564_s18 + $0xf4] sm:$0x3] }
 0x1db   : > { %v2689_v13 = vpop.permute.xlu1 %2688  ;;  %v3524_v19 = vor.u32 %v13259_v2, %v13255_v24  ;;  %v3575_v6 = vshll.u32 %v10389_v56, 16  ;;  %v3452_v3 = vor.u32 %v3451_v4, %v3448_v51  ;;  %v3587_v47 = vor.u32 %v13264_v39, %v13262_v15  ;;  %v10386_v51 = vld [vmem:[%s11564_s18 + $0xd0] sm:$0xe]  ;;  %v10387_v56 = vld [vmem:[%s11564_s18 + $0xd4] sm:$0x3] }
 0x1dc   : > { %2753 = vst.msk [vmem:[#allocation2 + $0x1f4] sm:$0xf] %vm856_vm7, %v2689_v13  ;;  %v2687_v23 = vpop.permute.xlu0 %2686  ;;  %3792 = vrot.lane.b32.xlu2 %v3345_v57, %s11529_s21  ;;  %v3566_v57 = vshll.u32 %v10388_v9, 16  ;;  %v13286_v26 = vrot.slane %v3590_v48, 5  ;;  %v13289_v31 = vrot.slane %v3593_v22, 6  ;;  %v3491_v13 = vshrl.u32 %v10380_v8, 16 }
 0x1dd   : > { %2752 = vst.msk [vmem:[#allocation2 + $0x1e4] sm:$0xf] %vm856_vm7, %v2687_v23  ;;  %v3494_v17 = vshll.u32 %v10380_v8, 16  ;;  %v13292_v54 = vrot.slane %v3572_v0, 5  ;;  %v13298_v34 = vrot.slane %v3575_v6, 6  ;;  %v3638_v37 = vshll.u32 %v10396_v55, 16 }
 0x1de   : > { %8322 = vmatmul.bf16.gmra.mxu0 %v11087_v59  ;;  %v3023_v60 = vpop.permute.xlu2 %3022  ;;  %v3443_v59 = vor.u32 %v3442_v18, %v3439_v44  ;;  %v3568_v14 = vrot.slane %v3566_v57, 6  ;;  %v3493_v50 = vrot.slane %v3491_v13, 5  ;;  %v3635_v44 = vshrl.u32 %v10396_v55, 16  ;;  %v10402_v57 = vld [vmem:[%s11564_s18 + $0x128] sm:$0xe] }
 0x1df   : > { %3112 = vst.msk [vmem:[#allocation2 + $0x64] sm:$0xf] %vm1244_vm11, %v3023_v60  ;;  %v3496_v58 = vrot.slane %v3494_v17, 6  ;;  %v3644_v60 = vshrl.u32 %v10397_v62, 16  ;;  %v3647_v24 = vshll.u32 %v10397_v62, 16  ;;  %v3543_v20 = vsel %vm12136_vm10, %v3534_v63, %v3542_v29 }
 0x1e0   : > { %v3444_v28 = vrot.slane %v3443_v59, 4  ;;  %v3637_v61 = vrot.slane %v3635_v44, 5  ;;  %v3525_v52 = vsel %vm12136_vm10, %v3516_v21, %v3524_v19  ;;  %v3617_v2 = vshrl.u32 %v10394_v53, 16  ;;  %v10403_v55 = vld [vmem:[%s11564_s18 + $0x12c] sm:$0x3] }
 0x1e1   : > { %3802 = vrot.lane.b32.xlu1 %v3435_v45, %s11529_s21  ;;  %v3563_v45 = vshrl.u32 %v10388_v9, 16  ;;  %v3497_v35 = vor.u32 %v3496_v58, %v3493_v50  ;;  %v3640_v9 = vrot.slane %v3638_v37, 6  ;;  %v3588_v59 = vrot.slane %v3587_v47, 4 }
 0x1e2   : > { %3800 = vrot.lane.b32.xlu0 %v13225_v1, %s11529_s21  ;;  %v10381_v1 = vld [vmem:[%s11564_s18 + $0xbc] sm:$0x3]  ;;  %v3453_v5 = vsel %vm12136_vm10, %v3444_v28, %v3452_v3  ;;  %v3596_v15 = vor.u32 %v13289_v31, %v13286_v26  ;;  %v3578_v48 = vor.u32 %v13298_v34, %v13292_v54  ;;  %v3649_v22 = vrot.slane %v3647_v24, 6 }
 0x1e3   : > { %v3015_v27 = vpop.permute.xlu1 %3014  ;;  %v3565_v16 = vrot.slane %v3563_v45, 5  ;;  %v3500_v23 = vshrl.u32 %v10381_v1, 16  ;;  %v3503_v32 = vshll.u32 %v10381_v1, 16  ;;  %v3620_v45 = vshll.u32 %v10394_v53, 16  ;;  %v13322_v1 = vld [vmem:[#allocation2 + $0x180] sm:$0xf] }
 0x1e4   : > { %3108 = vst.msk [vmem:[#allocation2 + $0x24] sm:$0xf] %vm1244_vm11, %v3015_v27  ;;  %v3013_v40 = vpop.permute.xlu0 %3012  ;;  %3798 = vrot.lane.b32.xlu2 %v3399_v33, %s11529_s21  ;;  %v3646_v33 = vrot.slane %v3644_v60, 5  ;;  %v3498_v27 = vrot.slane %v3497_v35, 4  ;;  %v3619_v63 = vrot.slane %v3617_v2, 5  ;;  %v3545_v29 = vshrl.u32 %v10386_v51, 16 }
 0x1e5   : > { %3107 = vst.msk [vmem:[#allocation2 + $0x14] sm:$0xf] %vm1244_vm11, %v3013_v40  ;;  %v3502_v7 = vrot.slane %v3500_v23, 5  ;;  %v3505_v41 = vrot.slane %v3503_v32, 6  ;;  %v3569_v39 = vor.u32 %v3568_v14, %v3565_v16  ;;  %v13324_v40 = vld [vmem:[#allocation2 + $0x18c] sm:$0xf0]  ;;  %v13329_v16 = vpop.f32.mrf.mxu0  ;;  %v3597_v58 = vsel %vm12136_vm10, %v3588_v59, %v3596_v15 }
 0x1e6   : > { %v3029_v46 = vpop.permute.xlu2 %3028  ;;  %v3622_v21 = vrot.slane %v3620_v45, 6  ;;  %v3626_v19 = vshrl.u32 %v10395_v10, 16  ;;  %v3629_v0 = vshll.u32 %v10395_v10, 16  ;;  %v3548_v6 = vshll.u32 %v10386_v51, 16  ;;  %v10400_v14 = vld [vmem:[%s11564_s18 + $0x120] sm:$0xe] }
 0x1e7   : > { %3115 = vst.msk [vmem:[#allocation2 + $0x94] sm:$0xf] %vm1244_vm11, %v3029_v46  ;;  %v3570_v28 = vrot.slane %v3569_v39, 4  ;;  %v3547_v36 = vrot.slane %v3545_v29, 5  ;;  %v3554_v43 = vshrl.u32 %v10387_v56, 16  ;;  %v3650_v47 = vor.u32 %v3649_v22, %v3646_v33 }
 0x1e8   : > { %v3550_v26 = vrot.slane %v3548_v6, 6  ;;  %v3689_v31 = vshrl.u32 %v10402_v57, 16  ;;  %v3692_v46 = vshll.u32 %v10402_v57, 16  ;;  %v3623_v23 = vor.u32 %v3622_v21, %v3619_v63  ;;  %v10408_v15 = vld [vmem:[%s11564_s18 + $0x140] sm:$0xe] }
 0x1e9   : > { %3808 = vrot.lane.b32.xlu1 %v3489_v42, %s11529_s21  ;;  %v3641_v42 = vor.u32 %v3640_v9, %v3637_v61  ;;  %v3556_v17 = vrot.slane %v3554_v43, 5  ;;  %v13335_v32 = vrot.slane %v3626_v19, 5  ;;  %v13337_v53 = vrot.slane %v3629_v0, 6  ;;  %v10393_v9 = vld [vmem:[%s11564_s18 + $0xec] sm:$0x3] }
 0x1ea   : > { %3806 = vrot.lane.b32.xlu0 %v3471_v30, %s11529_s21  ;;  %v3506_v30 = vor.u32 %v3505_v41, %v3502_v7  ;;  %v3551_v34 = vor.u32 %v3550_v26, %v3547_v36  ;;  %v3579_v44 = vsel %vm12136_vm10, %v3570_v28, %v3578_v48  ;;  %v10401_v7 = vld [vmem:[%s11564_s18 + $0x124] sm:$0x3]  ;;  %v10392_v41 = vld [vmem:[%s11564_s18 + $0xe8] sm:$0xe]  ;;  %v3691_v35 = vrot.slane %v3689_v31, 5 }
 0x1eb   : > { %v3021_v18 = vpop.permute.xlu1 %3020  ;;  %v3642_v3 = vrot.slane %v3641_v42, 4  ;;  %v3698_v61 = vshrl.u32 %v10403_v55, 16  ;;  %v3671_v60 = vshrl.u32 %v10400_v14, 16  ;;  %v3624_v10 = vrot.slane %v3623_v23, 4  ;;  %v10409_v57 = vld [vmem:[%s11564_s18 + $0x144] sm:$0x3] }
 0x1ec   : > { %3111 = vst.msk [vmem:[#allocation2 + $0x54] sm:$0xf] %vm1244_vm11, %v3021_v18  ;;  %v3019_v4 = vpop.permute.xlu0 %3018  ;;  %3804 = vrot.lane.b32.xlu2 %v3453_v5, %s11529_s21  ;;  %v3507_v13 = vsel %vm12136_vm10, %v3498_v27, %v3506_v30  ;;  %v11119_v5 = vor.u32 %v13324_v40, %v13322_v1  ;;  %v3552_v24 = vrot.slane %v3551_v34, 4  ;;  %v3632_v2 = vor.u32 %v13337_v53, %v13335_v32  ;;  %v10406_v6 = vld [vmem:[%s11564_s18 + $0x138] sm:$0xe] }
 0x1ed   : > { %3110 = vst.msk [vmem:[#allocation2 + $0x44] sm:$0xf] %vm1244_vm11, %v3019_v4  ;;  %v13352_v37 = vsel %vm12136_vm10, %v3642_v3, %v3650_v47  ;;  %v3701_v4 = vshll.u32 %v10403_v55, 16  ;;  %v3599_v59 = vshrl.u32 %v10392_v41, 16  ;;  %v3673_v39 = vrot.slane %v3671_v60, 5  ;;  %v13367_v28 = vpop.f32.mrf.mxu0  ;;  %v11485_v32 = vld [vmem:[%s16196_s1 + $0x78] sm:$0xff] }
 0x1ee   : > { %8327 = vmatmul.bf16.gmra.mxu0 %v11103_v38  ;;  %v3035_v8 = vpop.permute.xlu2 %3034  ;;  %v3557_v38 = vshll.u32 %v10387_v56, 16  ;;  %v3680_v56 = vshrl.u32 %v10401_v7, 16  ;;  %v3683_v42 = vshll.u32 %v10401_v7, 16  ;;  %v13360_v33 = vrot.slane %v3698_v61, 5  ;;  %v10398_v23 = vld [vmem:[%s11564_s18 + $0x118] sm:$0xe]  ;;  %8353 = vmatpush.bf16.msra.mxu1 %v11485_v32 }
 0x1ef   : > { %3118 = vst.msk [vmem:[#allocation2 + $0xc4] sm:$0xf] %vm1244_vm11, %v3035_v8  ;;  %v3601_v22 = vrot.slane %v3599_v59, 5  ;;  %v3602_v45 = vshll.u32 %v10392_v41, 16  ;;  %v3608_v27 = vshrl.u32 %v10393_v9, 16  ;;  %v3611_v29 = vshll.u32 %v10393_v9, 16 }
 0x1f0   : > { %v3559_v62 = vrot.slane %v3557_v38, 6  ;;  %v3743_v8 = vshrl.u32 %v10408_v15, 16  ;;  %v3703_v40 = vrot.slane %v3701_v4, 6  ;;  %v3746_v0 = vshll.u32 %v10408_v15, 16  ;;  %v10399_v7 = vld [vmem:[%s11564_s18 + $0x11c] sm:$0x3] }
 0x1f1   : > { %3814 = vrot.lane.b32.xlu1 %v3543_v20, %s11529_s21  ;;  %v3694_v20 = vrot.slane %v3692_v46, 6  ;;  %v3604_v21 = vrot.slane %v3602_v45, 6  ;;  %v3610_v19 = vrot.slane %v3608_v27, 5  ;;  %v3682_v38 = vrot.slane %v3680_v56, 5 }
 0x1f2   : > { %3812 = vrot.lane.b32.xlu0 %v3525_v52, %s11529_s21  ;;  %v3560_v18 = vor.u32 %v3559_v62, %v3556_v17  ;;  %v3674_v52 = vshll.u32 %v10400_v14, 16  ;;  %v3685_v3 = vrot.slane %v3683_v42, 6  ;;  %v3613_v47 = vrot.slane %v3611_v29, 6  ;;  %v10407_v17 = vld [vmem:[%s11564_s18 + $0x13c] sm:$0x3] }
 0x1f3   : > { %v3027_v54 = vpop.permute.xlu1 %3026  ;;  %v3695_v63 = vor.u32 %v3694_v20, %v3691_v35  ;;  %v3605_v26 = vor.u32 %v3604_v21, %v3601_v22  ;;  %v13372_v55 = vrot.slane %v3743_v8, 5  ;;  %v3748_v31 = vrot.slane %v3746_v0, 6  ;;  %v10447_v21 = vld [vmem:[%s11564_s18 + $0x1c] sm:$0x1]  ;;  %v10404_v0 = vld [vmem:[%s11564_s18 + $0x130] sm:$0xe] }
 0x1f4   : > { %3114 = vst.msk [vmem:[#allocation2 + $0x84] sm:$0xf] %vm1244_vm11, %v3027_v54  ;;  %v3025_v50 = vpop.permute.xlu0 %3024  ;;  %3810 = vrot.lane.b32.xlu2 %v3507_v13, %s11529_s21  ;;  %v3676_v48 = vrot.slane %v3674_v52, 6  ;;  %v3561_v30 = vsel %vm12136_vm10, %v3552_v24, %v3560_v18  ;;  %v3752_v13 = vshrl.u32 %v10409_v57, 16  ;;  %v3633_v62 = vsel %vm12136_vm10, %v3624_v10, %v3632_v2  ;;  %v10446_v2 = vld [vmem:[%s11564_s18 + $0x18] sm:$0xf] }
 0x1f5   : > { %3113 = vst.msk [vmem:[#allocation2 + $0x74] sm:$0xf] %vm1244_vm11, %v3025_v50  ;;  %v3614_v46 = vor.u32 %v3613_v47, %v3610_v19  ;;  %v3725_v14 = vshrl.u32 %v10406_v6, 16  ;;  %v3728_v54 = vshll.u32 %v10406_v6, 16  ;;  %v3696_v53 = vrot.slane %v3695_v63, 4  ;;  %v11483_v6 = vld [vmem:[%s16196_s1 + $0x68] sm:$0xff] }
 0x1f6   : > { %v3041_v51 = vpop.permute.xlu2 %3040  ;;  %v3677_v43 = vor.u32 %v3676_v48, %v3673_v39  ;;  %v3704_v34 = vor.u32 %v3703_v40, %v13360_v33  ;;  %v3686_v41 = vor.u32 %v3685_v3, %v3682_v38  ;;  %v3749_v60 = vor.u32 %v3748_v31, %v13372_v55  ;;  %v10444_v48 = vld [vmem:[%s11564_s18 + $0x10] sm:$0xf]  ;;  %v10445_v55 = vld [vmem:[%s11564_s18 + $0x14] sm:$0x1] }
 0x1f7   : > { %3121 = vst.msk [vmem:[#allocation2 + $0xf4] sm:$0xf] %vm1244_vm11, %v3041_v51  ;;  %v3727_v35 = vrot.slane %v3725_v14, 5  ;;  %v3730_v61 = vrot.slane %v3728_v54, 6  ;;  %v13387_v24 = vrot.slane %v3752_v13, 5  ;;  %v3653_v18 = vshrl.u32 %v10398_v23, 16 }
 0x1f8   : > { %v3734_v52 = vshrl.u32 %v10407_v17, 16  ;;  %v3737_v9 = vshll.u32 %v10407_v17, 16  ;;  %v3656_v10 = vshll.u32 %v10398_v23, 16  ;;  %v11484_v51 = vld [vmem:[%s16196_s1 + $0x70] sm:$0xff]  ;;  %v3662_v15 = vshrl.u32 %v10399_v7, 16 }
 0x1f9   : > { %3820 = vrot.lane.b32.xlu1 %v3597_v58, %s11529_s21  ;;  %v3606_v58 = vrot.slane %v3605_v26, 4  ;;  %v3655_v59 = vrot.slane %v3653_v18, 5  ;;  %v3665_v39 = vshll.u32 %v10399_v7, 16  ;;  %v3705_v42 = vsel %vm12136_vm10, %v3696_v53, %v3704_v34  ;;  %8354 = vmatpush.bf16.msra.mxu1 %v11484_v51  ;;  %v10405_v13 = vld [vmem:[%s11564_s18 + $0x134] sm:$0x3] }
 0x1fa   : > { %3818 = vrot.lane.b32.xlu0 %v3579_v44, %s11529_s21  ;;  %v3755_v44 = vshll.u32 %v10409_v57, 16  ;;  %v3731_v22 = vor.u32 %v3730_v61, %v3727_v35  ;;  %v3658_v45 = vrot.slane %v3656_v10, 6  ;;  %v3664_v27 = vrot.slane %v3662_v15, 5  ;;  %v13406_v57 = vpop.f32.mrf.mxu0  ;;  %v10452_v34 = vld [vmem:[%s11564_s18 + $0x30] sm:$0xf] }
 0x1fb   : > { %v3033_v1 = vpop.permute.xlu1 %3032  ;;  %v3615_v20 = vsel %vm12136_vm10, %v3606_v58, %v3614_v46  ;;  %v4050_v63 = vshrl.u32 %v10446_v2, 16  ;;  %v4053_v29 = vshll.u32 %v10446_v2, 16  ;;  %v3736_v8 = vrot.slane %v3734_v52, 5  ;;  %v10450_v18 = vld [vmem:[%s11564_s18 + $0x28] sm:$0xf] }
 0x1fc   : > { %3117 = vst.msk [vmem:[#allocation2 + $0xb4] sm:$0xf] %vm1244_vm11, %v3033_v1  ;;  %v3031_v36 = vpop.permute.xlu0 %3030  ;;  %3816 = vrot.lane.b32.xlu2 %v3561_v30, %s11529_s21  ;;  %v13396_v4 = vrot.slane %v3755_v44, 6  ;;  %v3667_v30 = vrot.slane %v3665_v39, 6  ;;  %v3739_v1 = vrot.slane %v3737_v9, 6  ;;  %v3659_v40 = vor.u32 %v3658_v45, %v3655_v59  ;;  %v11481_v45 = vld [vmem:[%s16196_s1 + $0x58] sm:$0xff] }
 0x1fd   : > { %3116 = vst.msk [vmem:[#allocation2 + $0xa4] sm:$0xf] %vm1244_vm11, %v3031_v36  ;;  %v4036_v19 = vshrl.u32 %v10444_v48, 16  ;;  %v11134_v36 = vld [vmem:[#allocation2 + $0x1a0] sm:$0xf]  ;;  %v3750_v38 = vrot.slane %v3749_v60, 4  ;;  %8355 = vmatpush.bf16.msra.mxu1 %v11483_v6 }
 0x1fe   : > { %8332 = vmatmul.bf16.gmra.mxu0 %v11119_v5  ;;  %v3047_v50 = vpop.permute.xlu2 %3046  ;;  %v3678_v5 = vrot.slane %v3677_v43, 4  ;;  %v11460_v43 = vld [vmem:[#allocation2 + $0x1ac] sm:$0xf0]  ;;  %v3758_v3 = vor.u32 %v13396_v4, %v13387_v24  ;;  %v3668_v26 = vor.u32 %v3667_v30, %v3664_v27  ;;  %v4039_v31 = vshll.u32 %v10444_v48, 16  ;;  %v10410_v15 = vld [vmem:[%s11564_s18 + $0x148] sm:$0xe] }
 0x1ff   : > { %3124 = vst.msk [vmem:[#allocation2 + $0x124] sm:$0xf] %vm1244_vm11, %v3047_v50  ;;  %v3732_v17 = vrot.slane %v3731_v22, 4  ;;  %v4052_v46 = vrot.slane %v4050_v63, 4  ;;  %v4055_v14 = vrot.slane %v4053_v29, 5  ;;  %v4038_v54 = vrot.slane %v4036_v19, 4 }
 0x200   : > { %v3687_v33 = vsel %vm12136_vm10, %v3678_v5, %v3686_v41  ;;  %v4041_v23 = vrot.slane %v4039_v31, 5  ;;  %v3707_v32 = vshrl.u32 %v10404_v0, 16  ;;  %v3710_v53 = vshll.u32 %v10404_v0, 16  ;;  %v11482_v5 = vld [vmem:[%s16196_s1 + $0x60] sm:$0xff] }
 0x201   : > { %3826 = vrot.lane.b32.xlu1 %v13352_v37, %s11529_s21  ;;  %v3740_v50 = vor.u32 %v3739_v1, %v3736_v8  ;;  %v3716_v44 = vshrl.u32 %v10405_v13, 16  ;;  %v3719_v7 = vshll.u32 %v10405_v13, 16  ;;  %v4059_v35 = vshll.u32 %v10447_v21, 16  ;;  %8356 = vmatpush.bf16.msra.mxu1 %v11482_v5  ;;  %v10411_v1 = vld [vmem:[%s11564_s18 + $0x14c] sm:$0x3] }
 0x202   : > { %3824 = vrot.lane.b32.xlu0 %v3633_v62, %s11529_s21  ;;  %v3660_v62 = vrot.slane %v3659_v40, 4  ;;  %v4045_v61 = vshll.u32 %v10445_v55, 16  ;;  %v3709_v60 = vrot.slane %v3707_v32, 5  ;;  %v3712_v24 = vrot.slane %v3710_v53, 6  ;;  %v13443_v40 = vpop.f32.mrf.mxu0  ;;  %v10458_v13 = vld [vmem:[%s11564_s18 + $0x48] sm:$0xf] }
 0x203   : > { %v3039_v37 = vpop.permute.xlu1 %3038  ;;  %v11135_v52 = vor.u32 %v11460_v43, %v11134_v36  ;;  %v3718_v9 = vrot.slane %v3716_v44, 5  ;;  %v3721_v10 = vrot.slane %v3719_v7, 6  ;;  %v4092_v2 = vshrl.u32 %v10452_v34, 16  ;;  %v10448_v44 = vld [vmem:[%s11564_s18 + $0x20] sm:$0xf] }
 0x204   : > { %3120 = vst.msk [vmem:[#allocation2 + $0xe4] sm:$0xf] %vm1244_vm11, %v3039_v37  ;;  %v3037_v56 = vpop.permute.xlu0 %3036  ;;  %3822 = vrot.lane.b32.xlu2 %v3615_v20, %s11529_s21  ;;  %v3669_v58 = vsel %vm12136_vm10, %v3660_v62, %v3668_v26  ;;  %v4056_v51 = vor.u32 %v4055_v14, %v4052_v46  ;;  %v4042_v37 = vor.u32 %v4041_v23, %v4038_v54  ;;  %v4095_v59 = vshll.u32 %v10452_v34, 16  ;;  %v10456_v54 = vld [vmem:[%s11564_s18 + $0x40] sm:$0xf]  ;;  %v11480_v23 = vld [vmem:[%s16196_s1 + $0x50] sm:$0xff] }
 0x205   : > { %3119 = vst.msk [vmem:[#allocation2 + $0xd4] sm:$0xf] %vm1244_vm11, %v3037_v56  ;;  %v3713_v4 = vor.u32 %v3712_v24, %v3709_v60  ;;  %v3759_v39 = vsel %vm12136_vm10, %v3750_v38, %v3758_v3  ;;  %v3741_v48 = vsel %vm12136_vm10, %v3732_v17, %v3740_v50  ;;  %v3722_v56 = vor.u32 %v3721_v10, %v3718_v9 }
 0x206   : > { %v3053_v47 = vpop.permute.xlu2 %3052  ;;  %v4078_v22 = vshrl.u32 %v10450_v18, 16  ;;  %v4061_v27 = vrot.slane %v4059_v35, 5  ;;  %v13440_v30 = vrot.slane %v4045_v61, 5  ;;  %v4081_v8 = vshll.u32 %v10450_v18, 16  ;;  %8357 = vmatpush.bf16.msra.mxu1 %v11481_v45  ;;  %v11479_v35 = vld [vmem:[%s16196_s1 + $0x48] sm:$0xff] }
 0x207   : > { %3127 = vst.msk [vmem:[#allocation2 + $0x154] sm:$0xf] %vm1244_vm11, %v3053_v47  ;;  %v3714_v29 = vrot.slane %v3713_v4, 4  ;;  %v4094_v21 = vrot.slane %v4092_v2, 4  ;;  %v4097_v19 = vrot.slane %v4095_v59, 5  ;;  %v3761_v6 = vshrl.u32 %v10410_v15, 16 }
 0x208   : > { %v4080_v0 = vrot.slane %v4078_v22, 4  ;;  %v4057_v36 = vrot.slane %v4056_v51, 4  ;;  %v4043_v43 = vrot.slane %v4042_v37, 4  ;;  %v4083_v38 = vrot.slane %v4081_v8, 5  ;;  %v10449_v18 = vld [vmem:[%s11564_s18 + $0x24] sm:$0x1] }
 0x209   : > { %3832 = vrot.lane.b32.xlu1 %v3705_v42, %s11529_s21  ;;  %v10453_v42 = vld [vmem:[%s11564_s18 + $0x34] sm:$0x1]  ;;  %v3764_v3 = vshll.u32 %v10410_v15, 16  ;;  %v3723_v47 = vsel %vm12136_vm10, %v3714_v29, %v3722_v56  ;;  %v3763_v26 = vrot.slane %v3761_v6, 5  ;;  %v3770_v55 = vshrl.u32 %v10411_v1, 16 }
 0x20a   : > { %3830 = vrot.lane.b32.xlu0 %v3687_v33, %s11529_s21  ;;  %v10451_v33 = vld [vmem:[%s11564_s18 + $0x2c] sm:$0x1]  ;;  %v3773_v31 = vshll.u32 %v10411_v1, 16  ;;  %v4101_v62 = vshll.u32 %v10453_v42, 16  ;;  %v4098_v53 = vor.u32 %v4097_v19, %v4094_v21  ;;  %v4084_v34 = vor.u32 %v4083_v38, %v4080_v0  ;;  %8358 = vmatpush.bf16.msra.mxu1 %v11480_v23  ;;  %v10464_v37 = vld [vmem:[%s11564_s18 + $0x78] sm:$0xf] }
 0x20b   : > { %v3045_v41 = vpop.permute.xlu1 %3044  ;;  %v4087_v46 = vshll.u32 %v10451_v33, 16  ;;  %v3766_v14 = vrot.slane %v3764_v3, 6  ;;  %v3772_v50 = vrot.slane %v3770_v55, 5  ;;  %v4134_v5 = vshrl.u32 %v10458_v13, 16  ;;  %v11150_v56 = vld [vmem:[#allocation2 + $0x1c0] sm:$0xf] }
 0x20c   : > { %3123 = vst.msk [vmem:[#allocation2 + $0x114] sm:$0xf] %vm1244_vm11, %v3045_v41  ;;  %v3043_v20 = vpop.permute.xlu0 %3042  ;;  %3828 = vrot.lane.b32.xlu2 %v3669_v58, %s11529_s21  ;;  %v3775_v58 = vrot.slane %v3773_v31, 6  ;;  %v4137_v41 = vshll.u32 %v10458_v13, 16  ;;  %v4062_v61 = vsel %vm11577_vm2, %v4057_v36, %v4061_v27  ;;  %v4048_v60 = vsel %vm11577_vm2, %v4043_v43, %v13440_v30  ;;  %v10457_v22 = vld [vmem:[%s11564_s18 + $0x44] sm:$0x1]  ;;  %v13475_v27 = vpop.f32.mrf.mxu0 }
 0x20d   : > { %3122 = vst.msk [vmem:[#allocation2 + $0x104] sm:$0xf] %vm1244_vm11, %v3043_v20  ;;  %v3767_v7 = vor.u32 %v3766_v14, %v3763_v26  ;;  %v11464_v20 = vld [vmem:[#allocation2 + $0x1cc] sm:$0xf0]  ;;  %v4120_v2 = vshrl.u32 %v10456_v54, 16  ;;  %v4123_v51 = vshll.u32 %v10456_v54, 16 }
 0x20e   : > { %8337 = vmatmul.bf16.gmra.mxu0 %v11135_v52  ;;  %v3059_v63 = vpop.permute.xlu2 %3058  ;;  %v3776_v24 = vor.u32 %v3775_v58, %v3772_v50  ;;  %v13468_v52 = vrot.slane %v4101_v62, 5  ;;  %v4099_v4 = vrot.slane %v4098_v53, 4  ;;  %v4085_v59 = vrot.slane %v4084_v34, 4  ;;  %8359 = vmatpush.bf16.msra.mxu1 %v11479_v35  ;;  %v10462_v8 = vld [vmem:[%s11564_s18 + $0x70] sm:$0xf]  ;;  %v11478_v43 = vld [vmem:[%s16196_s1 + $0x40] sm:$0xff] }
 0x20f   : > { %3130 = vst.msk [vmem:[#allocation2 + $0x184] sm:$0xf] %vm1244_vm11, %v3059_v63  ;;  %v3768_v10 = vrot.slane %v3767_v7, 4  ;;  %v4089_v15 = vrot.slane %v4087_v46, 5  ;;  %v4136_v42 = vrot.slane %v4134_v5, 4  ;;  %v4139_v33 = vrot.slane %v4137_v41, 5 }
 0x210   : > { %v4067_v45 = vshll.u32 %v10448_v44, 16  ;;  %v4073_v29 = vshll.u32 %v10449_v18, 16  ;;  %v10454_v1 = vld [vmem:[%s11564_s18 + $0x38] sm:$0xf]  ;;  %v4122_v19 = vrot.slane %v4120_v2, 4  ;;  %v4125_v0 = vrot.slane %v4123_v51, 5 }
 0x211   : > { %3838 = vrot.lane.b32.xlu1 %v3759_v39, %s11529_s21  ;;  %v10459_v39 = vld [vmem:[%s11564_s18 + $0x4c] sm:$0x1]  ;;  %v3777_v30 = vsel %vm12136_vm10, %v3768_v10, %v3776_v24  ;;  %v4176_v36 = vshrl.u32 %v10464_v37, 16  ;;  %v11151_v3 = vor.u32 %v11464_v20, %v11150_v56  ;;  %v4090_v26 = vsel %vm11577_vm2, %v4085_v59, %v4089_v15  ;;  %v10465_v46 = vld [vmem:[%s11564_s18 + $0x7c] sm:$0x1] }
 0x212   : > { %3836 = vrot.lane.b32.xlu0 %v3741_v48, %s11529_s21  ;;  %v4064_v48 = vshrl.u32 %v10448_v44, 16  ;;  %v4069_v6 = vrot.slane %v4067_v45, 5  ;;  %v4179_v55 = vshll.u32 %v10464_v37, 16  ;;  %v4140_v31 = vor.u32 %v4139_v33, %v4136_v42  ;;  %8360 = vmatpush.bf16.msra.mxu1 %v11478_v43  ;;  %v10463_v54 = vld [vmem:[%s11564_s18 + $0x74] sm:$0x1] }
 0x213   : > { %v3051_v17 = vpop.permute.xlu1 %3050  ;;  %v4143_v13 = vshll.u32 %v10459_v39, 16  ;;  %v4075_v14 = vrot.slane %v4073_v29, 5  ;;  %v4162_v23 = vshrl.u32 %v10462_v8, 16  ;;  %v4106_v53 = vshrl.u32 %v10454_v1, 16  ;;  %v10455_v7 = vld [vmem:[%s11564_s18 + $0x3c] sm:$0x1] }
 0x214   : > { %3126 = vst.msk [vmem:[#allocation2 + $0x144] sm:$0xf] %vm1244_vm11, %v3051_v17  ;;  %v3049_v32 = vpop.permute.xlu0 %3048  ;;  %3834 = vrot.lane.b32.xlu2 %v3723_v47, %s11529_s21  ;;  %v4066_v63 = vrot.slane %v4064_v48, 4  ;;  %v4104_v47 = vsel %vm11577_vm2, %v4099_v4, %v13468_v52  ;;  %v4129_v17 = vshll.u32 %v10457_v22, 16  ;;  %v4126_v34 = vor.u32 %v4125_v0, %v4122_v19  ;;  %v10470_v52 = vld [vmem:[%s11564_s18 + $0x90] sm:$0xf]  ;;  %v13504_v56 = vpop.f32.mrf.mxu0 }
 0x215   : > { %3125 = vst.msk [vmem:[#allocation2 + $0x134] sm:$0xf] %vm1244_vm11, %v3049_v32  ;;  %v4165_v32 = vshll.u32 %v10462_v8, 16  ;;  %v4178_v44 = vrot.slane %v4176_v36, 4  ;;  %v4109_v5 = vshll.u32 %v10454_v1, 16  ;;  %v4181_v41 = vrot.slane %v4179_v55, 5 }
 0x216   : > { %v3065_v9 = vpop.permute.xlu2 %3064  ;;  %v4070_v62 = vor.u32 %v4069_v6, %v4066_v63  ;;  %v4164_v35 = vrot.slane %v4162_v23, 4  ;;  %v4141_v24 = vrot.slane %v4140_v31, 4  ;;  %v4145_v18 = vrot.slane %v4143_v13, 5  ;;  %v10468_v51 = vld [vmem:[%s11564_s18 + $0x88] sm:$0xf] }
 0x217   : > { %3133 = vst.msk [vmem:[#allocation2 + $0x1b4] sm:$0xf] %vm1244_vm11, %v3065_v9  ;;  %v4111_v20 = vrot.slane %v4109_v5, 5  ;;  %v4185_v10 = vshll.u32 %v10465_v46, 16  ;;  %v4115_v2 = vshll.u32 %v10455_v7, 16  ;;  %v4127_v4 = vrot.slane %v4126_v34, 4 }
 0x218   : > { %v4071_v58 = vrot.slane %v4070_v62, 4  ;;  %v4131_v59 = vrot.slane %v4129_v17, 5  ;;  %v4171_v15 = vshll.u32 %v10463_v54, 16  ;;  %v10460_v48 = vld [vmem:[%s11564_s18 + $0x68] sm:$0xf]  ;;  %v4182_v33 = vor.u32 %v4181_v41, %v4178_v44 }
 0x219   : > { %4485 = vrot.lane.b32.xlu1 %v4062_v61, %s11527_s19  ;;  %v4167_v61 = vrot.slane %v4165_v32, 5  ;;  %v4218_v45 = vshrl.u32 %v10470_v52, 16  ;;  %v4221_v63 = vshll.u32 %v10470_v52, 16  ;;  %v4204_v29 = vshrl.u32 %v10468_v51, 16  ;;  %v11166_v36 = vld [vmem:[#allocation2 + $0x1e0] sm:$0xf] }
 0x21a   : > { %4483 = vrot.lane.b32.xlu0 %v4048_v60, %s11527_s19  ;;  %v4108_v60 = vrot.slane %v4106_v53, 4  ;;  %v4076_v9 = vsel %vm11577_vm2, %v4071_v58, %v4075_v14  ;;  %v4207_v8 = vshll.u32 %v10468_v51, 16  ;;  %v4187_v1 = vrot.slane %v4185_v10, 5  ;;  %v11468_v43 = vld [vmem:[#allocation2 + $0x1ec] sm:$0xf0] }
 0x21b   : > { %v3057_v21 = vpop.permute.xlu1 %3056  ;;  %v4168_v22 = vor.u32 %v4167_v61, %v4164_v35  ;;  %v4117_v19 = vrot.slane %v4115_v2, 5  ;;  %v4148_v0 = vshrl.u32 %v10460_v48, 16  ;;  %v4132_v6 = vsel %vm11577_vm2, %v4127_v4, %v4131_v59  ;;  %v10476_v55 = vld [vmem:[%s11564_s18 + $0xc0] sm:$0xf]  ;;  %v10471_v46 = vld [vmem:[%s11564_s18 + $0x94] sm:$0x1] }
 0x21c   : > { %3129 = vst.msk [vmem:[#allocation2 + $0x174] sm:$0xf] %vm1244_vm11, %v3057_v21  ;;  %v3055_v38 = vpop.permute.xlu0 %3054  ;;  %3840 = vrot.lane.b32.xlu2 %v3777_v30, %s11529_s21  ;;  %v4112_v39 = vor.u32 %v4111_v20, %v4108_v60  ;;  %v4146_v30 = vsel %vm11577_vm2, %v4141_v24, %v4145_v18  ;;  %v4183_v31 = vrot.slane %v4182_v33, 4  ;;  %v4220_v17 = vrot.slane %v4218_v45, 4  ;;  %v10469_v34 = vld [vmem:[%s11564_s18 + $0x8c] sm:$0x1]  ;;  %v13531_v2 = vpop.f32.mrf.mxu0 }
 0x21d   : > { %3128 = vst.msk [vmem:[#allocation2 + $0x164] sm:$0xf] %vm1244_vm11, %v3055_v38  ;;  %v4173_v38 = vrot.slane %v4171_v15, 5  ;;  %v4169_v13 = vrot.slane %v4168_v22, 4  ;;  %v4150_v62 = vrot.slane %v4148_v0, 4  ;;  %v4223_v14 = vrot.slane %v4221_v63, 5 }
 0x21e   : > { %8342 = vmatmul.bf16.gmra.mxu0 %v11151_v3  ;;  %v3071_v50 = vpop.permute.xlu2 %3070  ;;  %v4113_v21 = vrot.slane %v4112_v39, 4  ;;  %v4206_v54 = vrot.slane %v4204_v29, 4  ;;  %v4209_v23 = vrot.slane %v4207_v8, 5  ;;  %v4260_v7 = vshrl.u32 %v10476_v55, 16  ;;  %v10466_v41 = vld [vmem:[%s11564_s18 + $0x80] sm:$0xf] }
 0x21f   : > { %3136 = vst.msk [vmem:[#allocation2 + $0x1e4] sm:$0xf] %vm1244_vm11, %v3071_v50  ;;  %v4263_v5 = vshll.u32 %v10476_v55, 16  ;;  %v11167_v61 = vor.u32 %v11468_v43, %v11166_v36  ;;  %v4188_v60 = vsel %vm11577_vm2, %v4183_v31, %v4187_v1  ;;  %v4227_v24 = vshll.u32 %v10471_v46, 16  ;;  %v10474_v18 = vld [vmem:[%s11564_s18 + $0xa0] sm:$0xf] }
 0x220   : > { %v4118_v53 = vsel %vm11577_vm2, %v4113_v21, %v4117_v19  ;;  %v4174_v20 = vsel %vm11577_vm2, %v4169_v13, %v4173_v38  ;;  %v4224_v52 = vor.u32 %v4223_v14, %v4220_v17  ;;  %v4213_v10 = vshll.u32 %v10469_v34, 16  ;;  %v10477_v4 = vld [vmem:[%s11564_s18 + $0xc4] sm:$0x1]  ;;  %v10472_v29 = vld [vmem:[%s11564_s18 + $0x98] sm:$0xf] }
 0x221   : > { %4491 = vrot.lane.b32.xlu1 %v4104_v47, %s11527_s19  ;;  %v10461_v47 = vld [vmem:[%s11564_s18 + $0x6c] sm:$0x1]  ;;  %v4190_v59 = vshrl.u32 %v10466_v41, 16  ;;  %v4193_v15 = vshll.u32 %v10466_v41, 16  ;;  %v4246_v33 = vshrl.u32 %v10474_v18, 16  ;;  %v4249_v22 = vshll.u32 %v10474_v18, 16 }
 0x222   : > { %4489 = vrot.lane.b32.xlu0 %v4090_v26, %s11527_s19  ;;  %v4151_v26 = vshll.u32 %v10460_v48, 16  ;;  %v4157_v50 = vshll.u32 %v10461_v47, 16  ;;  %v4262_v48 = vrot.slane %v4260_v7, 4  ;;  %v10467_v45 = vld [vmem:[%s11564_s18 + $0x84] sm:$0x1]  ;;  %v4225_v8 = vrot.slane %v4224_v52, 4 }
 0x223   : > { %v3063_v37 = vpop.permute.xlu1 %3062  ;;  %v4195_v63 = vrot.slane %v4193_v15, 5  ;;  %v4229_v1 = vrot.slane %v4227_v24, 5  ;;  %v4215_v21 = vrot.slane %v4213_v10, 5  ;;  %v10482_v19 = vld [vmem:[%s11564_s18 + $0xd8] sm:$0xf]  ;;  %v4199_v38 = vshll.u32 %v10467_v45, 16 }
 0x224   : > { %3132 = vst.msk [vmem:[#allocation2 + $0x1a4] sm:$0xf] %vm1244_vm11, %v3063_v37  ;;  %v3061_v42 = vpop.permute.xlu0 %3060  ;;  %4487 = vrot.lane.b32.xlu2 %v4076_v9, %s11527_s19  ;;  %v4153_v32 = vrot.slane %v4151_v26, 5  ;;  %v4210_v9 = vor.u32 %v4209_v23, %v4206_v54  ;;  %v4159_v37 = vrot.slane %v4157_v50, 5  ;;  %v10475_v36 = vld [vmem:[%s11564_s18 + $0xa4] sm:$0x1] }
 0x225   : > { %3131 = vst.msk [vmem:[#allocation2 + $0x194] sm:$0xf] %vm1244_vm11, %v3061_v42  ;;  %v4265_v42 = vrot.slane %v4263_v5, 5  ;;  %v4269_v47 = vshll.u32 %v10477_v4, 16  ;;  %v4248_v26 = vrot.slane %v4246_v33, 4  ;;  %v4251_v55 = vrot.slane %v4249_v22, 5 }
 0x226   : > { %v3781_v3 = vpop.permute.xlu2 %3780  ;;  %v4154_v44 = vor.u32 %v4153_v32, %v4150_v62  ;;  %v4211_v0 = vrot.slane %v4210_v9, 4  ;;  %v4232_v31 = vshrl.u32 %v10472_v29, 16  ;;  %v4302_v62 = vshrl.u32 %v10482_v19, 16  ;;  %v10480_v14 = vld [vmem:[%s11564_s18 + $0xd0] sm:$0xf] }
 0x227   : > { %3875 = vst.msk [vmem:[#allocation2 + $0x14] sm:$0xf] %vm2016_vm12, %v3781_v3  ;;  %v4266_v17 = vor.u32 %v4265_v42, %v4262_v48  ;;  %v4305_v46 = vshll.u32 %v10482_v19, 16  ;;  %v4230_v54 = vsel %vm11577_vm2, %v4225_v8, %v4229_v1  ;;  %v4255_v23 = vshll.u32 %v10475_v36, 16  ;;  %v10488_v15 = vld [vmem:[%s11564_s18 + $0xf0] sm:$0xf] }
 0x228   : > { %v4155_v51 = vrot.slane %v4154_v44, 4  ;;  %v4235_v32 = vshll.u32 %v10472_v29, 16  ;;  %v4201_v50 = vrot.slane %v4199_v38, 5  ;;  %v4234_v44 = vrot.slane %v4232_v31, 4 }
 0x229   : > { %4497 = vrot.lane.b32.xlu1 %v4146_v30, %s11527_s19  ;;  %v4192_v30 = vrot.slane %v4190_v59, 4  ;;  %v4252_v7 = vor.u32 %v4251_v55, %v4248_v26  ;;  %v4288_v41 = vshrl.u32 %v10480_v14, 16  ;;  %v4267_v24 = vrot.slane %v4266_v17, 4 }
 0x22a   : > { %4495 = vrot.lane.b32.xlu0 %v4132_v6, %s11527_s19  ;;  %v4160_v6 = vsel %vm11577_vm2, %v4155_v51, %v4159_v37  ;;  %v4271_v18 = vrot.slane %v4269_v47, 5  ;;  %v4307_v52 = vrot.slane %v4305_v46, 5  ;;  %v4257_v10 = vrot.slane %v4255_v23, 5  ;;  %v10483_v51 = vld [vmem:[%s11564_s18 + $0xdc] sm:$0x1] }
 0x22b   : > { %v3069_v58 = vpop.permute.xlu1 %3068  ;;  %v4196_v43 = vor.u32 %v4195_v63, %v4192_v30  ;;  %v4253_v22 = vrot.slane %v4252_v7, 4  ;;  %v4290_v45 = vrot.slane %v4288_v41, 4  ;;  %v4311_v19 = vshll.u32 %v10483_v51, 16  ;;  %v10479_v46 = vld [vmem:[%s11564_s18 + $0xcc] sm:$0x1] }
 0x22c   : > { %3135 = vst.msk [vmem:[#allocation2 + $0x1d4] sm:$0xf] %vm1244_vm11, %v3069_v58  ;;  %v3067_v35 = vpop.permute.xlu0 %3066  ;;  %4493 = vrot.lane.b32.xlu2 %v4118_v53, %s11527_s19  ;;  %v4216_v53 = vsel %vm11577_vm2, %v4211_v0, %v4215_v21  ;;  %v10473_v58 = vld [vmem:[%s11564_s18 + $0x9c] sm:$0x1]  ;;  %v4272_v1 = vsel %vm11577_vm2, %v4267_v24, %v4271_v18  ;;  %v10481_v0 = vld [vmem:[%s11564_s18 + $0xd4] sm:$0x1] }
 0x22d   : > { %3134 = vst.msk [vmem:[#allocation2 + $0x1c4] sm:$0xf] %vm1244_vm11, %v3067_v35  ;;  %v4197_v34 = vrot.slane %v4196_v43, 4  ;;  %v4291_v35 = vshll.u32 %v10480_v14, 16  ;;  %v4241_v59 = vshll.u32 %v10473_v58, 16  ;;  %v4347_v36 = vshll.u32 %v10488_v15, 16 }
 0x22e   : > { %8347 = vmatmul.bf16.gmra.mxu0 %v11167_v61  ;;  %v3787_v39 = vpop.permute.xlu2 %3786  ;;  %v4237_v61 = vrot.slane %v4235_v32, 5  ;;  %v10928_v9 = vld [vmem:[#allocation2 + $0x10] sm:$0xf0]  ;;  %v4258_v31 = vsel %vm11577_vm2, %v4253_v22, %v4257_v10  ;;  %v4297_v17 = vshll.u32 %v10481_v0, 16  ;;  %v10484_v14 = vld [vmem:[%s11564_s18 + $0xe0] sm:$0xf] }
 0x22f   : > { %3878 = vst.msk [vmem:[#allocation2 + $0x44] sm:$0xf] %vm2016_vm12, %v3787_v39  ;;  %v4202_v37 = vsel %vm11577_vm2, %v4197_v34, %v4201_v50  ;;  %v10486_v39 = vld [vmem:[%s11564_s18 + $0xe8] sm:$0xf]  ;;  %v4293_v30 = vrot.slane %v4291_v35, 5  ;;  %v4243_v47 = vrot.slane %v4241_v59, 5 }
 0x230   : > { %v4238_v4 = vor.u32 %v4237_v61, %v4234_v44  ;;  %v4330_v43 = vshrl.u32 %v10486_v39, 16  ;;  %v4333_v38 = vshll.u32 %v10486_v39, 16  ;;  %v4313_v23 = vrot.slane %v4311_v19, 5  ;;  %v10489_v32 = vld [vmem:[%s11564_s18 + $0xf4] sm:$0x1] }
 0x231   : > { %4503 = vrot.lane.b32.xlu1 %v4188_v60, %s11527_s19  ;;  %v10478_v60 = vld [vmem:[%s11564_s18 + $0xc8] sm:$0xf]  ;;  %v4349_v34 = vrot.slane %v4347_v36, 5  ;;  %v10494_v44 = vld [vmem:[%s11564_s18 + $0x120] sm:$0xf]  ;;  %v4283_v35 = vshll.u32 %v10479_v46, 16 }
 0x232   : > { %4501 = vrot.lane.b32.xlu0 %v4174_v20, %s11527_s19  ;;  %v4304_v20 = vrot.slane %v4302_v62, 4  ;;  %v4274_v48 = vshrl.u32 %v10478_v60, 16  ;;  %v4277_v63 = vshll.u32 %v10478_v60, 16  ;;  %v4332_v50 = vrot.slane %v4330_v43, 4  ;;  %v10495_v19 = vld [vmem:[%s11564_s18 + $0x124] sm:$0x1] }
 0x233   : > { %v3779_v3 = vpop.permute.xlu1 %3778  ;;  %v4335_v58 = vrot.slane %v4333_v38, 5  ;;  %v4316_v61 = vshrl.u32 %v10484_v14, 16  ;;  %v4299_v18 = vrot.slane %v4297_v17, 5  ;;  %v4386_v10 = vshrl.u32 %v10494_v44, 16  ;;  %v10493_v46 = vld [vmem:[%s11564_s18 + $0x11c] sm:$0x1] }
 0x234   : > { %3874 = vst.msk [vmem:[#allocation2 + $0x4] sm:$0xf] %vm2016_vm12, %v3779_v3  ;;  %v3073_v13 = vpop.permute.xlu0 %3072  ;;  %4499 = vrot.lane.b32.xlu2 %v4160_v6, %s11527_s19  ;;  %v4308_v21 = vor.u32 %v4307_v52, %v4304_v20  ;;  %v4344_v6 = vshrl.u32 %v10488_v15, 16  ;;  %v4239_v3 = vrot.slane %v4238_v4, 4  ;;  %v4276_v26 = vrot.slane %v4274_v48, 4 }
 0x235   : > { %3137 = vst.msk [vmem:[#allocation2 + $0x1f4] sm:$0xf] %vm1244_vm11, %v3073_v13  ;;  %v4279_v55 = vrot.slane %v4277_v63, 5  ;;  %v4294_v13 = vor.u32 %v4293_v30, %v4290_v45  ;;  %v4353_v20 = vshll.u32 %v10489_v32, 16  ;;  %v4319_v52 = vshll.u32 %v10484_v14, 16 }
 0x236   : > { %v3793_v5 = vpop.permute.xlu2 %3792  ;;  %v4244_v7 = vsel %vm11577_vm2, %v4239_v3, %v4243_v47  ;;  %v4389_v51 = vshll.u32 %v10494_v44, 16  ;;  %v4318_v15 = vrot.slane %v4316_v61, 4  ;;  %v4285_v22 = vrot.slane %v4283_v35, 5  ;;  %v10485_v45 = vld [vmem:[%s11564_s18 + $0xe4] sm:$0x1] }
 0x237   : > { %3881 = vst.msk [vmem:[#allocation2 + $0x74] sm:$0xf] %vm2016_vm12, %v3793_v5  ;;  %v10487_v5 = vld [vmem:[%s11564_s18 + $0xec] sm:$0x1]  ;;  %v4280_v41 = vor.u32 %v4279_v55, %v4276_v26  ;;  %v4295_v24 = vrot.slane %v4294_v13, 4  ;;  %v4321_v39 = vrot.slane %v4319_v52, 5 }
 0x238   : > { %v4339_v59 = vshll.u32 %v10487_v5, 16  ;;  %v4355_v63 = vrot.slane %v4353_v20, 5  ;;  %v4388_v0 = vrot.slane %v4386_v10, 4  ;;  %v4325_v47 = vshll.u32 %v10485_v45, 16  ;;  %v10500_v13 = vld [vmem:[%s11564_s18 + $0x138] sm:$0xf] }
 0x239   : > { %4509 = vrot.lane.b32.xlu1 %v4230_v54, %s11527_s19  ;;  %v4309_v54 = vrot.slane %v4308_v21, 4  ;;  %v4300_v30 = vsel %vm11577_vm2, %v4295_v24, %v4299_v18  ;;  %v10490_v21 = vld [vmem:[%s11564_s18 + $0xf8] sm:$0xf]  ;;  %v4322_v3 = vor.u32 %v4321_v39, %v4318_v15  ;;  %v4428_v5 = vshrl.u32 %v10500_v13, 16  ;;  %v10501_v39 = vld [vmem:[%s11564_s18 + $0x13c] sm:$0x1] }
 0x23a   : > { %4507 = vrot.lane.b32.xlu0 %v4216_v53, %s11527_s19  ;;  %v4346_v53 = vrot.slane %v4344_v6, 4  ;;  %v4391_v6 = vrot.slane %v4389_v51, 5  ;;  %v4341_v38 = vrot.slane %v4339_v59, 5  ;;  %v4358_v17 = vshrl.u32 %v10490_v21, 16  ;;  %v10491_v51 = vld [vmem:[%s11564_s18 + $0xfc] sm:$0x1] }
 0x23b   : > { %v3785_v42 = vpop.permute.xlu1 %3784  ;;  %v11406_v33 = vld [vmem:[#allocation2 + $0x4] sm:$0xf]  ;;  %v4314_v4 = vsel %vm11577_vm2, %v4309_v54, %v4313_v23  ;;  %v4361_v23 = vshll.u32 %v10490_v21, 16  ;;  %v4323_v44 = vrot.slane %v4322_v3, 4  ;;  %v4381_v20 = vshll.u32 %v10493_v46, 16 }
 0x23c   : > { %3877 = vst.msk [vmem:[#allocation2 + $0x34] sm:$0xf] %vm2016_vm12, %v3785_v42  ;;  %v3783_v29 = vpop.permute.xlu0 %3782  ;;  %v10931_v8 = vor.u32 %v11406_v33, %v10928_v9  ;;  %4505 = vrot.lane.b32.xlu2 %v4202_v37, %s11527_s19  ;;  %v10492_v37 = vld [vmem:[%s11564_s18 + $0x118] sm:$0xf]  ;;  %v4350_v48 = vor.u32 %v4349_v34, %v4346_v53  ;;  %v4336_v42 = vor.u32 %v4335_v58, %v4332_v50  ;;  %v4281_v33 = vrot.slane %v4280_v41, 4 }
 0x23d   : > { %3876 = vst.msk [vmem:[#allocation2 + $0x24] sm:$0xf] %vm2016_vm12, %v3783_v29  ;;  %v4392_v34 = vor.u32 %v4391_v6, %v4388_v0  ;;  %v4395_v50 = vshll.u32 %v10495_v19, 16  ;;  %v10498_v58 = vld [vmem:[%s11564_s18 + $0x130] sm:$0xf]  ;;  %v4431_v41 = vshll.u32 %v10500_v13, 16 }
 0x23e   : > { %8361 = vmatmul.bf16.vlgmr.msra.gmra.mxu1 %v10931_v8  ;;  %v3799_v62 = vpop.permute.xlu2 %3798  ;;  %v4372_v8 = vshrl.u32 %v10492_v37, 16  ;;  %v4351_v26 = vrot.slane %v4350_v48, 4  ;;  %v4337_v55 = vrot.slane %v4336_v42, 4  ;;  %v4363_v24 = vrot.slane %v4361_v23, 5  ;;  %v10496_v59 = vld [vmem:[%s11564_s18 + $0x128] sm:$0xf] }
 0x23f   : > { %3884 = vst.msk [vmem:[#allocation2 + $0xa4] sm:$0xf] %vm2016_vm12, %v3799_v62  ;;  %v4417_v10 = vshll.u32 %v10498_v58, 16  ;;  %v4430_v48 = vrot.slane %v4428_v5, 4  ;;  %v4433_v42 = vrot.slane %v4431_v41, 5  ;;  %v4367_v45 = vshll.u32 %v10491_v51, 16 }
 0x240   : > { %v4374_v14 = vrot.slane %v4372_v8, 4  ;;  %v4356_v35 = vsel %vm11577_vm2, %v4351_v26, %v4355_v63  ;;  %v4342_v61 = vsel %vm11577_vm2, %v4337_v55, %v4341_v38  ;;  %v4400_v63 = vshrl.u32 %v10496_v59, 16  ;;  %v10504_v38 = vld [vmem:[%s11564_s18 + $0x148] sm:$0xf] }
 0x241   : > { %4515 = vrot.lane.b32.xlu1 %v4272_v1, %s11527_s19  ;;  %v4375_v1 = vshll.u32 %v10492_v37, 16  ;;  %v4393_v37 = vrot.slane %v4392_v34, 4  ;;  %v4383_v21 = vrot.slane %v4381_v20, 5  ;;  %v4419_v0 = vrot.slane %v4417_v10, 5  ;;  %v10502_v34 = vld [vmem:[%s11564_s18 + $0x140] sm:$0xf] }
 0x242   : > { %4513 = vrot.lane.b32.xlu0 %v4258_v31, %s11527_s19  ;;  %v4286_v31 = vsel %vm11577_vm2, %v4281_v33, %v4285_v22  ;;  %v10499_v33 = vld [vmem:[%s11564_s18 + $0x134] sm:$0x1]  ;;  %v4434_v3 = vor.u32 %v4433_v42, %v4430_v48  ;;  %v4369_v13 = vrot.slane %v4367_v45, 5 }
 0x243   : > { %v3791_v60 = vpop.permute.xlu1 %3790  ;;  %v10944_v43 = vld [vmem:[#allocation2 + $0x30] sm:$0xf0]  ;;  %v4377_v54 = vrot.slane %v4375_v1, 5 }
 0x244   : > { %3880 = vst.msk [vmem:[#allocation2 + $0x64] sm:$0xf] %vm2016_vm12, %v3791_v60  ;;  %v3789_v9 = vpop.permute.xlu0 %3788  ;;  %4511 = vrot.lane.b32.xlu2 %v4244_v7, %s11527_s19  ;;  %v11410_v36 = vld [vmem:[#allocation2 + $0x24] sm:$0xf]  ;;  %v4327_v7 = vrot.slane %v4325_v47, 5  ;;  %v4360_v60 = vrot.slane %v4358_v17, 4 }
 0x245   : > { %3879 = vst.msk [vmem:[#allocation2 + $0x54] sm:$0xf] %vm2016_vm12, %v3789_v9  ;;  %v10947_v53 = vor.u32 %v11410_v36, %v10944_v43  ;;  %v4378_v18 = vor.u32 %v4377_v54, %v4374_v14  ;;  %v4414_v9 = vshrl.u32 %v10498_v58, 16  ;;  %v4437_v43 = vshll.u32 %v10501_v39, 16  ;;  %v10497_v17 = vld [vmem:[%s11564_s18 + $0x12c] sm:$0x1] }
 0x246   : > { %v3805_v29 = vpop.permute.xlu2 %3804  ;;  %v4328_v15 = vsel %vm11577_vm2, %v4323_v44, %v4327_v7  ;;  %v4364_v22 = vor.u32 %v4363_v24, %v4360_v60  ;;  %v4423_v47 = vshll.u32 %v10499_v33, 16  ;;  %v4435_v44 = vrot.slane %v4434_v3, 4 }
 0x247   : > { %3887 = vst.msk [vmem:[#allocation2 + $0xd4] sm:$0xf] %vm2016_vm12, %v3805_v29  ;;  %v4403_v29 = vshll.u32 %v10496_v59, 16  ;;  %v4379_v1 = vrot.slane %v4378_v18, 4  ;;  %v4416_v19 = vrot.slane %v4414_v9, 4  ;;  %v4409_v41 = vshll.u32 %v10497_v17, 16 }
 0x248   : > { %v4442_v24 = vshrl.u32 %v10502_v34, 16  ;;  %v4445_v18 = vshll.u32 %v10502_v34, 16  ;;  %v4425_v10 = vrot.slane %v4423_v47, 5  ;;  %v10510_v17 = vld [vmem:[%s11564_s18 + $0x18] sm:$0xe] }
 0x249   : > { %4521 = vrot.lane.b32.xlu1 %v4314_v4, %s11527_s19  ;;  %v4397_v4 = vrot.slane %v4395_v50, 5  ;;  %v4405_v46 = vrot.slane %v4403_v29, 5  ;;  %v4384_v14 = vsel %vm11577_vm2, %v4379_v1, %v4383_v21  ;;  %v4420_v54 = vor.u32 %v4419_v0, %v4416_v19  ;;  %v10503_v21 = vld [vmem:[%s11564_s18 + $0x144] sm:$0x1] }
 0x24a   : > { %4519 = vrot.lane.b32.xlu0 %v4300_v30, %s11527_s19  ;;  %v10506_v30 = vld [vmem:[%s11564_s18 + $0x150] sm:$0xf]  ;;  %v4439_v50 = vrot.slane %v4437_v43, 5  ;;  %v4444_v45 = vrot.slane %v4442_v24, 4  ;;  %v4451_v43 = vshll.u32 %v10503_v21, 16 }
 0x24b   : > { %v3797_v62 = vpop.permute.xlu1 %3796  ;;  %v4398_v36 = vsel %vm11577_vm2, %v4393_v37, %v4397_v4  ;;  %v4470_v26 = vshrl.u32 %v10506_v30, 16  ;;  %v4473_v55 = vshll.u32 %v10506_v30, 16  ;;  %v4421_v9 = vrot.slane %v4420_v54, 4  ;;  %v10516_v24 = vld [vmem:[%s11564_s18 + $0x30] sm:$0xe] }
 0x24c   : > { %3883 = vst.msk [vmem:[#allocation2 + $0x94] sm:$0xf] %vm2016_vm12, %v3797_v62  ;;  %v3795_v32 = vpop.permute.xlu0 %3794  ;;  %4517 = vrot.lane.b32.xlu2 %v4286_v31, %s11527_s19  ;;  %v4365_v31 = vrot.slane %v4364_v22, 4  ;;  %v4402_v62 = vrot.slane %v4400_v63, 4  ;;  %v10960_v58 = vld [vmem:[#allocation2 + $0x50] sm:$0xf0]  ;;  %v4440_v39 = vsel %vm11577_vm2, %v4435_v44, %v4439_v50 }
 0x24d   : > { %3882 = vst.msk [vmem:[#allocation2 + $0x84] sm:$0xf] %vm2016_vm12, %v3795_v32  ;;  %v4456_v32 = vshrl.u32 %v10504_v38, 16  ;;  %v4472_v7 = vrot.slane %v4470_v26, 4  ;;  %v4475_v5 = vrot.slane %v4473_v55, 5  ;;  %v4411_v22 = vrot.slane %v4409_v41, 5 }
 0x24e   : > { %8366 = vmatmul.bf16.gmra.mxu1 %v10947_v53  ;;  %v3811_v52 = vpop.permute.xlu2 %3810  ;;  %v4459_v53 = vshll.u32 %v10504_v38, 16  ;;  %v4406_v60 = vor.u32 %v4405_v46, %v4402_v62  ;;  %v4447_v30 = vrot.slane %v4445_v18, 5  ;;  %v4426_v63 = vsel %vm11577_vm2, %v4421_v9, %v4425_v10  ;;  %v10512_v55 = vld [vmem:[%s11564_s18 + $0x20] sm:$0xe]  ;;  %v10511_v62 = vld [vmem:[%s11564_s18 + $0x1c] sm:$0x1] }
 0x24f   : > { %3890 = vst.msk [vmem:[#allocation2 + $0x104] sm:$0xf] %vm2016_vm12, %v3811_v52  ;;  %v11414_v52 = vld [vmem:[#allocation2 + $0x44] sm:$0xf]  ;;  %v4458_v51 = vrot.slane %v4456_v32, 4  ;;  %v4476_v48 = vor.u32 %v4475_v5, %v4472_v7  ;;  %v10574_v34 = vrot.slane %v10512_v55, 9 }
 0x250   : > { %v4461_v37 = vrot.slane %v4459_v53, 5  ;;  %v10963_v59 = vor.u32 %v11414_v52, %v10960_v58  ;;  %v4407_v33 = vrot.slane %v4406_v60, 4  ;;  %v11418_v32 = vld [vmem:[#allocation2 + $0x64] sm:$0xf]  ;;  %v10976_v53 = vld [vmem:[#allocation2 + $0x70] sm:$0xf0] }
 0x251   : > { %4527 = vrot.lane.b32.xlu1 %v4356_v35, %s11527_s19  ;;  %v4370_v35 = vsel %vm11577_vm2, %v4365_v31, %v4369_v13  ;;  %v4477_v0 = vrot.slane %v4476_v48, 4  ;;  %v10513_v31 = vld [vmem:[%s11564_s18 + $0x24] sm:$0x1]  ;;  %v10573_v58 = vrot.slane %v10510_v17, 9  ;;  %v4745_v44 = vrot.slane %v10511_v62, 5 }
 0x252   : > { %4525 = vrot.lane.b32.xlu0 %v4342_v61, %s11527_s19  ;;  %v10507_v61 = vld [vmem:[%s11564_s18 + $0x154] sm:$0x1]  ;;  %v4462_v29 = vor.u32 %v4461_v37, %v4458_v51  ;;  %v4749_v50 = vrot.slane %v10513_v31, 5  ;;  %v13659_v7 = vld [vmem:[%s11564_s18 + $0x38] sm:$0xe]  ;;  %v10979_v9 = vor.u32 %v11418_v32, %v10976_v53 }
 0x253   : > { %v3803_v8 = vpop.permute.xlu1 %3802  ;;  %v4479_v42 = vshll.u32 %v10507_v61, 16  ;;  %v10519_v41 = vld [vmem:[%s11564_s18 + $0x3c] sm:$0x1]  ;;  %v10414_v61 = vld [vmem:[%s11564_s18 + $0x20] sm:$0xf] }
 0x254   : > { %3886 = vst.msk [vmem:[#allocation2 + $0xc4] sm:$0xf] %vm2016_vm12, %v3803_v8  ;;  %v3801_v6 = vpop.permute.xlu0 %3800  ;;  %4523 = vrot.lane.b32.xlu2 %v4328_v15, %s11527_s19  ;;  %v10505_v15 = vld [vmem:[%s11564_s18 + $0x14c] sm:$0x1]  ;;  %v4463_v3 = vrot.slane %v4462_v29, 4  ;;  %v4750_v37 = vsel %vm11738_vm6, %v10574_v34, %v4749_v50 }
 0x255   : > { %3885 = vst.msk [vmem:[#allocation2 + $0xb4] sm:$0xf] %vm2016_vm12, %v3801_v6  ;;  %v4465_v8 = vshll.u32 %v10505_v15, 16  ;;  %v4481_v19 = vrot.slane %v4479_v42, 5  ;;  %v4412_v6 = vsel %vm11577_vm2, %v4407_v33, %v4411_v22  ;;  %v10509_v18 = vld [vmem:[%s11564_s18 + $0x14] sm:$0x1]  ;;  %v4746_v33 = vsel %vm11738_vm6, %v10573_v58, %v4745_v44 }
 0x256   : > { %v3817_v23 = vpop.permute.xlu2 %3816  ;;  %3941 = vst.msk [vmem:[#allocation2 + $0x28] sm:$0xf] %vm212_vm5, %v10414_v61  ;;  %v10517_v10 = vld [vmem:[%s11564_s18 + $0x34] sm:$0x1]  ;;  %v10412_v51 = vld [vmem:[%s11564_s18 + $0x10] sm:$0xf] }
 0x257   : > { %3893 = vst.msk [vmem:[#allocation2 + $0x134] sm:$0xf] %vm2016_vm12, %v3817_v23  ;;  %v4467_v47 = vrot.slane %v4465_v8, 5  ;;  %v4482_v13 = vsel %vm11577_vm2, %v4477_v0, %v4481_v19  ;;  %v10577_v15 = vrot.slane %v13659_v7, 9  ;;  %v4741_v42 = vrot.slane %v10509_v18, 5 }
 0x258   : > { %3939 = vst.msk [vmem:[#allocation2 + $0x8] sm:$0xf] %vm212_vm5, %v10412_v51  ;;  %v4757_v29 = vrot.slane %v10517_v10, 5  ;;  %v13696_v21 = vld [vmem:[%s11564_s18 + $0x48] sm:$0xe] }
 0x259   : > { %4533 = vrot.lane.b32.xlu1 %v4398_v36, %s11527_s19  ;;  %v4448_v36 = vor.u32 %v4447_v30, %v4444_v45  ;;  %v4468_v54 = vsel %vm11577_vm2, %v4463_v3, %v4467_v47  ;;  %v10604_v45 = vld [vmem:[%s11564_s18 + $0x10] sm:$0xe]  ;;  %v10605_v30 = vld [vmem:[%s11564_s18 + $0x14] sm:$0x3]  ;;  %v10514_v19 = vld [vmem:[%s11564_s18 + $0x28] sm:$0xe] }
 0x25a   : > { %4531 = vrot.lane.b32.xlu0 %v4384_v14, %s11527_s19  ;;  %v4453_v14 = vrot.slane %v4451_v43, 5  ;;  %v10515_v0 = vld [vmem:[%s11564_s18 + $0x2c] sm:$0x1]  ;;  %v5060_v43 = vshrl.u32 %v10604_v45, 16  ;;  %v5069_v3 = vshrl.u32 %v10605_v30, 16  ;;  %v10579_v17 = vrot.slane %v13696_v21, 9 }
 0x25b   : > { %v3809_v20 = vpop.permute.xlu1 %3808  ;;  %v4449_v46 = vrot.slane %v4448_v36, 4  ;;  %v13704_v36 = vld [vmem:[%s11564_s18 + $0x4c] sm:$0x1]  ;;  %v10417_v47 = vld [vmem:[%s11564_s18 + $0x38] sm:$0xf]  ;;  %v10575_v62 = vrot.slane %v10514_v19, 9 }
 0x25c   : > { %3889 = vst.msk [vmem:[#allocation2 + $0xf4] sm:$0xf] %vm2016_vm12, %v3809_v20  ;;  %v3807_v4 = vpop.permute.xlu0 %3806  ;;  %4529 = vrot.lane.b32.xlu2 %v4370_v35, %s11527_s19  ;;  %v10508_v35 = vld [vmem:[%s11564_s18 + $0x10] sm:$0xe]  ;;  %v10413_v20 = vld [vmem:[%s11564_s18 + $0x18] sm:$0xf] }
 0x25d   : > { %3888 = vst.msk [vmem:[#allocation2 + $0xe4] sm:$0xf] %vm2016_vm12, %v3807_v4  ;;  %v4454_v5 = vsel %vm11577_vm2, %v4449_v46, %v4453_v14  ;;  %v13679_v4 = vld [vmem:[%s11564_s18 + $0x68] sm:$0xe]  ;;  %v10572_v48 = vrot.slane %v10508_v35, 9  ;;  %v4753_v14 = vrot.slane %v10515_v0, 5 }
 0x25e   : > { %8371 = vmatmul.bf16.gmra.mxu1 %v10963_v59  ;;  %v3823_v1 = vpop.permute.xlu2 %3822  ;;  %v13682_v59 = vld [vmem:[%s11564_s18 + $0x6c] sm:$0x1]  ;;  %3940 = vst.msk [vmem:[#allocation2 + $0x18] sm:$0xf] %vm212_vm5, %v10413_v20  ;;  %v10580_v8 = vrot.slane %v13679_v4, 9  ;;  %v5062_v35 = vrot.slane %v5060_v43, 5 }
 0x25f   : > { %3896 = vst.msk [vmem:[#allocation2 + $0x164] sm:$0xf] %vm2016_vm12, %v3823_v1  ;;  %v4773_v1 = vrot.slane %v13682_v59, 5  ;;  %v10702_v55 = vld [vmem:[%s11564_s18 + $0x20] sm:$0xf] }
 0x260   : > { %3944 = vst.msk [vmem:[#allocation2 + $0x58] sm:$0xf] %vm212_vm5, %v10417_v47  ;;  %v10416_v31 = vld [vmem:[%s11564_s18 + $0x30] sm:$0xf]  ;;  %v10415_v46 = vld [vmem:[%s11564_s18 + $0x28] sm:$0xf] }
 0x261   : > { %4539 = vrot.lane.b32.xlu1 %v4440_v39, %s11527_s19  ;;  %v4761_v39 = vrot.slane %v10519_v41, 5  ;;  %v5907_v34 = vshrl.u32 %v10702_v55, 16  ;;  %v5910_v50 = vshll.u32 %v10702_v55, 16  ;;  %v10700_v58 = vld [vmem:[%s11564_s18 + $0x18] sm:$0xf]  ;;  %v4774_v47 = vsel %vm11738_vm6, %v10580_v8, %v4773_v1 }
 0x262   : > { %4537 = vrot.lane.b32.xlu0 %v4426_v63, %s11527_s19  ;;  %v10576_v63 = vrot.slane %v10516_v24, 9  ;;  %3943 = vst.msk [vmem:[#allocation2 + $0x48] sm:$0xf] %vm212_vm5, %v10416_v31  ;;  %v11422_v44 = vld [vmem:[#allocation2 + $0x84] sm:$0xf]  ;;  %v5893_v10 = vshrl.u32 %v10700_v58, 16 }
 0x263   : > { %v3815_v38 = vpop.permute.xlu1 %3814  ;;  %v4762_v32 = vsel %vm11738_vm6, %v10577_v15, %v4761_v39  ;;  %v10992_v7 = vld [vmem:[#allocation2 + $0x90] sm:$0xf0]  ;;  %3942 = vst.msk [vmem:[#allocation2 + $0x38] sm:$0xf] %vm212_vm5, %v10415_v46  ;;  %v10520_v24 = vld [vmem:[%s11564_s18 + $0x40] sm:$0xe] }
 0x264   : > { %3892 = vst.msk [vmem:[#allocation2 + $0x124] sm:$0xf] %vm2016_vm12, %v3815_v38  ;;  %v3813_v26 = vpop.permute.xlu0 %3812  ;;  %4535 = vrot.lane.b32.xlu2 %v4412_v6, %s11527_s19  ;;  %v4742_v6 = vsel %vm11738_vm6, %v10572_v48, %v4741_v42  ;;  %v5063_v38 = vshll.u32 %v10604_v45, 16  ;;  %v4758_v53 = vsel %vm11738_vm6, %v10576_v63, %v4757_v29  ;;  %v10521_v18 = vld [vmem:[%s11564_s18 + $0x44] sm:$0x1]  ;;  %v5896_v51 = vshll.u32 %v10700_v58, 16 }
 0x265   : > { %3891 = vst.msk [vmem:[#allocation2 + $0x114] sm:$0xf] %vm2016_vm12, %v3813_v26  ;;  %v5909_v15 = vrot.slane %v5907_v34, 4  ;;  %v5912_v39 = vrot.slane %v5910_v50, 5  ;;  %v10701_v48 = vld [vmem:[%s11564_s18 + $0x1c] sm:$0x1]  ;;  %v10995_v29 = vor.u32 %v11422_v44, %v10992_v7 }
 0x266   : > { %v3829_v23 = vpop.permute.xlu2 %3828  ;;  %v5065_v61 = vrot.slane %v5063_v38, 6  ;;  %v10420_v42 = vld [vmem:[%s11564_s18 + $0x68] sm:$0xf]  ;;  %v4765_v45 = vrot.slane %v10521_v18, 5  ;;  %v10529_v19 = vld [vmem:[%s11564_s18 + $0x7c] sm:$0x1] }
 0x267   : > { %3899 = vst.msk [vmem:[#allocation2 + $0x194] sm:$0xf] %vm2016_vm12, %v3829_v23  ;;  %v13716_v23 = vld [vmem:[%s11564_s18 + $0x78] sm:$0xe]  ;;  %v10419_v0 = vld [vmem:[%s11564_s18 + $0x48] sm:$0xf] }
 0x268   : > { %3947 = vst.msk [vmem:[#allocation2 + $0x88] sm:$0xf] %vm212_vm5, %v10420_v42  ;;  %v5066_v21 = vor.u32 %v5065_v61, %v5062_v35  ;;  %v5895_v43 = vrot.slane %v5893_v10, 4  ;;  %v5898_v38 = vrot.slane %v5896_v51, 5  ;;  %v10526_v55 = vld [vmem:[%s11564_s18 + $0x70] sm:$0xe] }
 0x269   : > { %4545 = vrot.lane.b32.xlu1 %v4482_v13, %s11527_s19  ;;  %3946 = vst.msk [vmem:[#allocation2 + $0x78] sm:$0xf] %vm212_vm5, %v10419_v0  ;;  %v10606_v31 = vld [vmem:[%s11564_s18 + $0x18] sm:$0xe]  ;;  %v10527_v46 = vld [vmem:[%s11564_s18 + $0x74] sm:$0x1] }
 0x26a   : > { %4543 = vrot.lane.b32.xlu0 %v4468_v54, %s11527_s19  ;;  %v5072_v54 = vshll.u32 %v10605_v30, 16  ;;  %v10860_v30 = vld [vmem:[%s11564_s18 + $0x18] sm:$0xe]  ;;  %v13766_v59 = vld [vmem:[%s11564_s18 + $0x1c] sm:$0x3]  ;;  %v5078_v8 = vshrl.u32 %v10606_v31, 16  ;;  %v5899_v58 = vor.u32 %v5898_v38, %v5895_v43 }
 0x26b   : > { %v3821_v60 = vpop.permute.xlu1 %3820  ;;  %v5081_v1 = vshll.u32 %v10606_v31, 16  ;;  %v10581_v7 = vrot.slane %v10526_v55, 9  ;;  %v4777_v35 = vrot.slane %v10527_v46, 5  ;;  %v10610_v18 = vld [vmem:[%s11564_s18 + $0x28] sm:$0xe] }
 0x26c   : > { %3895 = vst.msk [vmem:[#allocation2 + $0x154] sm:$0xf] %vm2016_vm12, %v3821_v60  ;;  %v3819_v52 = vpop.permute.xlu0 %3818  ;;  %4541 = vrot.lane.b32.xlu2 %v4454_v5, %s11527_s19  ;;  %v4769_v5 = vrot.slane %v13704_v36, 5  ;;  %v13725_v60 = vrot.slane %v5069_v3, 5  ;;  %v13732_v20 = vrot.slane %v5072_v54, 6  ;;  %v5902_v3 = vshll.u32 %v10701_v48, 16 }
 0x26d   : > { %3894 = vst.msk [vmem:[#allocation2 + $0x144] sm:$0xf] %vm2016_vm12, %v3819_v52  ;;  %v10582_v52 = vrot.slane %v13716_v23, 9  ;;  %v6920_v54 = vshll.u32 %v10860_v30, 16  ;;  %v5080_v10 = vrot.slane %v5078_v8, 5  ;;  %v5083_v51 = vrot.slane %v5081_v1, 6 }
 0x26e   : > { %8376 = vmatmul.bf16.gmra.mxu1 %v10979_v9  ;;  %v3835_v22 = vpop.permute.xlu2 %3834  ;;  %v10703_v9 = vld [vmem:[%s11564_s18 + $0x24] sm:$0x1]  ;;  %v5075_v4 = vor.u32 %v13732_v20, %v13725_v60  ;;  %v13776_v44 = vrot.slane %v5902_v3, 5  ;;  %v13789_v48 = vld [vmem:[%s11564_s18 + $0x2c] sm:$0x3]  ;;  %v4778_v43 = vsel %vm11738_vm6, %v10581_v7, %v4777_v35 }
 0x26f   : > { %3902 = vst.msk [vmem:[#allocation2 + $0x1c4] sm:$0xf] %vm2016_vm12, %v3835_v22  ;;  %v10578_v22 = vrot.slane %v10520_v24, 9  ;;  %v5916_v36 = vshll.u32 %v10703_v9, 16  ;;  %v6922_v60 = vrot.slane %v6920_v54, 6  ;;  %v6926_v24 = vshrl.u32 %v13766_v59, 16 }
 0x270   : > { %v13783_v9 = vld [vmem:[%s11564_s18 + $0x20] sm:$0xe]  ;;  %v10422_v0 = vld [vmem:[%s11564_s18 + $0x78] sm:$0xf]  ;;  %v13808_v3 = vld [vmem:[%s11564_s18 + $0x24] sm:$0x1]  ;;  %v5084_v23 = vor.u32 %v5083_v51, %v5080_v10 }
 0x271   : > { %4871 = vrot.lane.b32.xlu1 %v4750_v37, %s11528_s20  ;;  %v4754_v37 = vsel %vm11738_vm6, %v10575_v62, %v4753_v14  ;;  %v6917_v14 = vshrl.u32 %v10860_v30, 16  ;;  %v13771_v34 = vrot.slane %v5916_v36, 5  ;;  %v10608_v30 = vld [vmem:[%s11564_s18 + $0x20] sm:$0xe]  ;;  %v11426_v36 = vld [vmem:[#allocation2 + $0xa4] sm:$0xf] }
 0x272   : > { %4869 = vrot.lane.b32.xlu0 %v4746_v33, %s11528_s20  ;;  %v5096_v55 = vshrl.u32 %v10608_v30, 16  ;;  %v5099_v31 = vshll.u32 %v10608_v30, 16  ;;  %3949 = vst.msk [vmem:[#allocation2 + $0xa8] sm:$0xf] %vm212_vm5, %v10422_v0  ;;  %v6602_v1 = vrot.slane %v13808_v3, 5  ;;  %v5085_v7 = vrot.slane %v5084_v23, 4 }
 0x273   : > { %v3827_v26 = vpop.permute.xlu1 %3826  ;;  %v6919_v61 = vrot.slane %v6917_v14, 5  ;;  %v10426_v10 = vld [vmem:[%s11564_s18 + $0x98] sm:$0xf]  ;;  %v10425_v51 = vld [vmem:[%s11564_s18 + $0x90] sm:$0xf] }
 0x274   : > { %3898 = vst.msk [vmem:[#allocation2 + $0x184] sm:$0xf] %vm2016_vm12, %v3827_v26  ;;  %v3825_v13 = vpop.permute.xlu0 %3824  ;;  %4867 = vrot.lane.b32.xlu2 %v4742_v6, %s11528_s20  ;;  %v10418_v6 = vld [vmem:[%s11564_s18 + $0x40] sm:$0xf]  ;;  %v5913_v26 = vor.u32 %v5912_v39, %v5909_v15  ;;  %v13857_v23 = vld [vmem:[%s11564_s18 + $0x28] sm:$0xe] }
 0x275   : > { %3897 = vst.msk [vmem:[#allocation2 + $0x174] sm:$0xf] %vm2016_vm12, %v3825_v13  ;;  %v4770_v13 = vsel %vm11738_vm6, %v10579_v17, %v4769_v5  ;;  %v5067_v17 = vrot.slane %v5066_v21, 4  ;;  %v10607_v5 = vld [vmem:[%s11564_s18 + $0x1c] sm:$0x3]  ;;  %v6923_v38 = vor.u32 %v6922_v60, %v6919_v61 }
 0x276   : > { %v3841_v41 = vpop.permute.xlu2 %3840  ;;  %3945 = vst.msk [vmem:[#allocation2 + $0x68] sm:$0xf] %vm212_vm5, %v10418_v6  ;;  %v13774_v50 = vrot.slane %v5913_v26, 4  ;;  %v5087_v15 = vshrl.u32 %v10607_v5, 16  ;;  %v5090_v39 = vshll.u32 %v10607_v5, 16  ;;  %v10829_v26 = vrot.slane %v13783_v9, 9 }
 0x277   : > { %3905 = vst.msk [vmem:[#allocation2 + $0x1f4] sm:$0xf] %vm2016_vm12, %v3841_v41  ;;  %v5076_v42 = vsel %vm12136_vm10, %v5067_v17, %v5075_v4  ;;  %v10421_v6 = vld [vmem:[%s11564_s18 + $0x70] sm:$0xf]  ;;  %v10609_v17 = vld [vmem:[%s11564_s18 + $0x24] sm:$0x3] }
 0x278   : > { %3948 = vst.msk [vmem:[#allocation2 + $0x98] sm:$0xf] %vm212_vm5, %v10421_v6 }
 0x279   : > { %4877 = vrot.lane.b32.xlu1 %v4762_v32, %s11528_s20  ;;  %v4781_v32 = vrot.slane %v10529_v19, 5  ;;  %v6929_v19 = vshll.u32 %v13766_v59, 16  ;;  %v5919_v59 = vsel %vm11577_vm2, %v13774_v50, %v13771_v34  ;;  %v5098_v34 = vrot.slane %v5096_v55, 5  ;;  %3953 = vst.msk [vmem:[#allocation2 + $0xe8] sm:$0xf] %vm212_vm5, %v10426_v10 }
 0x27a   : > { %4875 = vrot.lane.b32.xlu0 %v4758_v53, %s11528_s20  ;;  %v4766_v53 = vsel %vm11738_vm6, %v10578_v22, %v4765_v45  ;;  %v5114_v22 = vshrl.u32 %v10610_v18, 16  ;;  %v5117_v45 = vshll.u32 %v10610_v18, 16  ;;  %v5101_v50 = vrot.slane %v5099_v31, 6  ;;  %3952 = vst.msk [vmem:[#allocation2 + $0xd8] sm:$0xf] %vm212_vm5, %v10425_v51 }
 0x27b   : > { %v3833_v33 = vpop.permute.xlu1 %3832  ;;  %v6931_v8 = vrot.slane %v6929_v19, 6  ;;  %v5105_v18 = vshrl.u32 %v10609_v17, 16  ;;  %v10428_v51 = vld [vmem:[%s11564_s18 + $0xc0] sm:$0xf] }
 0x27c   : > { %3901 = vst.msk [vmem:[#allocation2 + $0x1b4] sm:$0xf] %vm2016_vm12, %v3833_v33  ;;  %v3831_v63 = vpop.permute.xlu0 %3830  ;;  %4873 = vrot.lane.b32.xlu2 %v4754_v37, %s11528_s20  ;;  %v10423_v37 = vld [vmem:[%s11564_s18 + $0x80] sm:$0xf]  ;;  %v11008_v33 = vld [vmem:[#allocation2 + $0xb0] sm:$0xf0]  ;;  %v5102_v6 = vor.u32 %v5101_v50, %v5098_v34 }
 0x27d   : > { %3900 = vst.msk [vmem:[#allocation2 + $0x1a4] sm:$0xf] %vm2016_vm12, %v3831_v63  ;;  %v4782_v63 = vsel %vm11738_vm6, %v10582_v52, %v4781_v32  ;;  %v13812_v52 = vrot.slane %v6926_v24, 5  ;;  %v5116_v46 = vrot.slane %v5114_v22, 5  ;;  %v5119_v14 = vrot.slane %v5117_v45, 6 }
 0x27e   : > { %8381 = vmatmul.bf16.gmra.mxu1 %v10995_v29  ;;  %v4488_v62 = vpop.permute.xlu2 %4487  ;;  %3950 = vst.msk [vmem:[#allocation2 + $0xb8] sm:$0xf] %vm212_vm5, %v10423_v37  ;;  %v13799_v29 = vrot.slane %v5899_v58, 4  ;;  %v11011_v4 = vor.u32 %v11426_v36, %v11008_v33  ;;  %v10706_v32 = vld [vmem:[%s11564_s18 + $0x30] sm:$0xf]  ;;  %v6924_v58 = vrot.slane %v6923_v38, 4 }
 0x27f   : > { %4581 = vst.msk [vmem:[#allocation2 + $0x28] sm:$0xf] %vm856_vm7, %v4488_v62  ;;  %v5092_v62 = vrot.slane %v5090_v39, 6  ;;  %v5935_v35 = vshrl.u32 %v10706_v32, 16  ;;  %v5938_v61 = vshll.u32 %v10706_v32, 16  ;;  %v5120_v24 = vor.u32 %v5119_v14, %v5116_v46 }
 0x280   : > { %v5905_v37 = vsel %vm11577_vm2, %v13799_v29, %v13776_v44  ;;  %v13838_v39 = vld [vmem:[%s11564_s18 + $0x18] sm:$0xe]  ;;  %v10424_v33 = vld [vmem:[%s11564_s18 + $0x88] sm:$0xf]  ;;  %v10707_v22 = vld [vmem:[%s11564_s18 + $0x34] sm:$0x1]  ;;  %v6932_v30 = vor.u32 %v6931_v8, %v13812_v52 }
 0x281   : > { %4883 = vrot.lane.b32.xlu1 %v4774_v47, %s11528_s20  ;;  %v5123_v47 = vshrl.u32 %v13789_v48, 16  ;;  %v10862_v45 = vld [vmem:[%s11564_s18 + $0x20] sm:$0xe]  ;;  %v10863_v44 = vld [vmem:[%s11564_s18 + $0x24] sm:$0x3]  ;;  %v5121_v19 = vrot.slane %v5120_v24, 4 }
 0x282   : > { %4881 = vrot.lane.b32.xlu0 %v4770_v13, %s11528_s20  ;;  %v5089_v13 = vrot.slane %v5087_v15, 5  ;;  %v6938_v29 = vshll.u32 %v10862_v45, 16  ;;  %v10765_v36 = vld [vmem:[%s11564_s18 + $0x1c] sm:$0x1]  ;;  %3951 = vst.msk [vmem:[#allocation2 + $0xc8] sm:$0xf] %vm212_vm5, %v10424_v33 }
 0x283   : > { %v3839_v41 = vpop.permute.xlu1 %3838  ;;  %v13826_v5 = vrot.slane %v5123_v47, 5  ;;  %v13854_v38 = vrot.slane %v5105_v18, 5  ;;  %v13860_v47 = vld [vmem:[%s11564_s18 + $0x2c] sm:$0x1]  ;;  %v5944_v55 = vshll.u32 %v10707_v22, 16  ;;  %v6944_v46 = vshrl.u32 %v10863_v44, 16 }
 0x284   : > { %3904 = vst.msk [vmem:[#allocation2 + $0x1e4] sm:$0xf] %vm2016_vm12, %v3839_v41  ;;  %v3837_v20 = vpop.permute.xlu0 %3836  ;;  %4879 = vrot.lane.b32.xlu2 %v4766_v53, %s11528_s20  ;;  %v5126_v41 = vshll.u32 %v13789_v48, 16  ;;  %v5093_v60 = vor.u32 %v5092_v62, %v5089_v13  ;;  %v5937_v48 = vrot.slane %v5935_v35, 4  ;;  %v10828_v62 = vrot.slane %v13838_v39, 9 }
 0x285   : > { %3903 = vst.msk [vmem:[#allocation2 + $0x1d4] sm:$0xf] %vm2016_vm12, %v3837_v20  ;;  %v5108_v20 = vshll.u32 %v10609_v17, 16  ;;  %v6947_v14 = vshll.u32 %v10863_v44, 16  ;;  %v10866_v8 = vld [vmem:[%s11564_s18 + $0x30] sm:$0xe] }
 0x286   : > { %v4494_v21 = vpop.permute.xlu2 %4493  ;;  %v5128_v0 = vrot.slane %v5126_v41, 6  ;;  %v5103_v17 = vrot.slane %v5102_v6, 4  ;;  %v6598_v32 = vrot.slane %v10765_v36, 5  ;;  %v11430_v41 = vld [vmem:[#allocation2 + $0xc4] sm:$0xf]  ;;  %v6946_v9 = vrot.slane %v6944_v46, 5 }
 0x287   : > { %4584 = vst.msk [vmem:[#allocation2 + $0x58] sm:$0xf] %vm856_vm7, %v4494_v21  ;;  %v5094_v21 = vsel %vm12136_vm10, %v5085_v7, %v5093_v60  ;;  %v5110_v13 = vrot.slane %v5108_v20, 6  ;;  %v6606_v7 = vrot.slane %v13860_v47, 5  ;;  %v11024_v34 = vld [vmem:[#allocation2 + $0xd0] sm:$0xf0] }
 0x288   : > { %v13882_v60 = vld [vmem:[%s11564_s18 + $0x34] sm:$0x3]  ;;  %v10429_v24 = vld [vmem:[%s11564_s18 + $0xc8] sm:$0xf]  ;;  %v5129_v18 = vor.u32 %v5128_v0, %v13826_v5  ;;  %v6971_v3 = vshrl.u32 %v10866_v8, 16  ;;  %v6974_v10 = vshll.u32 %v10866_v8, 16 }
 0x289   : > { %5635 = vrot.lane.b32.xlu1 %v5076_v42, %s11529_s21  ;;  %v5940_v42 = vrot.slane %v5938_v61, 5  ;;  %v13879_v61 = vrot.slane %v5944_v55, 5  ;;  %v10864_v20 = vld [vmem:[%s11564_s18 + $0x28] sm:$0xe]  ;;  %3956 = vst.msk [vmem:[#allocation2 + $0x118] sm:$0xf] %vm212_vm5, %v10429_v24  ;;  %v5111_v5 = vor.u32 %v5110_v13, %v13854_v38 }
 0x28a   : > { %4887 = vrot.lane.b32.xlu0 %v4782_v63, %s11528_s20  ;;  %v6935_v63 = vshrl.u32 %v10862_v45, 16  ;;  %v6983_v39 = vshll.u32 %v13882_v60, 16  ;;  %3955 = vst.msk [vmem:[#allocation2 + $0x108] sm:$0xf] %vm212_vm5, %v10428_v51  ;;  %v6953_v33 = vshrl.u32 %v10864_v20, 16  ;;  %v6956_v22 = vshll.u32 %v10864_v20, 16 }
 0x28b   : > { %v4486_v54 = vpop.permute.xlu1 %4485  ;;  %v5941_v52 = vor.u32 %v5940_v42, %v5937_v48  ;;  %v13898_v48 = vld [vmem:[%s11564_s18 + $0x2c] sm:$0x3]  ;;  %v10427_v45 = vld [vmem:[%s11564_s18 + $0xa0] sm:$0xf]  ;;  %v10708_v6 = vld [vmem:[%s11564_s18 + $0x38] sm:$0xf]  ;;  %v5112_v55 = vsel %vm12136_vm10, %v5103_v17, %v5111_v5 }
 0x28c   : > { %4580 = vst.msk [vmem:[#allocation2 + $0x18] sm:$0xf] %vm856_vm7, %v4486_v54  ;;  %v4484_v53 = vpop.permute.xlu0 %4483  ;;  %4885 = vrot.lane.b32.xlu2 %v4778_v43, %s11528_s20  ;;  %v6933_v54 = vsel %vm12136_vm10, %v6924_v58, %v6932_v30  ;;  %v6603_v58 = vsel %vm11738_vm6, %v10829_v26, %v6602_v1  ;;  %v6949_v1 = vrot.slane %v6947_v14, 6  ;;  %v10704_v30 = vld [vmem:[%s11564_s18 + $0x28] sm:$0xf]  ;;  %v6955_v14 = vrot.slane %v6953_v33, 5 }
 0x28d   : > { %4579 = vst.msk [vmem:[#allocation2 + $0x8] sm:$0xf] %vm856_vm7, %v4484_v53  ;;  %v10830_v53 = vrot.slane %v13857_v23, 9  ;;  %v13877_v35 = vrot.slane %v5941_v52, 4  ;;  %v5921_v0 = vshrl.u32 %v10704_v30, 16  ;;  %v5924_v38 = vshll.u32 %v10704_v30, 16 }
 0x28e   : > { %8386 = vmatmul.bf16.gmra.mxu1 %v11011_v4  ;;  %v4500_v15 = vpop.permute.xlu2 %4499  ;;  %v6937_v4 = vrot.slane %v6935_v63, 5  ;;  %v11027_v63 = vor.u32 %v11430_v41, %v11024_v34  ;;  %v5949_v52 = vshrl.u32 %v10708_v6, 16  ;;  %3954 = vst.msk [vmem:[#allocation2 + $0xf8] sm:$0xf] %vm212_vm5, %v10427_v45  ;;  %v10709_v8 = vld [vmem:[%s11564_s18 + $0x3c] sm:$0x1] }
 0x28f   : > { %4587 = vst.msk [vmem:[#allocation2 + $0x88] sm:$0xf] %vm856_vm7, %v4500_v15  ;;  %v6980_v15 = vshrl.u32 %v13882_v60, 16  ;;  %v5923_v13 = vrot.slane %v5921_v0, 4  ;;  %v6965_v41 = vshll.u32 %v13898_v48, 16  ;;  %v13929_v20 = vrot.slane %v6983_v39, 6 }
 0x290   : > { %v10615_v60 = vld [vmem:[%s11564_s18 + $0x3c] sm:$0x3]  ;;  %v10432_v24 = vld [vmem:[%s11564_s18 + $0xe0] sm:$0xf]  ;;  %v5958_v51 = vshll.u32 %v10709_v8, 16 }
 0x291   : > { %6342 = vrot.lane.b32.xlu1 %v5919_v59, %s11527_s19  ;;  %v6940_v59 = vrot.slane %v6938_v29, 6  ;;  %v5130_v29 = vsel %vm12136_vm10, %v5121_v19, %v5129_v18  ;;  %v10705_v19 = vld [vmem:[%s11564_s18 + $0x2c] sm:$0x1]  ;;  %3959 = vst.msk [vmem:[#allocation2 + $0x148] sm:$0xf] %vm212_vm5, %v10432_v24  ;;  %v5162_v33 = vshll.u32 %v10615_v60, 16 }
 0x292   : > { %6340 = vrot.lane.b32.xlu0 %v5905_v37, %s11527_s19  ;;  %v6599_v37 = vsel %vm11738_vm6, %v10828_v62, %v6598_v32  ;;  %v5952_v62 = vshll.u32 %v10708_v6, 16  ;;  %v5951_v32 = vrot.slane %v5949_v52, 4  ;;  %v10430_v39 = vld [vmem:[%s11564_s18 + $0xd0] sm:$0xf]  ;;  %v6967_v45 = vrot.slane %v6965_v41, 6 }
 0x293   : > { %v4492_v43 = vpop.permute.xlu1 %4491  ;;  %v6941_v26 = vor.u32 %v6940_v59, %v6937_v4  ;;  %v6962_v4 = vshrl.u32 %v13898_v48, 16  ;;  %v5926_v59 = vrot.slane %v5924_v38, 5  ;;  %3957 = vst.msk [vmem:[#allocation2 + $0x128] sm:$0xf] %vm212_vm5, %v10430_v39  ;;  %v13953_v0 = vld [vmem:[%s11564_s18 + $0x34] sm:$0x1] }
 0x294   : > { %4583 = vst.msk [vmem:[#allocation2 + $0x48] sm:$0xf] %vm856_vm7, %v4492_v43  ;;  %v4490_v31 = vpop.permute.xlu0 %4489  ;;  %5637 = vrot.lane.b32.xlu2 %v5094_v21, %s11529_s21  ;;  %v13906_v21 = vrot.slane %v6971_v3, 5  ;;  %v6976_v43 = vrot.slane %v6974_v10, 6  ;;  %v5954_v17 = vrot.slane %v5952_v62, 5  ;;  %v13927_v3 = vrot.slane %v6980_v15, 5 }
 0x295   : > { %4582 = vst.msk [vmem:[#allocation2 + $0x38] sm:$0xf] %vm856_vm7, %v4490_v31  ;;  %v6942_v36 = vrot.slane %v6941_v26, 4  ;;  %v6950_v31 = vor.u32 %v6949_v1, %v6946_v9  ;;  %v5927_v34 = vor.u32 %v5926_v59, %v5923_v13  ;;  %v10431_v26 = vld [vmem:[%s11564_s18 + $0xd8] sm:$0xf]  ;;  %v5159_v15 = vshrl.u32 %v10615_v60, 16 }
 0x296   : > { %v4506_v50 = vpop.permute.xlu2 %4505  ;;  %v6977_v9 = vor.u32 %v6976_v43, %v13906_v21  ;;  %3958 = vst.msk [vmem:[#allocation2 + $0x138] sm:$0xf] %vm212_vm5, %v10431_v26  ;;  %v13950_v21 = vld [vmem:[%s11564_s18 + $0x30] sm:$0xe]  ;;  %v11434_v6 = vld [vmem:[#allocation2 + $0xe4] sm:$0xf]  ;;  %v6986_v62 = vor.u32 %v13929_v20, %v13927_v3 }
 0x297   : > { %4590 = vst.msk [vmem:[#allocation2 + $0xb8] sm:$0xf] %vm856_vm7, %v4506_v50  ;;  %v5930_v50 = vshll.u32 %v10705_v19, 16  ;;  %v6951_v18 = vsel %vm12136_vm10, %v6942_v36, %v6950_v31  ;;  %v5928_v30 = vrot.slane %v5927_v34, 4  ;;  %v11040_v47 = vld [vmem:[#allocation2 + $0xf0] sm:$0xf0] }
 0x298   : > { %v6978_v36 = vrot.slane %v6977_v9, 4  ;;  %v13962_v52 = vrot.slane %v5162_v33, 6  ;;  %v6610_v31 = vrot.slane %v13953_v0, 5  ;;  %v10435_v19 = vld [vmem:[%s11564_s18 + $0xf8] sm:$0xf] }
 0x299   : > { %7492 = vrot.lane.b32.xlu1 %v6933_v54, %s11529_s21  ;;  %v6958_v54 = vrot.slane %v6956_v22, 6  ;;  %v6964_v22 = vrot.slane %v6962_v4, 5  ;;  %v10434_v13 = vld [vmem:[%s11564_s18 + $0xf0] sm:$0xf]  ;;  %3962 = vst.msk [vmem:[#allocation2 + $0x178] sm:$0xf] %vm212_vm5, %v10435_v19 }
 0x29a   : > { %6726 = vrot.lane.b32.xlu0 %v6603_v58, %s11528_s20  ;;  %v10614_v58 = vld [vmem:[%s11564_s18 + $0x38] sm:$0xe]  ;;  %v10612_v4 = vld [vmem:[%s11564_s18 + $0x30] sm:$0xe]  ;;  %3961 = vst.msk [vmem:[#allocation2 + $0x168] sm:$0xf] %vm212_vm5, %v10434_v13  ;;  %v6987_v20 = vsel %vm12136_vm10, %v6978_v36, %v6986_v62 }
 0x29b   : > { %v4498_v42 = vpop.permute.xlu1 %4497  ;;  %v6959_v10 = vor.u32 %v6958_v54, %v6955_v14  ;;  %v5150_v5 = vshrl.u32 %v10614_v58, 16  ;;  %v10433_v54 = vld [vmem:[%s11564_s18 + $0xe8] sm:$0xf]  ;;  %v5135_v41 = vshll.u32 %v10612_v4, 16  ;;  %v13984_v60 = vld [vmem:[%s11564_s18 + $0x44] sm:$0x1] }
 0x29c   : > { %4586 = vst.msk [vmem:[#allocation2 + $0x78] sm:$0xf] %vm856_vm7, %v4498_v42  ;;  %v4496_v44 = vpop.permute.xlu0 %4495  ;;  %6724 = vrot.lane.b32.xlu2 %v6599_v37, %s11528_s20  ;;  %v5153_v37 = vshll.u32 %v10614_v58, 16  ;;  %v5955_v42 = vor.u32 %v5954_v17, %v5951_v32  ;;  %v13978_v32 = vld [vmem:[%s11564_s18 + $0x40] sm:$0xe]  ;;  %v5132_v58 = vshrl.u32 %v10612_v4, 16 }
 0x29d   : > { %4585 = vst.msk [vmem:[#allocation2 + $0x68] sm:$0xf] %vm856_vm7, %v4496_v44  ;;  %v5932_v44 = vrot.slane %v5930_v50, 5  ;;  %v6960_v23 = vrot.slane %v6959_v10, 4  ;;  %v5152_v38 = vrot.slane %v5150_v5, 5  ;;  %v11043_v50 = vor.u32 %v11434_v6, %v11040_v47 }
 0x29e   : > { %8391 = vmatmul.bf16.gmra.mxu1 %v11027_v63  ;;  %v4512_v46 = vpop.permute.xlu2 %4511  ;;  %v6607_v63 = vsel %vm11738_vm6, %v10830_v53, %v6606_v7  ;;  %v5155_v53 = vrot.slane %v5153_v37, 6  ;;  %v13956_v7 = vrot.slane %v5955_v42, 4  ;;  %v10613_v17 = vld [vmem:[%s11564_s18 + $0x34] sm:$0x3]  ;;  %v10616_v24 = vld [vmem:[%s11564_s18 + $0x40] sm:$0xe] }
 0x29f   : > { %4593 = vst.msk [vmem:[#allocation2 + $0xe8] sm:$0xf] %vm856_vm7, %v4512_v46  ;;  %v6968_v46 = vor.u32 %v6967_v45, %v6964_v22  ;;  %v5933_v14 = vsel %vm11577_vm2, %v5928_v30, %v5932_v44  ;;  %v5134_v9 = vrot.slane %v5132_v58, 5  ;;  %v5137_v3 = vrot.slane %v5135_v41, 6  ;;  %v10617_v42 = vld [vmem:[%s11564_s18 + $0x44] sm:$0x3] }
 0x2a0   : > { %v5156_v8 = vor.u32 %v5155_v53, %v5152_v38  ;;  %3960 = vst.msk [vmem:[#allocation2 + $0x158] sm:$0xf] %vm212_vm5, %v10433_v54  ;;  %v5141_v10 = vshrl.u32 %v10613_v17, 16  ;;  %v5171_v33 = vshll.u32 %v10616_v24, 16  ;;  %v10833_v39 = vrot.slane %v13978_v32, 9 }
 0x2a1   : > { %5641 = vrot.lane.b32.xlu1 %v5130_v29, %s11529_s21  ;;  %v5947_v29 = vsel %vm11577_vm2, %v13877_v35, %v13879_v61  ;;  %v13958_v35 = vrot.slane %v5958_v51, 5  ;;  %v13960_v61 = vrot.slane %v5159_v15, 5  ;;  %v6969_v26 = vsel %vm12136_vm10, %v6960_v23, %v6968_v46  ;;  %v10870_v45 = vld [vmem:[%s11564_s18 + $0x40] sm:$0xe]  ;;  %v10438_v0 = vld [vmem:[%s11564_s18 + $0x128] sm:$0xf] }
 0x2a2   : > { %5639 = vrot.lane.b32.xlu0 %v5112_v55, %s11529_s21  ;;  %v10831_v55 = vrot.slane %v13950_v21, 9  ;;  %v5144_v51 = vshll.u32 %v10613_v17, 16  ;;  %v5157_v5 = vrot.slane %v5156_v8, 4  ;;  %v5168_v15 = vshrl.u32 %v10616_v24, 16  ;;  %v10871_v21 = vld [vmem:[%s11564_s18 + $0x44] sm:$0x3] }
 0x2a3   : > { %v4504_v1 = vpop.permute.xlu1 %4503  ;;  %v6618_v22 = vrot.slane %v13984_v60, 5  ;;  %v5165_v30 = vor.u32 %v13962_v52, %v13960_v61  ;;  %v5143_v6 = vrot.slane %v5141_v10, 5  ;;  %v5177_v36 = vshrl.u32 %v10617_v42, 16  ;;  %3965 = vst.msk [vmem:[#allocation2 + $0x1a8] sm:$0xf] %vm212_vm5, %v10438_v0 }
 0x2a4   : > { %4589 = vst.msk [vmem:[#allocation2 + $0xa8] sm:$0xf] %vm856_vm7, %v4504_v1  ;;  %v4502_v48 = vpop.permute.xlu0 %4501  ;;  %7494 = vrot.lane.b32.xlu2 %v6951_v18, %s11529_s21  ;;  %v13990_v18 = vld [vmem:[%s11564_s18 + $0x38] sm:$0xe]  ;;  %v13997_v1 = vld [vmem:[%s11564_s18 + $0x3c] sm:$0x1]  ;;  %v6611_v44 = vsel %vm11738_vm6, %v10831_v55, %v6610_v31  ;;  %v5961_v54 = vsel %vm11577_vm2, %v13956_v7, %v13958_v35 }
 0x2a5   : > { %4588 = vst.msk [vmem:[#allocation2 + $0x98] sm:$0xf] %vm856_vm7, %v4502_v48  ;;  %v5138_v48 = vor.u32 %v5137_v3, %v5134_v9  ;;  %v5146_v47 = vrot.slane %v5144_v51, 6  ;;  %v5180_v23 = vshll.u32 %v10617_v42, 16  ;;  %v14021_v61 = vrot.slane %v5168_v15, 5 }
 0x2a6   : > { %v4518_v43 = vpop.permute.xlu2 %4517  ;;  %v14023_v52 = vrot.slane %v5171_v33, 6  ;;  %v7007_v55 = vshrl.u32 %v10870_v45, 16  ;;  %v10437_v31 = vld [vmem:[%s11564_s18 + $0x120] sm:$0xf]  ;;  %v11056_v13 = vld [vmem:[#allocation2 + $0x110] sm:$0xf0]  ;;  %v5166_v8 = vsel %vm12136_vm10, %v5157_v5, %v5165_v30 }
 0x2a7   : > { %4596 = vst.msk [vmem:[#allocation2 + $0x118] sm:$0xf] %vm856_vm7, %v4518_v43  ;;  %v14019_v43 = vld [vmem:[%s16197_s2] ss:$0 sm:$0xff]  ;;  %v5139_v53 = vrot.slane %v5138_v48, 4  ;;  %v7010_v62 = vshll.u32 %v10870_v45, 16  ;;  %v5147_v58 = vor.u32 %v5146_v47, %v5143_v6 }
 0x2a8   : > { %v7016_v46 = vshrl.u32 %v10871_v21, 16  ;;  %v10710_v4 = vld [vmem:[%s11564_s18 + $0x40] sm:$0xf]  ;;  %v11438_v17 = vld [vmem:[#allocation2 + $0x104] sm:$0xf]  ;;  %v14040_v9 = vrot.slane %v5177_v36, 5  ;;  %v8274_v5 = vadd.f32 %v14019_v43, %v13295_v12 }
 0x2a9   : > { %6728 = vrot.lane.b32.xlu1 %v6607_v63, %s11528_s20  ;;  %v10832_v63 = vrot.slane %v13990_v18, 9  ;;  %3964 = vst.msk [vmem:[#allocation2 + $0x198] sm:$0xf] %vm212_vm5, %v10437_v31  ;;  %v5963_v41 = vshrl.u32 %v10710_v4, 16  ;;  %v14042_v7 = vrot.slane %v5180_v23, 6  ;;  %v7019_v35 = vshll.u32 %v10871_v21, 16 }
 0x2aa   : > { %6346 = vrot.lane.b32.xlu0 %v5947_v29, %s11527_s19  ;;  %v6614_v29 = vrot.slane %v13997_v1, 5  ;;  %v7009_v48 = vrot.slane %v7007_v55, 5  ;;  %v7012_v42 = vrot.slane %v7010_v62, 6  ;;  %v10715_v15 = vld [vmem:[%s11564_s18 + $0x54] sm:$0x1]  ;;  %v5148_v45 = vsel %vm12136_vm10, %v5139_v53, %v5147_v58 }
 0x2ab   : > { %v4510_v59 = vpop.permute.xlu1 %4509  ;;  %v10712_v33 = vld [vmem:[%s11564_s18 + $0x48] sm:$0xf]  ;;  %v14054_v30 = vrot.slane %v7016_v46, 5  ;;  %v10713_v21 = vld [vmem:[%s11564_s18 + $0x4c] sm:$0x1]  ;;  %v14058_v36 = vrot.slane %v7019_v35, 6 }
 0x2ac   : > { %4592 = vst.msk [vmem:[#allocation2 + $0xd8] sm:$0xf] %vm856_vm7, %v4510_v59  ;;  %v4508_v34 = vpop.permute.xlu0 %4507  ;;  %6344 = vrot.lane.b32.xlu2 %v5933_v14, %s11527_s19  ;;  %v10436_v14 = vld [vmem:[%s11564_s18 + $0x118] sm:$0xf]  ;;  %v10711_v59 = vld [vmem:[%s11564_s18 + $0x44] sm:$0x1]  ;;  %v6615_v58 = vsel %vm11738_vm6, %v10832_v63, %v6614_v29 }
 0x2ad   : > { %4591 = vst.msk [vmem:[#allocation2 + $0xc8] sm:$0xf] %vm856_vm7, %v4508_v34  ;;  %v5966_v34 = vshll.u32 %v10710_v4, 16  ;;  %v5972_v3 = vshll.u32 %v10711_v59, 16  ;;  %v5977_v0 = vshrl.u32 %v10712_v33, 16  ;;  %v5980_v55 = vshll.u32 %v10712_v33, 16 }
 0x2ae   : > { %8396 = vmatmul.bf16.gmra.mxu1 %v11043_v50  ;;  %v4524_v37 = vpop.permute.xlu2 %4523  ;;  %v10714_v50 = vld [vmem:[%s11564_s18 + $0x50] sm:$0xf]  ;;  %3963 = vst.msk [vmem:[#allocation2 + $0x188] sm:$0xf] %vm212_vm5, %v10436_v14  ;;  %v10441_v6 = vld [vmem:[%s11564_s18 + $0x140] sm:$0xf]  ;;  %v8276_v14 = vadd.f32 %v14019_v43, %v13329_v16  ;;  %v7022_v18 = vor.u32 %v14058_v36, %v14054_v30 }
 0x2af   : > { %4599 = vst.msk [vmem:[#allocation2 + $0x148] sm:$0xf] %vm856_vm7, %v4524_v37  ;;  %v5991_v10 = vshrl.u32 %v10714_v50, 16  ;;  %v5994_v51 = vshll.u32 %v10714_v50, 16  ;;  %v11059_v37 = vor.u32 %v11438_v17, %v11056_v13  ;;  %v5974_v13 = vrot.slane %v5972_v3, 5 }
 0x2b0   : > { %3968 = vst.msk [vmem:[#allocation2 + $0x1d8] sm:$0xf] %vm212_vm5, %v10441_v6  ;;  %v6000_v62 = vshll.u32 %v10715_v15, 16  ;;  %v10440_v46 = vld [vmem:[%s11564_s18 + $0x138] sm:$0xf]  ;;  %v5982_v4 = vrot.slane %v5980_v55, 5  ;;  %v5183_v50 = vor.u32 %v14042_v7, %v14040_v9 }
 0x2b1   : > { %7498 = vrot.lane.b32.xlu1 %v6987_v20, %s11529_s21  ;;  %v5965_v20 = vrot.slane %v5963_v41, 4  ;;  %v5993_v23 = vrot.slane %v5991_v10, 4  ;;  %v10439_v59 = vld [vmem:[%s11564_s18 + $0x130] sm:$0xf]  ;;  %v5986_v17 = vshll.u32 %v10713_v21, 16 }
 0x2b2   : > { %7496 = vrot.lane.b32.xlu0 %v6969_v26, %s11529_s21  ;;  %v5968_v26 = vrot.slane %v5966_v34, 5  ;;  %3967 = vst.msk [vmem:[#allocation2 + $0x1c8] sm:$0xf] %vm212_vm5, %v10440_v46  ;;  %v10868_v16 = vld [vmem:[%s11564_s18 + $0x38] sm:$0xe] }
 0x2b3   : > { %v4516_v38 = vpop.permute.xlu1 %4515  ;;  %3966 = vst.msk [vmem:[#allocation2 + $0x1b8] sm:$0xf] %vm212_vm5, %v10439_v59  ;;  %v10869_v32 = vld [vmem:[%s11564_s18 + $0x3c] sm:$0x3]  ;;  %v6989_v34 = vshrl.u32 %v10868_v16, 16 }
 0x2b4   : > { %4595 = vst.msk [vmem:[#allocation2 + $0x108] sm:$0xf] %vm856_vm7, %v4516_v38  ;;  %v4514_v19 = vpop.permute.xlu0 %4513  ;;  %6730 = vrot.lane.b32.xlu2 %v6611_v44, %s11528_s20  ;;  %v5969_v44 = vor.u32 %v5968_v26, %v5965_v20  ;;  %v5996_v38 = vrot.slane %v5994_v51, 5  ;;  %v6998_v1 = vshrl.u32 %v10869_v32, 16  ;;  %v10872_v26 = vld [vmem:[%s11564_s18 + $0x48] sm:$0xe] }
 0x2b5   : > { %4594 = vst.msk [vmem:[#allocation2 + $0xf8] sm:$0xf] %vm856_vm7, %v4514_v19  ;;  %v5174_v19 = vor.u32 %v14023_v52, %v14021_v61  ;;  %v6619_v61 = vsel %vm11738_vm6, %v10833_v39, %v6618_v22  ;;  %v7013_v52 = vor.u32 %v7012_v42, %v7009_v48  ;;  %v6992_v39 = vshll.u32 %v10868_v16, 16  ;;  %v10443_v15 = vld [vmem:[%s11564_s18 + $0x150] sm:$0xf] }
 0x2b6   : > { %v4530_v24 = vpop.permute.xlu2 %4529  ;;  %v5997_v60 = vor.u32 %v5996_v38, %v5993_v23  ;;  %v6991_v29 = vrot.slane %v6989_v34, 5  ;;  %v7000_v7 = vrot.slane %v6998_v1, 5  ;;  %v14102_v48 = vrot.slane %v5986_v17, 5  ;;  %v10873_v30 = vld [vmem:[%s11564_s18 + $0x4c] sm:$0x3] }
 0x2b7   : > { %4602 = vst.msk [vmem:[#allocation2 + $0x178] sm:$0xf] %vm856_vm7, %v4530_v24  ;;  %v5175_v22 = vrot.slane %v5174_v19, 4  ;;  %v7001_v24 = vshll.u32 %v10869_v32, 16  ;;  %v6994_v35 = vrot.slane %v6992_v39, 6  ;;  %v7014_v3 = vrot.slane %v7013_v52, 4 }
 0x2b8   : > { %v7025_v6 = vshrl.u32 %v10872_v26, 16  ;;  %v11442_v36 = vld [vmem:[#allocation2 + $0x124] sm:$0xf]  ;;  %v11072_v23 = vld [vmem:[#allocation2 + $0x130] sm:$0xf0]  ;;  %v8279_v19 = vadd.f32 %v14019_v43, %v13367_v28  ;;  %v7037_v17 = vshll.u32 %v10873_v30, 16 }
 0x2b9   : > { %6348 = vrot.lane.b32.xlu1 %v5961_v54, %s11527_s19  ;;  %v5979_v54 = vrot.slane %v5977_v0, 4  ;;  %v7003_v20 = vrot.slane %v7001_v24, 6  ;;  %v6995_v42 = vor.u32 %v6994_v35, %v6991_v29  ;;  %3970 = vst.msk [vmem:[#allocation2 + $0x1f8] sm:$0xf] %vm212_vm5, %v10443_v15  ;;  %v10618_v55 = vld [vmem:[%s11564_s18 + $0x48] sm:$0xe]  ;;  %v11075_v1 = vor.u32 %v11442_v36, %v11072_v23 }
 0x2ba   : > { %5645 = vrot.lane.b32.xlu0 %v5166_v8, %s11529_s21  ;;  %v5970_v8 = vrot.slane %v5969_v44, 4  ;;  %v10442_v44 = vld [vmem:[%s11564_s18 + $0x148] sm:$0xf]  ;;  %v5186_v46 = vshrl.u32 %v10618_v55, 16  ;;  %v5189_v59 = vshll.u32 %v10618_v55, 16  ;;  %v7027_v28 = vrot.slane %v7025_v6, 5 }
 0x2bb   : > { %v4522_v12 = vpop.permute.xlu1 %4521  ;;  %v8362_v47 = vpop.f32.mrf.mxu1  ;;  %v5983_v63 = vor.u32 %v5982_v4, %v5979_v54  ;;  %v6996_v0 = vrot.slane %v6995_v42, 4  ;;  %v7004_v38 = vor.u32 %v7003_v20, %v7000_v7  ;;  %3969 = vst.msk [vmem:[#allocation2 + $0x1e8] sm:$0xf] %vm212_vm5, %v10442_v44  ;;  %v11493_v54 = vld [vmem:[%s16196_s1 + $0xb8] sm:$0xff]  ;;  %v7034_v4 = vshrl.u32 %v10873_v30, 16  ;;  %v11492_v39 = vld [vmem:[%s16196_s1 + $0xb0] sm:$0xff] }
 0x2bc   : > { %4598 = vst.msk [vmem:[#allocation2 + $0x138] sm:$0xf] %vm856_vm7, %v4522_v12  ;;  %v14062_v53 = vadd.f32 %v8362_v47, %v8274_v5  ;;  %v4520_v31 = vpop.permute.xlu0 %4519  ;;  %5643 = vrot.lane.b32.xlu2 %v5148_v45, %s11529_s21  ;;  %v5975_v9 = vsel %vm11577_vm2, %v5970_v8, %v5974_v13  ;;  %v14098_v5 = vrot.slane %v5997_v60, 4  ;;  %v7028_v12 = vshll.u32 %v10872_v26, 16  ;;  %8442 = vmatpush.bf16.msra.mxu2 %v11493_v54  ;;  %v10620_v34 = vld [vmem:[%s11564_s18 + $0x68] sm:$0xe] }
 0x2bd   : > { %4597 = vst.msk [vmem:[#allocation2 + $0x128] sm:$0xf] %vm856_vm7, %v4520_v31  ;;  %v14112_v21 = vrot.slane %v5983_v63, 4  ;;  %v5184_v47 = vsel %vm12136_vm10, %v5175_v22, %v5183_v50  ;;  %v10619_v31 = vld [vmem:[%s11564_s18 + $0x4c] sm:$0x3]  ;;  %v7023_v13 = vsel %vm12136_vm10, %v7014_v3, %v7022_v18  ;;  %v5188_v16 = vrot.slane %v5186_v46, 5 }
 0x2be   : > { %8401 = vmatmul.bf16.gmra.mxu1 %v11059_v37  ;;  %v4536_v41 = vpop.permute.xlu2 %4535  ;;  %v14100_v37 = vrot.slane %v6000_v62, 5  ;;  %v5198_v52 = vshll.u32 %v10619_v31, 16  ;;  %v7030_v8 = vrot.slane %v7028_v12, 6  ;;  %v14138_v24 = vld [vmem:[%s11564_s18 + $0x50] sm:$0xe]  ;;  %v5204_v26 = vshrl.u32 %v10620_v34, 16 }
 0x2bf   : > { %4605 = vst.msk [vmem:[#allocation2 + $0x1a8] sm:$0xf] %vm856_vm7, %v4536_v41  ;;  %v5191_v41 = vrot.slane %v5189_v59, 6  ;;  %v10623_v18 = vld [vmem:[%s11564_s18 + $0x74] sm:$0x3]  ;;  %v7039_v42 = vrot.slane %v7037_v17, 6 }
 0x2c0   : > { %v5200_v32 = vrot.slane %v5198_v52, 6  ;;  %v14145_v7 = vld [vmem:[%s11564_s18 + $0x54] sm:$0x1]  ;;  %v10621_v15 = vld [vmem:[%s11564_s18 + $0x6c] sm:$0x3]  ;;  %8443 = vmatpush.bf16.msra.mxu2 %v11492_v39  ;;  %v7031_v30 = vor.u32 %v7030_v8, %v7027_v28  ;;  %v5231_v6 = vshrl.u32 %v10623_v18, 16 }
 0x2c1   : > { %6734 = vrot.lane.b32.xlu1 %v6619_v61, %s11528_s20  ;;  %v5195_v61 = vshrl.u32 %v10619_v31, 16  ;;  %v5192_v20 = vor.u32 %v5191_v41, %v5188_v16  ;;  %v10835_v12 = vrot.slane %v14138_v24, 9  ;;  %v10718_v36 = vld [vmem:[%s11564_s18 + $0x78] sm:$0xf]  ;;  %v11491_v23 = vld [vmem:[%s16196_s1 + $0xa8] sm:$0xff]  ;;  %v5234_v55 = vshll.u32 %v10623_v18, 16 }
 0x2c2   : > { %6732 = vrot.lane.b32.xlu0 %v6615_v58, %s11528_s20  ;;  %v7005_v58 = vsel %vm12136_vm10, %v6996_v0, %v7004_v38  ;;  %v6626_v38 = vrot.slane %v14145_v7, 5  ;;  %v5206_v31 = vrot.slane %v5204_v26, 5  ;;  %v7032_v46 = vrot.slane %v7031_v30, 4  ;;  %v14174_v59 = vld [vmem:[%s11564_s18 + $0x70] sm:$0xe]  ;;  %v11490_v24 = vld [vmem:[%s16196_s1 + $0xa0] sm:$0xff] }
 0x2c3   : > { %v4528_v10 = vpop.permute.xlu1 %4527  ;;  %v8364_v51 = vpop.f32.mrf.mxu1  ;;  %v5197_v60 = vrot.slane %v5195_v61, 5  ;;  %v5193_v44 = vrot.slane %v5192_v20, 4  ;;  %v14177_v8 = vld [vmem:[%s11564_s18 + $0x74] sm:$0x1]  ;;  %v10776_v17 = vld [vmem:[%s11564_s18 + $0x48] sm:$0xe] }
 0x2c4   : > { %4601 = vst.msk [vmem:[#allocation2 + $0x168] sm:$0xf] %vm856_vm7, %v4528_v10  ;;  %v14106_v33 = vadd.f32 %v8364_v51, %v8276_v14  ;;  %v4526_v45 = vpop.permute.xlu0 %4525  ;;  %6350 = vrot.lane.b32.xlu2 %v5975_v9, %s11527_s19  ;;  %v10622_v14 = vld [vmem:[%s11564_s18 + $0x70] sm:$0xe]  ;;  %v7036_v9 = vrot.slane %v7034_v4, 5  ;;  %v8281_v10 = vadd.f32 %v14019_v43, %v13406_v57  ;;  %v6003_v51 = vsel %vm11577_vm2, %v14098_v5, %v14100_v37 }
 0x2c5   : > { %4600 = vst.msk [vmem:[#allocation2 + $0x158] sm:$0xf] %vm856_vm7, %v4526_v45  ;;  %v5222_v63 = vshrl.u32 %v10622_v14, 16  ;;  %v5225_v29 = vshll.u32 %v10622_v14, 16  ;;  %v5207_v45 = vshll.u32 %v10620_v34, 16  ;;  %v5201_v0 = vor.u32 %v5200_v32, %v5197_v60  ;;  %8444 = vmatpush.bf16.msra.mxu2 %v11491_v23 }
 0x2c6   : > { %v4542_v62 = vpop.permute.xlu2 %4541  ;;  %v5989_v57 = vsel %vm11577_vm2, %v14112_v21, %v14102_v48  ;;  %v5216_v21 = vshll.u32 %v10621_v15, 16  ;;  %v7040_v14 = vor.u32 %v7039_v42, %v7036_v9  ;;  %v14171_v4 = vrot.slane %v5231_v6, 5  ;;  %v10777_v16 = vld [vmem:[%s11564_s18 + $0x4c] sm:$0x1]  ;;  %v14187_v34 = vld [vmem:[%s11564_s18 + $0x7c] sm:$0x1] }
 0x2c7   : > { %4608 = vst.msk [vmem:[#allocation2 + $0x1d8] sm:$0xf] %vm856_vm7, %v4542_v62  ;;  %v5224_v37 = vrot.slane %v5222_v63, 5  ;;  %v5209_v48 = vrot.slane %v5207_v45, 6  ;;  %v6022_v62 = vshll.u32 %v10718_v36, 16  ;;  %v5202_v54 = vsel %vm12136_vm10, %v5193_v44, %v5201_v0 }
 0x2c8   : > { %v5236_v60 = vrot.slane %v5234_v55, 6  ;;  %v7041_v18 = vsel %vm12136_vm10, %v7032_v46, %v7040_v14  ;;  %v10834_v63 = vrot.slane %v10776_v17, 9  ;;  %v6627_v9 = vsel %vm11738_vm6, %v10835_v12, %v6626_v38  ;;  %v11446_v7 = vld [vmem:[#allocation2 + $0x144] sm:$0xf]  ;;  %v11088_v20 = vld [vmem:[#allocation2 + $0x150] sm:$0xf0] }
 0x2c9   : > { %5647 = vrot.lane.b32.xlu1 %v5184_v47, %s11529_s21  ;;  %v5227_v47 = vrot.slane %v5225_v29, 6  ;;  %v5210_v39 = vor.u32 %v5209_v48, %v5206_v31  ;;  %v6622_v29 = vrot.slane %v10777_v16, 5  ;;  %v10874_v42 = vld [vmem:[%s11564_s18 + $0x50] sm:$0xe]  ;;  %8445 = vmatpush.bf16.msra.mxu2 %v11490_v24  ;;  %v6630_v30 = vrot.slane %v14177_v8, 5 }
 0x2ca   : > { %7502 = vrot.lane.b32.xlu0 %v7023_v13, %s11529_s21  ;;  %v6019_v13 = vshrl.u32 %v10718_v36, 16  ;;  %v5237_v45 = vor.u32 %v5236_v60, %v14171_v4  ;;  %v6028_v44 = vshll.u32 %v14187_v34, 16  ;;  %v10879_v0 = vld [vmem:[%s11564_s18 + $0x7c] sm:$0x3]  ;;  %v10876_v38 = vld [vmem:[%s11564_s18 + $0x70] sm:$0xe] }
 0x2cb   : > { %v4534_v22 = vpop.permute.xlu1 %4533  ;;  %v8367_v50 = vpop.f32.mrf.mxu1  ;;  %v5228_v28 = vor.u32 %v5227_v47, %v5224_v37  ;;  %v5211_v6 = vrot.slane %v5210_v39, 4  ;;  %v11489_v37 = vld [vmem:[%s16196_s1 + $0x98] sm:$0xff]  ;;  %v6623_v36 = vsel %vm11738_vm6, %v10834_v63, %v6622_v29  ;;  %v7043_v55 = vshrl.u32 %v10874_v42, 16  ;;  %v11488_v14 = vld [vmem:[%s16196_s1 + $0x90] sm:$0xff] }
 0x2cc   : > { %4604 = vst.msk [vmem:[#allocation2 + $0x198] sm:$0xf] %vm856_vm7, %v4534_v22  ;;  %v14142_v35 = vadd.f32 %v8367_v50, %v8279_v19  ;;  %v4532_v3 = vpop.permute.xlu0 %4531  ;;  %7500 = vrot.lane.b32.xlu2 %v7005_v58, %s11529_s21  ;;  %v5213_v19 = vshrl.u32 %v10621_v15, 16  ;;  %v14191_v22 = vrot.slane %v5216_v21, 6  ;;  %v14193_v50 = vrot.slane %v6019_v13, 4  ;;  %v11501_v47 = vld [vmem:[%s16196_s1 + $0xf8] sm:$0xff] }
 0x2cd   : > { %4603 = vst.msk [vmem:[#allocation2 + $0x188] sm:$0xf] %vm856_vm7, %v4532_v3  ;;  %v10878_v3 = vld [vmem:[%s11564_s18 + $0x78] sm:$0xe]  ;;  %v5229_v26 = vrot.slane %v5228_v28, 4  ;;  %v8284_v15 = vadd.f32 %v14019_v43, %v13443_v40  ;;  %v7046_v31 = vshll.u32 %v10874_v42, 16  ;;  %8446 = vmatpush.bf16.msra.mxu2 %v11489_v37  ;;  %8531 = vmatpush.bf16.msra.mxu3 %v11501_v47 }
 0x2ce   : > { %8406 = vmatmul.bf16.gmra.mxu1 %v11075_v1  ;;  %v4868_v5 = vpop.permute.xlu2 %4867  ;;  %v14184_v32 = vrot.slane %v5213_v19, 5  ;;  %v14195_v1 = vrot.slane %v6022_v62, 5  ;;  %v7079_v40 = vshrl.u32 %v10878_v3, 16  ;;  %v7082_v23 = vshll.u32 %v10878_v3, 16  ;;  %v11500_v34 = vld [vmem:[%s16196_s1 + $0xf0] sm:$0xff]  ;;  %v11499_v37 = vld [vmem:[%s16196_s1 + $0xe8] sm:$0xff] }
 0x2cf   : > { %4963 = vst.msk [vmem:[#allocation2 + $0x8] sm:$0xf] %vm1244_vm11, %v4868_v5  ;;  %v10875_v5 = vld [vmem:[%s11564_s18 + $0x54] sm:$0x3]  ;;  %v7088_v21 = vshrl.u32 %v10879_v0, 16  ;;  %v7091_v13 = vshll.u32 %v10879_v0, 16  ;;  %v5238_v16 = vsel %vm12136_vm10, %v5229_v26, %v5237_v45 }
 0x2d0   : > { %v6025_v12 = vor.u32 %v14195_v1, %v14193_v50  ;;  %v7052_v62 = vshrl.u32 %v10875_v5, 16  ;;  %v7055_v46 = vshll.u32 %v10875_v5, 16  ;;  %v7045_v28 = vrot.slane %v7043_v55, 5  ;;  %v10626_v42 = vld [vmem:[%s11564_s18 + $0x80] sm:$0xe] }
 0x2d1   : > { %6354 = vrot.lane.b32.xlu1 %v6003_v51, %s11527_s19  ;;  %v10836_v51 = vrot.slane %v14174_v59, 9  ;;  %v7048_v17 = vrot.slane %v7046_v31, 6  ;;  %v7081_v39 = vrot.slane %v7079_v40, 5  ;;  %v7064_v50 = vshll.u32 %v10876_v38, 16  ;;  %8447 = vmatpush.bf16.msra.mxu2 %v11488_v14  ;;  %v10717_v40 = vld [vmem:[%s11564_s18 + $0x74] sm:$0x1] }
 0x2d2   : > { %6352 = vrot.lane.b32.xlu0 %v5989_v57, %s11527_s19  ;;  %v5219_v57 = vor.u32 %v14191_v22, %v14184_v32  ;;  %v7054_v60 = vrot.slane %v7052_v62, 5  ;;  %v7057_v32 = vrot.slane %v7055_v46, 6  ;;  %v7084_v22 = vrot.slane %v7082_v23, 6  ;;  %8532 = vmatpush.bf16.msra.mxu3 %v11500_v34  ;;  %v14276_v23 = vld [vmem:[%s11564_s18 + $0x84] sm:$0x3] }
 0x2d3   : > { %v4540_v61 = vpop.permute.xlu1 %4539  ;;  %v8369_v52 = vpop.f32.mrf.mxu1  ;;  %v7049_v1 = vor.u32 %v7048_v17, %v7045_v28  ;;  %v14250_v63 = vrot.slane %v6028_v44, 5  ;;  %v14264_v45 = vrot.slane %v7091_v13, 6  ;;  %v5261_v55 = vshll.u32 %v10626_v42, 16  ;;  %v10625_v62 = vld [vmem:[%s11564_s18 + $0x7c] sm:$0x3] }
 0x2d4   : > { %4607 = vst.msk [vmem:[#allocation2 + $0x1c8] sm:$0xf] %vm856_vm7, %v4540_v61  ;;  %v14182_v58 = vadd.f32 %v8369_v52, %v8281_v10  ;;  %v4538_v41 = vpop.permute.xlu0 %4537  ;;  %5649 = vrot.lane.b32.xlu2 %v5202_v54, %s11529_s21  ;;  %v11091_v61 = vor.u32 %v11446_v7, %v11088_v20  ;;  %v14237_v52 = vld [vmem:[%s11564_s18 + $0x74] sm:$0x3]  ;;  %v5220_v24 = vsel %vm12136_vm10, %v5211_v6, %v5219_v57  ;;  %v11487_v7 = vld [vmem:[%s16196_s1 + $0x88] sm:$0xff]  ;;  %v7066_v57 = vrot.slane %v7064_v50, 6 }
 0x2d5   : > { %4606 = vst.msk [vmem:[#allocation2 + $0x1b8] sm:$0xf] %vm856_vm7, %v4538_v41  ;;  %v7061_v41 = vshrl.u32 %v10876_v38, 16  ;;  %v7058_v3 = vor.u32 %v7057_v32, %v7054_v60  ;;  %v8286_v20 = vadd.f32 %v14019_v43, %v13475_v27  ;;  %v7070_v26 = vshrl.u32 %v14237_v52, 16  ;;  %v10624_v6 = vld [vmem:[%s11564_s18 + $0x78] sm:$0xe]  ;;  %8448 = vmatpush.bf16.msra.mxu2 %v11487_v7 }
 0x2d6   : > { %v4874_v10 = vpop.permute.xlu2 %4873  ;;  %v7073_v0 = vshll.u32 %v14237_v52, 16  ;;  %v7085_v27 = vor.u32 %v7084_v22, %v7081_v39  ;;  %v5258_v38 = vshrl.u32 %v10626_v42, 16  ;;  %v6631_v13 = vsel %vm11738_vm6, %v10836_v51, %v6630_v30  ;;  %8533 = vmatpush.bf16.msra.mxu3 %v11499_v37  ;;  %v11104_v30 = vld [vmem:[#allocation2 + $0x170] sm:$0xf0]  ;;  %v11498_v39 = vld [vmem:[%s16196_s1 + $0xe0] sm:$0xff] }
 0x2d7   : > { %4966 = vst.msk [vmem:[#allocation2 + $0x38] sm:$0xf] %vm1244_vm11, %v4874_v10  ;;  %v7050_v10 = vrot.slane %v7049_v1, 4  ;;  %v7063_v44 = vrot.slane %v7061_v41, 5  ;;  %v5240_v46 = vshrl.u32 %v10624_v6, 16  ;;  %v6014_v52 = vshll.u32 %v10717_v40, 16 }
 0x2d8   : > { %v7086_v59 = vrot.slane %v7085_v27, 4  ;;  %v7072_v17 = vrot.slane %v7070_v26, 5  ;;  %v7075_v51 = vrot.slane %v7073_v0, 6  ;;  %v5267_v41 = vshrl.u32 %v14276_v23, 16  ;;  %v11450_v22 = vld [vmem:[#allocation2 + $0x164] sm:$0xf] }
 0x2d9   : > { %7504 = vrot.lane.b32.xlu1 %v7041_v18, %s11529_s21  ;;  %v14248_v18 = vrot.slane %v6025_v12, 4  ;;  %v7059_v12 = vsel %vm12136_vm10, %v7050_v10, %v7058_v3  ;;  %v7067_v28 = vor.u32 %v7066_v57, %v7063_v44  ;;  %v5270_v60 = vshll.u32 %v14276_v23, 16  ;;  %v10669_v7 = vld [vmem:[%s11564_s18 + $0x20] sm:$0xf]  ;;  %v10722_v42 = vld [vmem:[%s11564_s18 + $0x88] sm:$0xf] }
 0x2da   : > { %6738 = vrot.lane.b32.xlu0 %v6627_v9, %s11528_s20  ;;  %v10716_v9 = vld [vmem:[%s11564_s18 + $0x70] sm:$0xf]  ;;  %v6016_v34 = vrot.slane %v6014_v52, 5  ;;  %v5260_v50 = vrot.slane %v5258_v38, 5  ;;  %v5263_v1 = vrot.slane %v5261_v55, 6  ;;  %v5252_v3 = vshll.u32 %v10625_v62, 16  ;;  %8534 = vmatpush.bf16.msra.mxu3 %v11498_v39 }
 0x2db   : > { %v4546_v19 = vpop.permute.xlu1 %4545  ;;  %v8372_v48 = vpop.f32.mrf.mxu1  ;;  %v6005_v5 = vshrl.u32 %v10716_v9, 16  ;;  %v6008_v31 = vshll.u32 %v10716_v9, 16  ;;  %v8289_v26 = vadd.f32 %v14019_v43, %v13504_v56  ;;  %v7068_v10 = vrot.slane %v7067_v28, 4  ;;  %5797 = vst.msk [vmem:[#allocation2 + $0x1c] sm:$0xf] %vm212_vm5, %v10669_v7  ;;  %v11496_v52 = vld [vmem:[%s16196_s1 + $0xd0] sm:$0xff] }
 0x2dc   : > { %4610 = vst.msk [vmem:[#allocation2 + $0x1f8] sm:$0xf] %vm856_vm7, %v4546_v19  ;;  %v14234_v54 = vadd.f32 %v8372_v48, %v8284_v15  ;;  %v4544_v4 = vpop.permute.xlu0 %4543  ;;  %6736 = vrot.lane.b32.xlu2 %v6623_v36, %s11528_s20  ;;  %v14262_v15 = vrot.slane %v7088_v21, 5  ;;  %v11486_v19 = vld [vmem:[%s16196_s1 + $0x80] sm:$0xff]  ;;  %v11107_v44 = vor.u32 %v11450_v22, %v11104_v30  ;;  %v7076_v0 = vor.u32 %v7075_v51, %v7072_v17  ;;  %v10782_v27 = vld [vmem:[%s11564_s18 + $0x78] sm:$0xe] }
 0x2dd   : > { %4609 = vst.msk [vmem:[#allocation2 + $0x1e8] sm:$0xf] %vm856_vm7, %v4544_v4  ;;  %v6007_v14 = vrot.slane %v6005_v5, 4  ;;  %v6031_v4 = vsel %vm11577_vm2, %v14248_v18, %v14250_v63  ;;  %v6010_v8 = vrot.slane %v6008_v31, 5  ;;  %8449 = vmatpush.bf16.msra.mxu2 %v11486_v19  ;;  %v5249_v18 = vshrl.u32 %v10625_v62, 16 }
 0x2de   : > { %8411 = vmatmul.bf16.gmra.mxu1 %v11091_v61  ;;  %v4880_v29 = vpop.permute.xlu2 %4879  ;;  %v5243_v61 = vshll.u32 %v10624_v6, 16  ;;  %v7094_v63 = vor.u32 %v14264_v45, %v14262_v15  ;;  %v10783_v57 = vld [vmem:[%s11564_s18 + $0x7c] sm:$0x1]  ;;  %v5264_v5 = vor.u32 %v5263_v1, %v5260_v50  ;;  %v5269_v37 = vrot.slane %v5267_v41, 5  ;;  %v14340_v17 = vld [vmem:[%s11564_s18 + $0x84] sm:$0x1] }
 0x2df   : > { %4969 = vst.msk [vmem:[#allocation2 + $0x68] sm:$0xf] %vm1244_vm11, %v4880_v29  ;;  %v6011_v32 = vor.u32 %v6010_v8, %v6007_v14  ;;  %v5251_v38 = vrot.slane %v5249_v18, 5  ;;  %v5254_v55 = vrot.slane %v5252_v3, 6  ;;  %v6047_v31 = vshrl.u32 %v10722_v42, 16 }
 0x2e0   : > { %v5245_v29 = vrot.slane %v5243_v61, 6  ;;  %v6050_v19 = vshll.u32 %v10722_v42, 16  ;;  %v7077_v62 = vsel %vm12136_vm10, %v7068_v10, %v7076_v0  ;;  %v14331_v14 = vld [vmem:[%s11564_s18 + $0x80] sm:$0xe]  ;;  %v10882_v8 = vld [vmem:[%s11564_s18 + $0x88] sm:$0xe]  ;;  %v8291_v30 = vadd.f32 %v14019_v43, %v13531_v2 }
 0x2e1   : > { %5653 = vrot.lane.b32.xlu1 %v5238_v16, %s11529_s21  ;;  %v6012_v9 = vrot.slane %v6011_v32, 4  ;;  %v5255_v28 = vor.u32 %v5254_v55, %v5251_v38  ;;  %v10723_v51 = vld [vmem:[%s11564_s18 + $0x8c] sm:$0x1]  ;;  %v10880_v32 = vld [vmem:[%s11564_s18 + $0x80] sm:$0xe]  ;;  %v7115_v50 = vshrl.u32 %v10882_v8, 16 }
 0x2e2   : > { %5651 = vrot.lane.b32.xlu0 %v5220_v24, %s11529_s21  ;;  %v5242_v24 = vrot.slane %v5240_v46, 5  ;;  %v6052_v41 = vrot.slane %v6050_v19, 5  ;;  %v10530_v1 = vld [vmem:[%s11564_s18 + $0x80] sm:$0xe]  ;;  %v7118_v3 = vshll.u32 %v10882_v8, 16  ;;  %v6638_v7 = vrot.slane %v14340_v17, 5 }
 0x2e3   : > { %v4872_v47 = vpop.permute.xlu1 %4871  ;;  %v8374_v36 = vpop.f32.mrf.mxu1  ;;  %v6017_v6 = vsel %vm11577_vm2, %v6012_v9, %v6016_v34  ;;  %v11495_v34 = vld [vmem:[%s16196_s1 + $0xc8] sm:$0xff]  ;;  %v7100_v42 = vshll.u32 %v10880_v32, 16  ;;  %v11494_v0 = vld [vmem:[%s16196_s1 + $0xc0] sm:$0xff] }
 0x2e4   : > { %4965 = vst.msk [vmem:[#allocation2 + $0x28] sm:$0xf] %vm1244_vm11, %v4872_v47  ;;  %v14282_v48 = vadd.f32 %v8374_v36, %v8286_v20  ;;  %v4870_v21 = vpop.permute.xlu0 %4869  ;;  %7506 = vrot.lane.b32.xlu2 %v7059_v12, %s11529_s21  ;;  %v11497_v20 = vld [vmem:[%s16196_s1 + $0xd8] sm:$0xff]  ;;  %v5272_v47 = vrot.slane %v5270_v60, 6  ;;  %v7095_v36 = vsel %vm12136_vm10, %v7086_v59, %v7094_v63  ;;  %v5246_v23 = vor.u32 %v5245_v29, %v5242_v24  ;;  %v10531_v24 = vld [vmem:[%s11564_s18 + $0x84] sm:$0x1] }
 0x2e5   : > { %4964 = vst.msk [vmem:[#allocation2 + $0x18] sm:$0xf] %vm1244_vm11, %v4870_v21  ;;  %v10668_v12 = vld [vmem:[%s11564_s18 + $0x18] sm:$0xf]  ;;  %8535 = vmatpush.bf16.msra.mxu3 %v11497_v20  ;;  %v10837_v21 = vrot.slane %v10782_v27, 9  ;;  %v10838_v63 = vrot.slane %v14331_v14, 9 }
 0x2e6   : > { %v4886_v16 = vpop.permute.xlu2 %4885  ;;  %5796 = vst.msk [vmem:[#allocation2 + $0xc] sm:$0xf] %vm212_vm5, %v10668_v12  ;;  %v5273_v61 = vor.u32 %v5272_v47, %v5269_v37  ;;  %v5247_v59 = vrot.slane %v5246_v23, 4  ;;  %v10883_v29 = vld [vmem:[%s11564_s18 + $0x8c] sm:$0x3]  ;;  %v6056_v20 = vshll.u32 %v10723_v51, 16 }
 0x2e7   : > { %4972 = vst.msk [vmem:[#allocation2 + $0x98] sm:$0xf] %vm1244_vm11, %v4886_v16  ;;  %v6049_v16 = vrot.slane %v6047_v31, 4  ;;  %v11120_v27 = vld [vmem:[#allocation2 + $0x190] sm:$0xf0]  ;;  %v7117_v12 = vrot.slane %v7115_v50, 5 }
 0x2e8   : > { %v5256_v9 = vsel %vm12136_vm10, %v5247_v59, %v5255_v28  ;;  %v10881_v37 = vld [vmem:[%s11564_s18 + $0x84] sm:$0x3]  ;;  %v10670_v55 = vld [vmem:[%s11564_s18 + $0x28] sm:$0xf]  ;;  %v6058_v8 = vrot.slane %v6056_v20, 5 }
 0x2e9   : > { %6740 = vrot.lane.b32.xlu1 %v6631_v13, %s11528_s20  ;;  %v6634_v13 = vrot.slane %v10783_v57, 5  ;;  %8536 = vmatpush.bf16.msra.mxu3 %v11496_v52  ;;  %v6053_v10 = vor.u32 %v6052_v41, %v6049_v16  ;;  %v10721_v23 = vld [vmem:[%s11564_s18 + $0x84] sm:$0x1]  ;;  %v10628_v19 = vld [vmem:[%s11564_s18 + $0x88] sm:$0xe]  ;;  %v7106_v52 = vshrl.u32 %v10881_v37, 16  ;;  %v6639_v41 = vsel %vm11738_vm6, %v10838_v63, %v6638_v7 }
 0x2ea   : > { %6358 = vrot.lane.b32.xlu0 %v6031_v4, %s11527_s19  ;;  %v5265_v4 = vrot.slane %v5264_v5, 4  ;;  %v7127_v5 = vshll.u32 %v10883_v29, 16  ;;  %5798 = vst.msk [vmem:[#allocation2 + $0x2c] sm:$0xf] %vm212_vm5, %v10670_v55  ;;  %v6042_v14 = vshll.u32 %v10721_v23, 16  ;;  %v7109_v59 = vshll.u32 %v10881_v37, 16 }
 0x2eb   : > { %v4878_v15 = vpop.permute.xlu1 %4877  ;;  %v8377_v45 = vpop.f32.mrf.mxu1  ;;  %v6635_v60 = vsel %vm11738_vm6, %v10837_v21, %v6634_v13  ;;  %v7102_v13 = vrot.slane %v7100_v42, 6  ;;  %v5276_v51 = vshrl.u32 %v10628_v19, 16  ;;  %v10671_v63 = vld [vmem:[%s11564_s18 + $0x30] sm:$0xf]  ;;  %v10786_v37 = vld [vmem:[%s11564_s18 + $0x88] sm:$0xe] }
 0x2ec   : > { %4968 = vst.msk [vmem:[#allocation2 + $0x58] sm:$0xf] %vm1244_vm11, %v4878_v15  ;;  %v14321_v40 = vadd.f32 %v8377_v45, %v8289_v26  ;;  %v4876_v56 = vpop.permute.xlu0 %4875  ;;  %6356 = vrot.lane.b32.xlu2 %v6017_v6, %s11527_s19  ;;  %v5274_v18 = vsel %vm12136_vm10, %v5265_v4, %v5273_v61  ;;  %v7097_v26 = vshrl.u32 %v10880_v32, 16  ;;  %v10583_v15 = vrot.slane %v10530_v1, 9  ;;  %v11454_v6 = vld [vmem:[#allocation2 + $0x184] sm:$0xf] }
 0x2ed   : > { %4967 = vst.msk [vmem:[#allocation2 + $0x48] sm:$0xf] %vm1244_vm11, %v4876_v56  ;;  %v4785_v45 = vrot.slane %v10531_v24, 5  ;;  %8537 = vmatpush.bf16.msra.mxu3 %v11495_v34  ;;  %v7124_v56 = vshrl.u32 %v10883_v29, 16  ;;  %v6054_v61 = vrot.slane %v6053_v10, 4  ;;  %v11123_v17 = vor.u32 %v11454_v6, %v11120_v27 }
 0x2ee   : > { %8416 = vmatmul.bf16.gmra.mxu1 %v11107_v44  ;;  %v5638_v46 = vpop.permute.xlu2 %5637  ;;  %v10720_v44 = vld [vmem:[%s11564_s18 + $0x80] sm:$0xf]  ;;  %v7099_v31 = vrot.slane %v7097_v26, 5  ;;  %v7129_v32 = vrot.slane %v7127_v5, 6  ;;  %v10629_v34 = vld [vmem:[%s11564_s18 + $0x8c] sm:$0x3] }
 0x2ef   : > { %5732 = vst.msk [vmem:[#allocation2 + $0x18] sm:$0xf] %vm2016_vm12, %v5638_v46  ;;  %v6033_v47 = vshrl.u32 %v10720_v44, 16  ;;  %v6036_v38 = vshll.u32 %v10720_v44, 16  ;;  %v6044_v1 = vrot.slane %v6042_v14, 5  ;;  %v6059_v24 = vsel %vm11577_vm2, %v6054_v61, %v6058_v8 }
 0x2f0   : > { %v5285_v7 = vshrl.u32 %v10629_v34, 16  ;;  %v5288_v20 = vshll.u32 %v10629_v34, 16  ;;  %5799 = vst.msk [vmem:[#allocation2 + $0x3c] sm:$0xf] %vm212_vm5, %v10671_v63  ;;  %v10724_v6 = vld [vmem:[%s11564_s18 + $0x90] sm:$0xf] }
 0x2f1   : > { %7510 = vrot.lane.b32.xlu1 %v7095_v36, %s11529_s21  ;;  %v7120_v36 = vrot.slane %v7118_v3, 6  ;;  %v6035_v21 = vrot.slane %v6033_v47, 4  ;;  %v6038_v46 = vrot.slane %v6036_v38, 5  ;;  %8538 = vmatpush.bf16.msra.mxu3 %v11494_v0  ;;  %v5278_v3 = vrot.slane %v5276_v51, 5  ;;  %v10726_v0 = vld [vmem:[%s11564_s18 + $0x98] sm:$0xf] }
 0x2f2   : > { %7508 = vrot.lane.b32.xlu0 %v7077_v62, %s11529_s21  ;;  %v4786_v62 = vsel %vm11738_vm6, %v10583_v15, %v4785_v45  ;;  %v14396_v45 = vld [vmem:[%s11564_s18 + $0x90] sm:$0xe]  ;;  %v14403_v5 = vld [vmem:[%s11564_s18 + $0x94] sm:$0x1]  ;;  %v10787_v47 = vld [vmem:[%s11564_s18 + $0x8c] sm:$0x1] }
 0x2f3   : > { %v4884_v39 = vpop.permute.xlu1 %4883  ;;  %v8379_v22 = vpop.f32.mrf.mxu1  ;;  %v6039_v16 = vor.u32 %v6038_v46, %v6035_v21  ;;  %v5287_v55 = vrot.slane %v5285_v7, 5  ;;  %v6075_v21 = vshrl.u32 %v10726_v0, 16  ;;  %v6064_v46 = vshll.u32 %v10724_v6, 16  ;;  %v10885_v63 = vld [vmem:[%s11564_s18 + $0x94] sm:$0x3] }
 0x2f4   : > { %4971 = vst.msk [vmem:[#allocation2 + $0x88] sm:$0xf] %vm1244_vm11, %v4884_v39  ;;  %v14355_v2 = vadd.f32 %v8379_v22, %v8291_v30  ;;  %v4882_v43 = vpop.permute.xlu0 %4881  ;;  %6742 = vrot.lane.b32.xlu2 %v6635_v60, %s11528_s20  ;;  %v5279_v30 = vshll.u32 %v10628_v19, 16  ;;  %v7126_v60 = vrot.slane %v7124_v56, 5  ;;  %v7121_v39 = vor.u32 %v7120_v36, %v7117_v12  ;;  %v14409_v19 = vld [vmem:[%s11564_s18 + $0x9c] sm:$0x1] }
 0x2f5   : > { %4970 = vst.msk [vmem:[#allocation2 + $0x78] sm:$0xf] %vm1244_vm11, %v4882_v43  ;;  %v7103_v22 = vor.u32 %v7102_v13, %v7099_v31  ;;  %v6040_v50 = vrot.slane %v6039_v16, 4  ;;  %v7108_v43 = vrot.slane %v7106_v52, 5  ;;  %v5290_v31 = vrot.slane %v5288_v20, 6 }
 0x2f6   : > { %v14370_v57 = vpop.permute.xlu2 %6724  ;;  %v11409_v26 = vld [vmem:[#allocation2 + $0x14] sm:$0xf0]  ;;  %v7122_v10 = vrot.slane %v7121_v39, 4  ;;  %v7130_v42 = vor.u32 %v7129_v32, %v7126_v60  ;;  %v6078_v13 = vshll.u32 %v10726_v0, 16  ;;  %v6642_v61 = vrot.slane %v10787_v47, 5 }
 0x2f7   : > { %v7104_v15 = vrot.slane %v7103_v22, 4  ;;  %v6045_v44 = vsel %vm11577_vm2, %v6040_v50, %v6044_v1  ;;  %v11458_v52 = vld [vmem:[#allocation2 + $0x1a4] sm:$0xf]  ;;  %v6084_v16 = vshll.u32 %v14409_v19, 16  ;;  %v6066_v34 = vrot.slane %v6064_v46, 5 }
 0x2f8   : > { %v7131_v14 = vsel %vm12136_vm10, %v7122_v10, %v7130_v42  ;;  %v6080_v60 = vrot.slane %v6078_v13, 5  ;;  %v10884_v39 = vld [vmem:[%s11564_s18 + $0x90] sm:$0xe]  ;;  %v10725_v22 = vld [vmem:[%s11564_s18 + $0x94] sm:$0x1]  ;;  %v7142_v19 = vshrl.u32 %v10885_v63, 16 }
 0x2f9   : > { %5657 = vrot.lane.b32.xlu1 %v5274_v18, %s11529_s21  ;;  %v7111_v18 = vrot.slane %v7109_v59, 6  ;;  %v11136_v59 = vld [vmem:[#allocation2 + $0x1b0] sm:$0xf0]  ;;  %v10532_v1 = vld [vmem:[%s11564_s18 + $0x88] sm:$0xe]  ;;  %v7133_v10 = vshrl.u32 %v10884_v39, 16 }
 0x2fa   : > { %5655 = vrot.lane.b32.xlu0 %v5256_v9, %s11529_s21  ;;  %v5281_v9 = vrot.slane %v5279_v30, 6  ;;  %v4793_v30 = vrot.slane %v14403_v5, 5  ;;  %v7136_v42 = vshll.u32 %v10884_v39, 16  ;;  %v10584_v0 = vrot.slane %v10532_v1, 9 }
 0x2fb   : > { %v5636_v4 = vpop.permute.xlu1 %5635  ;;  %v7112_v56 = vor.u32 %v7111_v18, %v7108_v43  ;;  %v10630_v43 = vld [vmem:[%s11564_s18 + $0x90] sm:$0xe]  ;;  %v6086_v13 = vrot.slane %v6084_v16, 5  ;;  %v10790_v16 = vld [vmem:[%s11564_s18 + $0x98] sm:$0xe] }
 0x2fc   : > { %5731 = vst.msk [vmem:[#allocation2 + $0x8] sm:$0xf] %vm2016_vm12, %v5636_v4  ;;  %v4888_v28 = vpop.permute.xlu0 %4887  ;;  %4889 = vrot.lane.b32.xlu2 %v4786_v62, %s11528_s20  ;;  %v5282_v38 = vor.u32 %v5281_v9, %v5278_v3  ;;  %v6061_v62 = vshrl.u32 %v10724_v6, 16  ;;  %v10839_v4 = vrot.slane %v10786_v37, 9  ;;  %v10631_v3 = vld [vmem:[%s11564_s18 + $0x94] sm:$0x3] }
 0x2fd   : > { %4973 = vst.msk [vmem:[#allocation2 + $0xa8] sm:$0xf] %vm1244_vm11, %v4888_v28  ;;  %v7113_v8 = vsel %vm12136_vm10, %v7104_v15, %v7112_v56  ;;  %v10585_v28 = vrot.slane %v14396_v45, 9  ;;  %v5294_v9 = vshrl.u32 %v10630_v43, 16  ;;  %v5297_v7 = vshll.u32 %v10630_v43, 16 }
 0x2fe   : > { %8421 = vmatmul.bf16.gmra.mxu1 %v11123_v17  ;;  %v14389_v29 = vpop.permute.xlu2 %7494  ;;  %v5283_v51 = vrot.slane %v5282_v38, 4  ;;  %v6063_v32 = vrot.slane %v6061_v62, 4  ;;  %v6643_v50 = vsel %vm11738_vm6, %v10839_v4, %v6642_v61  ;;  %v10673_v15 = vld [vmem:[%s11564_s18 + $0x40] sm:$0xf]  ;;  %v5303_v5 = vshrl.u32 %v10631_v3, 16 }
 0x2ff   : > { %v5299_v56 = vrot.slane %v5297_v7, 6  ;;  %v5306_v37 = vshll.u32 %v10631_v3, 16  ;;  %v4794_v47 = vsel %vm11738_vm6, %v10585_v28, %v4793_v30  ;;  %5801 = vst.msk [vmem:[#allocation2 + $0x5c] sm:$0xf] %vm212_vm5, %v10673_v15  ;;  %v10841_v3 = vrot.slane %v10790_v16, 9 }
 0x300   : > { %v10788_v15 = vld [vmem:[%s11564_s18 + $0x90] sm:$0xe]  ;;  %v10729_v16 = vld [vmem:[%s11564_s18 + $0xa4] sm:$0x1] }
 0x301   : > { %6744 = vrot.lane.b32.xlu1 %v6639_v41, %s11528_s20  ;;  %v6077_v41 = vrot.slane %v6075_v21, 4  ;;  %v7145_v21 = vshll.u32 %v10885_v63, 16  ;;  %v5308_v4 = vrot.slane %v5306_v37, 6  ;;  %v11462_v63 = vld [vmem:[#allocation2 + $0x1c4] sm:$0xf] }
 0x302   : > { %6362 = vrot.lane.b32.xlu0 %v6059_v24, %s11527_s19  ;;  %v10533_v24 = vld [vmem:[%s11564_s18 + $0x8c] sm:$0x1] }
 0x303   : > { %v6343_v27 = vpop.permute.xlu1 %6342  ;;  %v10934_v12 = vld [vmem:[#allocation2 + $0x8] sm:$0xf]  ;;  %v4789_v6 = vrot.slane %v10533_v24, 5  ;;  %v11152_v24 = vld [vmem:[#allocation2 + $0x1d0] sm:$0xf0] }
 0x304   : > { %6437 = vst.msk [vmem:[#allocation2 + $0x1c] sm:$0xf] %vm856_vm7, %v6343_v27  ;;  %v6341_v36 = vpop.permute.xlu0 %6340  ;;  %v10935_v23 = vor.u32 %v11409_v26, %v10934_v12  ;;  %6360 = vrot.lane.b32.xlu2 %v6045_v44, %s11527_s19  ;;  %v11139_v26 = vor.u32 %v11458_v52, %v11136_v59  ;;  %v6081_v44 = vor.u32 %v6080_v60, %v6077_v41  ;;  %v10672_v27 = vld [vmem:[%s11564_s18 + $0x38] sm:$0xf]  ;;  %v5296_v12 = vrot.slane %v5294_v9, 5 }
 0x305   : > { %6436 = vst.msk [vmem:[#allocation2 + $0xc] sm:$0xf] %vm856_vm7, %v6341_v36  ;;  %v6067_v36 = vor.u32 %v6066_v34, %v6063_v32  ;;  %v4790_v62 = vsel %vm11738_vm6, %v10584_v0, %v4789_v6  ;;  %v10791_v32 = vld [vmem:[%s11564_s18 + $0x9c] sm:$0x1] }
 0x306   : > { %6820 = vst.msk [vmem:[#allocation2 + $0xc] sm:$0xf] %vm1244_vm11, %v14370_v57  ;;  %8450 = vmatmul.bf16.vlgmr.msra.gmra.mxu2 %v10935_v23  ;;  %v6345_v17 = vpop.permute.xlu2 %6344  ;;  %v5291_v57 = vor.u32 %v5290_v31, %v5287_v55  ;;  %v6070_v23 = vshll.u32 %v10725_v22, 16  ;;  %v7135_v55 = vrot.slane %v7133_v10, 5  ;;  %v7138_v31 = vrot.slane %v7136_v42, 6 }
 0x307   : > { %6438 = vst.msk [vmem:[#allocation2 + $0x2c] sm:$0xf] %vm856_vm7, %v6345_v17  ;;  %v5300_v46 = vor.u32 %v5299_v56, %v5296_v12  ;;  %v6068_v52 = vrot.slane %v6067_v36, 4  ;;  %v10728_v22 = vld [vmem:[%s11564_s18 + $0xa0] sm:$0xf]  ;;  %v6650_v9 = vrot.slane %v10791_v32, 5  ;;  %v11155_v36 = vor.u32 %v11462_v63, %v11152_v24 }
 0x308   : > { %v5292_v45 = vsel %vm12136_vm10, %v5283_v51, %v5291_v57  ;;  %5800 = vst.msk [vmem:[#allocation2 + $0x4c] sm:$0xf] %vm212_vm5, %v10672_v27  ;;  %v6072_v59 = vrot.slane %v6070_v23, 5  ;;  %v7139_v17 = vor.u32 %v7138_v31, %v7135_v55  ;;  %v7144_v51 = vrot.slane %v7142_v19, 5  ;;  %v14471_v10 = vld [vmem:[%s11564_s18 + $0xa4] sm:$0x1] }
 0x309   : > { %7514 = vrot.lane.b32.xlu1 %v7131_v14, %s11529_s21  ;;  %v5305_v14 = vrot.slane %v5303_v5, 5  ;;  %v7147_v57 = vrot.slane %v7145_v21, 6  ;;  %v5301_v34 = vrot.slane %v5300_v46, 4  ;;  %v6089_v7 = vshrl.u32 %v10728_v22, 16  ;;  %v14479_v27 = vld [vmem:[%s11564_s18 + $0x98] sm:$0xe] }
 0x30a   : > { %7512 = vrot.lane.b32.xlu0 %v7113_v8, %s11529_s21  ;;  %v7140_v43 = vrot.slane %v7139_v17, 4  ;;  %v14482_v12 = vld [vmem:[%s11564_s18 + $0x9c] sm:$0x1]  ;;  %v6092_v31 = vshll.u32 %v10728_v22, 16  ;;  %v10635_v19 = vld [vmem:[%s11564_s18 + $0xa4] sm:$0x3] }
 0x30b   : > { %v7493_v18 = vpop.permute.xlu1 %7492  ;;  %v5309_v39 = vor.u32 %v5308_v4, %v5305_v14  ;;  %v10887_v56 = vld [vmem:[%s11564_s18 + $0x9c] sm:$0x3]  ;;  %v10840_v14 = vrot.slane %v10788_v15, 9  ;;  %v5339_v32 = vshrl.u32 %v10635_v19, 16  ;;  %v10632_v24 = vld [vmem:[%s11564_s18 + $0x98] sm:$0xe] }
 0x30c   : > { %7588 = vst.msk [vmem:[#allocation2 + $0xc] sm:$0xf] %vm2016_vm12, %v7493_v18  ;;  %v6727_v20 = vpop.permute.xlu0 %6726  ;;  %6746 = vrot.lane.b32.xlu2 %v6643_v50, %s11528_s20  ;;  %v6073_v50 = vsel %vm11577_vm2, %v6068_v52, %v6072_v59  ;;  %v7148_v18 = vor.u32 %v7147_v57, %v7144_v51  ;;  %v6651_v52 = vsel %vm11738_vm6, %v10841_v3, %v6650_v9  ;;  %v10586_v51 = vrot.slane %v14479_v27, 9  ;;  %v10675_v9 = vld [vmem:[%s11564_s18 + $0x50] sm:$0xf] }
 0x30d   : > { %6821 = vst.msk [vmem:[#allocation2 + $0x1c] sm:$0xf] %vm1244_vm11, %v6727_v20  ;;  %v10634_v20 = vld [vmem:[%s11564_s18 + $0xa0] sm:$0xe]  ;;  %v5310_v42 = vsel %vm12136_vm10, %v5301_v34, %v5309_v39  ;;  %v6091_v57 = vrot.slane %v6089_v7, 4  ;;  %v5342_v39 = vshll.u32 %v10635_v19, 16 }
 0x30e   : > { %7589 = vst.msk [vmem:[#allocation2 + $0x1c] sm:$0xf] %vm2016_vm12, %v14389_v29  ;;  %8426 = vmatmul.bf16.gmra.mxu1 %v11139_v26  ;;  %v14445_v38 = vpop.permute.xlu2 %6730  ;;  %v6082_v29 = vrot.slane %v6081_v44, 4  ;;  %v14468_v26 = vld [vmem:[%s11564_s18 + $0xa0] sm:$0xe]  ;;  %v7149_v55 = vsel %vm12136_vm10, %v7140_v43, %v7148_v18  ;;  %v5330_v21 = vshrl.u32 %v10634_v20, 16 }
 0x30f   : > { %v10886_v44 = vld [vmem:[%s11564_s18 + $0x98] sm:$0xe]  ;;  %v10587_v59 = vrot.slane %v14468_v26, 9  ;;  %v10633_v18 = vld [vmem:[%s11564_s18 + $0x9c] sm:$0x3]  ;;  %v5312_v63 = vshrl.u32 %v10632_v24, 16 }
 0x310   : > { %v6087_v60 = vsel %vm11577_vm2, %v6082_v29, %v6086_v13  ;;  %v7151_v5 = vshrl.u32 %v10886_v44, 16  ;;  %v7154_v37 = vshll.u32 %v10886_v44, 16  ;;  %v5333_v13 = vshll.u32 %v10634_v20, 16  ;;  %5803 = vst.msk [vmem:[#allocation2 + $0x7c] sm:$0xf] %vm212_vm5, %v10675_v9 }
 0x311   : > { %5659 = vrot.lane.b32.xlu1 %v5292_v45, %s11529_s21  ;;  %v10789_v45 = vld [vmem:[%s11564_s18 + $0x94] sm:$0x1]  ;;  %v5315_v3 = vshll.u32 %v10632_v24, 16  ;;  %v6098_v26 = vshll.u32 %v10729_v16, 16  ;;  %v5321_v27 = vshrl.u32 %v10633_v18, 16 }
 0x312   : > { %4893 = vrot.lane.b32.xlu0 %v4794_v47, %s11528_s20  ;;  %v7156_v46 = vrot.slane %v7154_v37, 6  ;;  %v6646_v4 = vrot.slane %v10789_v45, 5  ;;  %v5314_v45 = vrot.slane %v5312_v63, 5  ;;  %v5341_v37 = vrot.slane %v5339_v32, 5 }
 0x313   : > { %v5642_v61 = vpop.permute.xlu1 %5641  ;;  %v11407_v8 = vld [vmem:[#allocation2 + $0xc] sm:$0xf]  ;;  %v5317_v44 = vrot.slane %v5315_v3, 6  ;;  %v6100_v19 = vrot.slane %v6098_v26, 5 }
 0x314   : > { %5734 = vst.msk [vmem:[#allocation2 + $0x38] sm:$0xf] %vm2016_vm12, %v5642_v61  ;;  %v5640_v28 = vpop.permute.xlu0 %5639  ;;  %4891 = vrot.lane.b32.xlu2 %v4790_v62, %s11528_s20  ;;  %v7153_v62 = vrot.slane %v7151_v5, 5  ;;  %v7160_v61 = vshrl.u32 %v10887_v56, 16  ;;  %v6647_v22 = vsel %vm11738_vm6, %v10840_v14, %v6646_v4  ;;  %v5323_v4 = vrot.slane %v5321_v27, 5 }
 0x315   : > { %5733 = vst.msk [vmem:[#allocation2 + $0x28] sm:$0xf] %vm2016_vm12, %v5640_v28  ;;  %v10936_v30 = vld [vmem:[#allocation2 + $0x18] sm:$0xf0]  ;;  %v4801_v28 = vrot.slane %v14471_v10, 5  ;;  %v5318_v14 = vor.u32 %v5317_v44, %v5314_v45 }
 0x316   : > { %v10939_v41 = vor.u32 %v11407_v8, %v10936_v30  ;;  %v5644_v1 = vpop.permute.xlu2 %5643  ;;  %v7163_v8 = vshll.u32 %v10887_v56, 16  ;;  %v6094_v30 = vrot.slane %v6092_v31, 5  ;;  %v7157_v34 = vor.u32 %v7156_v46, %v7153_v62  ;;  %v14510_v10 = vld [vmem:[%s11564_s18 + $0xa8] sm:$0xe]  ;;  %v10636_v45 = vld [vmem:[%s11564_s18 + $0xc0] sm:$0xe] }
 0x317   : > { %5735 = vst.msk [vmem:[#allocation2 + $0x48] sm:$0xf] %vm2016_vm12, %v5644_v1  ;;  %v10674_v56 = vld [vmem:[%s11564_s18 + $0x48] sm:$0xf] }
 0x318   : > { %8539 = vmatmul.bf16.vlgmr.msra.gmra.mxu3 %v10939_v41  ;;  %v5332_v41 = vrot.slane %v5330_v21, 5  ;;  %v7165_v1 = vrot.slane %v7163_v8, 6  ;;  %v6095_v20 = vor.u32 %v6094_v30, %v6091_v57  ;;  %v7158_v15 = vrot.slane %v7157_v34, 4  ;;  %5802 = vst.msk [vmem:[#allocation2 + $0x6c] sm:$0xf] %vm212_vm5, %v10674_v56 }
 0x319   : > { %6366 = vrot.lane.b32.xlu1 %v6087_v60, %s11527_s19  ;;  %v5335_v60 = vrot.slane %v5333_v13, 6  ;;  %v14527_v13 = vld [vmem:[%s11564_s18 + $0xac] sm:$0x1]  ;;  %v10890_v46 = vld [vmem:[%s11564_s18 + $0xa8] sm:$0xe] }
 0x31a   : > { %6364 = vrot.lane.b32.xlu0 %v6073_v50, %s11527_s19  ;;  %v7162_v50 = vrot.slane %v7160_v61, 5  ;;  %v6096_v31 = vrot.slane %v6095_v20, 4  ;;  %v10792_v30 = vld [vmem:[%s11564_s18 + $0xa0] sm:$0xe]  ;;  %v7187_v32 = vshrl.u32 %v10890_v46, 16  ;;  %v7190_v34 = vshll.u32 %v10890_v46, 16 }
 0x31b   : > { %v6729_v0 = vpop.permute.xlu1 %6728  ;;  %v11413_v6 = vld [vmem:[#allocation2 + $0x34] sm:$0xf0]  ;;  %v10842_v63 = vrot.slane %v10792_v30, 9  ;;  %v10638_v20 = vld [vmem:[%s11564_s18 + $0xc8] sm:$0xe] }
 0x31c   : > { %6822 = vst.msk [vmem:[#allocation2 + $0x2c] sm:$0xf] %vm1244_vm11, %v6729_v0  ;;  %v6347_v47 = vpop.permute.xlu0 %6346  ;;  %v10950_v23 = vld [vmem:[#allocation2 + $0x28] sm:$0xf]  ;;  %5661 = vrot.lane.b32.xlu2 %v5310_v42, %s11529_s21  ;;  %v5336_v42 = vor.u32 %v5335_v60, %v5332_v41  ;;  %v4802_v0 = vsel %vm11738_vm6, %v10587_v59, %v4801_v28  ;;  %v14533_v28 = vld [vmem:[%s11564_s18 + $0xac] sm:$0x3]  ;;  %v6101_v41 = vsel %vm11577_vm2, %v6096_v31, %v6100_v19 }
 0x31d   : > { %6439 = vst.msk [vmem:[#allocation2 + $0x3c] sm:$0xf] %vm856_vm7, %v6347_v47  ;;  %v10951_v29 = vor.u32 %v11413_v6, %v10950_v23  ;;  %v7166_v6 = vor.u32 %v7165_v1, %v7162_v50  ;;  %v5344_v47 = vrot.slane %v5342_v39, 6  ;;  %v11466_v23 = vld [vmem:[#allocation2 + $0x1e4] sm:$0xf]  ;;  %v7196_v39 = vshrl.u32 %v14533_v28, 16 }
 0x31e   : > { %6823 = vst.msk [vmem:[#allocation2 + $0x3c] sm:$0xf] %vm1244_vm11, %v14445_v38  ;;  %8431 = vmatmul.bf16.gmra.mxu1 %v11155_v36  ;;  %v6351_v17 = vpop.permute.xlu2 %6350  ;;  %v4797_v38 = vrot.slane %v14482_v12, 5  ;;  %v5324_v12 = vshll.u32 %v10633_v18, 16  ;;  %v5337_v21 = vrot.slane %v5336_v42, 4  ;;  %v6658_v18 = vrot.slane %v14527_v13, 5 }
 0x31f   : > { %8455 = vmatmul.bf16.gmra.mxu2 %v10951_v29  ;;  %6441 = vst.msk [vmem:[#allocation2 + $0x5c] sm:$0xf] %vm856_vm7, %v6351_v17  ;;  %v10843_v29 = vrot.slane %v14510_v10, 9  ;;  %v7167_v62 = vsel %vm12136_vm10, %v7158_v15, %v7166_v6  ;;  %v5345_v59 = vor.u32 %v5344_v47, %v5341_v37  ;;  %v10730_v17 = vld [vmem:[%s11564_s18 + $0xa8] sm:$0xf]  ;;  %v7189_v42 = vrot.slane %v7187_v32, 5 }
 0x320   : > { %v4798_v5 = vsel %vm11738_vm6, %v10586_v51, %v4797_v38  ;;  %v5326_v61 = vrot.slane %v5324_v12, 6  ;;  %v10793_v60 = vld [vmem:[%s11564_s18 + $0xa4] sm:$0x1]  ;;  %v10731_v1 = vld [vmem:[%s11564_s18 + $0xac] sm:$0x1]  ;;  %v6103_v24 = vshrl.u32 %v10730_v17, 16 }
 0x321   : > { %7516 = vrot.lane.b32.xlu1 %v7149_v55, %s11529_s21  ;;  %v11168_v55 = vld [vmem:[#allocation2 + $0x1f0] sm:$0xf0]  ;;  %v6106_v9 = vshll.u32 %v10730_v17, 16  ;;  %v7199_v15 = vshll.u32 %v14533_v28, 16  ;;  %v10966_v6 = vld [vmem:[#allocation2 + $0x48] sm:$0xf]  ;;  %v6659_v46 = vsel %vm11738_vm6, %v10843_v29, %v6658_v18 }
 0x322   : > { %6750 = vrot.lane.b32.xlu0 %v6651_v52, %s11528_s20  ;;  %v11171_v38 = vor.u32 %v11466_v23, %v11168_v55  ;;  %v5327_v50 = vor.u32 %v5326_v61, %v5323_v4  ;;  %v6105_v26 = vrot.slane %v6103_v24, 4  ;;  %v7192_v27 = vrot.slane %v7190_v34, 6  ;;  %v10888_v37 = vld [vmem:[%s11564_s18 + $0xa0] sm:$0xe]  ;;  %v10889_v31 = vld [vmem:[%s11564_s18 + $0xa4] sm:$0x3] }
 0x323   : > { %v7499_v43 = vpop.permute.xlu1 %7498  ;;  %v6108_v44 = vrot.slane %v6106_v9, 5  ;;  %v14554_v12 = vrot.slane %v7196_v39, 5  ;;  %v5366_v23 = vshrl.u32 %v10638_v20, 16  ;;  %v7169_v19 = vshrl.u32 %v10888_v37, 16  ;;  %v10540_v4 = vld [vmem:[%s11564_s18 + $0xc0] sm:$0xe] }
 0x324   : > { %7591 = vst.msk [vmem:[#allocation2 + $0x3c] sm:$0xf] %vm2016_vm12, %v7499_v43  ;;  %v7497_v7 = vpop.permute.xlu0 %7496  ;;  %6748 = vrot.lane.b32.xlu2 %v6647_v22, %s11528_s20  ;;  %v5319_v22 = vrot.slane %v5318_v14, 4  ;;  %v5346_v43 = vsel %vm12136_vm10, %v5337_v21, %v5345_v59  ;;  %v7172_v21 = vshll.u32 %v10888_v37, 16  ;;  %v10541_v61 = vld [vmem:[%s11564_s18 + $0xc4] sm:$0x1]  ;;  %v7193_v30 = vor.u32 %v7192_v27, %v7189_v42 }
 0x325   : > { %7590 = vst.msk [vmem:[#allocation2 + $0x2c] sm:$0xf] %vm2016_vm12, %v7497_v7  ;;  %v6654_v7 = vrot.slane %v10793_v60, 5  ;;  %v6109_v55 = vor.u32 %v6108_v44, %v6105_v26  ;;  %v5351_v28 = vshll.u32 %v10636_v45, 16  ;;  %v7171_v29 = vrot.slane %v7169_v19, 5 }
 0x326   : > { %v14520_v36 = vpop.permute.xlu2 %7500  ;;  %v5328_v56 = vsel %vm12136_vm10, %v5319_v22, %v5327_v50  ;;  %v10676_v34 = vld [vmem:[%s11564_s18 + $0x70] sm:$0xf]  ;;  %v5368_v39 = vrot.slane %v5366_v23, 5  ;;  %v10637_v50 = vld [vmem:[%s11564_s18 + $0xc4] sm:$0x3]  ;;  %v7194_v26 = vrot.slane %v7193_v30, 4 }
 0x327   : > { %v6655_v14 = vsel %vm11738_vm6, %v10842_v63, %v6654_v7  ;;  %v6110_v17 = vrot.slane %v6109_v55, 4  ;;  %5804 = vst.msk [vmem:[#allocation2 + $0x8c] sm:$0xf] %vm212_vm5, %v10676_v34  ;;  %v10734_v63 = vld [vmem:[%s11564_s18 + $0xd0] sm:$0xf] }
 0x328   : > { %v6131_v37 = vshrl.u32 %v10734_v63, 16  ;;  %v6134_v23 = vshll.u32 %v10734_v63, 16  ;;  %v10543_v34 = vld [vmem:[%s11564_s18 + $0xcc] sm:$0x1] }
 0x329   : > { %4897 = vrot.lane.b32.xlu1 %v4802_v0, %s11528_s20  ;;  %v6112_v0 = vshll.u32 %v10731_v1, 16  ;;  %v4805_v1 = vrot.slane %v10541_v61, 5 }
 0x32a   : > { %4895 = vrot.lane.b32.xlu0 %v4798_v5, %s11528_s20  ;;  %v10639_v5 = vld [vmem:[%s11564_s18 + $0xcc] sm:$0x3] }
 0x32b   : > { %v6349_v8 = vpop.permute.xlu1 %6348  ;;  %v10952_v52 = vld [vmem:[#allocation2 + $0x38] sm:$0xf0]  ;;  %v6114_v10 = vrot.slane %v6112_v0, 5  ;;  %v5375_v60 = vshrl.u32 %v10639_v5, 16  ;;  %v5378_v32 = vshll.u32 %v10639_v5, 16 }
 0x32c   : > { %6440 = vst.msk [vmem:[#allocation2 + $0x4c] sm:$0xf] %vm856_vm7, %v6349_v8  ;;  %v5646_v51 = vpop.permute.xlu0 %5645  ;;  %v11411_v57 = vld [vmem:[#allocation2 + $0x2c] sm:$0xf]  ;;  %7518 = vrot.lane.b32.xlu2 %v7167_v62, %s11529_s21  ;;  %v5369_v8 = vshll.u32 %v10638_v20, 16 }
 0x32d   : > { %5736 = vst.msk [vmem:[#allocation2 + $0x58] sm:$0xf] %vm2016_vm12, %v5646_v51  ;;  %v10955_v16 = vor.u32 %v11411_v57, %v10952_v52  ;;  %v5348_v52 = vshrl.u32 %v10636_v45, 16  ;;  %v7174_v51 = vrot.slane %v7172_v21, 6  ;;  %v7181_v57 = vshll.u32 %v10889_v31, 16 }
 0x32e   : > { %8436 = vmatmul.bf16.gmra.mxu1 %v11171_v38  ;;  %v5650_v3 = vpop.permute.xlu2 %5649  ;;  %v7178_v38 = vshrl.u32 %v10889_v31, 16  ;;  %v5371_v22 = vrot.slane %v5369_v8, 6  ;;  %v6115_v18 = vsel %vm11577_vm2, %v6110_v17, %v6114_v10  ;;  %v5360_v45 = vshll.u32 %v10637_v50, 16  ;;  %v10735_v17 = vld [vmem:[%s11564_s18 + $0xd4] sm:$0x1] }
 0x32f   : > { %8544 = vmatmul.bf16.gmra.mxu3 %v10955_v16  ;;  %5738 = vst.msk [vmem:[#allocation2 + $0x78] sm:$0xf] %vm2016_vm12, %v5650_v3  ;;  %v7201_v16 = vrot.slane %v7199_v15, 6  ;;  %v5350_v24 = vrot.slane %v5348_v52, 5  ;;  %v7175_v3 = vor.u32 %v7174_v51, %v7171_v29  ;;  %v7183_v7 = vrot.slane %v7181_v57, 6 }
 0x330   : > { %v7180_v9 = vrot.slane %v7178_v38, 5  ;;  %v5357_v15 = vshrl.u32 %v10637_v50, 16  ;;  %v5372_v0 = vor.u32 %v5371_v22, %v5368_v39  ;;  %v5380_v27 = vrot.slane %v5378_v32, 6  ;;  %v10892_v38 = vld [vmem:[%s11564_s18 + $0xc8] sm:$0xe] }
 0x331   : > { %6368 = vrot.lane.b32.xlu1 %v6101_v41, %s11527_s19  ;;  %v7202_v42 = vor.u32 %v7201_v16, %v14554_v12  ;;  %v14592_v12 = vld [vmem:[%s11564_s18 + $0xc8] sm:$0xe]  ;;  %v7176_v55 = vrot.slane %v7175_v3, 4  ;;  %v6136_v10 = vrot.slane %v6134_v23, 5  ;;  %v10895_v32 = vld [vmem:[%s11564_s18 + $0xd4] sm:$0x3] }
 0x332   : > { %5665 = vrot.lane.b32.xlu0 %v5346_v43, %s11529_s21  ;;  %v5353_v43 = vrot.slane %v5351_v28, 6  ;;  %v7184_v31 = vor.u32 %v7183_v7, %v7180_v9  ;;  %v5359_v21 = vrot.slane %v5357_v15, 5  ;;  %v10844_v52 = vrot.slane %v14592_v12, 9  ;;  %v14604_v28 = vld [vmem:[%s11564_s18 + $0xcc] sm:$0x1] }
 0x333   : > { %v6735_v47 = vpop.permute.xlu1 %6734  ;;  %v7203_v19 = vsel %vm12136_vm10, %v7194_v26, %v7202_v42  ;;  %v10542_v57 = vld [vmem:[%s11564_s18 + $0xc8] sm:$0xe]  ;;  %v7205_v63 = vshrl.u32 %v10892_v38, 16  ;;  %v7208_v3 = vshll.u32 %v10892_v38, 16  ;;  %v4809_v7 = vrot.slane %v10543_v34, 5 }
 0x334   : > { %6825 = vst.msk [vmem:[#allocation2 + $0x5c] sm:$0xf] %vm1244_vm11, %v6735_v47  ;;  %v6733_v13 = vpop.permute.xlu0 %6732  ;;  %v11417_v62 = vld [vmem:[#allocation2 + $0x54] sm:$0xf0]  ;;  %5663 = vrot.lane.b32.xlu2 %v5328_v56, %s11529_s21  ;;  %v5354_v5 = vor.u32 %v5353_v43, %v5350_v24  ;;  %v7185_v29 = vsel %vm12136_vm10, %v7176_v55, %v7184_v31  ;;  %v10732_v39 = vld [vmem:[%s11564_s18 + $0xc8] sm:$0xf] }
 0x335   : > { %6824 = vst.msk [vmem:[#allocation2 + $0x4c] sm:$0xf] %vm1244_vm11, %v6733_v13  ;;  %v10967_v59 = vor.u32 %v11417_v62, %v10966_v6  ;;  %v5377_v6 = vrot.slane %v5375_v60, 5  ;;  %v10677_v56 = vld [vmem:[%s11564_s18 + $0x78] sm:$0xf]  ;;  %v5362_v13 = vrot.slane %v5360_v45, 6 }
 0x336   : > { %7592 = vst.msk [vmem:[#allocation2 + $0x4c] sm:$0xf] %vm2016_vm12, %v14520_v36  ;;  %v14574_v41 = vpop.permute.xlu2 %6736  ;;  %v10588_v36 = vrot.slane %v10540_v4, 9  ;;  %v11421_v61 = vld [vmem:[#allocation2 + $0x74] sm:$0xf0]  ;;  %v5355_v8 = vrot.slane %v5354_v5, 4 }
 0x337   : > { %8460 = vmatmul.bf16.gmra.mxu2 %v10967_v59  ;;  %5805 = vst.msk [vmem:[#allocation2 + $0x9c] sm:$0xf] %vm212_vm5, %v10677_v56  ;;  %v5381_v4 = vor.u32 %v5380_v27, %v5377_v6  ;;  %v6133_v59 = vrot.slane %v6131_v37, 4  ;;  %v5363_v60 = vor.u32 %v5362_v13, %v5359_v21  ;;  %v10589_v9 = vrot.slane %v10542_v57, 9  ;;  %v10893_v6 = vld [vmem:[%s11564_s18 + $0xcc] sm:$0x3] }
 0x338   : > { %v4806_v47 = vsel %vm11738_vm6, %v10588_v36, %v4805_v1  ;;  %v6120_v26 = vshll.u32 %v10732_v39, 16  ;;  %v6662_v15 = vrot.slane %v14604_v28, 5  ;;  %v10733_v27 = vld [vmem:[%s11564_s18 + $0xcc] sm:$0x1]  ;;  %v7235_v56 = vshll.u32 %v10895_v32, 16 }
 0x339   : > { %6754 = vrot.lane.b32.xlu1 %v6659_v46, %s11528_s20  ;;  %v10894_v46 = vld [vmem:[%s11564_s18 + $0xd0] sm:$0xe]  ;;  %v5364_v42 = vsel %vm12136_vm10, %v5355_v8, %v5363_v60  ;;  %v6137_v45 = vor.u32 %v6136_v10, %v6133_v59  ;;  %v7207_v55 = vrot.slane %v7205_v63, 5  ;;  %v7210_v31 = vrot.slane %v7208_v3, 6  ;;  %v10641_v28 = vld [vmem:[%s11564_s18 + $0xd4] sm:$0x3] }
 0x33a   : > { %6752 = vrot.lane.b32.xlu0 %v6655_v14, %s11528_s20  ;;  %v5373_v14 = vrot.slane %v5372_v0, 4  ;;  %v7223_v51 = vshrl.u32 %v10894_v46, 16  ;;  %v6122_v37 = vrot.slane %v6120_v26, 5  ;;  %v4810_v21 = vsel %vm11738_vm6, %v10589_v9, %v4809_v7  ;;  %v10678_v60 = vld [vmem:[%s11564_s18 + $0x80] sm:$0xf] }
 0x33b   : > { %v5648_v20 = vpop.permute.xlu1 %5647  ;;  %v7214_v8 = vshrl.u32 %v10893_v6, 16  ;;  %v7217_v59 = vshll.u32 %v10893_v6, 16  ;;  %v6663_v10 = vsel %vm11738_vm6, %v10844_v52, %v6662_v15  ;;  %v5396_v12 = vshll.u32 %v10641_v28, 16  ;;  %5806 = vst.msk [vmem:[#allocation2 + $0xac] sm:$0xf] %vm212_vm5, %v10678_v60 }
 0x33c   : > { %5737 = vst.msk [vmem:[#allocation2 + $0x68] sm:$0xf] %vm2016_vm12, %v5648_v20  ;;  %v7503_v44 = vpop.permute.xlu0 %7502  ;;  %6370 = vrot.lane.b32.xlu2 %v6115_v18, %s11527_s19  ;;  %v5382_v24 = vsel %vm12136_vm10, %v5373_v14, %v5381_v4  ;;  %v7226_v18 = vshll.u32 %v10894_v46, 16  ;;  %v6117_v20 = vshrl.u32 %v10732_v39, 16  ;;  %v6126_v46 = vshll.u32 %v10733_v27, 16 }
 0x33d   : > { %7593 = vst.msk [vmem:[#allocation2 + $0x5c] sm:$0xf] %vm2016_vm12, %v7503_v44  ;;  %v11415_v36 = vld [vmem:[#allocation2 + $0x4c] sm:$0xf]  ;;  %v6140_v44 = vshll.u32 %v10735_v17, 16  ;;  %v6138_v4 = vrot.slane %v6137_v45, 4 }
 0x33e   : > { %v14597_v62 = vpop.permute.xlu2 %7506  ;;  %v6119_v5 = vrot.slane %v6117_v20, 4  ;;  %v7228_v23 = vrot.slane %v7226_v18, 6  ;;  %v6128_v39 = vrot.slane %v6126_v46, 5  ;;  %v10738_v18 = vld [vmem:[%s11564_s18 + $0xe0] sm:$0xf]  ;;  %v5398_v9 = vrot.slane %v5396_v12, 6 }
 0x33f   : > { %v14652_v7 = vld [vmem:[%s11564_s18 + $0xd8] sm:$0xe]  ;;  %v14655_v20 = vld [vmem:[%s11564_s18 + $0xdc] sm:$0x1]  ;;  %v10799_v6 = vld [vmem:[%s11564_s18 + $0xd4] sm:$0x1] }
 0x340   : > { %v6123_v13 = vor.u32 %v6122_v37, %v6119_v5  ;;  %v6162_v5 = vshll.u32 %v10738_v18, 16  ;;  %v10679_v37 = vld [vmem:[%s11564_s18 + $0x88] sm:$0xf]  ;;  %v10545_v60 = vld [vmem:[%s11564_s18 + $0xd4] sm:$0x1] }
 0x341   : > { %4899 = vrot.lane.b32.xlu1 %v4806_v47, %s11528_s20  ;;  %v7225_v47 = vrot.slane %v7223_v51, 5  ;;  %5807 = vst.msk [vmem:[#allocation2 + $0xbc] sm:$0xf] %vm212_vm5, %v10679_v37 }
 0x342   : > { %7522 = vrot.lane.b32.xlu0 %v7203_v19, %s11529_s21  ;;  %v10640_v19 = vld [vmem:[%s11564_s18 + $0xd0] sm:$0xe]  ;;  %v6124_v34 = vrot.slane %v6123_v13, 4  ;;  %v6666_v13 = vrot.slane %v10799_v6, 5 }
 0x343   : > { %v6355_v30 = vpop.permute.xlu1 %6354  ;;  %v10982_v16 = vld [vmem:[#allocation2 + $0x68] sm:$0xf]  ;;  %v5387_v51 = vshll.u32 %v10640_v19, 16  ;;  %v7229_v38 = vor.u32 %v7228_v23, %v7225_v47 }
 0x344   : > { %6443 = vst.msk [vmem:[#allocation2 + $0x7c] sm:$0xf] %vm856_vm7, %v6355_v30  ;;  %v6353_v22 = vpop.permute.xlu0 %6352  ;;  %v10983_v50 = vor.u32 %v11421_v61, %v10982_v16  ;;  %v10968_v1 = vld [vmem:[#allocation2 + $0x58] sm:$0xf0]  ;;  %7520 = vrot.lane.b32.xlu2 %v7185_v29, %s11529_s21  ;;  %v6142_v61 = vrot.slane %v6140_v44, 5  ;;  %v5384_v29 = vshrl.u32 %v10640_v19, 16  ;;  %v7211_v16 = vor.u32 %v7210_v31, %v7207_v55 }
 0x345   : > { %6442 = vst.msk [vmem:[#allocation2 + $0x6c] sm:$0xf] %vm856_vm7, %v6353_v22  ;;  %v10971_v43 = vor.u32 %v11415_v36, %v10968_v1  ;;  %v7237_v30 = vrot.slane %v7235_v56, 6  ;;  %v7216_v22 = vrot.slane %v7214_v8, 5  ;;  %v6129_v26 = vsel %vm11577_vm2, %v6124_v34, %v6128_v39  ;;  %v10643_v39 = vld [vmem:[%s11564_s18 + $0xdc] sm:$0x3] }
 0x346   : > { %6826 = vst.msk [vmem:[#allocation2 + $0x6c] sm:$0xf] %vm1244_vm11, %v14574_v41  ;;  %v6357_v0 = vpop.permute.xlu2 %6356  ;;  %v7232_v41 = vshrl.u32 %v10895_v32, 16  ;;  %v5393_v32 = vshrl.u32 %v10641_v28, 16  ;;  %v6143_v52 = vsel %vm11577_vm2, %v6138_v4, %v6142_v61  ;;  %v5386_v1 = vrot.slane %v5384_v29, 5 }
 0x347   : > { %8465 = vmatmul.bf16.gmra.mxu2 %v10983_v50  ;;  %8549 = vmatmul.bf16.gmra.mxu3 %v10971_v43  ;;  %6444 = vst.msk [vmem:[#allocation2 + $0x8c] sm:$0xf] %vm856_vm7, %v6357_v0  ;;  %v7219_v50 = vrot.slane %v7217_v59, 6  ;;  %v7212_v43 = vrot.slane %v7211_v16, 4  ;;  %v10798_v0 = vld [vmem:[%s11564_s18 + $0xd0] sm:$0xe] }
 0x348   : > { %v7234_v57 = vrot.slane %v7232_v41, 5  ;;  %v5395_v3 = vrot.slane %v5393_v32, 5  ;;  %v6159_v56 = vshrl.u32 %v10738_v18, 16  ;;  %v4817_v4 = vrot.slane %v14655_v20, 5  ;;  %v10544_v16 = vld [vmem:[%s11564_s18 + $0xd0] sm:$0xe] }
 0x349   : > { %5669 = vrot.lane.b32.xlu1 %v5382_v24, %s11529_s21  ;;  %v5389_v24 = vrot.slane %v5387_v51, 6  ;;  %v7220_v44 = vor.u32 %v7219_v50, %v7216_v22  ;;  %v10642_v32 = vld [vmem:[%s11564_s18 + $0xd8] sm:$0xe]  ;;  %v10897_v18 = vld [vmem:[%s11564_s18 + $0xdc] sm:$0x3]  ;;  %v4813_v20 = vrot.slane %v10545_v60, 5 }
 0x34a   : > { %5667 = vrot.lane.b32.xlu0 %v5364_v42, %s11529_s21  ;;  %v7238_v63 = vor.u32 %v7237_v30, %v7234_v57  ;;  %v10736_v42 = vld [vmem:[%s11564_s18 + $0xd8] sm:$0xf]  ;;  %v5399_v59 = vor.u32 %v5398_v9, %v5395_v3  ;;  %v6161_v28 = vrot.slane %v6159_v56, 4  ;;  %v10737_v57 = vld [vmem:[%s11564_s18 + $0xdc] sm:$0x1]  ;;  %v5405_v22 = vshll.u32 %v10642_v32, 16 }
 0x34b   : > { %v7505_v14 = vpop.permute.xlu1 %7504  ;;  %v5390_v41 = vor.u32 %v5389_v24, %v5386_v1  ;;  %v6145_v23 = vshrl.u32 %v10736_v42, 16  ;;  %v6148_v55 = vshll.u32 %v10736_v42, 16  ;;  %v7221_v46 = vsel %vm12136_vm10, %v7212_v43, %v7220_v44 }
 0x34c   : > { %7594 = vst.msk [vmem:[#allocation2 + $0x6c] sm:$0xf] %vm2016_vm12, %v7505_v14  ;;  %v6739_v17 = vpop.permute.xlu0 %6738  ;;  %4901 = vrot.lane.b32.xlu2 %v4810_v21, %s11528_s20  ;;  %v10845_v21 = vrot.slane %v10798_v0, 9  ;;  %v10591_v14 = vrot.slane %v14652_v7, 9  ;;  %v10590_v7 = vrot.slane %v10544_v16, 9  ;;  %v5407_v42 = vrot.slane %v5405_v22, 6 }
 0x34d   : > { %6827 = vst.msk [vmem:[#allocation2 + $0x7c] sm:$0xf] %vm1244_vm11, %v6739_v17  ;;  %v5391_v8 = vrot.slane %v5390_v41, 4  ;;  %v6164_v17 = vrot.slane %v6162_v5, 5  ;;  %v6147_v29 = vrot.slane %v6145_v23, 4  ;;  %v6150_v51 = vrot.slane %v6148_v55, 5 }
 0x34e   : > { %7595 = vst.msk [vmem:[#allocation2 + $0x7c] sm:$0xf] %vm2016_vm12, %v14597_v62  ;;  %v14645_v36 = vpop.permute.xlu2 %6742  ;;  %v7230_v62 = vrot.slane %v7229_v38, 4  ;;  %v10896_v38 = vld [vmem:[%s11564_s18 + $0xd8] sm:$0xe]  ;;  %v6667_v30 = vsel %vm11738_vm6, %v10845_v21, %v6666_v13  ;;  %v4818_v44 = vsel %vm11738_vm6, %v10591_v14, %v4817_v4  ;;  %v6154_v6 = vshll.u32 %v10737_v57, 16 }
 0x34f   : > { %v5400_v24 = vsel %vm12136_vm10, %v5391_v8, %v5399_v59  ;;  %v7244_v9 = vshll.u32 %v10896_v38, 16  ;;  %v6151_v0 = vor.u32 %v6150_v51, %v6147_v29  ;;  %v4814_v23 = vsel %vm11738_vm6, %v10590_v7, %v4813_v20  ;;  %v10802_v8 = vld [vmem:[%s11564_s18 + $0xe0] sm:$0xe]  ;;  %v10803_v59 = vld [vmem:[%s11564_s18 + $0xe4] sm:$0x1] }
 0x350   : > { %v7239_v19 = vsel %vm12136_vm10, %v7230_v62, %v7238_v63  ;;  %v6165_v62 = vor.u32 %v6164_v17, %v6161_v28  ;;  %v7241_v63 = vshrl.u32 %v10896_v38, 16  ;;  %v10740_v51 = vld [vmem:[%s11564_s18 + $0xe8] sm:$0xf]  ;;  %v10847_v60 = vrot.slane %v10802_v8, 9  ;;  %v10801_v22 = vld [vmem:[%s11564_s18 + $0xdc] sm:$0x1] }
 0x351   : > { %6756 = vrot.lane.b32.xlu1 %v6663_v10, %s11528_s20  ;;  %v10739_v10 = vld [vmem:[%s11564_s18 + $0xe4] sm:$0x1]  ;;  %v7246_v37 = vrot.slane %v7244_v9, 6  ;;  %v6152_v13 = vrot.slane %v6151_v0, 4  ;;  %v6176_v9 = vshll.u32 %v10740_v51, 16  ;;  %v6670_v0 = vrot.slane %v10801_v22, 5 }
 0x352   : > { %6374 = vrot.lane.b32.xlu0 %v6143_v52, %s11527_s19  ;;  %v5402_v52 = vshrl.u32 %v10642_v32, 16  ;;  %v6168_v43 = vshll.u32 %v10739_v10, 16  ;;  %v6166_v41 = vrot.slane %v6165_v62, 4  ;;  %v7243_v5 = vrot.slane %v7241_v63, 5  ;;  %v10548_v63 = vld [vmem:[%s11564_s18 + $0xe0] sm:$0xe] }
 0x353   : > { %v5654_v15 = vpop.permute.xlu1 %5653  ;;  %v11419_v45 = vld [vmem:[#allocation2 + $0x6c] sm:$0xf]  ;;  %v6674_v32 = vrot.slane %v10803_v59, 5 }
 0x354   : > { %5740 = vst.msk [vmem:[#allocation2 + $0x98] sm:$0xf] %vm2016_vm12, %v5654_v15  ;;  %v5652_v27 = vpop.permute.xlu0 %5651  ;;  %6372 = vrot.lane.b32.xlu2 %v6129_v26, %s11527_s19  ;;  %v5404_v26 = vrot.slane %v5402_v52, 5  ;;  %v5411_v15 = vshrl.u32 %v10643_v39, 16  ;;  %v6170_v56 = vrot.slane %v6168_v43, 5 }
 0x355   : > { %5739 = vst.msk [vmem:[#allocation2 + $0x88] sm:$0xf] %vm2016_vm12, %v5652_v27  ;;  %v10984_v47 = vld [vmem:[#allocation2 + $0x78] sm:$0xf0]  ;;  %v10646_v52 = vld [vmem:[%s11564_s18 + $0xe8] sm:$0xe] }
 0x356   : > { %v10987_v31 = vor.u32 %v11419_v45, %v10984_v47  ;;  %v4890_v61 = vpop.permute.xlu2 %4889  ;;  %v5414_v45 = vshll.u32 %v10643_v39, 16  ;;  %v7253_v47 = vshll.u32 %v10897_v18, 16  ;;  %v5408_v55 = vor.u32 %v5407_v42, %v5404_v26  ;;  %v10550_v43 = vld [vmem:[%s11564_s18 + $0xe8] sm:$0xe] }
 0x357   : > { %4974 = vst.msk [vmem:[#allocation2 + $0xb8] sm:$0xf] %vm1244_vm11, %v4890_v61  ;;  %v6171_v4 = vsel %vm11577_vm2, %v6166_v41, %v6170_v56  ;;  %v7247_v61 = vor.u32 %v7246_v37, %v7243_v5  ;;  %v10680_v37 = vld [vmem:[%s11564_s18 + $0x90] sm:$0xf] }
 0x358   : > { %8554 = vmatmul.bf16.gmra.mxu3 %v10987_v31  ;;  %v5413_v31 = vrot.slane %v5411_v15, 5  ;;  %v7255_v17 = vrot.slane %v7253_v47, 6  ;;  %v5409_v10 = vrot.slane %v5408_v55, 4  ;;  %v5438_v55 = vshrl.u32 %v10646_v52, 16  ;;  %5808 = vst.msk [vmem:[#allocation2 + $0xcc] sm:$0xf] %vm212_vm5, %v10680_v37 }
 0x359   : > { %7526 = vrot.lane.b32.xlu1 %v7239_v19, %s11529_s21  ;;  %v5416_v19 = vrot.slane %v5414_v45, 6  ;;  %v7248_v16 = vrot.slane %v7247_v61, 4  ;;  %v10681_v45 = vld [vmem:[%s11564_s18 + $0x98] sm:$0xf]  ;;  %v6178_v61 = vrot.slane %v6176_v9, 5 }
 0x35a   : > { %7524 = vrot.lane.b32.xlu0 %v7221_v46, %s11529_s21  ;;  %v6156_v46 = vrot.slane %v6154_v6, 5  ;;  %5809 = vst.msk [vmem:[#allocation2 + $0xdc] sm:$0xf] %vm212_vm5, %v10681_v45 }
 0x35b   : > { %v6741_v12 = vpop.permute.xlu1 %6740  ;;  %v11425_v34 = vld [vmem:[#allocation2 + $0x94] sm:$0xf0]  ;;  %v5417_v29 = vor.u32 %v5416_v19, %v5413_v31  ;;  %v5441_v31 = vshll.u32 %v10646_v52, 16  ;;  %v10593_v19 = vrot.slane %v10550_v43, 9 }
 0x35c   : > { %6828 = vst.msk [vmem:[#allocation2 + $0x8c] sm:$0xf] %vm1244_vm11, %v6741_v12  ;;  %v6359_v50 = vpop.permute.xlu0 %6358  ;;  %v10998_v1 = vld [vmem:[#allocation2 + $0x88] sm:$0xf]  ;;  %6758 = vrot.lane.b32.xlu2 %v6667_v30, %s11528_s20  ;;  %v6157_v38 = vsel %vm11577_vm2, %v6152_v13, %v6156_v46  ;;  %v10800_v30 = vld [vmem:[%s11564_s18 + $0xd8] sm:$0xe] }
 0x35d   : > { %6445 = vst.msk [vmem:[#allocation2 + $0x9c] sm:$0xf] %vm856_vm7, %v6359_v50  ;;  %v10999_v3 = vor.u32 %v11425_v34, %v10998_v1  ;;  %v6173_v12 = vshrl.u32 %v10740_v51, 16  ;;  %v5418_v39 = vsel %vm12136_vm10, %v5409_v10, %v5417_v29  ;;  %v10898_v50 = vld [vmem:[%s11564_s18 + $0xe0] sm:$0xe]  ;;  %v10846_v7 = vrot.slane %v10800_v30, 9 }
 0x35e   : > { %6829 = vst.msk [vmem:[#allocation2 + $0x9c] sm:$0xf] %vm1244_vm11, %v14645_v36  ;;  %v6361_v27 = vpop.permute.xlu2 %6360  ;;  %v7250_v36 = vshrl.u32 %v10897_v18, 16  ;;  %v10899_v1 = vld [vmem:[%s11564_s18 + $0xe4] sm:$0x3]  ;;  %v7259_v20 = vshrl.u32 %v10898_v50, 16 }
 0x35f   : > { %8470 = vmatmul.bf16.gmra.mxu2 %v10999_v3  ;;  %6446 = vst.msk [vmem:[#allocation2 + $0xac] sm:$0xf] %vm856_vm7, %v6361_v27  ;;  %v10551_v18 = vld [vmem:[%s11564_s18 + $0xec] sm:$0x1]  ;;  %v10549_v3 = vld [vmem:[%s11564_s18 + $0xe4] sm:$0x1]  ;;  %v6671_v10 = vsel %vm11738_vm6, %v10846_v7, %v6670_v0 }
 0x360   : > { %v7252_v28 = vrot.slane %v7250_v36, 5  ;;  %v7262_v26 = vshll.u32 %v10898_v50, 16  ;;  %v7268_v6 = vshrl.u32 %v10899_v1, 16  ;;  %v7271_v27 = vshll.u32 %v10899_v1, 16  ;;  %v10644_v51 = vld [vmem:[%s11564_s18 + $0xe0] sm:$0xe] }
 0x361   : > { %5671 = vrot.lane.b32.xlu1 %v5400_v24, %s11529_s21  ;;  %v7261_v56 = vrot.slane %v7259_v20, 5  ;;  %v6675_v36 = vsel %vm11738_vm6, %v10847_v60, %v6674_v32  ;;  %v10592_v13 = vrot.slane %v10548_v63, 9  ;;  %v4821_v46 = vrot.slane %v10549_v3, 5  ;;  %v10645_v32 = vld [vmem:[%s11564_s18 + $0xe4] sm:$0x3] }
 0x362   : > { %4905 = vrot.lane.b32.xlu0 %v4818_v44, %s11528_s20  ;;  %v7256_v34 = vor.u32 %v7255_v17, %v7252_v28  ;;  %v7264_v5 = vrot.slane %v7262_v26, 6  ;;  %v7270_v8 = vrot.slane %v7268_v6, 5  ;;  %v7273_v59 = vrot.slane %v7271_v27, 6  ;;  %v10902_v0 = vld [vmem:[%s11564_s18 + $0xf0] sm:$0xe] }
 0x363   : > { %v7511_v21 = vpop.permute.xlu1 %7510  ;;  %v5443_v60 = vrot.slane %v5441_v31, 6  ;;  %v4822_v52 = vsel %vm11738_vm6, %v10592_v13, %v4821_v46  ;;  %v5429_v63 = vshrl.u32 %v10645_v32, 16  ;;  %v5432_v3 = vshll.u32 %v10645_v32, 16  ;;  %v10804_v31 = vld [vmem:[%s11564_s18 + $0xe8] sm:$0xe] }
 0x364   : > { %7597 = vst.msk [vmem:[#allocation2 + $0x9c] sm:$0xf] %vm2016_vm12, %v7511_v21  ;;  %v7509_v14 = vpop.permute.xlu0 %7508  ;;  %4903 = vrot.lane.b32.xlu2 %v4814_v23, %s11528_s20  ;;  %v7257_v41 = vsel %vm12136_vm10, %v7248_v16, %v7256_v34  ;;  %v10647_v23 = vld [vmem:[%s11564_s18 + $0xec] sm:$0x3]  ;;  %v4825_v21 = vrot.slane %v10551_v18, 5  ;;  %v7265_v29 = vor.u32 %v7264_v5, %v7261_v56  ;;  %v5440_v16 = vrot.slane %v5438_v55, 5 }
 0x365   : > { %7596 = vst.msk [vmem:[#allocation2 + $0x8c] sm:$0xf] %vm2016_vm12, %v7509_v14  ;;  %v10741_v14 = vld [vmem:[%s11564_s18 + $0xec] sm:$0x1]  ;;  %v5447_v28 = vshrl.u32 %v10647_v23, 16  ;;  %v5450_v17 = vshll.u32 %v10647_v23, 16 }
 0x366   : > { %v14710_v57 = vpop.permute.xlu2 %6746  ;;  %v6182_v22 = vshll.u32 %v10741_v14, 16  ;;  %v7266_v43 = vrot.slane %v7265_v29, 4  ;;  %v5423_v18 = vshll.u32 %v10644_v51, 16  ;;  %v5444_v9 = vor.u32 %v5443_v60, %v5440_v16  ;;  %v10807_v55 = vld [vmem:[%s11564_s18 + $0xf4] sm:$0x1] }
 0x367   : > { %v5449_v7 = vrot.slane %v5447_v28, 5  ;;  %v5452_v20 = vrot.slane %v5450_v17, 6  ;;  %v5431_v27 = vrot.slane %v5429_v63, 5  ;;  %v10805_v13 = vld [vmem:[%s11564_s18 + $0xec] sm:$0x1]  ;;  %v7295_v46 = vshrl.u32 %v10902_v0, 16 }
 0x368   : > { %v6184_v45 = vrot.slane %v6182_v22, 5  ;;  %v5445_v5 = vrot.slane %v5444_v9, 4  ;;  %v10903_v14 = vld [vmem:[%s11564_s18 + $0xf4] sm:$0x3]  ;;  %v6682_v17 = vrot.slane %v10807_v55, 5  ;;  %v6678_v32 = vrot.slane %v10805_v13, 5 }
 0x369   : > { %6378 = vrot.lane.b32.xlu1 %v6171_v4, %s11527_s19  ;;  %v6175_v4 = vrot.slane %v6173_v12, 4  ;;  %v5453_v37 = vor.u32 %v5452_v20, %v5449_v7  ;;  %v10743_v29 = vld [vmem:[%s11564_s18 + $0xf4] sm:$0x1]  ;;  %v8699_v22 = vld [vmem:[%s14770_s27 + $0x3c] sm:$0x7] }
 0x36a   : > { %6376 = vrot.lane.b32.xlu0 %v6157_v38, %s11527_s19 }
 0x36b   : > { %v5658_v24 = vpop.permute.xlu1 %5657  ;;  %v11000_v62 = vld [vmem:[#allocation2 + $0x98] sm:$0xf0]  ;;  %v6179_v1 = vor.u32 %v6178_v61, %v6175_v4  ;;  %v5454_v28 = vsel %vm12136_vm10, %v5445_v5, %v5453_v37 }
 0x36c   : > { %5742 = vst.msk [vmem:[#allocation2 + $0xb8] sm:$0xf] %vm2016_vm12, %v5658_v24  ;;  %v5656_v42 = vpop.permute.xlu0 %5655  ;;  %v11423_v15 = vld [vmem:[#allocation2 + $0x8c] sm:$0xf]  ;;  %5673 = vrot.lane.b32.xlu2 %v5418_v39, %s11529_s21  ;;  %v4826_v39 = vsel %vm11738_vm6, %v10593_v19, %v4825_v21  ;;  %v7274_v24 = vor.u32 %v7273_v59, %v7270_v8 }
 0x36d   : > { %5741 = vst.msk [vmem:[#allocation2 + $0xa8] sm:$0xf] %vm2016_vm12, %v5656_v42  ;;  %v11003_v44 = vor.u32 %v11423_v15, %v11000_v62  ;;  %v5420_v62 = vshrl.u32 %v10644_v51, 16  ;;  %v5425_v42 = vrot.slane %v5423_v18, 6  ;;  %v6180_v15 = vrot.slane %v6179_v1, 4 }
 0x36e   : > { %v4892_v47 = vpop.permute.xlu2 %4891  ;;  %v8684_v51 = vld [vmem:[%s14770_s27 + $0x28] sm:$0x7]  ;;  %v10648_v1 = vld [vmem:[%s11564_s18 + $0xf0] sm:$0xe] }
 0x36f   : > { %8559 = vmatmul.bf16.gmra.mxu3 %v11003_v44  ;;  %4975 = vst.msk [vmem:[#allocation2 + $0xc8] sm:$0xf] %vm1244_vm11, %v4892_v47  ;;  %v5422_v26 = vrot.slane %v5420_v62, 5  ;;  %v7275_v44 = vsel %vm12136_vm10, %v7266_v43, %v7274_v24  ;;  %v6185_v19 = vsel %vm11577_vm2, %v6180_v15, %v6184_v45  ;;  %v6196_v62 = vshll.u32 %v10743_v29, 16 }
 0x370   : > { %v8685_v43 = vsel %vm14787_vm14, 0, %v8684_v51  ;;  %v8700_v15 = vsel %vm14787_vm14, 0, %v8699_v22 }
 0x371   : > { %7528 = vrot.lane.b32.xlu1 %v7257_v41, %s11529_s21  ;;  %v5426_v6 = vor.u32 %v5425_v42, %v5422_v26  ;;  %v5434_v41 = vrot.slane %v5432_v3, 6  ;;  %8686 = vst [vmem:[%s14770_s27 + $0x28] sm:$0x7] %v8685_v43  ;;  %v10552_v26 = vld [vmem:[%s11564_s18 + $0xf0] sm:$0xe]  ;;  %v6198_v5 = vrot.slane %v6196_v62, 5 }
 0x372   : > { %6762 = vrot.lane.b32.xlu0 %v6675_v36, %s11528_s20  ;;  %v10742_v36 = vld [vmem:[%s11564_s18 + $0xf0] sm:$0xf]  ;;  %8701 = vst [vmem:[%s14770_s27 + $0x3c] sm:$0x7] %v8700_v15  ;;  %v8759_v62 = vld [vmem:[%s14770_s27 + $0x8c] sm:$0x7] }
 0x373   : > { %v6745_v38 = vpop.permute.xlu1 %6744  ;;  %v11429_v30 = vld [vmem:[#allocation2 + $0xb4] sm:$0xf0]  ;;  %v5427_v4 = vrot.slane %v5426_v6, 4  ;;  %v5435_v61 = vor.u32 %v5434_v41, %v5431_v27  ;;  %v6187_v8 = vshrl.u32 %v10742_v36, 16  ;;  %v6190_v59 = vshll.u32 %v10742_v36, 16 }
 0x374   : > { %6830 = vst.msk [vmem:[#allocation2 + $0xac] sm:$0xf] %vm1244_vm11, %v6745_v38  ;;  %v6363_v12 = vpop.permute.xlu0 %6362  ;;  %v11014_v34 = vld [vmem:[#allocation2 + $0xa8] sm:$0xf]  ;;  %6760 = vrot.lane.b32.xlu2 %v6671_v10, %s11528_s20  ;;  %v7298_v10 = vshll.u32 %v10902_v0, 16  ;;  %v10848_v38 = vrot.slane %v10804_v31, 9 }
 0x375   : > { %6447 = vst.msk [vmem:[#allocation2 + $0xbc] sm:$0xf] %vm856_vm7, %v6363_v12  ;;  %v11015_v50 = vor.u32 %v11429_v30, %v11014_v34  ;;  %v10650_v30 = vld [vmem:[%s11564_s18 + $0xf8] sm:$0xe]  ;;  %v6189_v16 = vrot.slane %v6187_v8, 4  ;;  %v6192_v60 = vrot.slane %v6190_v59, 5 }
 0x376   : > { %6831 = vst.msk [vmem:[#allocation2 + $0xbc] sm:$0xf] %vm1244_vm11, %v14710_v57  ;;  %v14758_v57 = vld [vmem:[%s11564_s18 + $0xf0] sm:$0xe]  ;;  %v5662_v23 = vpop.permute.xlu2 %5661  ;;  %v7297_v12 = vrot.slane %v7295_v46, 5  ;;  %v7304_v34 = vshrl.u32 %v10903_v14, 16  ;;  %v6679_v37 = vsel %vm11738_vm6, %v10848_v38, %v6678_v32 }
 0x377   : > { %8475 = vmatmul.bf16.gmra.mxu2 %v11015_v50  ;;  %v10849_v21 = vrot.slane %v14758_v57, 9  ;;  %v5436_v50 = vsel %vm12136_vm10, %v5427_v4, %v5435_v61  ;;  %v6193_v24 = vor.u32 %v6192_v60, %v6189_v16  ;;  %v7300_v3 = vrot.slane %v7298_v10, 6  ;;  %v10651_v57 = vld [vmem:[%s11564_s18 + $0xfc] sm:$0x3]  ;;  %v10553_v41 = vld [vmem:[%s11564_s18 + $0xf4] sm:$0x1] }
 0x378   : > { %v5474_v9 = vshrl.u32 %v10650_v30, 16  ;;  %v5477_v42 = vshll.u32 %v10650_v30, 16  ;;  %v5459_v0 = vshll.u32 %v10648_v1, 16  ;;  %v10649_v31 = vld [vmem:[%s11564_s18 + $0xf4] sm:$0x3]  ;;  %v5486_v46 = vshll.u32 %v10651_v57, 16 }
 0x379   : > { %4909 = vrot.lane.b32.xlu1 %v4826_v39, %s11528_s20  ;;  %v7307_v39 = vshll.u32 %v10903_v14, 16  ;;  %v6683_v6 = vsel %vm11738_vm6, %v10849_v21, %v6682_v17  ;;  %v7301_v36 = vor.u32 %v7300_v3, %v7297_v12  ;;  %v10594_v21 = vrot.slane %v10552_v26, 9  ;;  %v8744_v17 = vld [vmem:[%s14770_s27 + $0x78] sm:$0x7] }
 0x37a   : > { %4907 = vrot.lane.b32.xlu0 %v4822_v52, %s11528_s20  ;;  %v5479_v13 = vrot.slane %v5477_v42, 6  ;;  %v5461_v4 = vrot.slane %v5459_v0, 6  ;;  %v4829_v61 = vrot.slane %v10553_v41, 5  ;;  %v5465_v8 = vshrl.u32 %v10649_v31, 16  ;;  %v10747_v42 = vld [vmem:[%s11564_s18 + $0x104] sm:$0x1] }
 0x37b   : > { %v7515_v56 = vpop.permute.xlu1 %7514  ;;  %v7309_v55 = vrot.slane %v7307_v39, 6  ;;  %v5468_v59 = vshll.u32 %v10649_v31, 16  ;;  %v7302_v51 = vrot.slane %v7301_v36, 4  ;;  %v5488_v32 = vrot.slane %v5486_v46, 6  ;;  %v10901_v0 = vld [vmem:[%s11564_s18 + $0xec] sm:$0x3] }
 0x37c   : > { %7599 = vst.msk [vmem:[#allocation2 + $0xbc] sm:$0xf] %vm2016_vm12, %v7515_v56  ;;  %v7513_v47 = vpop.permute.xlu0 %7512  ;;  %7530 = vrot.lane.b32.xlu2 %v7275_v44, %s11529_s21  ;;  %v5456_v44 = vshrl.u32 %v10648_v1, 16  ;;  %v6194_v56 = vrot.slane %v6193_v24, 4  ;;  %v8745_v12 = vsel %vm14787_vm14, 0, %v8744_v17  ;;  %v5467_v1 = vrot.slane %v5465_v8, 5 }
 0x37d   : > { %7598 = vst.msk [vmem:[#allocation2 + $0xac] sm:$0xf] %vm2016_vm12, %v7513_v47  ;;  %v7306_v47 = vrot.slane %v7304_v34, 5  ;;  %v5470_v24 = vrot.slane %v5468_v59, 6  ;;  %v8657_v41 = vld [vmem:[%s14770_s27 + $0x4] sm:$0x7] }
 0x37e   : > { %v6749_v27 = vpop.permute.xlu2 %6748  ;;  %v5458_v14 = vrot.slane %v5456_v44, 5  ;;  %8746 = vst [vmem:[%s14770_s27 + $0x78] sm:$0x7] %v8745_v12  ;;  %v10809_v31 = vld [vmem:[%s11564_s18 + $0xfc] sm:$0x1]  ;;  %v7289_v46 = vshll.u32 %v10901_v0, 16 }
 0x37f   : > { %v7310_v38 = vor.u32 %v7309_v55, %v7306_v47  ;;  %v5471_v26 = vor.u32 %v5470_v24, %v5467_v1  ;;  %v10808_v55 = vld [vmem:[%s11564_s18 + $0xf8] sm:$0xe]  ;;  %v8658_v8 = vsel %vm14787_vm14, 0, %v8657_v41  ;;  %v6686_v12 = vrot.slane %v10809_v31, 5  ;;  %v8717_v41 = vld [vmem:[%s14770_s27 + $0x54] sm:$0x7] }
 0x380   : > { %v5462_v39 = vor.u32 %v5461_v4, %v5458_v14  ;;  %v8804_v14 = vld [vmem:[%s14770_s27 + $0xc8] sm:$0x7]  ;;  %8659 = vst [vmem:[%s14770_s27 + $0x4] sm:$0x7] %v8658_v8 }
 0x381   : > { %6380 = vrot.lane.b32.xlu1 %v6185_v19, %s11527_s19  ;;  %v5476_v19 = vrot.slane %v5474_v9, 5  ;;  %v7311_v43 = vsel %vm12136_vm10, %v7302_v51, %v7310_v38  ;;  %v8805_v59 = vsel %vm14787_vm14, 0, %v8804_v14 }
 0x382   : > { %5677 = vrot.lane.b32.xlu0 %v5454_v28, %s11529_s21  ;;  %v6199_v28 = vsel %vm11577_vm2, %v6194_v56, %v6198_v5  ;;  %8806 = vst [vmem:[%s14770_s27 + $0xc8] sm:$0x7] %v8805_v59  ;;  %v14896_v59 = vld [vmem:[%s11564_s18 + $0xf8] sm:$0xe] }
 0x383   : > { %v5660_v18 = vpop.permute.xlu1 %5659  ;;  %v11016_v63 = vld [vmem:[#allocation2 + $0xb8] sm:$0xf0]  ;;  %v5480_v16 = vor.u32 %v5479_v13, %v5476_v19 }
 0x384   : > { %5743 = vst.msk [vmem:[#allocation2 + $0xc8] sm:$0xf] %vm2016_vm12, %v5660_v18  ;;  %v4894_v7 = vpop.permute.xlu0 %4893  ;;  %v11427_v20 = vld [vmem:[#allocation2 + $0xac] sm:$0xf]  ;;  %5675 = vrot.lane.b32.xlu2 %v5436_v50, %s11529_s21  ;;  %v4830_v50 = vsel %vm11738_vm6, %v10594_v21, %v4829_v61  ;;  %v8760_v18 = vsel %vm14787_vm14, 0, %v8759_v62  ;;  %v6224_v61 = vshll.u32 %v10747_v42, 16 }
 0x385   : > { %4976 = vst.msk [vmem:[#allocation2 + $0xd8] sm:$0xf] %vm1244_vm11, %v4894_v7  ;;  %v11019_v45 = vor.u32 %v11427_v20, %v11016_v63  ;;  %v5481_v3 = vrot.slane %v5480_v16, 4  ;;  %v5463_v7 = vrot.slane %v5462_v39, 4  ;;  %v10746_v20 = vld [vmem:[%s11564_s18 + $0x100] sm:$0xf] }
 0x386   : > { %5744 = vst.msk [vmem:[#allocation2 + $0xd8] sm:$0xf] %vm2016_vm12, %v5662_v23  ;;  %v5483_v23 = vshrl.u32 %v10651_v57, 16  ;;  %v7519_v63 = vpop.permute.xlu2 %7518  ;;  %v6215_v15 = vshrl.u32 %v10746_v20, 16  ;;  %v10900_v57 = vld [vmem:[%s11564_s18 + $0xe8] sm:$0xe] }
 0x387   : > { %8564 = vmatmul.bf16.gmra.mxu3 %v11019_v45  ;;  %8761 = vst [vmem:[%s14770_s27 + $0x8c] sm:$0x7] %v8760_v18  ;;  %v6218_v45 = vshll.u32 %v10746_v20, 16  ;;  %v5472_v21 = vsel %vm12136_vm10, %v5463_v7, %v5471_v26  ;;  %v6226_v1 = vrot.slane %v6224_v61, 5  ;;  %v10682_v7 = vld [vmem:[%s11564_s18 + $0xa0] sm:$0xf] }
 0x388   : > { %v5485_v60 = vrot.slane %v5483_v23, 5  ;;  %v6217_v36 = vrot.slane %v6215_v15, 4  ;;  %v7286_v23 = vshrl.u32 %v10901_v0, 16  ;;  %v8864_v20 = vld [vmem:[%s14770_s27 + $0x118] sm:$0x7] }
 0x389   : > { %6766 = vrot.lane.b32.xlu1 %v6683_v6, %s11528_s20  ;;  %v7277_v6 = vshrl.u32 %v10900_v57, 16  ;;  %v8451_v56 = vpop.f32.mrf.mxu2  ;;  %v6220_v47 = vrot.slane %v6218_v45, 5  ;;  %5810 = vst.msk [vmem:[#allocation2 + $0xec] sm:$0xf] %vm212_vm5, %v10682_v7  ;;  %v8865_v42 = vsel %vm14787_vm14, 0, %v8864_v20 }
 0x38a   : > { %6764 = vrot.lane.b32.xlu0 %v6679_v37, %s11528_s20  ;;  %v5489_v9 = vor.u32 %v5488_v32, %v5485_v60  ;;  %v8452_v16 = vadd.f32 %v8451_v56, %v14062_v53  ;;  %v10850_v32 = vrot.slane %v10808_v55, 9  ;;  %v8879_v15 = vld [vmem:[%s14770_s27 + $0x12c] sm:$0x7]  ;;  %8866 = vst [vmem:[%s14770_s27 + $0x118] sm:$0x7] %v8865_v42 }
 0x38b   : > { %v6367_v10 = vpop.permute.xlu1 %6366  ;;  %v11030_v29 = vld [vmem:[#allocation2 + $0xc8] sm:$0xf]  ;;  %v7279_v19 = vrot.slane %v7277_v6, 5  ;;  %v6221_v4 = vor.u32 %v6220_v47, %v6217_v36  ;;  %v8880_v6 = vsel %vm14787_vm14, 0, %v8879_v15  ;;  %v10906_v47 = vld [vmem:[%s11564_s18 + $0x100] sm:$0xe] }
 0x38c   : > { %6449 = vst.msk [vmem:[#allocation2 + $0xdc] sm:$0xf] %vm856_vm7, %v6367_v10  ;;  %v6365_v30 = vpop.permute.xlu0 %6364  ;;  %6382 = vrot.lane.b32.xlu2 %v6199_v28, %s11527_s19  ;;  %v5490_v37 = vsel %vm12136_vm10, %v5481_v3, %v5489_v9  ;;  %v8819_v28 = vld [vmem:[%s14770_s27 + $0xdc] sm:$0x7]  ;;  %v7288_v10 = vrot.slane %v7286_v23, 5  ;;  %v6687_v9 = vsel %vm11738_vm6, %v10850_v32, %v6686_v12  ;;  %v7334_v23 = vshll.u32 %v10906_v47, 16 }
 0x38d   : > { %6448 = vst.msk [vmem:[#allocation2 + $0xcc] sm:$0xf] %vm856_vm7, %v6365_v30  ;;  %v11433_v34 = vld [vmem:[#allocation2 + $0xd4] sm:$0xf0]  ;;  %v8820_v51 = vsel %vm14787_vm14, 0, %v8819_v28 }
 0x38e   : > { %6832 = vst.msk [vmem:[#allocation2 + $0xcc] sm:$0xf] %vm1244_vm11, %v6749_v27  ;;  %v11031_v22 = vor.u32 %v11433_v34, %v11030_v29  ;;  %v7280_v27 = vshll.u32 %v10900_v57, 16  ;;  %v7291_v29 = vrot.slane %v7289_v46, 6  ;;  %v5664_v60 = vpop.permute.xlu2 %5663  ;;  %v10683_v56 = vld [vmem:[%s11564_s18 + $0xa8] sm:$0xf] }
 0x38f   : > { %8821 = vst [vmem:[%s14770_s27 + $0xdc] sm:$0x7] %v8820_v51  ;;  %v8777_v7 = vld [vmem:[%s14770_s27 + $0xa4] sm:$0x7] }
 0x390   : > { %8480 = vmatmul.bf16.gmra.mxu2 %v11031_v22  ;;  %v7282_v13 = vrot.slane %v7280_v27, 6  ;;  %v7292_v30 = vor.u32 %v7291_v29, %v7288_v10  ;;  %8881 = vst [vmem:[%s14770_s27 + $0x12c] sm:$0x7] %v8880_v6  ;;  %v7336_v10 = vrot.slane %v7334_v23, 6 }
 0x391   : > { %4911 = vrot.lane.b32.xlu1 %v4830_v50, %s11528_s20  ;;  %v6222_v50 = vrot.slane %v6221_v4, 4  ;;  %v8453_v18 = vpop.f32.mrf.mxu2  ;;  %5811 = vst.msk [vmem:[#allocation2 + $0xfc] sm:$0xf] %vm212_vm5, %v10683_v56 }
 0x392   : > { %7534 = vrot.lane.b32.xlu0 %v7311_v43, %s11529_s21  ;;  %v7283_v17 = vor.u32 %v7282_v13, %v7279_v19  ;;  %v8454_v0 = vadd.f32 %v8453_v18, %v14106_v33  ;;  %v8718_v33 = vsel %vm14787_vm14, 0, %v8717_v41  ;;  %v10907_v19 = vld [vmem:[%s11564_s18 + $0x104] sm:$0x3]  ;;  %v7331_v13 = vshrl.u32 %v10906_v47, 16  ;;  %v10554_v47 = vld [vmem:[%s11564_s18 + $0xf8] sm:$0xe] }
 0x393   : > { %v7517_v44 = vpop.permute.xlu1 %7516  ;;  %v6227_v26 = vsel %vm11577_vm2, %v6222_v50, %v6226_v1  ;;  %8719 = vst [vmem:[%s14770_s27 + $0x54] sm:$0x7] %v8718_v33  ;;  %v7340_v29 = vshrl.u32 %v10907_v19, 16  ;;  %v7343_v12 = vshll.u32 %v10907_v19, 16 }
 0x394   : > { %7600 = vst.msk [vmem:[#allocation2 + $0xcc] sm:$0xf] %vm2016_vm12, %v7517_v44  ;;  %v6751_v5 = vpop.permute.xlu0 %6750  ;;  %v7284_v38 = vrot.slane %v7283_v17, 4  ;;  %v7333_v17 = vrot.slane %v7331_v13, 5  ;;  %v7316_v13 = vshll.u32 %v14896_v59, 16 }
 0x395   : > { %6833 = vst.msk [vmem:[#allocation2 + $0xdc] sm:$0xf] %vm1244_vm11, %v6751_v5  ;;  %v7342_v32 = vrot.slane %v7340_v29, 5 }
 0x396   : > { %7601 = vst.msk [vmem:[#allocation2 + $0xdc] sm:$0xf] %vm2016_vm12, %v7519_v63  ;;  %v7293_v24 = vsel %vm12136_vm10, %v7284_v38, %v7292_v30  ;;  %v6371_v8 = vpop.permute.xlu2 %6370 }
 0x397   : > { %7532 = vrot.lane.b32.xlu2 %v7293_v24, %s11529_s21  ;;  %6451 = vst.msk [vmem:[#allocation2 + $0xfc] sm:$0xf] %vm856_vm7, %v6371_v8 }
 0x399   : > { %5681 = vrot.lane.b32.xlu1 %v5490_v37, %s11529_s21 }
 0x39a   : > { %5679 = vrot.lane.b32.xlu0 %v5472_v21, %s11529_s21 }
 0x39b   : > { %v8540_v34 = vpop.f32.mrf.mxu3  ;;  %v4898_v39 = vpop.permute.xlu1 %4897  ;;  %v11431_v22 = vld [vmem:[#allocation2 + $0xcc] sm:$0xf] }
 0x39c   : > { %v8541_v62 = vadd.f32 %v8540_v34, %v8452_v16  ;;  %4978 = vst.msk [vmem:[#allocation2 + $0xf8] sm:$0xf] %vm1244_vm11, %v4898_v39  ;;  %v4896_v53 = vpop.permute.xlu0 %4895  ;;  %v7313_v34 = vshrl.u32 %v14896_v59, 16  ;;  %v10652_v59 = vld [vmem:[%s11564_s18 + $0x118] sm:$0xe] }
 0x39d   : > { %4977 = vst.msk [vmem:[#allocation2 + $0xe8] sm:$0xf] %vm1244_vm11, %v4896_v53  ;;  %v11032_v43 = vld [vmem:[#allocation2 + $0xd8] sm:$0xf0] }
 0x39e   : > { %v8620_v63 = vmax.f32 %v8541_v62, 0.0  ;;  %5745 = vst.msk [vmem:[#allocation2 + $0xe8] sm:$0xf] %vm2016_vm12, %v5664_v60  ;;  %v11035_v3 = vor.u32 %v11431_v22, %v11032_v43  ;;  %v7337_v60 = vor.u32 %v7336_v10, %v7333_v17  ;;  %v7315_v33 = vrot.slane %v7313_v34, 5 }
 0x39f   : > { %v7318_v17 = vrot.slane %v7316_v13, 6  ;;  %v10595_v34 = vrot.slane %v10554_v47, 9 }
 0x3a0   : > { %v8910_v45 = vrot.slane %v8620_v63, 2  ;;  %v8911_v57 = vrot.slane %v8620_v63, 4  ;;  %v8912_v44 = vrot.slane %v8620_v63, 6  ;;  %8569 = vmatmul.bf16.gmra.mxu3 %v11035_v3  ;;  %v9006_v27 = vpack.c.bf16 %v8620_v63, %v8620_v63 }
 0x3a1   : > { %6768 = vrot.lane.b32.xlu1 %v6687_v9, %s11528_s20  ;;  %v11324_v9 = vld [vmem:[%s14770_s27 + $0x28] sm:$0x7]  ;;  %v7338_v41 = vrot.slane %v7337_v60, 4 }
 0x3a2   : > { %v9007_v5 = vpack.c.bf16 %v8910_v45, %v8910_v45  ;;  %v9008_v37 = vpack.c.bf16 %v8911_v57, %v8911_v57  ;;  %v9009_v36 = vpack.c.bf16 %v8912_v44, %v8912_v44  ;;  %6386 = vrot.lane.b32.xlu0 %v6227_v26, %s11527_s19  ;;  %v9134_v28 = vunpack.c.l.b16 %v9006_v27  ;;  %v10905_v44 = vld [vmem:[%s11564_s18 + $0xfc] sm:$0x3]  ;;  %v8456_v29 = vpop.f32.mrf.mxu2 }
 0x3a3   : > { %v8542_v55 = vpop.f32.mrf.mxu3  ;;  %v6369_v31 = vpop.permute.xlu1 %6368  ;;  %v8778_v45 = vsel %vm14787_vm14, 0, %v8777_v7  ;;  %v7322_v23 = vshrl.u32 %v10905_v44, 16 }
 0x3a4   : > { %v9135_v46 = vunpack.c.l.b16 %v9007_v5  ;;  %v9136_v21 = vunpack.c.l.b16 %v9008_v37  ;;  %v9137_v14 = vunpack.c.l.b16 %v9009_v36  ;;  %v8543_v4 = vadd.f32 %v8542_v55, %v8454_v0  ;;  %6450 = vst.msk [vmem:[#allocation2 + $0xec] sm:$0xf] %vm856_vm7, %v6369_v31  ;;  %v5666_v61 = vpop.permute.xlu0 %5665 }
 0x3a5   : > { %5746 = vst.msk [vmem:[#allocation2 + $0xf8] sm:$0xf] %vm2016_vm12, %v5666_v61  ;;  %v7345_v36 = vrot.slane %v7343_v12, 6  ;;  %v10555_v61 = vld [vmem:[%s11564_s18 + $0xfc] sm:$0x1]  ;;  %v7324_v10 = vrot.slane %v7322_v23, 5  ;;  %v7319_v12 = vor.u32 %v7318_v17, %v7315_v33 }
 0x3a6   : > { %v9198_v51 = vrot.slane %v9135_v46, 7  ;;  %v9201_v38 = vrot.slane %v9136_v21, 6  ;;  %v9204_v30 = vrot.slane %v9137_v14, 5  ;;  %v8621_v16 = vmax.f32 %v8543_v4, 0.0  ;;  %8779 = vst [vmem:[%s14770_s27 + $0xa4] sm:$0x7] %v8778_v45  ;;  %v7521_v46 = vpop.permute.xlu2 %7520 }
 0x3a7   : > { %v7346_v14 = vor.u32 %v7345_v36, %v7342_v32  ;;  %v7325_v4 = vshll.u32 %v10905_v44, 16  ;;  %v5495_v45 = vshll.u32 %v10652_v59, 16 }
 0x3a8   : > { %v9200_v39 = vsel %vm9199_vm15, %v9198_v51, %v9134_v28  ;;  %v9347_v22 = vsel %vm9202_vm0, %v9198_v51, %v9134_v28  ;;  %v9495_v50 = vrot.slane %v8621_v16, 2  ;;  %v9496_v1 = vrot.slane %v8621_v16, 4 }
 0x3a9   : > { %v9203_v24 = vsel %vm9202_vm0, %v9201_v38, %v9200_v39  ;;  %v9348_v62 = vsel %vm9205_vm1, %v9201_v38, %v9347_v22  ;;  %v9497_v53 = vrot.slane %v8621_v16, 6  ;;  %v9591_v43 = vpack.c.bf16 %v8621_v16, %v8621_v16  ;;  %v11046_v16 = vld [vmem:[#allocation2 + $0xe8] sm:$0xf]  ;;  %v10653_v39 = vld [vmem:[%s11564_s18 + $0x11c] sm:$0x3] }
 0x3aa   : > { %v9206_v18 = vsel %vm9205_vm1, %v9204_v30, %v9203_v24  ;;  %v9350_v63 = vsel %vm9349_vm4, %v9204_v30, %v9348_v62  ;;  %v9592_v20 = vpack.c.bf16 %v9495_v50, %v9495_v50  ;;  %v9593_v26 = vpack.c.bf16 %v9496_v1, %v9496_v1  ;;  %v10558_v22 = vld [vmem:[%s11564_s18 + $0x120] sm:$0xe]  ;;  %v8837_v50 = vld [vmem:[%s14770_s27 + $0xf4] sm:$0x7] }
 0x3ab   : > { %v9297_v42 = vpack.c.b16 %v9206_v18, %v9206_v18  ;;  %v9396_v15 = vpack.c.b16 %v9350_v63, %v9350_v63  ;;  %v9594_v57 = vpack.c.bf16 %v9497_v53, %v9497_v53  ;;  %v9719_v0 = vunpack.c.l.b16 %v9591_v43  ;;  %v6755_v56 = vpop.permute.xlu1 %6754  ;;  %v10559_v53 = vld [vmem:[%s11564_s18 + $0x124] sm:$0x1] }
 0x3ac   : > { %v9720_v6 = vunpack.c.l.b16 %v9592_v20  ;;  %v9721_v27 = vunpack.c.l.b16 %v9593_v26  ;;  %v6753_v55 = vpop.permute.xlu0 %6752  ;;  %6835 = vst.msk [vmem:[#allocation2 + $0xfc] sm:$0xf] %vm1244_vm11, %v6755_v56  ;;  %v7347_v38 = vsel %vm12136_vm10, %v7338_v41, %v7346_v14  ;;  %v7327_v30 = vrot.slane %v7325_v4, 6  ;;  %v11437_v60 = vld [vmem:[#allocation2 + $0xf4] sm:$0xf0] }
 0x3ad   : > { %11308 = vst.msk [vmem:[%s14770_s27 + $0x3c] sm:$0x3] %vm9330_vm8, %v9297_v42  ;;  %v9432_v5 = vsel %vm14910_vm9, %v9396_v15, %v11324_v9  ;;  %v9722_v37 = vunpack.c.l.b16 %v9594_v57  ;;  %7538 = vrot.lane.b32.xlu1 %v7347_v38, %s11529_s21  ;;  %v4833_v62 = vrot.slane %v10555_v61, 5  ;;  %v8457_v43 = vadd.f32 %v8456_v29, %v14142_v35  ;;  %v8687_v20 = vld [vmem:[%s14770_s27 + $0x2c] sm:$0x7] }
 0x3ae   : > { %11325 = vst [vmem:[%s14770_s27 + $0x28] sm:$0x7] %v9432_v5  ;;  %v9783_v31 = vrot.slane %v9720_v6, 7  ;;  %v9785_v19 = vrot.slane %v9721_v27, 6  ;;  %v7328_v24 = vor.u32 %v7327_v30, %v7324_v10  ;;  %v8838_v18 = vsel %vm14787_vm14, 0, %v8837_v50 }
 0x3af   : > { %v9787_v21 = vrot.slane %v9722_v37, 5  ;;  %6834 = vst.msk [vmem:[#allocation2 + $0xec] sm:$0xf] %vm1244_vm11, %v6753_v55  ;;  %v7320_v63 = vrot.slane %v7319_v12, 4  ;;  %v11047_v9 = vor.u32 %v11437_v60, %v11046_v16  ;;  %v8702_v26 = vld [vmem:[%s14770_s27 + $0x40] sm:$0x7]  ;;  %v4834_v42 = vsel %vm11738_vm6, %v10595_v34, %v4833_v62 }
 0x3b0   : > { %v9784_v8 = vsel %vm9199_vm15, %v9783_v31, %v9719_v0  ;;  %v9928_v28 = vsel %vm9202_vm0, %v9783_v31, %v9719_v0  ;;  %7602 = vst.msk [vmem:[#allocation2 + $0xec] sm:$0xf] %vm2016_vm12, %v7521_v46  ;;  %v5492_v15 = vshrl.u32 %v10652_v59, 16  ;;  %v5501_v57 = vshrl.u32 %v10653_v39, 16  ;;  %4913 = vrot.lane.b32.xlu2 %v4834_v42, %s11528_s20  ;;  %v11372_v14 = vld [vmem:[%s14770_s27 + $0x4] sm:$0x7] }
 0x3b1   : > { %v9786_v51 = vsel %vm9202_vm0, %v9785_v19, %v9784_v8  ;;  %v9929_v1 = vsel %vm9205_vm1, %v9785_v19, %v9928_v28  ;;  %8839 = vst [vmem:[%s14770_s27 + $0xf4] sm:$0x7] %v8838_v18  ;;  %v7329_v35 = vsel %vm12136_vm10, %v7320_v63, %v7328_v24  ;;  %8485 = vmatmul.bf16.gmra.mxu2 %v11047_v9  ;;  %v5504_v0 = vshll.u32 %v10653_v39, 16  ;;  %v10744_v59 = vld [vmem:[%s11564_s18 + $0xf8] sm:$0xf]  ;;  %v4902_v9 = vpop.permute.xlu2 %4901 }
 0x3b2   : > { %v14938_v32 = vsel %vm9205_vm1, %v9787_v21, %v9786_v51  ;;  %v8545_v7 = vpop.f32.mrf.mxu3  ;;  %v9930_v44 = vsel %vm9349_vm4, %v9787_v21, %v9929_v1  ;;  %v10597_v6 = vrot.slane %v10558_v22, 9  ;;  %7536 = vrot.lane.b32.xlu0 %v7329_v35, %s11529_s21  ;;  %v5494_v27 = vrot.slane %v5492_v15, 5  ;;  %v10745_v29 = vld [vmem:[%s11564_s18 + $0xfc] sm:$0x1]  ;;  %v10750_v60 = vld [vmem:[%s11564_s18 + $0x128] sm:$0xf] }
 0x3b3   : > { %v5497_v41 = vrot.slane %v5495_v45, 6  ;;  %v5503_v56 = vrot.slane %v5501_v57, 5  ;;  %v8546_v5 = vadd.f32 %v8545_v7, %v8457_v43  ;;  %v5506_v37 = vrot.slane %v5504_v0, 6  ;;  %v4900_v51 = vpop.permute.xlu1 %4899  ;;  %v10751_v39 = vld [vmem:[%s11564_s18 + $0x12c] sm:$0x1]  ;;  %v8458_v7 = vpop.f32.mrf.mxu2 }
 0x3b4   : > { %v4841_v36 = vrot.slane %v10559_v53, 5  ;;  %v8688_v33 = vsel %vm14787_vm14, 0, %v8687_v20  ;;  %v8703_v47 = vsel %vm14787_vm14, 0, %v8702_v26  ;;  %v9976_v55 = vpack.c.b16 %v9930_v44, %v9930_v44  ;;  %v7523_v16 = vpop.permute.xlu0 %7522  ;;  %4979 = vst.msk [vmem:[#allocation2 + $0x108] sm:$0xf] %vm1244_vm11, %v4900_v51 }
 0x3b5   : > { %v5498_v31 = vor.u32 %v5497_v41, %v5494_v27  ;;  %v8622_v19 = vmax.f32 %v8546_v5, 0.0  ;;  %8689 = vst [vmem:[%s14770_s27 + $0x2c] sm:$0x7] %v8688_v33  ;;  %v5507_v13 = vor.u32 %v5506_v37, %v5503_v56  ;;  %v6201_v38 = vshrl.u32 %v10744_v59, 16  ;;  %v8747_v22 = vld [vmem:[%s14770_s27 + $0x7c] sm:$0x7] }
 0x3b6   : > { %8704 = vst [vmem:[%s14770_s27 + $0x40] sm:$0x7] %v8703_v47  ;;  %v4842_v4 = vsel %vm11738_vm6, %v10597_v6, %v4841_v36  ;;  %v10010_v8 = vsel %vm14910_vm9, %v9976_v55, %v11372_v14  ;;  %v6204_v30 = vshll.u32 %v10744_v59, 16  ;;  %v6210_v34 = vshll.u32 %v10745_v29, 16  ;;  %v8762_v53 = vld [vmem:[%s14770_s27 + $0x90] sm:$0x7] }
 0x3b7   : > { %v5499_v23 = vrot.slane %v5498_v31, 4  ;;  %v8913_v46 = vrot.slane %v8622_v19, 2  ;;  %v8914_v21 = vrot.slane %v8622_v19, 4  ;;  %v8915_v61 = vrot.slane %v8622_v19, 6  ;;  %11373 = vst [vmem:[%s14770_s27 + $0x4] sm:$0x7] %v10010_v8 }
 0x3b8   : > { %v9010_v50 = vpack.c.bf16 %v8622_v19, %v8622_v19  ;;  %v6203_v1 = vrot.slane %v6201_v38, 4  ;;  %v6206_v24 = vrot.slane %v6204_v30, 5  ;;  %7603 = vst.msk [vmem:[#allocation2 + $0xfc] sm:$0xf] %vm2016_vm12, %v7523_v16  ;;  %v8748_v62 = vsel %vm14787_vm14, 0, %v8747_v22 }
 0x3b9   : > { %v5508_v28 = vsel %vm12136_vm10, %v5499_v23, %v5507_v13  ;;  %v9011_v17 = vpack.c.bf16 %v8913_v46, %v8913_v46  ;;  %v9012_v10 = vpack.c.bf16 %v8914_v21, %v8914_v21  ;;  %v9013_v43 = vpack.c.bf16 %v8915_v61, %v8915_v61  ;;  %8749 = vst [vmem:[%s14770_s27 + $0x7c] sm:$0x7] %v8748_v62  ;;  %v10748_v44 = vld [vmem:[%s11564_s18 + $0x120] sm:$0xf]  ;;  %v10749_v27 = vld [vmem:[%s11564_s18 + $0x124] sm:$0x1] }
 0x3ba   : > { %5683 = vrot.lane.b32.xlu1 %v5508_v28, %s11529_s21  ;;  %4917 = vrot.lane.b32.xlu0 %v4842_v4, %s11528_s20  ;;  %v8763_v20 = vsel %vm14787_vm14, 0, %v8762_v53  ;;  %v6207_v26 = vor.u32 %v6206_v24, %v6203_v1  ;;  %v6212_v42 = vrot.slane %v6210_v34, 5  ;;  %v6243_v15 = vshrl.u32 %v10750_v60, 16  ;;  %4980 = vst.msk [vmem:[#allocation2 + $0x118] sm:$0xf] %vm1244_vm11, %v4902_v9  ;;  %v8547_v41 = vpop.f32.mrf.mxu3 }
 0x3bb   : > { %v9139_v12 = vunpack.c.l.b16 %v9011_v17  ;;  %v9140_v18 = vunpack.c.l.b16 %v9012_v10  ;;  %8764 = vst [vmem:[%s14770_s27 + $0x90] sm:$0x7] %v8763_v20  ;;  %v6246_v45 = vshll.u32 %v10750_v60, 16  ;;  %v6252_v57 = vshll.u32 %v10751_v39, 16  ;;  %v8660_v33 = vld [vmem:[%s14770_s27 + $0x8] sm:$0x7]  ;;  %v5670_v9 = vpop.permute.xlu1 %5669 }
 0x3bc   : > { %v9138_v35 = vunpack.c.l.b16 %v9010_v50  ;;  %v6208_v0 = vrot.slane %v6207_v26, 4  ;;  %v6245_v6 = vrot.slane %v6243_v15, 4  ;;  %v8459_v56 = vadd.f32 %v8458_v7, %v14182_v58  ;;  %v8807_v4 = vld [vmem:[%s14770_s27 + $0xcc] sm:$0x7]  ;;  %v8822_v59 = vld [vmem:[%s14770_s27 + $0xe0] sm:$0x7]  ;;  %v5668_v7 = vpop.permute.xlu0 %5667 }
 0x3bd   : > { %v9207_v63 = vrot.slane %v9139_v12, 7  ;;  %v9141_v5 = vunpack.c.l.b16 %v9013_v43  ;;  %v9209_v37 = vrot.slane %v9140_v18, 6  ;;  %v6248_v36 = vrot.slane %v6246_v45, 5  ;;  %v10810_v18 = vld [vmem:[%s11564_s18 + $0x100] sm:$0xe] }
 0x3be   : > { %v6213_v55 = vsel %vm11577_vm2, %v6208_v0, %v6212_v42  ;;  %v6254_v31 = vrot.slane %v6252_v57, 5  ;;  %v6229_v19 = vshrl.u32 %v10748_v44, 16  ;;  %v6232_v23 = vshll.u32 %v10748_v44, 16  ;;  %v10684_v20 = vld [vmem:[%s11564_s18 + $0xc8] sm:$0xf]  ;;  %v15025_v44 = vpop.f32.mrf.mxu0 }
 0x3bf   : > { %v9208_v47 = vsel %vm9199_vm15, %v9207_v63, %v9138_v35  ;;  %6384 = vrot.lane.b32.xlu2 %v6213_v55, %s11527_s19  ;;  %v6249_v13 = vor.u32 %v6248_v36, %v6245_v6  ;;  %v6238_v58 = vshll.u32 %v10749_v27, 16  ;;  %v8548_v46 = vadd.f32 %v8547_v41, %v8459_v56  ;;  %5748 = vst.msk [vmem:[#allocation2 + $0x118] sm:$0xf] %vm2016_vm12, %v5670_v9  ;;  %v11435_v57 = vld [vmem:[#allocation2 + $0xec] sm:$0xf] }
 0x3c0   : > { %v6231_v21 = vrot.slane %v6229_v19, 4  ;;  %v8661_v14 = vsel %vm14787_vm14, 0, %v8660_v33  ;;  %v15001_v61 = vrot.slane %v9141_v5, 5  ;;  %v6234_v28 = vrot.slane %v6232_v23, 5  ;;  %5747 = vst.msk [vmem:[#allocation2 + $0x108] sm:$0xf] %vm2016_vm12, %v5668_v7  ;;  %v8461_v5 = vpop.f32.mrf.mxu2 }
 0x3c1   : > { %v6250_v8 = vrot.slane %v6249_v13, 4  ;;  %v8623_v17 = vmax.f32 %v8548_v46, 0.0  ;;  %v8808_v10 = vsel %vm14787_vm14, 0, %v8807_v4  ;;  %v9210_v29 = vsel %vm9202_vm0, %v9209_v37, %v9208_v47  ;;  %8662 = vst [vmem:[%s14770_s27 + $0x8] sm:$0x7] %v8661_v14  ;;  %v6373_v47 = vpop.permute.xlu2 %6372 }
 0x3c2   : > { %v9351_v51 = vsel %vm9202_vm0, %v9207_v63, %v9138_v35  ;;  %v6240_v38 = vrot.slane %v6238_v58, 5  ;;  %8809 = vst [vmem:[%s14770_s27 + $0xcc] sm:$0x7] %v8808_v10  ;;  %v8823_v30 = vsel %vm14787_vm14, 0, %v8822_v59  ;;  %v6235_v60 = vor.u32 %v6234_v28, %v6231_v21  ;;  %v10811_v63 = vld [vmem:[%s11564_s18 + $0x104] sm:$0x1] }
 0x3c3   : > { %v6255_v16 = vsel %vm11577_vm2, %v6250_v8, %v6254_v31  ;;  %v9498_v12 = vrot.slane %v8623_v17, 2  ;;  %8824 = vst [vmem:[%s14770_s27 + $0xe0] sm:$0x7] %v8823_v30  ;;  %v9499_v34 = vrot.slane %v8623_v17, 4  ;;  %v9500_v39 = vrot.slane %v8623_v17, 6 }
 0x3c4   : > { %6390 = vrot.lane.b32.xlu1 %v6255_v16, %s11527_s19  ;;  %v9595_v22 = vpack.c.bf16 %v8623_v17, %v8623_v17  ;;  %v9212_v50 = vsel %vm9205_vm1, %v15001_v61, %v9210_v29  ;;  %v6236_v1 = vrot.slane %v6235_v60, 4  ;;  %v9352_v62 = vsel %vm9205_vm1, %v9209_v37, %v9351_v51  ;;  %v11048_v41 = vld [vmem:[#allocation2 + $0xf8] sm:$0xf0]  ;;  %v10908_v56 = vld [vmem:[%s11564_s18 + $0x120] sm:$0xe] }
 0x3c5   : > { %v9596_v24 = vpack.c.bf16 %v9498_v12, %v9498_v12  ;;  %v9597_v53 = vpack.c.bf16 %v9499_v34, %v9499_v34  ;;  %v9598_v43 = vpack.c.bf16 %v9500_v39, %v9500_v39  ;;  %v10851_v15 = vrot.slane %v10810_v18, 9  ;;  %v8720_v37 = vld [vmem:[%s14770_s27 + $0x58] sm:$0x7]  ;;  %5812 = vst.msk [vmem:[#allocation2 + $0x10c] sm:$0xf] %vm212_vm5, %v10684_v20 }
 0x3c6   : > { %v6241_v26 = vsel %vm11577_vm2, %v6236_v1, %v6240_v38  ;;  %v6690_v45 = vrot.slane %v10811_v63, 5  ;;  %v9298_v35 = vpack.c.b16 %v9212_v50, %v9212_v50  ;;  %v15028_v0 = vunpack.c.l.b16 %v9595_v22  ;;  %v8867_v19 = vld [vmem:[%s14770_s27 + $0x11c] sm:$0x7]  ;;  %v8882_v14 = vld [vmem:[%s14770_s27 + $0x130] sm:$0x7]  ;;  %v6757_v22 = vpop.permute.xlu1 %6756  ;;  %v6375_v63 = vpop.permute.xlu0 %6374 }
 0x3c7   : > { %v9724_v42 = vunpack.c.l.b16 %v9596_v24  ;;  %6388 = vrot.lane.b32.xlu0 %v6241_v26, %s11527_s19  ;;  %v9725_v6 = vunpack.c.l.b16 %v9597_v53  ;;  %v9726_v27 = vunpack.c.l.b16 %v9598_v43  ;;  %v11051_v55 = vor.u32 %v11435_v57, %v11048_v41  ;;  %v10909_v59 = vld [vmem:[%s11564_s18 + $0x124] sm:$0x3]  ;;  %v10814_v12 = vld [vmem:[%s11564_s18 + $0x128] sm:$0xe]  ;;  %v10815_v34 = vld [vmem:[%s11564_s18 + $0x12c] sm:$0x1] }
 0x3c8   : > { %v6691_v33 = vsel %vm11738_vm6, %v10851_v15, %v6690_v45  ;;  %v7349_v31 = vshrl.u32 %v10908_v56, 16  ;;  %v8721_v13 = vsel %vm14787_vm14, 0, %v8720_v37  ;;  %v7352_v46 = vshll.u32 %v10908_v56, 16  ;;  %11309 = vst.msk [vmem:[%s14770_s27 + $0x40] sm:$0x3] %vm9330_vm8, %v9298_v35  ;;  %v15078_v15 = vpop.f32.mrf.mxu0 }
 0x3c9   : > { %v15033_v36 = vrot.slane %v9724_v42, 7  ;;  %v15041_v23 = vrot.slane %v9725_v6, 6  ;;  %v15043_v58 = vrot.slane %v9726_v27, 5  ;;  %6770 = vrot.lane.b32.xlu2 %v6691_v33, %s11528_s20  ;;  %v8868_v21 = vsel %vm14787_vm14, 0, %v8867_v19  ;;  %8722 = vst [vmem:[%s14770_s27 + $0x58] sm:$0x7] %v8721_v13  ;;  %8574 = vmatmul.bf16.gmra.mxu3 %v11051_v55  ;;  %v6759_v56 = vpop.permute.xlu2 %6758 }
 0x3ca   : > { %v7351_v8 = vrot.slane %v7349_v31, 5  ;;  %8869 = vst [vmem:[%s14770_s27 + $0x11c] sm:$0x7] %v8868_v21  ;;  %v8883_v28 = vsel %vm14787_vm14, 0, %v8882_v14  ;;  %v8462_v17 = vadd.f32 %v8461_v5, %v14234_v54  ;;  %v7354_v29 = vrot.slane %v7352_v46, 6  ;;  %v8550_v51 = vpop.f32.mrf.mxu3 }
 0x3cb   : > { %v9790_v4 = vsel %vm9199_vm15, %v15033_v36, %v15028_v0  ;;  %8884 = vst [vmem:[%s14770_s27 + $0x130] sm:$0x7] %v8883_v28  ;;  %v9353_v38 = vsel %vm9349_vm4, %v15001_v61, %v9352_v62  ;;  %v7358_v16 = vshrl.u32 %v10909_v59, 16  ;;  %v7361_v60 = vshll.u32 %v10909_v59, 16  ;;  %v10556_v43 = vld [vmem:[%s11564_s18 + $0x118] sm:$0xe] }
 0x3cc   : > { %v9792_v10 = vsel %vm9202_vm0, %v15041_v23, %v9790_v4  ;;  %v7355_v54 = vor.u32 %v7354_v29, %v7351_v8  ;;  %v10853_v39 = vrot.slane %v10814_v12, 9  ;;  %6452 = vst.msk [vmem:[#allocation2 + $0x10c] sm:$0xf] %vm856_vm7, %v6373_v47  ;;  %v6698_v1 = vrot.slane %v10815_v34, 5  ;;  %v10557_v18 = vld [vmem:[%s11564_s18 + $0x11c] sm:$0x1] }
 0x3cd   : > { %v15065_v30 = vsel %vm9205_vm1, %v15043_v58, %v9792_v10  ;;  %v7360_v50 = vrot.slane %v7358_v16, 5  ;;  %v7363_v61 = vrot.slane %v7361_v60, 6  ;;  %v8551_v24 = vadd.f32 %v8550_v51, %v8462_v17  ;;  %6836 = vst.msk [vmem:[#allocation2 + $0x10c] sm:$0xf] %vm1244_vm11, %v6757_v22  ;;  %v10685_v42 = vld [vmem:[%s11564_s18 + $0xd0] sm:$0xf] }
 0x3ce   : > { %v9397_v62 = vpack.c.b16 %v9353_v38, %v9353_v38  ;;  %v7356_v53 = vrot.slane %v7355_v54, 4  ;;  %v6699_v7 = vsel %vm11738_vm6, %v10853_v39, %v6698_v1  ;;  %v10596_v20 = vrot.slane %v10556_v43, 9  ;;  %v8780_v45 = vld [vmem:[%s14770_s27 + $0xa8] sm:$0x7]  ;;  %5813 = vst.msk [vmem:[#allocation2 + $0x11c] sm:$0xf] %vm212_vm5, %v10685_v42 }
 0x3cf   : > { %v7364_v9 = vor.u32 %v7363_v61, %v7360_v50  ;;  %v4837_v26 = vrot.slane %v10557_v18, 5  ;;  %6774 = vrot.lane.b32.xlu0 %v6699_v7, %s11528_s20  ;;  %v11062_v57 = vld [vmem:[#allocation2 + $0x108] sm:$0xf]  ;;  %v11326_v35 = vld [vmem:[%s14770_s27 + $0x2c] sm:$0x7]  ;;  %v8781_v6 = vsel %vm14787_vm14, 0, %v8780_v45  ;;  %v9931_v4 = vsel %vm9202_vm0, %v15033_v36, %v15028_v0 }
 0x3d0   : > { %6453 = vst.msk [vmem:[#allocation2 + $0x11c] sm:$0xf] %vm856_vm7, %v6375_v63  ;;  %v15091_v5 = vmax.f32 %v8551_v24, 0.0  ;;  %v9435_v37 = vsel %vm14910_vm9, %v9397_v62, %v11326_v35  ;;  %v11441_v33 = vld [vmem:[#allocation2 + $0x114] sm:$0xf0]  ;;  %v9932_v54 = vsel %vm9205_vm1, %v15041_v23, %v9931_v4  ;;  %v15126_v61 = vpop.f32.mrf.mxu0  ;;  %v8463_v24 = vpop.f32.mrf.mxu2 }
 0x3d1   : > { %v7365_v27 = vsel %vm12136_vm10, %v7356_v53, %v7364_v9  ;;  %v4838_v41 = vsel %vm11738_vm6, %v10596_v20, %v4837_v26  ;;  %8782 = vst [vmem:[%s14770_s27 + $0xa8] sm:$0x7] %v8781_v6  ;;  %v10562_v47 = vld [vmem:[%s11564_s18 + $0x130] sm:$0xe]  ;;  %v11063_v55 = vor.u32 %v11441_v33, %v11062_v57  ;;  %v10563_v31 = vld [vmem:[%s11564_s18 + $0x134] sm:$0x1]  ;;  %v9933_v62 = vsel %vm9349_vm4, %v15043_v58, %v9932_v54  ;;  %v7527_v63 = vpop.permute.xlu1 %7526  ;;  %v7525_v9 = vpop.permute.xlu0 %7524 }
 0x3d2   : > { %7540 = vrot.lane.b32.xlu1 %v7365_v27, %s11529_s21  ;;  %4915 = vrot.lane.b32.xlu2 %v4838_v41, %s11528_s20  ;;  %11327 = vst [vmem:[%s14770_s27 + $0x2c] sm:$0x7] %v9435_v37  ;;  %v10599_v19 = vrot.slane %v10562_v47, 9  ;;  %v8916_v13 = vrot.slane %v15091_v5, 2  ;;  %v4849_v46 = vrot.slane %v10563_v31, 5  ;;  %v8917_v14 = vrot.slane %v15091_v5, 4  ;;  %v4904_v45 = vpop.permute.xlu2 %4903  ;;  %v8552_v37 = vpop.f32.mrf.mxu3 }
 0x3d3   : > { %6837 = vst.msk [vmem:[#allocation2 + $0x11c] sm:$0xf] %vm1244_vm11, %v6759_v56  ;;  %v10560_v21 = vld [vmem:[%s11564_s18 + $0x128] sm:$0xe]  ;;  %8490 = vmatmul.bf16.gmra.mxu2 %v11063_v55  ;;  %v10561_v8 = vld [vmem:[%s11564_s18 + $0x12c] sm:$0x1]  ;;  %v9014_v7 = vpack.c.bf16 %v15091_v5, %v15091_v5  ;;  %v9977_v6 = vpack.c.b16 %v9933_v62, %v9933_v62  ;;  %v8464_v27 = vadd.f32 %v8463_v24, %v14282_v48 }
 0x3d4   : > { %v10598_v28 = vrot.slane %v10560_v21, 9  ;;  %v8690_v17 = vld [vmem:[%s14770_s27 + $0x30] sm:$0x7]  ;;  %v8918_v10 = vrot.slane %v15091_v5, 6  ;;  %v9015_v59 = vpack.c.bf16 %v8916_v13, %v8916_v13  ;;  %v4845_v29 = vrot.slane %v10561_v8, 5 }
 0x3d5   : > { %v8691_v51 = vsel %vm14787_vm14, 0, %v8690_v17  ;;  %v8705_v38 = vld [vmem:[%s14770_s27 + $0x44] sm:$0x7]  ;;  %v9016_v16 = vpack.c.bf16 %v8917_v14, %v8917_v14  ;;  %v4850_v60 = vsel %vm11738_vm6, %v10599_v19, %v4849_v46  ;;  %v8840_v22 = vld [vmem:[%s14770_s27 + $0xf8] sm:$0x7]  ;;  %v9142_v13 = vunpack.c.l.b16 %v9014_v7 }
 0x3d6   : > { %8692 = vst [vmem:[%s14770_s27 + $0x30] sm:$0x7] %v8691_v51  ;;  %v8706_v0 = vsel %vm14787_vm14, 0, %v8705_v38  ;;  %v9017_v36 = vpack.c.bf16 %v8918_v10, %v8918_v10  ;;  %v9143_v12 = vunpack.c.l.b16 %v9015_v59  ;;  %v4846_v34 = vsel %vm11738_vm6, %v10598_v28, %v4845_v29  ;;  %v10654_v18 = vld [vmem:[%s11564_s18 + $0x120] sm:$0xe] }
 0x3d7   : > { %8707 = vst [vmem:[%s14770_s27 + $0x44] sm:$0x7] %v8706_v0  ;;  %v9144_v39 = vunpack.c.l.b16 %v9016_v16  ;;  %4919 = vrot.lane.b32.xlu0 %v4846_v34, %s11528_s20  ;;  %v8841_v1 = vsel %vm14787_vm14, 0, %v8840_v22  ;;  %v10655_v20 = vld [vmem:[%s11564_s18 + $0x124] sm:$0x3]  ;;  %v5510_v26 = vshrl.u32 %v10654_v18, 16  ;;  %v8553_v10 = vadd.f32 %v8552_v37, %v8464_v27  ;;  %v15161_v0 = vpop.f32.mrf.mxu1 }
 0x3d8   : > { %v9145_v50 = vunpack.c.l.b16 %v9017_v36  ;;  %v9213_v23 = vrot.slane %v9143_v12, 7  ;;  %8842 = vst [vmem:[%s14770_s27 + $0xf8] sm:$0x7] %v8841_v1  ;;  %v5513_v42 = vshll.u32 %v10654_v18, 16  ;;  %v5519_v57 = vshrl.u32 %v10655_v20, 16 }
 0x3d9   : > { %v15134_v53 = vrot.slane %v9144_v39, 6  ;;  %7605 = vst.msk [vmem:[#allocation2 + $0x11c] sm:$0xf] %vm2016_vm12, %v7527_v63  ;;  %v5522_v58 = vshll.u32 %v10655_v20, 16  ;;  %v10752_v35 = vld [vmem:[%s11564_s18 + $0x130] sm:$0xf] }
 0x3da   : > { %4921 = vrot.lane.b32.xlu1 %v4850_v60, %s11528_s20  ;;  %v15136_v43 = vrot.slane %v9145_v50, 5  ;;  %7604 = vst.msk [vmem:[#allocation2 + $0x10c] sm:$0xf] %vm2016_vm12, %v7525_v9  ;;  %v8750_v41 = vld [vmem:[%s14770_s27 + $0x80] sm:$0x7]  ;;  %v5512_v56 = vrot.slane %v5510_v26, 5  ;;  %v9214_v29 = vsel %vm9199_vm15, %v9213_v23, %v9142_v13  ;;  %v9354_v51 = vsel %vm9202_vm0, %v9213_v23, %v9142_v13  ;;  %v15169_v23 = vpop.f32.mrf.mxu0 }
 0x3db   : > { %v5515_v5 = vrot.slane %v5513_v42, 6  ;;  %4981 = vst.msk [vmem:[#allocation2 + $0x128] sm:$0xf] %vm1244_vm11, %v4904_v45  ;;  %v8751_v33 = vsel %vm14787_vm14, 0, %v8750_v41  ;;  %v8765_v47 = vld [vmem:[%s14770_s27 + $0x94] sm:$0x7]  ;;  %v9216_v7 = vsel %vm9202_vm0, %v15134_v53, %v9214_v29  ;;  %v8466_v45 = vpop.f32.mrf.mxu2  ;;  %v9355_v13 = vsel %vm9205_vm1, %v15134_v53, %v9354_v51  ;;  %v5674_v29 = vpop.permute.xlu2 %5673 }
 0x3dc   : > { %v5521_v55 = vrot.slane %v5519_v57, 5  ;;  %v5524_v31 = vrot.slane %v5522_v58, 6  ;;  %v6257_v19 = vshrl.u32 %v10752_v35, 16  ;;  %8752 = vst [vmem:[%s14770_s27 + $0x80] sm:$0x7] %v8751_v33  ;;  %v8766_v48 = vsel %vm14787_vm14, 0, %v8765_v47 }
 0x3dd   : > { %v5516_v46 = vor.u32 %v5515_v5, %v5512_v56  ;;  %v10753_v21 = vld [vmem:[%s11564_s18 + $0x134] sm:$0x1]  ;;  %v6260_v14 = vshll.u32 %v10752_v35, 16  ;;  %8767 = vst [vmem:[%s14770_s27 + $0x94] sm:$0x7] %v8766_v48  ;;  %v8625_v63 = vmax.f32 %v8553_v10, 0.0  ;;  %v8467_v48 = vadd.f32 %v8466_v45, %v14321_v40 }
 0x3de   : > { %v5525_v4 = vor.u32 %v5524_v31, %v5521_v55  ;;  %v6259_v8 = vrot.slane %v6257_v19, 4  ;;  %v6266_v28 = vshll.u32 %v10753_v21, 16  ;;  %v10658_v17 = vld [vmem:[%s11564_s18 + $0x130] sm:$0xe]  ;;  %v11374_v59 = vld [vmem:[%s14770_s27 + $0x8] sm:$0x7]  ;;  %v9218_v53 = vsel %vm9205_vm1, %v15136_v43, %v9216_v7 }
 0x3df   : > { %v5517_v38 = vrot.slane %v5516_v46, 4  ;;  %v6262_v16 = vrot.slane %v6260_v14, 5  ;;  %v10659_v60 = vld [vmem:[%s11564_s18 + $0x134] sm:$0x3]  ;;  %v10013_v36 = vsel %vm14910_vm9, %v9977_v6, %v11374_v59  ;;  %v5546_v54 = vshrl.u32 %v10658_v17, 16 }
 0x3e0   : > { %v6268_v12 = vrot.slane %v6266_v28, 5  ;;  %v5549_v34 = vshll.u32 %v10658_v17, 16  ;;  %v8663_v39 = vld [vmem:[%s14770_s27 + $0xc] sm:$0x7]  ;;  %11375 = vst [vmem:[%s14770_s27 + $0x8] sm:$0x7] %v10013_v36  ;;  %v9599_v33 = vpack.c.bf16 %v8625_v63, %v8625_v63 }
 0x3e1   : > { %v5526_v22 = vsel %vm12136_vm10, %v5517_v38, %v5525_v4  ;;  %v6263_v50 = vor.u32 %v6262_v16, %v6259_v8  ;;  %v5555_v1 = vshrl.u32 %v10659_v60, 16  ;;  %v5558_v24 = vshll.u32 %v10659_v60, 16  ;;  %v8810_v57 = vld [vmem:[%s14770_s27 + $0xd0] sm:$0x7]  ;;  %v8825_v56 = vld [vmem:[%s14770_s27 + $0xe4] sm:$0x7]  ;;  %v5672_v4 = vpop.permute.xlu1 %5671  ;;  %v4906_v8 = vpop.permute.xlu0 %4905 }
 0x3e2   : > { %5685 = vrot.lane.b32.xlu2 %v5526_v22, %s11529_s21  ;;  %v5548_v62 = vrot.slane %v5546_v54, 5  ;;  %v5551_v18 = vrot.slane %v5549_v34, 6  ;;  %v8664_v9 = vsel %vm14787_vm14, 0, %v8663_v39  ;;  %v9501_v35 = vrot.slane %v8625_v63, 2  ;;  %v10812_v21 = vld [vmem:[%s11564_s18 + $0x120] sm:$0xe]  ;;  %v8555_v38 = vpop.f32.mrf.mxu3 }
 0x3e3   : > { %v6264_v20 = vrot.slane %v6263_v50, 4  ;;  %v5557_v26 = vrot.slane %v5555_v1, 5  ;;  %v5560_v42 = vrot.slane %v5558_v24, 6  ;;  %8665 = vst [vmem:[%s14770_s27 + $0xc] sm:$0x7] %v8664_v9  ;;  %v9502_v6 = vrot.slane %v8625_v63, 4  ;;  %v15218_v9 = vpop.f32.mrf.mxu0 }
 0x3e4   : > { %v5552_v58 = vor.u32 %v5551_v18, %v5548_v62  ;;  %v9503_v27 = vrot.slane %v8625_v63, 6  ;;  %v8811_v41 = vsel %vm14787_vm14, 0, %v8810_v57  ;;  %v8826_v47 = vsel %vm14787_vm14, 0, %v8825_v56  ;;  %v10813_v14 = vld [vmem:[%s11564_s18 + $0x124] sm:$0x1] }
 0x3e5   : > { %v6269_v5 = vsel %vm11577_vm2, %v6264_v20, %v6268_v12  ;;  %v5561_v37 = vor.u32 %v5560_v42, %v5557_v26  ;;  %8812 = vst [vmem:[%s14770_s27 + $0xd0] sm:$0x7] %v8811_v41  ;;  %v9600_v31 = vpack.c.bf16 %v9501_v35, %v9501_v35  ;;  %v9601_v19 = vpack.c.bf16 %v9502_v6, %v9502_v6  ;;  %v11439_v40 = vld [vmem:[#allocation2 + $0x10c] sm:$0xf]  ;;  %v11064_v36 = vld [vmem:[#allocation2 + $0x118] sm:$0xf0]  ;;  %v15202_v12 = vpop.f32.mrf.mxu1 }
 0x3e6   : > { %6392 = vrot.lane.b32.xlu1 %v6269_v5, %s11527_s19  ;;  %v5553_v55 = vrot.slane %v5552_v58, 4  ;;  %8827 = vst [vmem:[%s14770_s27 + $0xe4] sm:$0x7] %v8826_v47  ;;  %v9602_v46 = vpack.c.bf16 %v9503_v27, %v9503_v27  ;;  %v10852_v59 = vrot.slane %v10812_v21, 9  ;;  %v15199_v51 = vunpack.c.l.b16 %v9599_v33  ;;  %v8723_v54 = vld [vmem:[%s14770_s27 + $0x5c] sm:$0x7] }
 0x3e7   : > { %v9728_v17 = vunpack.c.l.b16 %v9600_v31  ;;  %v9729_v10 = vunpack.c.l.b16 %v9601_v19  ;;  %5749 = vst.msk [vmem:[#allocation2 + $0x128] sm:$0xf] %vm2016_vm12, %v5672_v4  ;;  %v6694_v60 = vrot.slane %v10813_v14, 5  ;;  %v11067_v22 = vor.u32 %v11439_v40, %v11064_v36  ;;  %v10818_v18 = vld [vmem:[%s11564_s18 + $0x138] sm:$0xe] }
 0x3e8   : > { %v5562_v28 = vsel %vm12136_vm10, %v5553_v55, %v5561_v37  ;;  %v9730_v16 = vunpack.c.l.b16 %v9602_v46  ;;  %4982 = vst.msk [vmem:[#allocation2 + $0x138] sm:$0xf] %vm1244_vm11, %v4906_v8  ;;  %v8556_v50 = vadd.f32 %v8555_v38, %v8467_v48  ;;  %v8724_v1 = vsel %vm14787_vm14, 0, %v8723_v54  ;;  %v10819_v63 = vld [vmem:[%s11564_s18 + $0x13c] sm:$0x1] }
 0x3e9   : > { %5689 = vrot.lane.b32.xlu0 %v5562_v28, %s11529_s21  ;;  %v15205_v34 = vrot.slane %v9728_v17, 7  ;;  %v15207_v39 = vrot.slane %v9729_v10, 6  ;;  %5750 = vst.msk [vmem:[#allocation2 + $0x138] sm:$0xf] %vm2016_vm12, %v5674_v29  ;;  %v6695_v62 = vsel %vm11738_vm6, %v10852_v59, %v6694_v60  ;;  %8579 = vmatmul.bf16.gmra.mxu3 %v11067_v22  ;;  %v10855_v20 = vrot.slane %v10818_v18, 9 }
 0x3ea   : > { %v15212_v24 = vrot.slane %v9730_v16, 5  ;;  %8725 = vst [vmem:[%s14770_s27 + $0x5c] sm:$0x7] %v8724_v1  ;;  %6772 = vrot.lane.b32.xlu2 %v6695_v62, %s11528_s20  ;;  %v6706_v26 = vrot.slane %v10819_v63, 5  ;;  %v10816_v42 = vld [vmem:[%s11564_s18 + $0x130] sm:$0xe]  ;;  %v9299_v57 = vpack.c.b16 %v9218_v53, %v9218_v53  ;;  %v9356_v58 = vsel %vm9349_vm4, %v15136_v43, %v9355_v13 }
 0x3eb   : > { %v9796_v7 = vsel %vm9199_vm15, %v15205_v34, %v15199_v51  ;;  %v8870_v45 = vld [vmem:[%s14770_s27 + $0x120] sm:$0x7]  ;;  %v10817_v6 = vld [vmem:[%s11564_s18 + $0x134] sm:$0x1]  ;;  %v10854_v27 = vrot.slane %v10816_v42, 9  ;;  %v15242_v43 = vmax.f32 %v8556_v50, 0.0  ;;  %v9398_v21 = vpack.c.b16 %v9356_v58, %v9356_v58 }
 0x3ec   : > { %v9798_v35 = vsel %vm9202_vm0, %v15207_v39, %v9796_v7  ;;  %v8871_v41 = vsel %vm14787_vm14, 0, %v8870_v45  ;;  %v8885_v56 = vld [vmem:[%s14770_s27 + $0x134] sm:$0x7]  ;;  %v6707_v37 = vsel %vm11738_vm6, %v10855_v20, %v6706_v26  ;;  %v10910_v33 = vld [vmem:[%s11564_s18 + $0x128] sm:$0xe]  ;;  %v6702_v55 = vrot.slane %v10817_v6, 5  ;;  %v15274_v7 = vpop.f32.mrf.mxu0  ;;  %v8468_v26 = vpop.f32.mrf.mxu2 }
 0x3ed   : > { %v15237_v5 = vsel %vm9205_vm1, %v15212_v24, %v9798_v35  ;;  %8872 = vst [vmem:[%s14770_s27 + $0x120] sm:$0x7] %v8871_v41  ;;  %v8886_v47 = vsel %vm14787_vm14, 0, %v8885_v56  ;;  %v10911_v31 = vld [vmem:[%s11564_s18 + $0x12c] sm:$0x3]  ;;  %v7367_v19 = vshrl.u32 %v10910_v33, 16  ;;  %v15265_v36 = vpop.f32.mrf.mxu1  ;;  %v9934_v58 = vsel %vm9202_vm0, %v15205_v34, %v15199_v51  ;;  %v6377_v51 = vpop.permute.xlu0 %6376 }
 0x3ee   : > { %6778 = vrot.lane.b32.xlu1 %v6707_v37, %s11528_s20  ;;  %8887 = vst [vmem:[%s14770_s27 + $0x134] sm:$0x7] %v8886_v47  ;;  %v7370_v48 = vshll.u32 %v10910_v33, 16  ;;  %v7376_v13 = vshrl.u32 %v10911_v31, 16  ;;  %v7379_v46 = vshll.u32 %v10911_v31, 16  ;;  %v6703_v14 = vsel %vm11738_vm6, %v10854_v27, %v6702_v55  ;;  %v6379_v37 = vpop.permute.xlu1 %6378 }
 0x3ef   : > { %11310 = vst.msk [vmem:[%s14770_s27 + $0x44] sm:$0x3] %vm9330_vm8, %v9299_v57  ;;  %v8693_v4 = vld [vmem:[%s14770_s27 + $0x34] sm:$0x7]  ;;  %v8708_v8 = vld [vmem:[%s14770_s27 + $0x48] sm:$0x7]  ;;  %v9018_v27 = vpack.c.bf16 %v15242_v43, %v15242_v43  ;;  %v8469_v47 = vadd.f32 %v8468_v26, %v14355_v2  ;;  %v9935_v55 = vsel %vm9205_vm1, %v15207_v39, %v9934_v58 }
 0x3f0   : > { %v7369_v28 = vrot.slane %v7367_v19, 5  ;;  %v7372_v17 = vrot.slane %v7370_v48, 6  ;;  %v7378_v10 = vrot.slane %v7376_v13, 5  ;;  %v7381_v59 = vrot.slane %v7379_v46, 6  ;;  %v8672_v29 = vld [vmem:[%s14770_s27 + $0x18] sm:$0x7]  ;;  %v8557_v48 = vpop.f32.mrf.mxu3 }
 0x3f1   : > { %6776 = vrot.lane.b32.xlu0 %v6703_v14, %s11528_s20  ;;  %v8783_v40 = vld [vmem:[%s14770_s27 + $0xac] sm:$0x7]  ;;  %v8694_v38 = vsel %vm14787_vm14, 0, %v8693_v4  ;;  %v8709_v53 = vsel %vm14787_vm14, 0, %v8708_v8  ;;  %v8919_v16 = vrot.slane %v15242_v43, 2  ;;  %v8920_v60 = vrot.slane %v15242_v43, 4 }
 0x3f2   : > { %v8784_v54 = vsel %vm14787_vm14, 0, %v8783_v40  ;;  %v7373_v22 = vor.u32 %v7372_v17, %v7369_v28  ;;  %v7382_v50 = vor.u32 %v7381_v59, %v7378_v10  ;;  %8695 = vst [vmem:[%s14770_s27 + $0x34] sm:$0x7] %v8694_v38  ;;  %v8921_v1 = vrot.slane %v15242_v43, 6  ;;  %v11328_v20 = vld [vmem:[%s14770_s27 + $0x30] sm:$0x7]  ;;  %v6761_v59 = vpop.permute.xlu2 %6760 }
 0x3f3   : > { %8785 = vst [vmem:[%s14770_s27 + $0xac] sm:$0x7] %v8784_v54  ;;  %v9019_v62 = vpack.c.bf16 %v8919_v16, %v8919_v16  ;;  %v9020_v18 = vpack.c.bf16 %v8920_v60, %v8920_v60  ;;  %v8673_v63 = vsel %vm14787_vm14, 0, %v8672_v29  ;;  %v9438_v57 = vsel %vm14910_vm9, %v9398_v21, %v11328_v20  ;;  %v10687_v56 = vld [vmem:[%s11564_s18 + $0xe0] sm:$0xf] }
 0x3f4   : > { %v7374_v42 = vrot.slane %v7373_v22, 4  ;;  %8710 = vst [vmem:[%s14770_s27 + $0x48] sm:$0x7] %v8709_v53  ;;  %v9021_v45 = vpack.c.bf16 %v8921_v1, %v8921_v1  ;;  %v10686_v33 = vld [vmem:[%s11564_s18 + $0xd8] sm:$0xf]  ;;  %v8558_v21 = vadd.f32 %v8557_v48, %v8469_v47  ;;  %v15305_v4 = vunpack.c.l.b16 %v9018_v27 }
 0x3f5   : > { %v9147_v35 = vunpack.c.l.b16 %v9019_v62  ;;  %8674 = vst [vmem:[%s14770_s27 + $0x18] sm:$0x7] %v8673_v63  ;;  %v9148_v41 = vunpack.c.l.b16 %v9020_v18  ;;  %v11078_v34 = vld [vmem:[#allocation2 + $0x128] sm:$0xf]  ;;  %v11445_v19 = vld [vmem:[#allocation2 + $0x134] sm:$0xf0]  ;;  %v9936_v17 = vsel %vm9349_vm4, %v15212_v24, %v9935_v55  ;;  %v15316_v40 = vpop.f32.mrf.mxu1  ;;  %v15348_v63 = vpop.f32.mrf.mxu0 }
 0x3f6   : > { %11329 = vst [vmem:[%s14770_s27 + $0x30] sm:$0x7] %v9438_v57  ;;  %v7383_v6 = vsel %vm12136_vm10, %v7374_v42, %v7382_v50  ;;  %v9149_v31 = vunpack.c.l.b16 %v9021_v45  ;;  %v8753_v2 = vld [vmem:[%s14770_s27 + $0x84] sm:$0x7]  ;;  %v11079_v13 = vor.u32 %v11445_v19, %v11078_v34  ;;  %v10564_v46 = vld [vmem:[%s11564_s18 + $0x138] sm:$0xe]  ;;  %v9978_v20 = vpack.c.b16 %v9936_v17, %v9936_v17 }
 0x3f7   : > { %7542 = vrot.lane.b32.xlu2 %v7383_v6, %s11529_s21  ;;  %5815 = vst.msk [vmem:[#allocation2 + $0x13c] sm:$0xf] %vm212_vm5, %v10687_v56  ;;  %v15296_v43 = vrot.slane %v9147_v35, 7  ;;  %v8843_v14 = vld [vmem:[%s14770_s27 + $0xfc] sm:$0x7]  ;;  %v8754_v39 = vsel %vm14787_vm14, 0, %v8753_v2 }
 0x3f8   : > { %6455 = vst.msk [vmem:[#allocation2 + $0x13c] sm:$0xf] %vm856_vm7, %v6379_v37  ;;  %v15307_v8 = vrot.slane %v9148_v41, 6  ;;  %v8844_v28 = vsel %vm14787_vm14, 0, %v8843_v14  ;;  %v8768_v10 = vld [vmem:[%s14770_s27 + $0x98] sm:$0x7]  ;;  %8495 = vmatmul.bf16.gmra.mxu2 %v11079_v13 }
 0x3f9   : > { %5814 = vst.msk [vmem:[#allocation2 + $0x12c] sm:$0xf] %vm212_vm5, %v10686_v33  ;;  %v10600_v29 = vrot.slane %v10564_v46, 9  ;;  %v8769_v38 = vsel %vm14787_vm14, 0, %v8768_v10  ;;  %v9220_v53 = vsel %vm9199_vm15, %v15296_v43, %v15305_v4  ;;  %v15324_v16 = vrot.slane %v9149_v31, 5 }
 0x3fa   : > { %6454 = vst.msk [vmem:[#allocation2 + $0x12c] sm:$0xf] %vm856_vm7, %v6377_v51  ;;  %v10565_v24 = vld [vmem:[%s11564_s18 + $0x13c] sm:$0x1]  ;;  %v15330_v60 = vld [vmem:[%s16197_s2] ss:$0 sm:$0xff]  ;;  %v9222_v42 = vsel %vm9202_vm0, %v15307_v8, %v9220_v53 }
 0x3fb   : > { %8755 = vst [vmem:[%s14770_s27 + $0x84] sm:$0x7] %v8754_v39  ;;  %v15334_v54 = vadd.f32 %v15330_v60, %v15025_v44  ;;  %v15338_v22 = vadd.f32 %v15330_v60, %v15078_v15  ;;  %v4853_v50 = vrot.slane %v10565_v24, 5  ;;  %v10914_v1 = vld [vmem:[%s11564_s18 + $0x138] sm:$0xe]  ;;  %v15342_v62 = vmax.f32 %v8558_v21, 0.0  ;;  %v15375_v24 = vpop.f32.mrf.mxu2 }
 0x3fc   : > { %8845 = vst [vmem:[%s14770_s27 + $0xfc] sm:$0x7] %v8844_v28  ;;  %v15346_v18 = vadd.f32 %v15330_v60, %v15126_v61  ;;  %v10915_v44 = vld [vmem:[%s11564_s18 + $0x13c] sm:$0x3]  ;;  %v7403_v15 = vshrl.u32 %v10914_v1, 16  ;;  %v7406_v26 = vshll.u32 %v10914_v1, 16 }
 0x3fd   : > { %8770 = vst [vmem:[%s14770_s27 + $0x98] sm:$0x7] %v8769_v38  ;;  %v4854_v45 = vsel %vm11738_vm6, %v10600_v29, %v4853_v50  ;;  %v7412_v57 = vshrl.u32 %v10915_v44, 16  ;;  %v7415_v58 = vshll.u32 %v10915_v44, 16  ;;  %v10656_v61 = vld [vmem:[%s11564_s18 + $0x128] sm:$0xe] }
 0x3fe   : > { %6838 = vst.msk [vmem:[#allocation2 + $0x12c] sm:$0xf] %vm1244_vm11, %v6761_v59  ;;  %v10657_v35 = vld [vmem:[%s11564_s18 + $0x12c] sm:$0x3]  ;;  %4923 = vrot.lane.b32.xlu1 %v4854_v45, %s11528_s20  ;;  %v7405_v6 = vrot.slane %v7403_v15, 5  ;;  %v7408_v27 = vrot.slane %v7406_v26, 6  ;;  %v15379_v15 = vpop.f32.mrf.mxu1  ;;  %v9603_v45 = vpack.c.bf16 %v15342_v62, %v15342_v62 }
 0x3ff   : > { %v5528_v41 = vshrl.u32 %v10656_v61, 16  ;;  %v5531_v56 = vshll.u32 %v10656_v61, 16  ;;  %v8666_v37 = vld [vmem:[%s14770_s27 + $0x10] sm:$0x7]  ;;  %v7414_v33 = vrot.slane %v7412_v57, 5  ;;  %v7417_v47 = vrot.slane %v7415_v58, 6 }
 0x400   : > { %v5537_v51 = vshrl.u32 %v10657_v35, 16  ;;  %v5540_v34 = vshll.u32 %v10657_v35, 16  ;;  %v8813_v55 = vld [vmem:[%s14770_s27 + $0xd4] sm:$0x7]  ;;  %v7409_v31 = vor.u32 %v7408_v27, %v7405_v6  ;;  %v8667_v2 = vsel %vm14787_vm14, 0, %v8666_v37 }
 0x401   : > { %v5530_v19 = vrot.slane %v5528_v41, 5  ;;  %v5533_v48 = vrot.slane %v5531_v56, 6  ;;  %v8732_v13 = vld [vmem:[%s14770_s27 + $0x68] sm:$0x7]  ;;  %v11376_v46 = vld [vmem:[%s14770_s27 + $0xc] sm:$0x7]  ;;  %v7418_v14 = vor.u32 %v7417_v47, %v7414_v33  ;;  %v9357_v58 = vsel %vm9202_vm0, %v15296_v43, %v15305_v4 }
 0x402   : > { %v8814_v21 = vsel %vm14787_vm14, 0, %v8813_v55  ;;  %v5539_v39 = vrot.slane %v5537_v51, 5  ;;  %v5542_v28 = vrot.slane %v5540_v34, 6  ;;  %v10016_v17 = vsel %vm14910_vm9, %v9978_v20, %v11376_v46  ;;  %v8828_v10 = vld [vmem:[%s14770_s27 + $0xe8] sm:$0x7] }
 0x403   : > { %8815 = vst [vmem:[%s14770_s27 + $0xd4] sm:$0x7] %v8814_v21  ;;  %v7410_v59 = vrot.slane %v7409_v31, 4  ;;  %v5534_v29 = vor.u32 %v5533_v48, %v5530_v19  ;;  %v9504_v38 = vrot.slane %v15342_v62, 2  ;;  %v8829_v53 = vsel %vm14787_vm14, 0, %v8828_v10 }
 0x404   : > { %11377 = vst [vmem:[%s14770_s27 + $0xc] sm:$0x7] %v10016_v17  ;;  %v5543_v50 = vor.u32 %v5542_v28, %v5539_v39  ;;  %v9505_v1 = vrot.slane %v15342_v62, 4  ;;  %v9506_v44 = vrot.slane %v15342_v62, 6  ;;  %v8733_v6 = vsel %vm14787_vm14, 0, %v8732_v13  ;;  %v8310_v62 = vpop.f32.mrf.mxu0  ;;  %v6763_v13 = vpop.permute.xlu0 %6762 }
 0x405   : > { %8830 = vst [vmem:[%s14770_s27 + $0xe8] sm:$0x7] %v8829_v53  ;;  %v7419_v20 = vsel %vm12136_vm10, %v7410_v59, %v7418_v14  ;;  %v5535_v26 = vrot.slane %v5534_v29, 4  ;;  %v9604_v57 = vpack.c.bf16 %v9504_v38, %v9504_v38  ;;  %v8301_v27 = vadd.f32 %v15330_v60, %v15169_v23  ;;  %v10662_v46 = vld [vmem:[%s11564_s18 + $0x140] sm:$0xe] }
 0x406   : > { %7546 = vrot.lane.b32.xlu0 %v7419_v20, %s11529_s21  ;;  %8668 = vst [vmem:[%s14770_s27 + $0x10] sm:$0x7] %v8667_v2  ;;  %v9605_v61 = vpack.c.bf16 %v9505_v1, %v9505_v1  ;;  %v9606_v35 = vpack.c.bf16 %v9506_v44, %v9506_v44  ;;  %v8304_v41 = vadd.f32 %v15330_v60, %v15218_v9  ;;  %v9731_v51 = vunpack.c.l.b16 %v9603_v45  ;;  %v10663_v21 = vld [vmem:[%s11564_s18 + $0x144] sm:$0x3]  ;;  %v8726_v17 = vld [vmem:[%s14770_s27 + $0x60] sm:$0x7]  ;;  %v8473_v20 = vpop.f32.mrf.mxu2 }
 0x407   : > { %v5544_v56 = vsel %vm12136_vm10, %v5535_v26, %v5543_v50  ;;  %v9732_v43 = vunpack.c.l.b16 %v9604_v57  ;;  %8734 = vst [vmem:[%s14770_s27 + $0x68] sm:$0x7] %v8733_v6  ;;  %v8306_v4 = vadd.f32 %v15330_v60, %v15274_v7  ;;  %v9224_v37 = vsel %vm9205_vm1, %v15324_v16, %v9222_v42  ;;  %v10660_v44 = vld [vmem:[%s11564_s18 + $0x138] sm:$0xe]  ;;  %v8394_v26 = vpop.f32.mrf.mxu1 }
 0x408   : > { %5687 = vrot.lane.b32.xlu2 %v5544_v56, %s11529_s21  ;;  %v9733_v33 = vunpack.c.l.b16 %v9605_v61  ;;  %v9734_v23 = vunpack.c.l.b16 %v9606_v35  ;;  %v15407_v9 = vadd.f32 %v15330_v60, %v15348_v63  ;;  %v9358_v47 = vsel %vm9205_vm1, %v15307_v8, %v9357_v58  ;;  %v8873_v63 = vld [vmem:[%s14770_s27 + $0x124] sm:$0x7]  ;;  %v10661_v35 = vld [vmem:[%s11564_s18 + $0x13c] sm:$0x3]  ;;  %6839 = vst.msk [vmem:[#allocation2 + $0x13c] sm:$0xf] %vm1244_vm11, %v6763_v13 }
 0x409   : > { %v9801_v7 = vrot.slane %v9732_v43, 7  ;;  %v15412_v34 = vadd.f32 %v15330_v60, %v8310_v62  ;;  %v15416_v42 = vadd.f32 %v15161_v0, %v15334_v54  ;;  %v15420_v55 = vadd.f32 %v15202_v12, %v15338_v22  ;;  %v7529_v60 = vpop.permute.xlu1 %7528  ;;  %v8888_v0 = vld [vmem:[%s14770_s27 + $0x138] sm:$0x7]  ;;  %v7531_v22 = vpop.permute.xlu2 %7530 }
 0x40a   : > { %v9803_v31 = vrot.slane %v9733_v33, 6  ;;  %v8874_v8 = vsel %vm14787_vm14, 0, %v8873_v63  ;;  %v9300_v19 = vpack.c.b16 %v9224_v37, %v9224_v37  ;;  %v9805_v2 = vrot.slane %v9734_v23, 5  ;;  %7606 = vst.msk [vmem:[#allocation2 + $0x12c] sm:$0xf] %vm2016_vm12, %v7529_v60 }
 0x40b   : > { %v9802_v48 = vsel %vm9199_vm15, %v9801_v7, %v9731_v51  ;;  %8875 = vst [vmem:[%s14770_s27 + $0x124] sm:$0x7] %v8874_v8  ;;  %v9359_v12 = vsel %vm9349_vm4, %v15324_v16, %v9358_v47  ;;  %v5582_v14 = vshrl.u32 %v10662_v46, 16  ;;  %v5585_v39 = vshll.u32 %v10662_v46, 16  ;;  %v15441_v16 = vpop.f32.mrf.mxu3  ;;  %v10754_v23 = vld [vmem:[%s11564_s18 + $0x138] sm:$0xf] }
 0x40c   : > { %v9804_v54 = vsel %vm9202_vm0, %v9803_v31, %v9802_v48  ;;  %v8889_v28 = vsel %vm14787_vm14, 0, %v8888_v0  ;;  %v9937_v59 = vsel %vm9202_vm0, %v9801_v7, %v9731_v51  ;;  %v5591_v29 = vshrl.u32 %v10663_v21, 16  ;;  %11311 = vst.msk [vmem:[%s14770_s27 + $0x48] sm:$0x3] %vm9330_vm8, %v9300_v19  ;;  %v11330_v47 = vld [vmem:[%s14770_s27 + $0x34] sm:$0x7]  ;;  %v4908_v19 = vpop.permute.xlu0 %4907 }
 0x40d   : > { %v15437_v10 = vsel %vm9205_vm1, %v9805_v2, %v9804_v54  ;;  %v15445_v38 = vadd.f32 %v15265_v36, %v15346_v18  ;;  %v15448_v53 = vadd.f32 %v15316_v40, %v8301_v27  ;;  %8890 = vst [vmem:[%s14770_s27 + $0x138] sm:$0x7] %v8889_v28  ;;  %v8727_v50 = vsel %vm14787_vm14, 0, %v8726_v17  ;;  %v10755_v8 = vld [vmem:[%s11564_s18 + $0x13c] sm:$0x1] }
 0x40e   : > { %v5584_v1 = vrot.slane %v5582_v14, 5  ;;  %v5587_v45 = vrot.slane %v5585_v39, 6  ;;  %v5593_v57 = vrot.slane %v5591_v29, 5  ;;  %v5594_v58 = vshll.u32 %v10663_v21, 16  ;;  %8728 = vst [vmem:[%s14770_s27 + $0x60] sm:$0x7] %v8727_v50 }
 0x40f   : > { %v5564_v61 = vshrl.u32 %v10660_v44, 16  ;;  %v15457_v36 = vadd.f32 %v15379_v15, %v8304_v41  ;;  %v9399_v40 = vpack.c.b16 %v9359_v12, %v9359_v12  ;;  %v9938_v18 = vsel %vm9205_vm1, %v9803_v31, %v9937_v59  ;;  %7607 = vst.msk [vmem:[#allocation2 + $0x13c] sm:$0xf] %vm2016_vm12, %v7531_v22  ;;  %v10820_v14 = vld [vmem:[%s11564_s18 + $0x140] sm:$0xe] }
 0x410   : > { %v5567_v6 = vshll.u32 %v10660_v44, 16  ;;  %v5588_v27 = vor.u32 %v5587_v45, %v5584_v1  ;;  %v5596_v62 = vrot.slane %v5594_v58, 6  ;;  %v5573_v43 = vshrl.u32 %v10661_v35, 16  ;;  %4983 = vst.msk [vmem:[#allocation2 + $0x148] sm:$0xf] %vm1244_vm11, %v4908_v19 }
 0x411   : > { %v5566_v56 = vrot.slane %v5564_v61, 5  ;;  %v15463_v37 = vadd.f32 %v8394_v26, %v8306_v4  ;;  %v9879_v15 = vpack.c.b16 %v14938_v32, %v14938_v32  ;;  %v5576_v33 = vshll.u32 %v10661_v35, 16  ;;  %v4910_v4 = vpop.permute.xlu1 %4909  ;;  %v5676_v21 = vpop.permute.xlu2 %5675  ;;  %v11443_v22 = vld [vmem:[#allocation2 + $0x12c] sm:$0xf]  ;;  %v8786_v50 = vld [vmem:[%s14770_s27 + $0xb0] sm:$0x7] }
 0x412   : > { %v5569_v41 = vrot.slane %v5567_v6, 6  ;;  %v15471_v51 = vsel %vm9349_vm4, %v9805_v2, %v9938_v18  ;;  %v5589_v7 = vrot.slane %v5588_v27, 4  ;;  %v5597_v63 = vor.u32 %v5596_v62, %v5593_v57  ;;  %4984 = vst.msk [vmem:[#allocation2 + $0x158] sm:$0xf] %vm1244_vm11, %v4910_v4  ;;  %v10758_v18 = vld [vmem:[%s11564_s18 + $0x148] sm:$0xf] }
 0x413   : > { %v5575_v31 = vrot.slane %v5573_v43, 5  ;;  %v9441_v48 = vsel %vm14910_vm9, %v9399_v40, %v11330_v47  ;;  %v5578_v13 = vrot.slane %v5576_v33, 6  ;;  %v6271_v46 = vshrl.u32 %v10754_v23, 16  ;;  %v8562_v29 = vpop.f32.mrf.mxu3  ;;  %5751 = vst.msk [vmem:[#allocation2 + $0x148] sm:$0xf] %vm2016_vm12, %v5676_v21 }
 0x414   : > { %v5570_v60 = vor.u32 %v5569_v41, %v5566_v56  ;;  %11331 = vst [vmem:[%s14770_s27 + $0x34] sm:$0x7] %v9441_v48  ;;  %v8472_v2 = vadd.f32 %v15375_v24, %v15416_v42  ;;  %v5598_v0 = vsel %vm12136_vm10, %v5589_v7, %v5597_v63  ;;  %v6274_v12 = vshll.u32 %v10754_v23, 16  ;;  %v10821_v24 = vld [vmem:[%s11564_s18 + $0x144] sm:$0x1]  ;;  %v8476_v42 = vpop.f32.mrf.mxu2  ;;  %v5678_v4 = vpop.permute.xlu0 %5677 }
 0x415   : > { %v6280_v54 = vshll.u32 %v10755_v8, 16  ;;  %v9979_v39 = vpack.c.b16 %v15471_v51, %v15471_v51  ;;  %5693 = vrot.lane.b32.xlu1 %v5598_v0, %s11529_s21  ;;  %v5579_v17 = vor.u32 %v5578_v13, %v5575_v31  ;;  %v6273_v59 = vrot.slane %v6271_v46, 4  ;;  %v10759_v35 = vld [vmem:[%s11564_s18 + $0x14c] sm:$0x1]  ;;  %v10912_v41 = vld [vmem:[%s11564_s18 + $0x130] sm:$0xe] }
 0x416   : > { %v5571_v28 = vrot.slane %v5570_v60, 4  ;;  %v8474_v1 = vadd.f32 %v8473_v20, %v15420_v55  ;;  %v6276_v44 = vrot.slane %v6274_v12, 5  ;;  %v8561_v45 = vadd.f32 %v15441_v16, %v8472_v2  ;;  %v11080_v20 = vld [vmem:[#allocation2 + $0x138] sm:$0xf0]  ;;  %v10913_v33 = vld [vmem:[%s11564_s18 + $0x134] sm:$0x3] }
 0x417   : > { %v6282_v26 = vrot.slane %v6280_v54, 5  ;;  %v8787_v57 = vsel %vm14787_vm14, 0, %v8786_v50  ;;  %v10856_v61 = vrot.slane %v10820_v14, 9  ;;  %v6710_v40 = vrot.slane %v10821_v24, 5  ;;  %v10688_v31 = vld [vmem:[%s11564_s18 + $0xe8] sm:$0xf] }
 0x418   : > { %v5580_v58 = vsel %vm12136_vm10, %v5571_v28, %v5579_v17  ;;  %8788 = vst [vmem:[%s14770_s27 + $0xb0] sm:$0x7] %v8787_v57  ;;  %v6277_v55 = vor.u32 %v6276_v44, %v6273_v59  ;;  %v15501_v16 = vadd.f32 %v8476_v42, %v15445_v38  ;;  %v15503_v6 = vadd.f32 %v8562_v29, %v8474_v1  ;;  %v10689_v28 = vld [vmem:[%s11564_s18 + $0xf0] sm:$0xf]  ;;  %v10918_v29 = vld [vmem:[%s11564_s18 + $0x148] sm:$0xe] }
 0x419   : > { %5691 = vrot.lane.b32.xlu0 %v5580_v58, %s11529_s21  ;;  %v11083_v27 = vor.u32 %v11443_v22, %v11080_v20  ;;  %v6711_v62 = vsel %vm11738_vm6, %v10856_v61, %v6710_v40  ;;  %v6299_v56 = vshrl.u32 %v10758_v18, 16  ;;  %v6302_v43 = vshll.u32 %v10758_v18, 16  ;;  %v6381_v8 = vpop.permute.xlu1 %6380  ;;  %5816 = vst.msk [vmem:[#allocation2 + $0x14c] sm:$0xf] %vm212_vm5, %v10688_v31  ;;  %v6383_v13 = vpop.permute.xlu2 %6382  ;;  %v8846_v50 = vld [vmem:[%s14770_s27 + $0x100] sm:$0x7] }
 0x41a   : > { %v6278_v23 = vrot.slane %v6277_v55, 4  ;;  %v6308_v47 = vshll.u32 %v10759_v35, 16  ;;  %v8628_v7 = vmax.f32 %v8561_v45, 0.0  ;;  %v7385_v63 = vshrl.u32 %v10912_v41, 16  ;;  %6456 = vst.msk [vmem:[#allocation2 + $0x14c] sm:$0xf] %vm856_vm7, %v6381_v8 }
 0x41b   : > { %8584 = vmatmul.bf16.gmra.mxu3 %v11083_v27  ;;  %v6301_v38 = vrot.slane %v6299_v56, 4  ;;  %v6304_v19 = vrot.slane %v6302_v43, 5  ;;  %v7388_v48 = vshll.u32 %v10912_v41, 16  ;;  %v7394_v60 = vshrl.u32 %v10913_v33, 16  ;;  %5752 = vst.msk [vmem:[#allocation2 + $0x158] sm:$0xf] %vm2016_vm12, %v5678_v4 }
 0x41c   : > { %v6283_v46 = vsel %vm11577_vm2, %v6278_v23, %v6282_v26  ;;  %v6310_v21 = vrot.slane %v6308_v47, 5  ;;  %v8922_v2 = vrot.slane %v8628_v7, 2  ;;  %v8923_v0 = vrot.slane %v8628_v7, 4  ;;  %5817 = vst.msk [vmem:[#allocation2 + $0x15c] sm:$0xf] %vm212_vm5, %v10689_v28  ;;  %v6765_v23 = vpop.permute.xlu0 %6764 }
 0x41d   : > { %6394 = vrot.lane.b32.xlu2 %v6283_v46, %s11527_s19  ;;  %6780 = vrot.lane.b32.xlu1 %v6711_v62, %s11528_s20  ;;  %v6305_v12 = vor.u32 %v6304_v19, %v6301_v38  ;;  %v8924_v54 = vrot.slane %v8628_v7, 6  ;;  %v9022_v22 = vpack.c.bf16 %v8628_v7, %v8628_v7  ;;  %v7387_v14 = vrot.slane %v7385_v63, 5  ;;  %6457 = vst.msk [vmem:[#allocation2 + $0x15c] sm:$0xf] %vm856_vm7, %v6383_v13  ;;  %v10919_v18 = vld [vmem:[%s11564_s18 + $0x14c] sm:$0x3] }
 0x41e   : > { %v9023_v17 = vpack.c.bf16 %v8922_v2, %v8922_v2  ;;  %v9024_v59 = vpack.c.bf16 %v8923_v0, %v8923_v0  ;;  %v7390_v24 = vrot.slane %v7388_v48, 6  ;;  %v7396_v42 = vrot.slane %v7394_v60, 5  ;;  %v10916_v60 = vld [vmem:[%s11564_s18 + $0x140] sm:$0xe]  ;;  %v10917_v0 = vld [vmem:[%s11564_s18 + $0x144] sm:$0x3] }
 0x41f   : > { %v6306_v1 = vrot.slane %v6305_v12, 4  ;;  %v9025_v44 = vpack.c.bf16 %v8924_v54, %v8924_v54  ;;  %v9150_v26 = vunpack.c.l.b16 %v9022_v22  ;;  %v7397_v45 = vshll.u32 %v10913_v33, 16  ;;  %v11332_v22 = vld [vmem:[%s14770_s27 + $0x78] sm:$0x7]  ;;  %6840 = vst.msk [vmem:[#allocation2 + $0x14c] sm:$0xf] %vm1244_vm11, %v6765_v23 }
 0x420   : > { %v8847_v57 = vsel %vm14787_vm14, 0, %v8846_v50  ;;  %v9151_v58 = vunpack.c.l.b16 %v9023_v17  ;;  %v9152_v61 = vunpack.c.l.b16 %v9024_v59  ;;  %v7391_v40 = vor.u32 %v7390_v24, %v7387_v14  ;;  %v8792_v17 = vld [vmem:[%s14770_s27 + $0xb8] sm:$0x7]  ;;  %v10566_v59 = vld [vmem:[%s11564_s18 + $0x140] sm:$0xe] }
 0x421   : > { %8848 = vst [vmem:[%s14770_s27 + $0x100] sm:$0x7] %v8847_v57  ;;  %v6311_v55 = vsel %vm11577_vm2, %v6306_v1, %v6310_v21  ;;  %v9153_v20 = vunpack.c.l.b16 %v9025_v44  ;;  %v7399_v35 = vrot.slane %v7397_v45, 6  ;;  %v7439_v27 = vshrl.u32 %v10918_v29, 16  ;;  %v6767_v33 = vpop.permute.xlu1 %6766  ;;  %v7533_v8 = vpop.permute.xlu2 %7532  ;;  %v10567_v1 = vld [vmem:[%s11564_s18 + $0x144] sm:$0x1] }
 0x422   : > { %6398 = vrot.lane.b32.xlu0 %v6311_v55, %s11527_s19  ;;  %v9225_v62 = vrot.slane %v9151_v58, 7  ;;  %v9227_v56 = vrot.slane %v9152_v61, 6  ;;  %v7392_v43 = vrot.slane %v7391_v40, 4  ;;  %v7442_v41 = vshll.u32 %v10918_v29, 16  ;;  %6841 = vst.msk [vmem:[#allocation2 + $0x15c] sm:$0xf] %vm1244_vm11, %v6767_v33 }
 0x423   : > { %v9229_v47 = vrot.slane %v9153_v20, 5  ;;  %v7400_v7 = vor.u32 %v7399_v35, %v7396_v42  ;;  %v7441_v63 = vrot.slane %v7439_v27, 5  ;;  %v7448_v31 = vshrl.u32 %v10919_v18, 16  ;;  %7608 = vst.msk [vmem:[#allocation2 + $0x14c] sm:$0xf] %vm2016_vm12, %v7533_v8 }
 0x424   : > { %v9226_v4 = vsel %vm9199_vm15, %v9225_v62, %v9150_v26  ;;  %v9360_v38 = vsel %vm9202_vm0, %v9225_v62, %v9150_v26  ;;  %v7444_v19 = vrot.slane %v7442_v41, 6  ;;  %v7451_v48 = vshll.u32 %v10919_v18, 16  ;;  %v11378_v44 = vld [vmem:[%s14770_s27 + $0x10] sm:$0x7]  ;;  %v11449_v61 = vld [vmem:[#allocation2 + $0x154] sm:$0xf0] }
 0x425   : > { %v9228_v13 = vsel %vm9202_vm0, %v9227_v56, %v9226_v4  ;;  %v9361_v46 = vsel %vm9205_vm1, %v9227_v56, %v9360_v38  ;;  %v7401_v21 = vsel %vm12136_vm10, %v7392_v43, %v7400_v7  ;;  %v7450_v2 = vrot.slane %v7448_v31, 5  ;;  %v10570_v35 = vld [vmem:[%s11564_s18 + $0x150] sm:$0xe]  ;;  %v11094_v43 = vld [vmem:[#allocation2 + $0x148] sm:$0xf]  ;;  %v8478_v38 = vpop.f32.mrf.mxu2 }
 0x426   : > { %v9230_v12 = vsel %vm9205_vm1, %v9229_v47, %v9228_v13  ;;  %v9362_v54 = vsel %vm9349_vm4, %v9229_v47, %v9361_v46  ;;  %7544 = vrot.lane.b32.xlu2 %v7401_v21, %s11529_s21  ;;  %v7445_v14 = vor.u32 %v7444_v19, %v7441_v63  ;;  %v7453_v28 = vrot.slane %v7451_v48, 6  ;;  %v10571_v41 = vld [vmem:[%s11564_s18 + $0x154] sm:$0x1]  ;;  %v7535_v63 = vpop.permute.xlu0 %7534  ;;  %v10756_v46 = vld [vmem:[%s11564_s18 + $0x140] sm:$0xf] }
 0x427   : > { %v9301_v24 = vpack.c.b16 %v9230_v12, %v9230_v12  ;;  %v9400_v42 = vpack.c.b16 %v9362_v54, %v9362_v54  ;;  %v7421_v29 = vshrl.u32 %v10916_v60, 16  ;;  %v7424_v50 = vshll.u32 %v10916_v60, 16  ;;  %7609 = vst.msk [vmem:[#allocation2 + $0x15c] sm:$0xf] %vm2016_vm12, %v7535_v63  ;;  %v10690_v32 = vld [vmem:[%s11564_s18 + $0xf8] sm:$0xf] }
 0x428   : > { %v7446_v26 = vrot.slane %v7445_v14, 4  ;;  %v7454_v45 = vor.u32 %v7453_v28, %v7450_v2  ;;  %v7430_v57 = vshrl.u32 %v10917_v0, 16  ;;  %v7433_v58 = vshll.u32 %v10917_v0, 16  ;;  %v10664_v14 = vld [vmem:[%s11564_s18 + $0x148] sm:$0xe] }
 0x429   : > { %v10019_v40 = vsel %vm14910_vm9, %v9979_v39, %v11378_v44  ;;  %11312 = vst.msk [vmem:[%s14770_s27 + $0x8c] sm:$0x3] %vm9330_vm8, %v9301_v24  ;;  %v9444_v18 = vsel %vm14910_vm9, %v9400_v42, %v11332_v22  ;;  %v7423_v55 = vrot.slane %v7421_v29, 5  ;;  %v7426_v20 = vrot.slane %v7424_v50, 6  ;;  %v4912_v39 = vpop.permute.xlu1 %4911  ;;  %v4914_v21 = vpop.permute.xlu2 %4913  ;;  %v10757_v22 = vld [vmem:[%s11564_s18 + $0x144] sm:$0x1] }
 0x42a   : > { %11379 = vst [vmem:[%s14770_s27 + $0x10] sm:$0x7] %v10019_v40  ;;  %v7455_v27 = vsel %vm12136_vm10, %v7446_v26, %v7454_v45  ;;  %v7432_v62 = vrot.slane %v7430_v57, 5  ;;  %v7435_v56 = vrot.slane %v7433_v58, 6  ;;  %v8629_v51 = vmax.f32 %v15503_v6, 0.0 }
 0x42b   : > { %11333 = vst [vmem:[%s14770_s27 + $0x78] sm:$0x7] %v9444_v18  ;;  %7550 = vrot.lane.b32.xlu1 %v7455_v27, %s11529_s21  ;;  %v7427_v33 = vor.u32 %v7426_v20, %v7423_v55  ;;  %v8793_v23 = vsel %vm14787_vm14, 0, %v8792_v17  ;;  %v10601_v47 = vrot.slane %v10566_v59, 9  ;;  %v4857_v7 = vrot.slane %v10567_v1, 5 }
 0x42c   : > { %v7436_v31 = vor.u32 %v7435_v56, %v7432_v62  ;;  %8794 = vst [vmem:[%s14770_s27 + $0xb8] sm:$0x7] %v8793_v23  ;;  %v9507_v8 = vrot.slane %v8629_v51, 2  ;;  %v9508_v6 = vrot.slane %v8629_v51, 4  ;;  %v9509_v4 = vrot.slane %v8629_v51, 6 }
 0x42d   : > { %v7428_v19 = vrot.slane %v7427_v33, 4  ;;  %v9607_v48 = vpack.c.bf16 %v8629_v51, %v8629_v51  ;;  %v4858_v60 = vsel %vm11738_vm6, %v10601_v47, %v4857_v7  ;;  %v11095_v13 = vor.u32 %v11449_v61, %v11094_v43  ;;  %4985 = vst.msk [vmem:[#allocation2 + $0x168] sm:$0xf] %vm1244_vm11, %v4912_v39  ;;  %v10665_v44 = vld [vmem:[%s11564_s18 + $0x14c] sm:$0x3] }
 0x42e   : > { %v9608_v2 = vpack.c.bf16 %v9507_v8, %v9507_v8  ;;  %v9609_v0 = vpack.c.bf16 %v9508_v6, %v9508_v6  ;;  %v9610_v12 = vpack.c.bf16 %v9509_v4, %v9509_v4  ;;  %4925 = vrot.lane.b32.xlu2 %v4858_v60, %s11528_s20  ;;  %v10603_v54 = vrot.slane %v10570_v35, 9  ;;  %4986 = vst.msk [vmem:[#allocation2 + $0x178] sm:$0xf] %vm1244_vm11, %v4914_v21  ;;  %v8852_v55 = vld [vmem:[%s14770_s27 + $0x108] sm:$0x7]  ;;  %v8565_v8 = vpop.f32.mrf.mxu3  ;;  %v5680_v6 = vpop.permute.xlu0 %5679 }
 0x42f   : > { %v7437_v28 = vsel %vm12136_vm10, %v7428_v19, %v7436_v31  ;;  %v9735_v17 = vunpack.c.l.b16 %v9607_v48  ;;  %8500 = vmatmul.bf16.gmra.mxu2 %v11095_v13  ;;  %v4865_v59 = vrot.slane %v10571_v41, 5  ;;  %v15577_v24 = vadd.f32 %v8478_v38, %v15448_v53  ;;  %v10760_v39 = vld [vmem:[%s11564_s18 + $0x150] sm:$0xf]  ;;  %v10761_v31 = vld [vmem:[%s11564_s18 + $0x154] sm:$0x1] }
 0x430   : > { %7548 = vrot.lane.b32.xlu0 %v7437_v28, %s11529_s21  ;;  %v9736_v42 = vunpack.c.l.b16 %v9608_v2  ;;  %v9737_v29 = vunpack.c.l.b16 %v9609_v0  ;;  %v9738_v50 = vunpack.c.l.b16 %v9610_v12  ;;  %v6285_v1 = vshrl.u32 %v10756_v46, 16  ;;  %11356 = vst.msk [vmem:[%s14770_s27 + $0x18] sm:$0x3] %vm9330_vm8, %v9879_v15  ;;  %v11380_v19 = vld [vmem:[%s14770_s27 + $0x54] sm:$0x7] }
 0x431   : > { %v4866_v26 = vsel %vm11738_vm6, %v10603_v54, %v4865_v59  ;;  %v6288_v45 = vshll.u32 %v10756_v46, 16  ;;  %v6294_v57 = vshll.u32 %v10757_v22, 16  ;;  %v5600_v53 = vshrl.u32 %v10664_v14, 16  ;;  %v5682_v33 = vpop.permute.xlu1 %5681  ;;  %v10822_v13 = vld [vmem:[%s11564_s18 + $0x148] sm:$0xe]  ;;  %v6385_v22 = vpop.permute.xlu2 %6384 }
 0x432   : > { %v9807_v58 = vrot.slane %v9736_v42, 7  ;;  %v9809_v61 = vrot.slane %v9737_v29, 6  ;;  %v9811_v40 = vrot.slane %v9738_v50, 5  ;;  %v6287_v18 = vrot.slane %v6285_v1, 4  ;;  %v10823_v46 = vld [vmem:[%s11564_s18 + $0x14c] sm:$0x1] }
 0x433   : > { %v6290_v20 = vrot.slane %v6288_v45, 5  ;;  %v6296_v35 = vrot.slane %v6294_v57, 5  ;;  %v5602_v27 = vrot.slane %v5600_v53, 5  ;;  %v5603_v62 = vshll.u32 %v10664_v14, 16  ;;  %v10762_v21 = vld [vmem:[%s11564_s18 + $0x158] sm:$0xf] }
 0x434   : > { %v8853_v56 = vsel %vm14787_vm14, 0, %v8852_v55  ;;  %v9808_v51 = vsel %vm9199_vm15, %v9807_v58, %v9735_v17  ;;  %v9940_v43 = vsel %vm9202_vm0, %v9807_v58, %v9735_v17  ;;  %v5609_v41 = vshrl.u32 %v10665_v44, 16  ;;  %5754 = vst.msk [vmem:[#allocation2 + $0x178] sm:$0xf] %vm2016_vm12, %v5682_v33  ;;  %v10763_v1 = vld [vmem:[%s11564_s18 + $0x15c] sm:$0x1] }
 0x435   : > { %8854 = vst [vmem:[%s14770_s27 + $0x108] sm:$0x7] %v8853_v56  ;;  %v9810_v23 = vsel %vm9202_vm0, %v9809_v61, %v9808_v51  ;;  %v9941_v47 = vsel %vm9205_vm1, %v9809_v61, %v9940_v43  ;;  %v6291_v7 = vor.u32 %v6290_v20, %v6287_v18  ;;  %v5605_v63 = vrot.slane %v5603_v62, 6  ;;  %v11096_v51 = vld [vmem:[#allocation2 + $0x158] sm:$0xf0] }
 0x436   : > { %v9812_v4 = vsel %vm9205_vm1, %v9811_v40, %v9810_v23  ;;  %v9942_v38 = vsel %vm9349_vm4, %v9811_v40, %v9941_v47  ;;  %v5611_v48 = vrot.slane %v5609_v41, 5  ;;  %v5612_v60 = vshll.u32 %v10665_v44, 16  ;;  %5753 = vst.msk [vmem:[#allocation2 + $0x168] sm:$0xf] %vm2016_vm12, %v5680_v6  ;;  %v10826_v23 = vld [vmem:[%s11564_s18 + $0x158] sm:$0xe] }
 0x437   : > { %v9883_v2 = vpack.c.b16 %v9812_v4, %v9812_v4  ;;  %v9980_v0 = vpack.c.b16 %v9942_v38, %v9942_v38  ;;  %v6292_v12 = vrot.slane %v6291_v7, 4  ;;  %v5606_v54 = vor.u32 %v5605_v63, %v5602_v27  ;;  %5818 = vst.msk [vmem:[#allocation2 + $0x16c] sm:$0xf] %vm212_vm5, %v10690_v32  ;;  %v10827_v6 = vld [vmem:[%s11564_s18 + $0x15c] sm:$0x1]  ;;  %v8567_v4 = vpop.f32.mrf.mxu3 }
 0x438   : > { %4929 = vrot.lane.b32.xlu0 %v4866_v26, %s11528_s20  ;;  %v5614_v15 = vrot.slane %v5612_v60, 6  ;;  %v6313_v14 = vshrl.u32 %v10760_v39, 16  ;;  %v6316_v28 = vshll.u32 %v10760_v39, 16  ;;  %v6322_v17 = vshll.u32 %v10761_v31, 16  ;;  %6458 = vst.msk [vmem:[#allocation2 + $0x16c] sm:$0xf] %vm856_vm7, %v6385_v22  ;;  %v6387_v22 = vpop.permute.xlu0 %6386 }
 0x439   : > { %11360 = vst.msk [vmem:[%s14770_s27 + $0x68] sm:$0x3] %vm9330_vm8, %v9883_v2  ;;  %v10022_v59 = vsel %vm14910_vm9, %v9980_v0, %v11380_v19  ;;  %v6297_v42 = vsel %vm11577_vm2, %v6292_v12, %v6296_v35  ;;  %v5607_v29 = vrot.slane %v5606_v54, 4  ;;  %v8566_v50 = vadd.f32 %v8565_v8, %v15501_v16  ;;  %v11447_v8 = vld [vmem:[#allocation2 + $0x14c] sm:$0xf] }
 0x43a   : > { %11381 = vst [vmem:[%s14770_s27 + $0x54] sm:$0x7] %v10022_v59  ;;  %6396 = vrot.lane.b32.xlu2 %v6297_v42, %s11527_s19  ;;  %v5615_v44 = vor.u32 %v5614_v15, %v5611_v48  ;;  %v6315_v26 = vrot.slane %v6313_v14, 4  ;;  %v6318_v45 = vrot.slane %v6316_v28, 5  ;;  %v6324_v57 = vrot.slane %v6322_v17, 5  ;;  %v6771_v15 = vpop.permute.xlu2 %6770 }
 0x43b   : > { %v8630_v53 = vmax.f32 %v8566_v50, 0.0  ;;  %v10857_v58 = vrot.slane %v10822_v13, 9  ;;  %v6714_v61 = vrot.slane %v10823_v46, 5  ;;  %v6327_v40 = vshrl.u32 %v10762_v21, 16  ;;  %v8675_v38 = vld [vmem:[%s14770_s27 + $0x1c] sm:$0x7] }
 0x43c   : > { %v5616_v18 = vsel %vm12136_vm10, %v5607_v29, %v5615_v44  ;;  %v6319_v55 = vor.u32 %v6318_v45, %v6315_v26  ;;  %v6330_v16 = vshll.u32 %v10762_v21, 16  ;;  %v6336_v20 = vshll.u32 %v10763_v1, 16  ;;  %v10568_v46 = vld [vmem:[%s11564_s18 + $0x148] sm:$0xe]  ;;  %v6769_v21 = vpop.permute.xlu1 %6768  ;;  %v10569_v32 = vld [vmem:[%s11564_s18 + $0x14c] sm:$0x1] }
 0x43d   : > { %5695 = vrot.lane.b32.xlu1 %v5616_v18, %s11529_s21  ;;  %v8925_v35 = vrot.slane %v8630_v53, 2  ;;  %v8926_v27 = vrot.slane %v8630_v53, 4  ;;  %v8927_v62 = vrot.slane %v8630_v53, 6  ;;  %v9026_v56 = vpack.c.bf16 %v8630_v53, %v8630_v53  ;;  %v10920_v42 = vld [vmem:[%s11564_s18 + $0x150] sm:$0xe] }
 0x43e   : > { %v6320_v43 = vrot.slane %v6319_v55, 4  ;;  %v6715_v41 = vsel %vm11738_vm6, %v10857_v58, %v6714_v61  ;;  %v6329_v39 = vrot.slane %v6327_v40, 4  ;;  %v6332_v33 = vrot.slane %v6330_v16, 5  ;;  %6842 = vst.msk [vmem:[#allocation2 + $0x16c] sm:$0xf] %vm1244_vm11, %v6769_v21  ;;  %v8397_v58 = vpop.f32.mrf.mxu1 }
 0x43f   : > { %v9027_v47 = vpack.c.bf16 %v8925_v35, %v8925_v35  ;;  %v9028_v7 = vpack.c.bf16 %v8926_v27, %v8926_v27  ;;  %v9029_v63 = vpack.c.bf16 %v8927_v62, %v8927_v62  ;;  %v9154_v31 = vunpack.c.l.b16 %v9026_v56  ;;  %v8481_v27 = vpop.f32.mrf.mxu2  ;;  %v8735_v21 = vld [vmem:[%s14770_s27 + $0x6c] sm:$0x7] }
 0x440   : > { %v6325_v19 = vsel %vm11577_vm2, %v6320_v43, %v6324_v57  ;;  %v6333_v48 = vor.u32 %v6332_v33, %v6329_v39  ;;  %v6338_v60 = vrot.slane %v6336_v20, 5  ;;  %v11099_v13 = vor.u32 %v11447_v8, %v11096_v51  ;;  %v11334_v51 = vld [vmem:[%s14770_s27 + $0x7c] sm:$0x7] }
 0x441   : > { %6400 = vrot.lane.b32.xlu0 %v6325_v19, %s11527_s19  ;;  %v9155_v2 = vunpack.c.l.b16 %v9027_v47  ;;  %v9156_v0 = vunpack.c.l.b16 %v9028_v7  ;;  %v9157_v12 = vunpack.c.l.b16 %v9029_v63  ;;  %v10859_v54 = vrot.slane %v10826_v23, 9  ;;  %v10921_v7 = vld [vmem:[%s11564_s18 + $0x154] sm:$0x3]  ;;  %v11110_v63 = vld [vmem:[#allocation2 + $0x168] sm:$0xf] }
 0x442   : > { %6782 = vrot.lane.b32.xlu2 %v6715_v41, %s11528_s20  ;;  %v6334_v14 = vrot.slane %v6333_v48, 4  ;;  %8589 = vmatmul.bf16.gmra.mxu3 %v11099_v13  ;;  %v6722_v28 = vrot.slane %v10827_v6, 5  ;;  %v8568_v17 = vadd.f32 %v8567_v4, %v15577_v24  ;;  %v8676_v59 = vsel %vm14787_vm14, 0, %v8675_v38  ;;  %v10691_v24 = vld [vmem:[%s11564_s18 + $0x100] sm:$0xf]  ;;  %v15660_v6 = vpop.f32.mrf.mxu3  ;;  %v7537_v13 = vpop.permute.xlu0 %7536 }
 0x443   : > { %v9231_v29 = vrot.slane %v9155_v2, 7  ;;  %v9233_v50 = vrot.slane %v9156_v0, 6  ;;  %v9235_v1 = vrot.slane %v9157_v12, 5  ;;  %8677 = vst [vmem:[%s14770_s27 + $0x1c] sm:$0x7] %v8676_v59  ;;  %v10602_v44 = vrot.slane %v10568_v46, 9  ;;  %v4916_v46 = vpop.permute.xlu2 %4915 }
 0x444   : > { %v6339_v26 = vsel %vm11577_vm2, %v6334_v14, %v6338_v60  ;;  %v6723_v45 = vsel %vm11738_vm6, %v10859_v54, %v6722_v28  ;;  %v8631_v57 = vmax.f32 %v8568_v17, 0.0  ;;  %v4861_v53 = vrot.slane %v10569_v32, 5  ;;  %5819 = vst.msk [vmem:[#allocation2 + $0x17c] sm:$0xf] %vm212_vm5, %v10691_v24  ;;  %v7539_v8 = vpop.permute.xlu1 %7538  ;;  %v10666_v60 = vld [vmem:[%s11564_s18 + $0x150] sm:$0xe] }
 0x445   : > { %v9232_v61 = vsel %vm9199_vm15, %v9231_v29, %v9154_v31  ;;  %v9363_v40 = vsel %vm9202_vm0, %v9231_v29, %v9154_v31  ;;  %6402 = vrot.lane.b32.xlu1 %v6339_v26, %s11527_s19  ;;  %v7457_v18 = vshrl.u32 %v10920_v42, 16  ;;  %v7460_v55 = vshll.u32 %v10920_v42, 16  ;;  %6459 = vst.msk [vmem:[#allocation2 + $0x17c] sm:$0xf] %vm856_vm7, %v6387_v22  ;;  %v11453_v31 = vld [vmem:[#allocation2 + $0x174] sm:$0xf0] }
 0x446   : > { %v9234_v25 = vsel %vm9202_vm0, %v9233_v50, %v9232_v61  ;;  %v9364_v16 = vsel %vm9205_vm1, %v9233_v50, %v9363_v40  ;;  %v9510_v20 = vrot.slane %v8631_v57, 2  ;;  %v9511_v35 = vrot.slane %v8631_v57, 4  ;;  %6843 = vst.msk [vmem:[#allocation2 + $0x17c] sm:$0xf] %vm1244_vm11, %v6771_v15  ;;  %v10667_v42 = vld [vmem:[%s11564_s18 + $0x154] sm:$0x3]  ;;  %v8399_v24 = vpop.f32.mrf.mxu1 }
 0x447   : > { %v9236_v62 = vsel %vm9205_vm1, %v9235_v1, %v9234_v25  ;;  %v9365_v56 = vsel %vm9349_vm4, %v9235_v1, %v9364_v16  ;;  %v9512_v43 = vrot.slane %v8631_v57, 6  ;;  %v9611_v41 = vpack.c.bf16 %v8631_v57, %v8631_v57  ;;  %7611 = vst.msk [vmem:[#allocation2 + $0x17c] sm:$0xf] %vm2016_vm12, %v7539_v8  ;;  %v11382_v25 = vld [vmem:[%s14770_s27 + $0x58] sm:$0x7] }
 0x448   : > { %v9302_v39 = vpack.c.b16 %v9236_v62, %v9236_v62  ;;  %v9401_v33 = vpack.c.b16 %v9365_v56, %v9365_v56  ;;  %v9612_v23 = vpack.c.bf16 %v9510_v20, %v9510_v20  ;;  %v9613_v47 = vpack.c.bf16 %v9511_v35, %v9511_v35  ;;  %7610 = vst.msk [vmem:[#allocation2 + $0x16c] sm:$0xf] %vm2016_vm12, %v7537_v13  ;;  %v8483_v62 = vpop.f32.mrf.mxu2  ;;  %v10824_v56 = vld [vmem:[%s11564_s18 + $0x150] sm:$0xe] }
 0x449   : > { %v15663_v4 = vadd.f32 %v8397_v58, %v15407_v9  ;;  %6786 = vrot.lane.b32.xlu0 %v6723_v45, %s11528_s20  ;;  %v9614_v38 = vpack.c.bf16 %v9512_v43, %v9512_v43  ;;  %v4862_v19 = vsel %vm11738_vm6, %v10602_v44, %v4861_v53  ;;  %v7459_v48 = vrot.slane %v7457_v18, 5  ;;  %4987 = vst.msk [vmem:[#allocation2 + $0x188] sm:$0xf] %vm1244_vm11, %v4916_v46 }
 0x44a   : > { %11313 = vst.msk [vmem:[%s14770_s27 + $0x90] sm:$0x3] %vm9330_vm8, %v9302_v39  ;;  %v9447_v9 = vsel %vm14910_vm9, %v9401_v33, %v11334_v51  ;;  %v9740_v2 = vunpack.c.l.b16 %v9612_v23  ;;  %v9741_v0 = vunpack.c.l.b16 %v9613_v47  ;;  %4927 = vrot.lane.b32.xlu2 %v4862_v19, %s11528_s20  ;;  %v7462_v12 = vrot.slane %v7460_v55, 6  ;;  %v10825_v51 = vld [vmem:[%s11564_s18 + $0x154] sm:$0x1]  ;;  %v4918_v47 = vpop.permute.xlu0 %4917 }
 0x44b   : > { %11335 = vst [vmem:[%s14770_s27 + $0x7c] sm:$0x7] %v9447_v9  ;;  %v8736_v54 = vsel %vm14787_vm14, 0, %v8735_v21  ;;  %v9742_v32 = vunpack.c.l.b16 %v9614_v38  ;;  %v7466_v22 = vshrl.u32 %v10921_v7, 16  ;;  %v7469_v15 = vshll.u32 %v10921_v7, 16  ;;  %v8572_v9 = vpop.f32.mrf.mxu3 }
 0x44c   : > { %8737 = vst [vmem:[%s14770_s27 + $0x6c] sm:$0x7] %v8736_v54  ;;  %v9739_v14 = vunpack.c.l.b16 %v9611_v41  ;;  %v9813_v28 = vrot.slane %v9740_v2, 7  ;;  %v9815_v17 = vrot.slane %v9741_v0, 6  ;;  %v7463_v59 = vor.u32 %v7462_v12, %v7459_v48  ;;  %v5684_v43 = vpop.permute.xlu1 %5683  ;;  %v10923_v19 = vld [vmem:[%s11564_s18 + $0x15c] sm:$0x3] }
 0x44d   : > { %v9817_v29 = vrot.slane %v9742_v32, 5  ;;  %v7468_v50 = vrot.slane %v7466_v22, 5  ;;  %v7471_v1 = vrot.slane %v7469_v15, 6  ;;  %v11111_v44 = vor.u32 %v11453_v31, %v11110_v63  ;;  %5755 = vst.msk [vmem:[#allocation2 + $0x188] sm:$0xf] %vm2016_vm12, %v5684_v43 }
 0x44e   : > { %v9814_v26 = vsel %vm9199_vm15, %v9813_v28, %v9739_v14  ;;  %v9943_v45 = vsel %vm9202_vm0, %v9813_v28, %v9739_v14  ;;  %v7464_v57 = vrot.slane %v7463_v59, 4  ;;  %v5618_v53 = vshrl.u32 %v10666_v60, 16  ;;  %4988 = vst.msk [vmem:[#allocation2 + $0x198] sm:$0xf] %vm1244_vm11, %v4918_v47  ;;  %v11112_v38 = vld [vmem:[#allocation2 + $0x178] sm:$0xf0] }
 0x44f   : > { %v9816_v58 = vsel %vm9202_vm0, %v9815_v17, %v9814_v26  ;;  %v9944_v61 = vsel %vm9205_vm1, %v9815_v17, %v9943_v45  ;;  %v7472_v40 = vor.u32 %v7471_v1, %v7468_v50  ;;  %8505 = vmatmul.bf16.gmra.mxu2 %v11111_v44  ;;  %v5621_v18 = vshll.u32 %v10666_v60, 16  ;;  %v8795_v48 = vld [vmem:[%s14770_s27 + $0xbc] sm:$0x7]  ;;  %v11451_v54 = vld [vmem:[#allocation2 + $0x16c] sm:$0xf] }
 0x450   : > { %v9945_v55 = vsel %vm9349_vm4, %v9817_v29, %v9944_v61  ;;  %v8482_v16 = vadd.f32 %v8481_v27, %v15457_v36  ;;  %v5620_v20 = vrot.slane %v5618_v53, 5  ;;  %v5627_v35 = vshrl.u32 %v10667_v42, 16  ;;  %v5686_v36 = vpop.permute.xlu2 %5685  ;;  %v10922_v27 = vld [vmem:[%s11564_s18 + $0x158] sm:$0xe]  ;;  %v8678_v44 = vld [vmem:[%s14770_s27 + $0x20] sm:$0x7] }
 0x451   : > { %v15693_v41 = vsel %vm9205_vm1, %v9817_v29, %v9816_v58  ;;  %v9981_v39 = vpack.c.b16 %v9945_v55, %v9945_v55  ;;  %v7473_v33 = vsel %vm12136_vm10, %v7464_v57, %v7472_v40  ;;  %v5623_v23 = vrot.slane %v5621_v18, 6  ;;  %5756 = vst.msk [vmem:[#allocation2 + $0x198] sm:$0xf] %vm2016_vm12, %v5686_v36 }
 0x452   : > { %v15700_v7 = vadd.f32 %v8399_v24, %v15412_v34  ;;  %v9880_v63 = vpack.c.b16 %v15065_v30, %v15065_v30  ;;  %7552 = vrot.lane.b32.xlu1 %v7473_v33, %s11529_s21  ;;  %v5629_v31 = vrot.slane %v5627_v35, 5  ;;  %v5630_v8 = vshll.u32 %v10667_v42, 16  ;;  %v8855_v33 = vld [vmem:[%s14770_s27 + $0x10c] sm:$0x7] }
 0x453   : > { %v10025_v60 = vsel %vm14910_vm9, %v9981_v39, %v11382_v25  ;;  %v5624_v13 = vor.u32 %v5623_v23, %v5620_v20  ;;  %v10858_v34 = vrot.slane %v10824_v56, 9  ;;  %v8571_v46 = vadd.f32 %v15660_v6, %v8482_v16  ;;  %v6389_v20 = vpop.permute.xlu0 %6388  ;;  %v8486_v39 = vpop.f32.mrf.mxu2 }
 0x454   : > { %v8796_v21 = vsel %vm14787_vm14, 0, %v8795_v48  ;;  %v9884_v2 = vpack.c.b16 %v15693_v41, %v15693_v41  ;;  %11383 = vst [vmem:[%s14770_s27 + $0x58] sm:$0x7] %v10025_v60  ;;  %v5632_v0 = vrot.slane %v5630_v8, 6  ;;  %v8484_v12 = vadd.f32 %v8483_v62, %v15463_v37  ;;  %v6391_v16 = vpop.permute.xlu1 %6390 }
 0x455   : > { %8797 = vst [vmem:[%s14770_s27 + $0xbc] sm:$0x7] %v8796_v21  ;;  %v5625_v32 = vrot.slane %v5624_v13, 4  ;;  %v6718_v22 = vrot.slane %v10825_v51, 5  ;;  %v8632_v15 = vmax.f32 %v8571_v46, 0.0  ;;  %v11115_v6 = vor.u32 %v11451_v54, %v11112_v38 }
 0x456   : > { %v5633_v14 = vor.u32 %v5632_v0, %v5629_v31  ;;  %v7475_v28 = vshrl.u32 %v10922_v27, 16  ;;  %v7478_v17 = vshll.u32 %v10922_v27, 16  ;;  %v8573_v59 = vadd.f32 %v8572_v9, %v8484_v12  ;;  %v8575_v31 = vpop.f32.mrf.mxu3  ;;  %v8313_v9 = vpop.f32.mrf.mxu0  ;;  %11357 = vst.msk [vmem:[%s14770_s27 + $0x1c] sm:$0x3] %vm9330_vm8, %v9880_v63  ;;  %v11126_v63 = vld [vmem:[#allocation2 + $0x188] sm:$0xf] }
 0x457   : > { %v8928_v42 = vrot.slane %v8632_v15, 2  ;;  %v8929_v29 = vrot.slane %v8632_v15, 4  ;;  %v8930_v50 = vrot.slane %v8632_v15, 6  ;;  %8594 = vmatmul.bf16.gmra.mxu3 %v11115_v6  ;;  %v7484_v1 = vshrl.u32 %v10923_v19, 16  ;;  %11361 = vst.msk [vmem:[%s14770_s27 + $0x6c] sm:$0x3] %vm9330_vm8, %v9884_v2 }
 0x458   : > { %v5634_v37 = vsel %vm12136_vm10, %v5625_v32, %v5633_v14  ;;  %v9030_v26 = vpack.c.bf16 %v8632_v15, %v8632_v15  ;;  %v7477_v45 = vrot.slane %v7475_v28, 5  ;;  %v7480_v57 = vrot.slane %v7478_v17, 6  ;;  %v15731_v43 = vpop.permute.xlu2 %6772  ;;  %v10692_v32 = vld [vmem:[%s11564_s18 + $0x120] sm:$0xf]  ;;  %v11457_v6 = vld [vmem:[#allocation2 + $0x194] sm:$0xf0] }
 0x459   : > { %5697 = vrot.lane.b32.xlu2 %v5634_v37, %s11529_s21  ;;  %v6719_v53 = vsel %vm11738_vm6, %v10858_v34, %v6718_v22  ;;  %v9031_v24 = vpack.c.bf16 %v8928_v42, %v8928_v42  ;;  %v9032_v58 = vpack.c.bf16 %v8929_v29, %v8929_v29  ;;  %v9033_v61 = vpack.c.bf16 %v8930_v50, %v8930_v50  ;;  %v8738_v29 = vld [vmem:[%s14770_s27 + $0x70] sm:$0x7]  ;;  %v11336_v37 = vld [vmem:[%s14770_s27 + $0x80] sm:$0x7] }
 0x45a   : > { %v7481_v40 = vor.u32 %v7480_v57, %v7477_v45  ;;  %v7487_v18 = vshll.u32 %v10923_v19, 16  ;;  %v8633_v55 = vmax.f32 %v8573_v59, 0.0  ;;  %v8679_v25 = vsel %vm14787_vm14, 0, %v8678_v44  ;;  %6461 = vst.msk [vmem:[#allocation2 + $0x19c] sm:$0xf] %vm856_vm7, %v6391_v16 }
 0x45b   : > { %v9159_v35 = vunpack.c.l.b16 %v9031_v24  ;;  %v9160_v62 = vunpack.c.l.b16 %v9032_v58  ;;  %v9161_v56 = vunpack.c.l.b16 %v9033_v61  ;;  %v15727_v51 = vrot.slane %v7484_v1, 5  ;;  %8680 = vst [vmem:[%s14770_s27 + $0x20] sm:$0x7] %v8679_v25  ;;  %v6775_v44 = vpop.permute.xlu0 %6774  ;;  %v8488_v24 = vpop.f32.mrf.mxu2 }
 0x45c   : > { %v9158_v23 = vunpack.c.l.b16 %v9030_v26  ;;  %v7489_v47 = vrot.slane %v7487_v18, 6  ;;  %v9513_v36 = vrot.slane %v8633_v55, 2  ;;  %v9514_v27 = vrot.slane %v8633_v55, 4  ;;  %5820 = vst.msk [vmem:[#allocation2 + $0x18c] sm:$0xf] %vm212_vm5, %v10692_v32 }
 0x45d   : > { %v8856_v8 = vsel %vm14787_vm14, 0, %v8855_v33  ;;  %v9237_v38 = vrot.slane %v9159_v35, 7  ;;  %v9239_v19 = vrot.slane %v9160_v62, 6  ;;  %v7482_v48 = vrot.slane %v7481_v40, 4  ;;  %6460 = vst.msk [vmem:[#allocation2 + $0x18c] sm:$0xf] %vm856_vm7, %v6389_v20 }
 0x45e   : > { %8857 = vst [vmem:[%s14770_s27 + $0x10c] sm:$0x7] %v8856_v8  ;;  %v9241_v60 = vrot.slane %v9161_v56, 5  ;;  %v9515_v13 = vrot.slane %v8633_v55, 6  ;;  %v9615_v34 = vpack.c.bf16 %v8633_v55, %v8633_v55  ;;  %v9616_v46 = vpack.c.bf16 %v9513_v36, %v9513_v36  ;;  %v8577_v55 = vpop.f32.mrf.mxu3  ;;  %v8315_v36 = vpop.f32.mrf.mxu0 }
 0x45f   : > { %v9238_v21 = vsel %vm9199_vm15, %v9237_v38, %v9158_v23  ;;  %v9366_v0 = vsel %vm9202_vm0, %v9237_v38, %v9158_v23  ;;  %v7490_v12 = vor.u32 %v7489_v47, %v15727_v51  ;;  %v9617_v54 = vpack.c.bf16 %v9514_v27, %v9514_v27  ;;  %v8402_v51 = vpop.f32.mrf.mxu1  ;;  %6844 = vst.msk [vmem:[#allocation2 + $0x18c] sm:$0xf] %vm1244_vm11, %v15731_v43  ;;  %v11384_v27 = vld [vmem:[%s14770_s27 + $0x5c] sm:$0x7]  ;;  %v8681_v38 = vld [vmem:[%s14770_s27 + $0x24] sm:$0x7] }
 0x460   : > { %v9240_v22 = vsel %vm9202_vm0, %v9239_v19, %v9238_v21  ;;  %v9367_v30 = vsel %vm9205_vm1, %v9239_v19, %v9366_v0  ;;  %v9618_v15 = vpack.c.bf16 %v9515_v13, %v9515_v13  ;;  %v8487_v14 = vadd.f32 %v8486_v39, %v15663_v4  ;;  %v7541_v4 = vpop.permute.xlu1 %7540  ;;  %6845 = vst.msk [vmem:[#allocation2 + $0x19c] sm:$0xf] %vm1244_vm11, %v6775_v44 }
 0x461   : > { %6784 = vrot.lane.b32.xlu2 %v6719_v53, %s11528_s20  ;;  %v9242_v28 = vsel %vm9205_vm1, %v9241_v60, %v9240_v22  ;;  %v9368_v17 = vsel %vm9349_vm4, %v9241_v60, %v9367_v30  ;;  %v9743_v41 = vunpack.c.l.b16 %v9615_v34  ;;  %v9744_v59 = vunpack.c.l.b16 %v9616_v46  ;;  %v7543_v53 = vpop.permute.xlu2 %7542  ;;  %7612 = vst.msk [vmem:[#allocation2 + $0x18c] sm:$0xf] %vm2016_vm12, %v7541_v4 }
 0x462   : > { %v9303_v2 = vpack.c.b16 %v9242_v28, %v9242_v28  ;;  %v9402_v42 = vpack.c.b16 %v9368_v17, %v9368_v17  ;;  %v9745_v50 = vunpack.c.l.b16 %v9617_v54  ;;  %v9746_v1 = vunpack.c.l.b16 %v9618_v15  ;;  %7613 = vst.msk [vmem:[#allocation2 + $0x19c] sm:$0xf] %vm2016_vm12, %v7543_v53  ;;  %v10695_v15 = vld [vmem:[%s11564_s18 + $0x138] sm:$0xf] }
 0x463   : > { %v8739_v26 = vsel %vm14787_vm14, 0, %v8738_v29  ;;  %v9819_v45 = vrot.slane %v9744_v59, 7  ;;  %v11127_v57 = vor.u32 %v11457_v6, %v11126_v63  ;;  %v8576_v58 = vadd.f32 %v8575_v31, %v8487_v14  ;;  %v4920_v13 = vpop.permute.xlu0 %4919  ;;  %v8491_v54 = vpop.f32.mrf.mxu2  ;;  %v8798_v6 = vld [vmem:[%s14770_s27 + $0xc0] sm:$0x7]  ;;  %5823 = vst.msk [vmem:[#allocation2 + $0x1bc] sm:$0xf] %vm212_vm5, %v10695_v15 }
 0x464   : > { %11314 = vst.msk [vmem:[%s14770_s27 + $0x94] sm:$0x3] %vm9330_vm8, %v9303_v2  ;;  %v9450_v61 = vsel %vm14910_vm9, %v9402_v42, %v11336_v37  ;;  %v9821_v40 = vrot.slane %v9745_v50, 6  ;;  %v8489_v18 = vadd.f32 %v8488_v24, %v15700_v7  ;;  %v15771_v25 = vrot.slane %v9746_v1, 5 }
 0x465   : > { %11337 = vst [vmem:[%s14770_s27 + $0x80] sm:$0x7] %v9450_v61  ;;  %v9946_v16 = vsel %vm9202_vm0, %v9819_v45, %v9743_v41  ;;  %8510 = vmatmul.bf16.gmra.mxu2 %v11127_v57  ;;  %v8634_v20 = vmax.f32 %v8576_v58, 0.0  ;;  %v7491_v35 = vsel %vm12136_vm10, %v7482_v48, %v7490_v12  ;;  %v8314_v33 = vadd.f32 %v15785_v11, %v8313_v9  ;;  %v10694_v12 = vld [vmem:[%s11564_s18 + $0x130] sm:$0xf] }
 0x466   : > { %8740 = vst [vmem:[%s14770_s27 + $0x70] sm:$0x7] %v8739_v26  ;;  %v9947_v62 = vsel %vm9205_vm1, %v9821_v40, %v9946_v16  ;;  %v8578_v56 = vadd.f32 %v8577_v55, %v8489_v18  ;;  %v9820_v19 = vsel %vm9199_vm15, %v9819_v45, %v9743_v41  ;;  %v8316_v32 = vadd.f32 %v15785_v11, %v8315_v36 }
 0x467   : > { %v9948_v7 = vsel %vm9349_vm4, %v15771_v25, %v9947_v62  ;;  %v8931_v49 = vrot.slane %v8634_v20, 2  ;;  %v8932_v39 = vrot.slane %v8634_v20, 4  ;;  %v8933_v47 = vrot.slane %v8634_v20, 6  ;;  %4989 = vst.msk [vmem:[#allocation2 + $0x1a8] sm:$0xf] %vm1244_vm11, %v4920_v13  ;;  %v8404_v58 = vpop.f32.mrf.mxu1 }
 0x468   : > { %v9982_v23 = vpack.c.b16 %v9948_v7, %v9948_v7  ;;  %v9034_v43 = vpack.c.bf16 %v8634_v20, %v8634_v20  ;;  %v4922_v60 = vpop.permute.xlu1 %4921  ;;  %v8635_v46 = vmax.f32 %v8578_v56, 0.0  ;;  %v8403_v22 = vadd.f32 %v8402_v51, %v8314_v33  ;;  %v11455_v50 = vld [vmem:[#allocation2 + $0x18c] sm:$0xf]  ;;  %5822 = vst.msk [vmem:[#allocation2 + $0x1ac] sm:$0xf] %vm212_vm5, %v10694_v12 }
 0x469   : > { %7554 = vrot.lane.b32.xlu2 %v7491_v35, %s11529_s21  ;;  %v9035_v31 = vpack.c.bf16 %v8931_v49, %v8931_v49  ;;  %v9036_v8 = vpack.c.bf16 %v8932_v39, %v8932_v39  ;;  %v9037_v34 = vpack.c.bf16 %v8933_v47, %v8933_v47  ;;  %v5688_v9 = vpop.permute.xlu2 %5687  ;;  %4990 = vst.msk [vmem:[#allocation2 + $0x1b8] sm:$0xf] %vm1244_vm11, %v4922_v60  ;;  %v8682_v63 = vsel %vm14787_vm14, 0, %v8681_v38  ;;  %v11128_v61 = vld [vmem:[#allocation2 + $0x198] sm:$0xf0] }
 0x46a   : > { %v10028_v48 = vsel %vm14910_vm9, %v9982_v23, %v11384_v27  ;;  %v9822_v14 = vsel %vm9202_vm0, %v9821_v40, %v9820_v19  ;;  %v9162_v28 = vunpack.c.l.b16 %v9034_v43  ;;  %v8799_v59 = vsel %vm14787_vm14, 0, %v8798_v6  ;;  %5757 = vst.msk [vmem:[#allocation2 + $0x1a8] sm:$0xf] %vm2016_vm12, %v5688_v9  ;;  %v11338_v39 = vld [vmem:[%s14770_s27 + $0x84] sm:$0x7] }
 0x46b   : > { %11385 = vst [vmem:[%s14770_s27 + $0x5c] sm:$0x7] %v10028_v48  ;;  %v9163_v21 = vunpack.c.l.b16 %v9035_v31  ;;  %v9164_v0 = vunpack.c.l.b16 %v9036_v8  ;;  %v9165_v30 = vunpack.c.l.b16 %v9037_v34  ;;  %v9516_v42 = vrot.slane %v8635_v46, 2  ;;  %v5690_v51 = vpop.permute.xlu0 %5689  ;;  %v10696_v31 = vld [vmem:[%s11564_s18 + $0x140] sm:$0xf]  ;;  %v8493_v19 = vpop.f32.mrf.mxu2 }
 0x46c   : > { %v9517_v29 = vrot.slane %v8635_v46, 4  ;;  %8800 = vst [vmem:[%s14770_s27 + $0xc0] sm:$0x7] %v8799_v59  ;;  %v9518_v44 = vrot.slane %v8635_v46, 6  ;;  %v9619_v37 = vpack.c.bf16 %v8635_v46, %v8635_v46  ;;  %v8580_v24 = vpop.f32.mrf.mxu3  ;;  %v8492_v55 = vadd.f32 %v8491_v54, %v8403_v22  ;;  %v8858_v48 = vld [vmem:[%s14770_s27 + $0x110] sm:$0x7] }
 0x46d   : > { %v9243_v17 = vrot.slane %v9163_v21, 7  ;;  %v9245_v41 = vrot.slane %v9164_v0, 6  ;;  %v9247_v2 = vrot.slane %v9165_v30, 5  ;;  %v9620_v57 = vpack.c.bf16 %v9516_v42, %v9516_v42  ;;  %8683 = vst [vmem:[%s14770_s27 + $0x24] sm:$0x7] %v8682_v63 }
 0x46e   : > { %v9621_v53 = vpack.c.bf16 %v9517_v29, %v9517_v29  ;;  %v9622_v16 = vpack.c.bf16 %v9518_v44, %v9518_v44  ;;  %v11131_v20 = vor.u32 %v11455_v50, %v11128_v61  ;;  %v9824_v49 = vsel %vm9205_vm1, %v15771_v25, %v9822_v14  ;;  %5758 = vst.msk [vmem:[#allocation2 + $0x1b8] sm:$0xf] %vm2016_vm12, %v5690_v51  ;;  %v8741_v30 = vld [vmem:[%s14770_s27 + $0x74] sm:$0x7] }
 0x46f   : > { %v9244_v1 = vsel %vm9199_vm15, %v9243_v17, %v9162_v28  ;;  %v9369_v4 = vsel %vm9202_vm0, %v9243_v17, %v9162_v28  ;;  %v9748_v7 = vunpack.c.l.b16 %v9620_v57  ;;  %v8581_v47 = vadd.f32 %v8580_v24, %v8492_v55  ;;  %5824 = vst.msk [vmem:[#allocation2 + $0x1cc] sm:$0xf] %vm212_vm5, %v10696_v31  ;;  %v11386_v28 = vld [vmem:[%s14770_s27 + $0x60] sm:$0x7] }
 0x470   : > { %v9246_v26 = vsel %vm9202_vm0, %v9245_v41, %v9244_v1  ;;  %v9370_v45 = vsel %vm9205_vm1, %v9245_v41, %v9369_v4  ;;  %v6393_v56 = vpop.permute.xlu1 %6392  ;;  %v9749_v33 = vunpack.c.l.b16 %v9621_v53  ;;  %v9750_v23 = vunpack.c.l.b16 %v9622_v16  ;;  %8599 = vmatmul.bf16.gmra.mxu3 %v11131_v20  ;;  %v10697_v53 = vld [vmem:[%s11564_s18 + $0x148] sm:$0xf] }
 0x471   : > { %v9248_v40 = vsel %vm9205_vm1, %v9247_v2, %v9246_v26  ;;  %v9371_v18 = vsel %vm9349_vm4, %v9247_v2, %v9370_v45  ;;  %6462 = vst.msk [vmem:[#allocation2 + $0x1ac] sm:$0xf] %vm856_vm7, %v6393_v56  ;;  %v15828_v27 = vunpack.c.l.b16 %v9619_v37  ;;  %v15830_v43 = vrot.slane %v9748_v7, 7  ;;  %v11142_v1 = vld [vmem:[#allocation2 + $0x1a8] sm:$0xf] }
 0x472   : > { %v9304_v35 = vpack.c.b16 %v9248_v40, %v9248_v40  ;;  %v9403_v62 = vpack.c.b16 %v9371_v18, %v9371_v18  ;;  %v8405_v25 = vadd.f32 %v8404_v58, %v8316_v32  ;;  %v9881_v8 = vpack.c.b16 %v15237_v5, %v15237_v5  ;;  %5825 = vst.msk [vmem:[#allocation2 + $0x1dc] sm:$0xf] %vm212_vm5, %v10697_v53 }
 0x473   : > { %v15836_v38 = vrot.slane %v9749_v33, 6  ;;  %v9885_v60 = vpack.c.b16 %v9824_v49, %v9824_v49  ;;  %v15840_v13 = vrot.slane %v9750_v23, 5  ;;  %v9949_v34 = vsel %vm9202_vm0, %v15830_v43, %v15828_v27  ;;  %v6777_v41 = vpop.permute.xlu0 %6776 }
 0x474   : > { %11315 = vst.msk [vmem:[%s14770_s27 + $0x98] sm:$0x3] %vm9330_vm8, %v9304_v35  ;;  %v9453_v36 = vsel %vm14910_vm9, %v9403_v62, %v11338_v39  ;;  %v8636_v46 = vmax.f32 %v8581_v47, 0.0  ;;  %v8859_v5 = vsel %vm14787_vm14, 0, %v8858_v48  ;;  %v8494_v12 = vadd.f32 %v8493_v19, %v8405_v25  ;;  %v8582_v22 = vpop.f32.mrf.mxu3  ;;  %v8801_v19 = vld [vmem:[%s14770_s27 + $0xc4] sm:$0x7] }
 0x475   : > { %11339 = vst [vmem:[%s14770_s27 + $0x84] sm:$0x7] %v9453_v36  ;;  %v9950_v21 = vsel %vm9205_vm1, %v15836_v38, %v9949_v34  ;;  %v8742_v14 = vsel %vm14787_vm14, 0, %v8741_v30  ;;  %v11461_v26 = vld [vmem:[#allocation2 + $0x1b4] sm:$0xf0]  ;;  %v9826_v23 = vsel %vm9199_vm15, %v15830_v43, %v15828_v27  ;;  %v8802_v27 = vsel %vm14787_vm14, 0, %v8801_v19 }
 0x476   : > { %8860 = vst [vmem:[%s14770_s27 + $0x110] sm:$0x7] %v8859_v5  ;;  %v9951_v0 = vsel %vm9349_vm4, %v15840_v13, %v9950_v21  ;;  %v8934_v54 = vrot.slane %v8636_v46, 2  ;;  %v8935_v32 = vrot.slane %v8636_v46, 4  ;;  %v8936_v63 = vrot.slane %v8636_v46, 6 }
 0x477   : > { %v6395_v9 = vpop.permute.xlu2 %6394  ;;  %11358 = vst.msk [vmem:[%s14770_s27 + $0x20] sm:$0x3] %vm9330_vm8, %v9881_v8  ;;  %v9983_v15 = vpack.c.b16 %v9951_v0, %v9951_v0  ;;  %v9038_v6 = vpack.c.bf16 %v8636_v46, %v8636_v46  ;;  %v8583_v42 = vadd.f32 %v8582_v22, %v8494_v12  ;;  %v11143_v24 = vor.u32 %v11461_v26, %v11142_v1  ;;  %v11340_v43 = vld [vmem:[%s14770_s27 + $0xc8] sm:$0x7]  ;;  %v8318_v26 = vpop.f32.mrf.mxu0 }
 0x478   : > { %11362 = vst.msk [vmem:[%s14770_s27 + $0x70] sm:$0x3] %vm9330_vm8, %v9885_v60  ;;  %v6779_v17 = vpop.permute.xlu1 %6778  ;;  %v9039_v59 = vpack.c.bf16 %v8934_v54, %v8934_v54  ;;  %v9040_v2 = vpack.c.bf16 %v8935_v32, %v8935_v32  ;;  %v9041_v50 = vpack.c.bf16 %v8936_v63, %v8936_v63  ;;  %v9828_v12 = vsel %vm9202_vm0, %v15836_v38, %v9826_v23 }
 0x479   : > { %6463 = vst.msk [vmem:[#allocation2 + $0x1bc] sm:$0xf] %vm856_vm7, %v6395_v9  ;;  %v10031_v29 = vsel %vm14910_vm9, %v9983_v15, %v11386_v28  ;;  %v8637_v37 = vmax.f32 %v8583_v42, 0.0  ;;  %v9166_v45 = vunpack.c.l.b16 %v9038_v6  ;;  %8515 = vmatmul.bf16.gmra.mxu2 %v11143_v24  ;;  %v9830_v38 = vsel %vm9205_vm1, %v15840_v13, %v9828_v12 }
 0x47a   : > { %8743 = vst [vmem:[%s14770_s27 + $0x74] sm:$0x7] %v8742_v14  ;;  %v9167_v4 = vunpack.c.l.b16 %v9039_v59  ;;  %v9168_v44 = vunpack.c.l.b16 %v9040_v2  ;;  %v9169_v57 = vunpack.c.l.b16 %v9041_v50  ;;  %v9882_v2 = vpack.c.b16 %v15437_v10, %v15437_v10  ;;  %v8861_v50 = vld [vmem:[%s14770_s27 + $0x114] sm:$0x7] }
 0x47b   : > { %11387 = vst [vmem:[%s14770_s27 + $0x60] sm:$0x7] %v10031_v29  ;;  %v9519_v40 = vrot.slane %v8637_v37, 2  ;;  %v9520_v18 = vrot.slane %v8637_v37, 4  ;;  %v9521_v55 = vrot.slane %v8637_v37, 6  ;;  %v9623_v16 = vpack.c.bf16 %v8637_v37, %v8637_v37  ;;  %v7547_v36 = vpop.permute.xlu0 %7546 }
 0x47c   : > { %6847 = vst.msk [vmem:[#allocation2 + $0x1bc] sm:$0xf] %vm1244_vm11, %v6779_v17  ;;  %v9249_v58 = vrot.slane %v9167_v4, 7  ;;  %v9251_v61 = vrot.slane %v9168_v44, 6  ;;  %v9253_v62 = vrot.slane %v9169_v57, 5  ;;  %v9886_v13 = vpack.c.b16 %v9830_v38, %v9830_v38 }
 0x47d   : > { %6846 = vst.msk [vmem:[#allocation2 + $0x1ac] sm:$0xf] %vm1244_vm11, %v6777_v41  ;;  %v9624_v51 = vpack.c.bf16 %v9519_v40, %v9519_v40  ;;  %v9625_v39 = vpack.c.bf16 %v9520_v18, %v9520_v18  ;;  %v9626_v33 = vpack.c.bf16 %v9521_v55, %v9521_v55  ;;  %v9751_v5 = vunpack.c.l.b16 %v9623_v16  ;;  %v11388_v44 = vld [vmem:[%s14770_s27 + $0xa4] sm:$0x7]  ;;  %v8496_v40 = vpop.f32.mrf.mxu2  ;;  %v10698_v55 = vld [vmem:[%s11564_s18 + $0x150] sm:$0xf] }
 0x47e   : > { %v9250_v35 = vsel %vm9199_vm15, %v9249_v58, %v9166_v45  ;;  %v9372_v56 = vsel %vm9202_vm0, %v9249_v58, %v9166_v45  ;;  %7615 = vst.msk [vmem:[#allocation2 + $0x1bc] sm:$0xf] %vm2016_vm12, %v7547_v36  ;;  %v8862_v4 = vsel %vm14787_vm14, 0, %v8861_v50  ;;  %v8319_v18 = vadd.f32 %v15785_v11, %v8318_v26 }
 0x47f   : > { %v9252_v7 = vsel %vm9202_vm0, %v9251_v61, %v9250_v35  ;;  %v9373_v49 = vsel %vm9205_vm1, %v9251_v61, %v9372_v56  ;;  %v9752_v8 = vunpack.c.l.b16 %v9624_v51  ;;  %v9753_v34 = vunpack.c.l.b16 %v9625_v39  ;;  %8803 = vst [vmem:[%s14770_s27 + $0xc4] sm:$0x7] %v8802_v27  ;;  %v8407_v61 = vpop.f32.mrf.mxu1  ;;  %v10699_v35 = vld [vmem:[%s11564_s18 + $0x158] sm:$0xf] }
 0x480   : > { %v7545_v20 = vpop.permute.xlu2 %7544  ;;  %v4924_v47 = vpop.permute.xlu1 %4923  ;;  %v9254_v31 = vsel %vm9205_vm1, %v9253_v62, %v9252_v7  ;;  %v9374_v25 = vsel %vm9349_vm4, %v9253_v62, %v9373_v49  ;;  %v9754_v46 = vunpack.c.l.b16 %v9626_v33  ;;  %8863 = vst [vmem:[%s14770_s27 + $0x114] sm:$0x7] %v8862_v4  ;;  %v8408_v16 = vadd.f32 %v8407_v61, %v8319_v18 }
 0x481   : > { %7614 = vst.msk [vmem:[#allocation2 + $0x1ac] sm:$0xf] %vm2016_vm12, %v7545_v20  ;;  %v9305_v48 = vpack.c.b16 %v9254_v31, %v9254_v31  ;;  %v9404_v60 = vpack.c.b16 %v9374_v25, %v9374_v25  ;;  %v9831_v9 = vrot.slane %v9752_v8, 7  ;;  %v9833_v0 = vrot.slane %v9753_v34, 6  ;;  %v8320_v62 = vpop.f32.mrf.mxu0 }
 0x482   : > { %4991 = vst.msk [vmem:[#allocation2 + $0x1c8] sm:$0xf] %vm1244_vm11, %v4924_v47  ;;  %v9835_v32 = vrot.slane %v9754_v46, 5  ;;  %v8497_v56 = vadd.f32 %v8496_v40, %v8408_v16  ;;  %v8321_v33 = vadd.f32 %v15785_v11, %v8320_v62 }
 0x483   : > { %v9456_v21 = vsel %vm14910_vm9, %v9404_v60, %v11340_v43  ;;  %11316 = vst.msk [vmem:[%s14770_s27 + $0xdc] sm:$0x3] %vm9330_vm8, %v9305_v48  ;;  %v9832_v54 = vsel %vm9199_vm15, %v9831_v9, %v9751_v5  ;;  %v9952_v22 = vsel %vm9202_vm0, %v9831_v9, %v9751_v5 }
 0x484   : > { %11341 = vst [vmem:[%s14770_s27 + $0xc8] sm:$0x7] %v9456_v21  ;;  %v9834_v30 = vsel %vm9202_vm0, %v9833_v0, %v9832_v54  ;;  %v9953_v15 = vsel %vm9205_vm1, %v9833_v0, %v9952_v22 }
 0x485   : > { %v9836_v6 = vsel %vm9205_vm1, %v9835_v32, %v9834_v30  ;;  %v9954_v14 = vsel %vm9349_vm4, %v9835_v32, %v9953_v15  ;;  %v11144_v29 = vld [vmem:[#allocation2 + $0x1b8] sm:$0xf0]  ;;  %11359 = vst.msk [vmem:[%s14770_s27 + $0x24] sm:$0x3] %vm9330_vm8, %v9882_v2  ;;  %v8498_v23 = vpop.f32.mrf.mxu2 }
 0x486   : > { %v9887_v28 = vpack.c.b16 %v9836_v6, %v9836_v6  ;;  %v9984_v59 = vpack.c.b16 %v9954_v14, %v9954_v14  ;;  %11363 = vst.msk [vmem:[%s14770_s27 + $0x74] sm:$0x3] %vm9330_vm8, %v9886_v13 }
 0x487   : > { %5826 = vst.msk [vmem:[#allocation2 + $0x1ec] sm:$0xf] %vm212_vm5, %v10698_v55  ;;  %v8409_v49 = vpop.f32.mrf.mxu1 }
 0x488   : > { %v4926_v63 = vpop.permute.xlu2 %4925  ;;  %v5694_v17 = vpop.permute.xlu1 %5693  ;;  %v11459_v42 = vld [vmem:[#allocation2 + $0x1ac] sm:$0xf]  ;;  %11364 = vst.msk [vmem:[%s14770_s27 + $0xb8] sm:$0x3] %vm9330_vm8, %v9887_v28  ;;  %v10034_v10 = vsel %vm14910_vm9, %v9984_v59, %v11388_v44  ;;  %v8410_v36 = vadd.f32 %v8409_v49, %v8321_v33 }
 0x489   : > { %4992 = vst.msk [vmem:[#allocation2 + $0x1d8] sm:$0xf] %vm1244_vm11, %v4926_v63  ;;  %v11147_v1 = vor.u32 %v11459_v42, %v11144_v29 }
 0x48a   : > { %5760 = vst.msk [vmem:[#allocation2 + $0x1d8] sm:$0xf] %vm2016_vm12, %v5694_v17  ;;  %v8499_v48 = vadd.f32 %v8498_v23, %v8410_v36 }
 0x48b   : > { %v5692_v41 = vpop.permute.xlu0 %5691  ;;  %8604 = vmatmul.bf16.gmra.mxu3 %v11147_v1  ;;  %11389 = vst [vmem:[%s14770_s27 + $0xa4] sm:$0x7] %v10034_v10 }
 0x48c   : > { %5759 = vst.msk [vmem:[#allocation2 + $0x1c8] sm:$0xf] %vm2016_vm12, %v5692_v41 }
 0x48d   : > { %5827 = vst.msk [vmem:[#allocation2 + $0x1fc] sm:$0xf] %vm212_vm5, %v10699_v35 }
 0x490   : > { %v6781_v45 = vpop.permute.xlu1 %6780 }
 0x491   : > { %v11465_v37 = vld [vmem:[#allocation2 + $0x1d4] sm:$0xf0] }
 0x493   : > { %v11158_v57 = vld [vmem:[#allocation2 + $0x1c8] sm:$0xf] }
 0x494   : > { %v6397_v53 = vpop.permute.xlu2 %6396  ;;  %v6399_v24 = vpop.permute.xlu0 %6398  ;;  %v11159_v58 = vor.u32 %v11465_v37, %v11158_v57 }
 0x495   : > { %6464 = vst.msk [vmem:[#allocation2 + $0x1cc] sm:$0xf] %vm856_vm7, %v6397_v53 }
 0x496   : > { %6848 = vst.msk [vmem:[#allocation2 + $0x1cc] sm:$0xf] %vm1244_vm11, %v6781_v45  ;;  %8520 = vmatmul.bf16.gmra.mxu2 %v11159_v58  ;;  %v11342_v45 = vld [vmem:[%s14770_s27 + $0xcc] sm:$0x7] }
 0x497   : > { %6465 = vst.msk [vmem:[#allocation2 + $0x1dc] sm:$0xf] %vm856_vm7, %v6399_v24 }
 0x49c   : > { %v6783_v20 = vpop.permute.xlu2 %6782 }
 0x49d   : > { %6849 = vst.msk [vmem:[#allocation2 + $0x1dc] sm:$0xf] %vm1244_vm11, %v6783_v20  ;;  %v7551_v51 = vpop.permute.xlu1 %7550 }
 0x49e   : > { %7617 = vst.msk [vmem:[#allocation2 + $0x1dc] sm:$0xf] %vm2016_vm12, %v7551_v51  ;;  %v8585_v7 = vpop.f32.mrf.mxu3 }
 0x49f   : > { %v8586_v39 = vadd.f32 %v8585_v7, %v8497_v56 }
 0x4a1   : > { %v8638_v47 = vmax.f32 %v8586_v39, 0.0 }
 0x4a2   : > { %v7549_v31 = vpop.permute.xlu0 %7548 }
 0x4a3   : > { %7616 = vst.msk [vmem:[#allocation2 + $0x1cc] sm:$0xf] %vm2016_vm12, %v7549_v31  ;;  %v8937_v25 = vrot.slane %v8638_v47, 2  ;;  %v8938_v8 = vrot.slane %v8638_v47, 4  ;;  %v8939_v19 = vrot.slane %v8638_v47, 6  ;;  %v9042_v34 = vpack.c.bf16 %v8638_v47, %v8638_v47 }
 0x4a4   : > { %v4928_v60 = vpop.permute.xlu2 %4927  ;;  %v11390_v47 = vld [vmem:[%s14770_s27 + $0xa8] sm:$0x7] }
 0x4a5   : > { %4993 = vst.msk [vmem:[#allocation2 + $0x1e8] sm:$0xf] %vm1244_vm11, %v4928_v60  ;;  %v9043_v46 = vpack.c.bf16 %v8937_v25, %v8937_v25  ;;  %v9044_v27 = vpack.c.bf16 %v8938_v8, %v8938_v8  ;;  %v9045_v43 = vpack.c.bf16 %v8939_v19, %v8939_v19  ;;  %v11160_v54 = vld [vmem:[#allocation2 + $0x1d8] sm:$0xf0]  ;;  %v9170_v32 = vunpack.c.l.b16 %v9042_v34  ;;  %v8323_v8 = vpop.f32.mrf.mxu0  ;;  %v8412_v34 = vpop.f32.mrf.mxu1 }
 0x4a6   : > { %v8587_v5 = vpop.f32.mrf.mxu3 }
 0x4a7   : > { %v9171_v9 = vunpack.c.l.b16 %v9043_v46  ;;  %v9172_v21 = vunpack.c.l.b16 %v9044_v27  ;;  %v9173_v0 = vunpack.c.l.b16 %v9045_v43  ;;  %v8588_v12 = vadd.f32 %v8587_v5, %v8499_v48 }
 0x4a8   : > { %v8324_v43 = vadd.f32 %v15785_v11, %v8323_v8 }
 0x4a9   : > { %v9255_v22 = vrot.slane %v9171_v9, 7  ;;  %v9257_v30 = vrot.slane %v9172_v21, 6  ;;  %v8639_v15 = vmax.f32 %v8588_v12, 0.0  ;;  %v9259_v63 = vrot.slane %v9173_v0, 5 }
 0x4aa   : > { %v4930_v6 = vpop.permute.xlu0 %4929  ;;  %v11463_v14 = vld [vmem:[#allocation2 + $0x1cc] sm:$0xf]  ;;  %v8413_v5 = vadd.f32 %v8412_v34, %v8324_v43 }
 0x4ab   : > { %v9256_v38 = vsel %vm9199_vm15, %v9255_v22, %v9170_v32  ;;  %v9375_v28 = vsel %vm9202_vm0, %v9255_v22, %v9170_v32  ;;  %4994 = vst.msk [vmem:[#allocation2 + $0x1f8] sm:$0xf] %vm1244_vm11, %v4930_v6  ;;  %v11163_v17 = vor.u32 %v11463_v14, %v11160_v54  ;;  %v9522_v41 = vrot.slane %v8639_v15, 2 }
 0x4ac   : > { %v9258_v59 = vsel %vm9202_vm0, %v9257_v30, %v9256_v38  ;;  %v9376_v2 = vsel %vm9205_vm1, %v9257_v30, %v9375_v28  ;;  %v9523_v42 = vrot.slane %v8639_v15, 4  ;;  %v9524_v29 = vrot.slane %v8639_v15, 6 }
 0x4ad   : > { %v9260_v50 = vsel %vm9205_vm1, %v9259_v63, %v9258_v59  ;;  %v9377_v13 = vsel %vm9349_vm4, %v9259_v63, %v9376_v2  ;;  %8609 = vmatmul.bf16.gmra.mxu3 %v11163_v17  ;;  %v9627_v1 = vpack.c.bf16 %v8639_v15, %v8639_v15  ;;  %v9628_v4 = vpack.c.bf16 %v9522_v41, %v9522_v41  ;;  %v8325_v21 = vpop.f32.mrf.mxu0  ;;  %v8414_v32 = vpop.f32.mrf.mxu1 }
 0x4ae   : > { %v9306_v44 = vpack.c.b16 %v9260_v50, %v9260_v50  ;;  %v9405_v10 = vpack.c.b16 %v9377_v13, %v9377_v13  ;;  %v9629_v37 = vpack.c.bf16 %v9523_v42, %v9523_v42  ;;  %v9630_v26 = vpack.c.bf16 %v9524_v29, %v9524_v29 }
 0x4af   : > { %v5696_v57 = vpop.permute.xlu1 %5695  ;;  %v9756_v53 = vunpack.c.l.b16 %v9628_v4  ;;  %v9755_v40 = vunpack.c.l.b16 %v9627_v1  ;;  %v8326_v30 = vadd.f32 %v15785_v11, %v8325_v21 }
 0x4b0   : > { %11317 = vst.msk [vmem:[%s14770_s27 + $0xe0] sm:$0x3] %vm9330_vm8, %v9306_v44  ;;  %v9459_v24 = vsel %vm14910_vm9, %v9405_v10, %v11342_v45  ;;  %v9757_v58 = vunpack.c.l.b16 %v9629_v37  ;;  %v9758_v61 = vunpack.c.l.b16 %v9630_v26 }
 0x4b1   : > { %11343 = vst [vmem:[%s14770_s27 + $0xcc] sm:$0x7] %v9459_v24  ;;  %v9837_v18 = vrot.slane %v9756_v53, 7  ;;  %v8415_v6 = vadd.f32 %v8414_v32, %v8326_v30 }
 0x4b2   : > { %5761 = vst.msk [vmem:[#allocation2 + $0x1e8] sm:$0xf] %vm2016_vm12, %v5696_v57  ;;  %v9839_v55 = vrot.slane %v9757_v58, 6  ;;  %v9841_v35 = vrot.slane %v9758_v61, 5  ;;  %v8501_v27 = vpop.f32.mrf.mxu2 }
 0x4b3   : > { %v5698_v16 = vpop.permute.xlu2 %5697  ;;  %v9838_v20 = vsel %vm9199_vm15, %v9837_v18, %v9755_v40  ;;  %v9955_v62 = vsel %vm9202_vm0, %v9837_v18, %v9755_v40  ;;  %v6401_v56 = vpop.permute.xlu0 %6400  ;;  %v8502_v0 = vadd.f32 %v8501_v27, %v8413_v5 }
 0x4b4   : > { %5762 = vst.msk [vmem:[#allocation2 + $0x1f8] sm:$0xf] %vm2016_vm12, %v5698_v16  ;;  %v9840_v51 = vsel %vm9202_vm0, %v9839_v55, %v9838_v20  ;;  %v9956_v7 = vsel %vm9205_vm1, %v9839_v55, %v9955_v62 }
 0x4b5   : > { %v9842_v49 = vsel %vm9205_vm1, %v9841_v35, %v9840_v51  ;;  %v9957_v39 = vsel %vm9349_vm4, %v9841_v35, %v9956_v7  ;;  %6466 = vst.msk [vmem:[#allocation2 + $0x1ec] sm:$0xf] %vm856_vm7, %v6401_v56  ;;  %v8328_v26 = vpop.f32.mrf.mxu0  ;;  %v8417_v58 = vpop.f32.mrf.mxu1 }
 0x4b6   : > { %v9888_v33 = vpack.c.b16 %v9842_v49, %v9842_v49  ;;  %v9985_v23 = vpack.c.b16 %v9957_v39, %v9957_v39  ;;  %v8329_v20 = vadd.f32 %v15785_v11, %v8328_v26 }
 0x4b7   : > { %v6403_v36 = vpop.permute.xlu1 %6402 }
 0x4b8   : > { %11365 = vst.msk [vmem:[%s14770_s27 + $0xbc] sm:$0x3] %vm9330_vm8, %v9888_v33  ;;  %v10037_v31 = vsel %vm14910_vm9, %v9985_v23, %v11390_v47 }
 0x4b9   : > { %11391 = vst [vmem:[%s14770_s27 + $0xa8] sm:$0x7] %v10037_v31  ;;  %v11174_v25 = vld [vmem:[#allocation2 + $0x1e8] sm:$0xf] }
 0x4ba   : > { %6467 = vst.msk [vmem:[#allocation2 + $0x1fc] sm:$0xf] %vm856_vm7, %v6403_v36  ;;  %v8503_v15 = vpop.f32.mrf.mxu2 }
 0x4bb   : > { %v6785_v19 = vpop.permute.xlu2 %6784  ;;  %v11469_v48 = vld [vmem:[#allocation2 + $0x1f4] sm:$0xf0]  ;;  %v6787_v60 = vpop.permute.xlu0 %6786  ;;  %v8504_v17 = vadd.f32 %v8503_v15, %v8415_v6 }
 0x4bc   : > { %6850 = vst.msk [vmem:[#allocation2 + $0x1ec] sm:$0xf] %vm1244_vm11, %v6785_v19  ;;  %v11175_v46 = vor.u32 %v11469_v48, %v11174_v25  ;;  %v11344_v25 = vld [vmem:[%s14770_s27 + $0xd0] sm:$0x7]  ;;  %v8418_v19 = vadd.f32 %v8417_v58, %v8329_v20 }
 0x4bd   : > { %6851 = vst.msk [vmem:[#allocation2 + $0x1fc] sm:$0xf] %vm1244_vm11, %v6787_v60  ;;  %v8330_v43 = vpop.f32.mrf.mxu0  ;;  %v8419_v32 = vpop.f32.mrf.mxu1 }
 0x4be   : > { %8525 = vmatmul.bf16.gmra.mxu2 %v11175_v46 }
 0x4c3   : > { %v7555_v9 = vpop.permute.xlu2 %7554 }
 0x4c4   : > { %7619 = vst.msk [vmem:[#allocation2 + $0x1fc] sm:$0xf] %vm2016_vm12, %v7555_v9  ;;  %v7553_v12 = vpop.permute.xlu1 %7552 }
 0x4c5   : > { %7618 = vst.msk [vmem:[#allocation2 + $0x1ec] sm:$0xf] %vm2016_vm12, %v7553_v12  ;;  %v8590_v54 = vpop.f32.mrf.mxu3 }
 0x4c6   : > { %v8591_v22 = vadd.f32 %v8590_v54, %v8502_v0 }
 0x4c8   : > { %v8640_v63 = vmax.f32 %v8591_v22, 0.0 }
 0x4ca   : > { %v8940_v14 = vrot.slane %v8640_v63, 2  ;;  %v8941_v38 = vrot.slane %v8640_v63, 4  ;;  %v8942_v28 = vrot.slane %v8640_v63, 6  ;;  %v9046_v2 = vpack.c.bf16 %v8640_v63, %v8640_v63 }
 0x4cb   : > { %v11176_v41 = vld [vmem:[#allocation2 + $0x1f8] sm:$0xf0]  ;;  %v8331_v63 = vadd.f32 %v15785_v11, %v8330_v43 }
 0x4cc   : > { %v11467_v59 = vld [vmem:[#allocation2 + $0x1ec] sm:$0xf]  ;;  %v9047_v42 = vpack.c.bf16 %v8940_v14, %v8940_v14  ;;  %v9048_v29 = vpack.c.bf16 %v8941_v38, %v8941_v38  ;;  %v9049_v50 = vpack.c.bf16 %v8942_v28, %v8942_v28  ;;  %v9174_v45 = vunpack.c.l.b16 %v9046_v2 }
 0x4cd   : > { %v11179_v13 = vor.u32 %v11467_v59, %v11176_v41  ;;  %v8592_v1 = vpop.f32.mrf.mxu3  ;;  %v8420_v59 = vadd.f32 %v8419_v32, %v8331_v63  ;;  %v11392_v2 = vld [vmem:[%s14770_s27 + $0xac] sm:$0x7] }
 0x4ce   : > { %v9175_v4 = vunpack.c.l.b16 %v9047_v42  ;;  %v9176_v44 = vunpack.c.l.b16 %v9048_v29  ;;  %v9177_v10 = vunpack.c.l.b16 %v9049_v50  ;;  %v8593_v37 = vadd.f32 %v8592_v1, %v8504_v17 }
 0x4cf   : > { %8614 = vmatmul.bf16.gmra.mxu3 %v11179_v13 }
 0x4d0   : > { %v9261_v57 = vrot.slane %v9175_v4, 7  ;;  %v9263_v53 = vrot.slane %v9176_v44, 6  ;;  %v8641_v24 = vmax.f32 %v8593_v37, 0.0  ;;  %v9265_v61 = vrot.slane %v9177_v10, 5 }
 0x4d2   : > { %v9262_v40 = vsel %vm9199_vm15, %v9261_v57, %v9174_v45  ;;  %v9378_v18 = vsel %vm9202_vm0, %v9261_v57, %v9174_v45  ;;  %v9525_v55 = vrot.slane %v8641_v24, 2  ;;  %v9526_v16 = vrot.slane %v8641_v24, 4  ;;  %v8506_v56 = vpop.f32.mrf.mxu2 }
 0x4d3   : > { %v9264_v35 = vsel %vm9202_vm0, %v9263_v53, %v9262_v40  ;;  %v9379_v62 = vsel %vm9205_vm1, %v9263_v53, %v9378_v18  ;;  %v9527_v51 = vrot.slane %v8641_v24, 6  ;;  %v9631_v39 = vpack.c.bf16 %v8641_v24, %v8641_v24 }
 0x4d4   : > { %v9266_v7 = vsel %vm9205_vm1, %v9265_v61, %v9264_v35  ;;  %v9380_v49 = vsel %vm9349_vm4, %v9265_v61, %v9379_v62  ;;  %v9632_v33 = vpack.c.bf16 %v9525_v55, %v9525_v55  ;;  %v9633_v36 = vpack.c.bf16 %v9526_v16, %v9526_v16 }
 0x4d5   : > { %v9307_v23 = vpack.c.b16 %v9266_v7, %v9266_v7  ;;  %v9406_v47 = vpack.c.b16 %v9380_v49, %v9380_v49  ;;  %v9634_v31 = vpack.c.bf16 %v9527_v51, %v9527_v51  ;;  %v9759_v46 = vunpack.c.l.b16 %v9631_v39 }
 0x4d6   : > { %v9760_v8 = vunpack.c.l.b16 %v9632_v33  ;;  %v9761_v60 = vunpack.c.l.b16 %v9633_v36  ;;  %v8507_v5 = vadd.f32 %v8506_v56, %v8418_v19 }
 0x4d7   : > { %11318 = vst.msk [vmem:[%s14770_s27 + $0xe4] sm:$0x3] %vm9330_vm8, %v9307_v23  ;;  %v9462_v48 = vsel %vm14910_vm9, %v9406_v47, %v11344_v25  ;;  %v9762_v34 = vunpack.c.l.b16 %v9634_v31 }
 0x4d8   : > { %11345 = vst [vmem:[%s14770_s27 + $0xd0] sm:$0x7] %v9462_v48  ;;  %v9843_v27 = vrot.slane %v9760_v8, 7  ;;  %v9845_v9 = vrot.slane %v9761_v60, 6  ;;  %v11346_v8 = vld [vmem:[%s14770_s27 + $0xd4] sm:$0x7]  ;;  %v8333_v60 = vpop.f32.mrf.mxu0 }
 0x4d9   : > { %v9847_v0 = vrot.slane %v9762_v34, 5  ;;  %v8334_v63 = vadd.f32 %v15785_v11, %v8333_v60 }
 0x4da   : > { %v9844_v21 = vsel %vm9199_vm15, %v9843_v27, %v9759_v46  ;;  %v9958_v12 = vsel %vm9202_vm0, %v9843_v27, %v9759_v46  ;;  %v8595_v54 = vpop.f32.mrf.mxu3  ;;  %v8508_v17 = vpop.f32.mrf.mxu2 }
 0x4db   : > { %v9846_v22 = vsel %vm9202_vm0, %v9845_v9, %v9844_v21  ;;  %v9959_v30 = vsel %vm9205_vm1, %v9845_v9, %v9958_v12  ;;  %v8596_v15 = vadd.f32 %v8595_v54, %v8507_v5  ;;  %v8509_v1 = vadd.f32 %v8508_v17, %v8420_v59  ;;  %v8422_v9 = vpop.f32.mrf.mxu1 }
 0x4dc   : > { %v9848_v6 = vsel %vm9205_vm1, %v9847_v0, %v9846_v22  ;;  %v9960_v14 = vsel %vm9349_vm4, %v9847_v0, %v9959_v30 }
 0x4dd   : > { %v9889_v38 = vpack.c.b16 %v9848_v6, %v9848_v6  ;;  %v9986_v28 = vpack.c.b16 %v9960_v14, %v9960_v14  ;;  %v8642_v41 = vmax.f32 %v8596_v15, 0.0 }
 0x4df   : > { %11366 = vst.msk [vmem:[%s14770_s27 + $0xc0] sm:$0x3] %vm9330_vm8, %v9889_v38  ;;  %v10040_v42 = vsel %vm14910_vm9, %v9986_v28, %v11392_v2  ;;  %v8943_v29 = vrot.slane %v8642_v41, 2  ;;  %v8944_v50 = vrot.slane %v8642_v41, 4  ;;  %v8945_v13 = vrot.slane %v8642_v41, 6 }
 0x4e0   : > { %11393 = vst [vmem:[%s14770_s27 + $0xac] sm:$0x7] %v10040_v42  ;;  %v9050_v4 = vpack.c.bf16 %v8642_v41, %v8642_v41  ;;  %v11394_v38 = vld [vmem:[%s14770_s27 + $0xb0] sm:$0x7]  ;;  %v8423_v28 = vadd.f32 %v8422_v9, %v8334_v63  ;;  %v8335_v41 = vpop.f32.mrf.mxu0 }
 0x4e1   : > { %v9051_v44 = vpack.c.bf16 %v8943_v29, %v8943_v29  ;;  %v9052_v10 = vpack.c.bf16 %v8944_v50, %v8944_v50  ;;  %v9053_v37 = vpack.c.bf16 %v8945_v13, %v8945_v13  ;;  %v8336_v50 = vadd.f32 %v15785_v11, %v8335_v41 }
 0x4e2   : > { %v8597_v26 = vpop.f32.mrf.mxu3  ;;  %v9178_v58 = vunpack.c.l.b16 %v9050_v4 }
 0x4e3   : > { %v9179_v45 = vunpack.c.l.b16 %v9051_v44  ;;  %v9180_v57 = vunpack.c.l.b16 %v9052_v10  ;;  %v9181_v53 = vunpack.c.l.b16 %v9053_v37  ;;  %v8598_v24 = vadd.f32 %v8597_v26, %v8509_v1  ;;  %v8424_v42 = vpop.f32.mrf.mxu1 }
 0x4e4   : > { %v8425_v4 = vadd.f32 %v8424_v42, %v8336_v50  ;;  %v11396_v42 = vld [vmem:[%s14770_s27 + $0xf4] sm:$0x7] }
 0x4e5   : > { %v9267_v61 = vrot.slane %v9179_v45, 7  ;;  %v9269_v40 = vrot.slane %v9180_v57, 6  ;;  %v8643_v18 = vmax.f32 %v8598_v24, 0.0  ;;  %v9271_v55 = vrot.slane %v9181_v53, 5 }
 0x4e7   : > { %v9268_v16 = vsel %vm9199_vm15, %v9267_v61, %v9178_v58  ;;  %v9381_v20 = vsel %vm9202_vm0, %v9267_v61, %v9178_v58  ;;  %v9528_v35 = vrot.slane %v8643_v18, 2  ;;  %v9529_v62 = vrot.slane %v8643_v18, 4 }
 0x4e8   : > { %v9270_v56 = vsel %vm9202_vm0, %v9269_v40, %v9268_v16  ;;  %v9382_v51 = vsel %vm9205_vm1, %v9269_v40, %v9381_v20  ;;  %v9530_v7 = vrot.slane %v8643_v18, 6  ;;  %v9635_v49 = vpack.c.bf16 %v8643_v18, %v8643_v18  ;;  %v8511_v22 = vpop.f32.mrf.mxu2 }
 0x4e9   : > { %v9272_v39 = vsel %vm9205_vm1, %v9271_v55, %v9270_v56  ;;  %v9383_v33 = vsel %vm9349_vm4, %v9271_v55, %v9382_v51  ;;  %v9636_v23 = vpack.c.bf16 %v9528_v35, %v9528_v35  ;;  %v9637_v47 = vpack.c.bf16 %v9529_v62, %v9529_v62 }
 0x4ea   : > { %v9308_v36 = vpack.c.b16 %v9272_v39, %v9272_v39  ;;  %v9407_v31 = vpack.c.b16 %v9383_v33, %v9383_v33  ;;  %v9638_v25 = vpack.c.bf16 %v9530_v7, %v9530_v7  ;;  %v9763_v27 = vunpack.c.l.b16 %v9635_v49 }
 0x4eb   : > { %v9764_v19 = vunpack.c.l.b16 %v9636_v23  ;;  %v9765_v48 = vunpack.c.l.b16 %v9637_v47  ;;  %v8512_v59 = vadd.f32 %v8511_v22, %v8423_v28 }
 0x4ec   : > { %11319 = vst.msk [vmem:[%s14770_s27 + $0xe8] sm:$0x3] %vm9330_vm8, %v9308_v36  ;;  %v9465_v34 = vsel %vm14910_vm9, %v9407_v31, %v11346_v8  ;;  %v9766_v46 = vunpack.c.l.b16 %v9638_v25 }
 0x4ed   : > { %11347 = vst [vmem:[%s14770_s27 + $0xd4] sm:$0x7] %v9465_v34  ;;  %v9849_v43 = vrot.slane %v9764_v19, 7  ;;  %v9851_v5 = vrot.slane %v9765_v48, 6  ;;  %v8338_v34 = vpop.f32.mrf.mxu0 }
 0x4ee   : > { %v9853_v0 = vrot.slane %v9766_v46, 5  ;;  %v11348_v46 = vld [vmem:[%s14770_s27 + $0x118] sm:$0x7] }
 0x4ef   : > { %v9850_v21 = vsel %vm9199_vm15, %v9849_v43, %v9763_v27  ;;  %v9961_v12 = vsel %vm9202_vm0, %v9849_v43, %v9763_v27 }
 0x4f0   : > { %v9852_v54 = vsel %vm9202_vm0, %v9851_v5, %v9850_v21  ;;  %v9962_v32 = vsel %vm9205_vm1, %v9851_v5, %v9961_v12  ;;  %v8513_v13 = vpop.f32.mrf.mxu2  ;;  %v8427_v21 = vpop.f32.mrf.mxu1 }
 0x4f1   : > { %v9854_v30 = vsel %vm9205_vm1, %v9853_v0, %v9852_v54  ;;  %v9963_v15 = vsel %vm9349_vm4, %v9853_v0, %v9962_v32  ;;  %v8514_v26 = vadd.f32 %v8513_v13, %v8425_v4  ;;  %v16036_v32 = vld [vmem:[%s16197_s2] ss:$0 sm:$0xff] }
 0x4f2   : > { %v9890_v6 = vpack.c.b16 %v9854_v30, %v9854_v30  ;;  %v9987_v14 = vpack.c.b16 %v9963_v15, %v9963_v15  ;;  %v8339_v22 = vadd.f32 %v16036_v32, %v8338_v34 }
 0x4f3   : > { %v8600_v2 = vpop.f32.mrf.mxu3 }
 0x4f4   : > { %11367 = vst.msk [vmem:[%s14770_s27 + $0xc4] sm:$0x3] %vm9330_vm8, %v9890_v6  ;;  %v10043_v17 = vsel %vm14910_vm9, %v9987_v14, %v11394_v38  ;;  %v8601_v29 = vadd.f32 %v8600_v2, %v8512_v59  ;;  %v8428_v28 = vadd.f32 %v8427_v21, %v8339_v22 }
 0x4f5   : > { %11395 = vst [vmem:[%s14770_s27 + $0xb0] sm:$0x7] %v10043_v17 }
 0x4f6   : > { %v8644_v1 = vmax.f32 %v8601_v29, 0.0 }
 0x4f8   : > { %v8946_v44 = vrot.slane %v8644_v1, 2  ;;  %v8947_v10 = vrot.slane %v8644_v1, 4  ;;  %v8948_v37 = vrot.slane %v8644_v1, 6  ;;  %v9054_v45 = vpack.c.bf16 %v8644_v1, %v8644_v1  ;;  %v8340_v1 = vpop.f32.mrf.mxu0 }
 0x4fa   : > { %v9055_v57 = vpack.c.bf16 %v8946_v44, %v8946_v44  ;;  %v9056_v53 = vpack.c.bf16 %v8947_v10, %v8947_v10  ;;  %v9057_v24 = vpack.c.bf16 %v8948_v37, %v8948_v37  ;;  %v9182_v16 = vunpack.c.l.b16 %v9054_v45  ;;  %v8429_v44 = vpop.f32.mrf.mxu1 }
 0x4fb   : > { %v8602_v58 = vpop.f32.mrf.mxu3  ;;  %v8341_v37 = vadd.f32 %v16036_v32, %v8340_v1  ;;  %v11398_v1 = vld [vmem:[%s14770_s27 + $0xf8] sm:$0x7] }
 0x4fc   : > { %v9183_v61 = vunpack.c.l.b16 %v9055_v57  ;;  %v9184_v40 = vunpack.c.l.b16 %v9056_v53  ;;  %v9185_v18 = vunpack.c.l.b16 %v9057_v24  ;;  %v8603_v55 = vadd.f32 %v8602_v58, %v8514_v26  ;;  %v8516_v6 = vpop.f32.mrf.mxu2 }
 0x4fd   : > { %v8517_v29 = vadd.f32 %v8516_v6, %v8428_v28  ;;  %v8430_v24 = vadd.f32 %v8429_v44, %v8341_v37 }
 0x4fe   : > { %v9273_v20 = vrot.slane %v9183_v61, 7  ;;  %v9275_v35 = vrot.slane %v9184_v40, 6  ;;  %v8645_v11 = vmax.f32 %v8603_v55, 0.0  ;;  %v9277_v62 = vrot.slane %v9185_v18, 5 }
 0x500   : > { %v9274_v56 = vsel %vm9199_vm15, %v9273_v20, %v9182_v16  ;;  %v9384_v51 = vsel %vm9202_vm0, %v9273_v20, %v9182_v16  ;;  %v9531_v7 = vrot.slane %v8645_v11, 2  ;;  %v9532_v49 = vrot.slane %v8645_v11, 4  ;;  %v8343_v22 = vpop.f32.mrf.mxu0 }
 0x501   : > { %v9276_v39 = vsel %vm9202_vm0, %v9275_v35, %v9274_v56  ;;  %v9385_v33 = vsel %vm9205_vm1, %v9275_v35, %v9384_v51  ;;  %v9533_v23 = vrot.slane %v8645_v11, 6  ;;  %v9639_v47 = vpack.c.bf16 %v8645_v11, %v8645_v11 }
 0x502   : > { %v9278_v36 = vsel %vm9205_vm1, %v9277_v62, %v9276_v39  ;;  %v9386_v31 = vsel %vm9349_vm4, %v9277_v62, %v9385_v33  ;;  %v9640_v25 = vpack.c.bf16 %v9531_v7, %v9531_v7  ;;  %v9641_v8 = vpack.c.bf16 %v9532_v49, %v9532_v49  ;;  %v8432_v6 = vpop.f32.mrf.mxu1 }
 0x503   : > { %v9309_v19 = vpack.c.b16 %v9278_v36, %v9278_v36  ;;  %v9408_v48 = vpack.c.b16 %v9386_v31, %v9386_v31  ;;  %v9642_v60 = vpack.c.bf16 %v9533_v23, %v9533_v23  ;;  %v9767_v0 = vunpack.c.l.b16 %v9639_v47 }
 0x504   : > { %v9768_v27 = vunpack.c.l.b16 %v9640_v25  ;;  %v9769_v43 = vunpack.c.l.b16 %v9641_v8  ;;  %v8518_v26 = vpop.f32.mrf.mxu2 }
 0x505   : > { %11320 = vst.msk [vmem:[%s14770_s27 + $0x12c] sm:$0x3] %vm9330_vm8, %v9309_v19  ;;  %v9468_v5 = vsel %vm14910_vm9, %v9408_v48, %v11348_v46  ;;  %v9770_v9 = vunpack.c.l.b16 %v9642_v60  ;;  %v8519_v55 = vadd.f32 %v8518_v26, %v8430_v24 }
 0x506   : > { %11349 = vst [vmem:[%s14770_s27 + $0x118] sm:$0x7] %v9468_v5  ;;  %v9855_v12 = vrot.slane %v9768_v27, 7  ;;  %v9857_v54 = vrot.slane %v9769_v43, 6  ;;  %v11350_v5 = vld [vmem:[%s14770_s27 + $0x11c] sm:$0x7] }
 0x507   : > { %v9859_v15 = vrot.slane %v9770_v9, 5 }
 0x508   : > { %v9856_v30 = vsel %vm9199_vm15, %v9855_v12, %v9767_v0  ;;  %v9964_v63 = vsel %vm9202_vm0, %v9855_v12, %v9767_v0 }
 0x509   : > { %v9858_v14 = vsel %vm9202_vm0, %v9857_v54, %v9856_v30  ;;  %v9965_v38 = vsel %vm9205_vm1, %v9857_v54, %v9964_v63 }
 0x50a   : > { %v9860_v17 = vsel %vm9205_vm1, %v9859_v15, %v9858_v14  ;;  %v9966_v41 = vsel %vm9349_vm4, %v9859_v15, %v9965_v38 }
 0x50b   : > { %v9891_v59 = vpack.c.b16 %v9860_v17, %v9860_v17  ;;  %v9988_v2 = vpack.c.b16 %v9966_v41, %v9966_v41 }
 0x50d   : > { %11368 = vst.msk [vmem:[%s14770_s27 + $0x108] sm:$0x3] %vm9330_vm8, %v9891_v59  ;;  %v10046_v50 = vsel %vm14910_vm9, %v9988_v2, %v11396_v42 }
 0x50e   : > { %v8605_v13 = vpop.f32.mrf.mxu3  ;;  %11397 = vst [vmem:[%s14770_s27 + $0xf4] sm:$0x7] %v10046_v50 }
 0x50f   : > { %v8606_v4 = vadd.f32 %v8605_v13, %v8517_v29  ;;  %v8344_v13 = vadd.f32 %v16036_v32, %v8343_v22  ;;  %v11352_v22 = vld [vmem:[%s14770_s27 + $0x120] sm:$0x7] }
 0x511   : > { %v8646_v10 = vmax.f32 %v8606_v4, 0.0  ;;  %v8433_v44 = vadd.f32 %v8432_v6, %v8344_v13 }
 0x513   : > { %v8949_v45 = vrot.slane %v8646_v10, 2  ;;  %v8950_v57 = vrot.slane %v8646_v10, 4  ;;  %v8951_v53 = vrot.slane %v8646_v10, 6  ;;  %v9058_v58 = vpack.c.bf16 %v8646_v10, %v8646_v10  ;;  %v8345_v10 = vpop.f32.mrf.mxu0 }
 0x515   : > { %v9059_v61 = vpack.c.bf16 %v8949_v45, %v8949_v45  ;;  %v9060_v40 = vpack.c.bf16 %v8950_v57, %v8950_v57  ;;  %v9061_v18 = vpack.c.bf16 %v8951_v53, %v8951_v53  ;;  %v9186_v56 = vunpack.c.l.b16 %v9058_v58  ;;  %v8434_v45 = vpop.f32.mrf.mxu1 }
 0x516   : > { %v8607_v16 = vpop.f32.mrf.mxu3  ;;  %v8346_v53 = vadd.f32 %v16036_v32, %v8345_v10  ;;  %v11400_v10 = vld [vmem:[%s14770_s27 + $0xfc] sm:$0x7] }
 0x517   : > { %v9187_v20 = vunpack.c.l.b16 %v9059_v61  ;;  %v9188_v35 = vunpack.c.l.b16 %v9060_v40  ;;  %v9189_v11 = vunpack.c.l.b16 %v9061_v18  ;;  %v8608_v62 = vadd.f32 %v8607_v16, %v8519_v55 }
 0x518   : > { %v8435_v61 = vadd.f32 %v8434_v45, %v8346_v53  ;;  %v8669_v53 = vld [vmem:[%s14770_s27 + $0x14] sm:$0x7] }
 0x519   : > { %v9279_v51 = vrot.slane %v9187_v20, 7  ;;  %v9281_v7 = vrot.slane %v9188_v35, 6  ;;  %v8647_v49 = vmax.f32 %v8608_v62, 0.0  ;;  %v9283_v33 = vrot.slane %v9189_v11, 5  ;;  %v8521_v59 = vpop.f32.mrf.mxu2 }
 0x51a   : > { %v8522_v37 = vadd.f32 %v8521_v59, %v8433_v44 }
 0x51b   : > { %v9280_v39 = vsel %vm9199_vm15, %v9279_v51, %v9186_v56  ;;  %v9387_v23 = vsel %vm9202_vm0, %v9279_v51, %v9186_v56  ;;  %v9534_v31 = vrot.slane %v8647_v49, 2  ;;  %v9535_v25 = vrot.slane %v8647_v49, 4 }
 0x51c   : > { %v9282_v47 = vsel %vm9202_vm0, %v9281_v7, %v9280_v39  ;;  %v9388_v36 = vsel %vm9205_vm1, %v9281_v7, %v9387_v23  ;;  %v9536_v48 = vrot.slane %v8647_v49, 6  ;;  %v9643_v60 = vpack.c.bf16 %v8647_v49, %v8647_v49 }
 0x51d   : > { %v9284_v8 = vsel %vm9205_vm1, %v9283_v33, %v9282_v47  ;;  %v9389_v19 = vsel %vm9349_vm4, %v9283_v33, %v9388_v36  ;;  %v9644_v27 = vpack.c.bf16 %v9534_v31, %v9534_v31  ;;  %v9645_v43 = vpack.c.bf16 %v9535_v25, %v9535_v25  ;;  %v8437_v44 = vpop.f32.mrf.mxu1 }
 0x51e   : > { %v9310_v34 = vpack.c.b16 %v9284_v8, %v9284_v8  ;;  %v9409_v46 = vpack.c.b16 %v9389_v19, %v9389_v19  ;;  %v9646_v9 = vpack.c.bf16 %v9536_v48, %v9536_v48  ;;  %v9771_v30 = vunpack.c.l.b16 %v9643_v60 }
 0x51f   : > { %v9772_v0 = vunpack.c.l.b16 %v9644_v27  ;;  %v9773_v12 = vunpack.c.l.b16 %v9645_v43 }
 0x520   : > { %11321 = vst.msk [vmem:[%s14770_s27 + $0x130] sm:$0x3] %vm9330_vm8, %v9310_v34  ;;  %v9471_v21 = vsel %vm14910_vm9, %v9409_v46, %v11350_v5  ;;  %v9774_v54 = vunpack.c.l.b16 %v9646_v9 }
 0x521   : > { %11351 = vst [vmem:[%s14770_s27 + $0x11c] sm:$0x7] %v9471_v21  ;;  %v9861_v15 = vrot.slane %v9772_v0, 7  ;;  %v9863_v63 = vrot.slane %v9773_v12, 6  ;;  %v8523_v24 = vpop.f32.mrf.mxu2 }
 0x522   : > { %v9865_v38 = vrot.slane %v9774_v54, 5  ;;  %v8524_v16 = vadd.f32 %v8523_v24, %v8435_v61  ;;  %v8696_v24 = vld [vmem:[%s14770_s27 + $0x38] sm:$0x7]  ;;  %v8670_v61 = vsel %vm14787_vm14, 0, %v8669_v53 }
 0x523   : > { %v9862_v14 = vsel %vm9199_vm15, %v9861_v15, %v9771_v30  ;;  %v9967_v28 = vsel %vm9202_vm0, %v9861_v15, %v9771_v30  ;;  %8671 = vst [vmem:[%s14770_s27 + $0x14] sm:$0x7] %v8670_v61  ;;  %v8831_v61 = vld [vmem:[%s14770_s27 + $0xec] sm:$0x7] }
 0x524   : > { %v9864_v17 = vsel %vm9202_vm0, %v9863_v63, %v9862_v14  ;;  %v9968_v41 = vsel %vm9205_vm1, %v9863_v63, %v9967_v28 }
 0x525   : > { %v9866_v2 = vsel %vm9205_vm1, %v9865_v38, %v9864_v17  ;;  %v9969_v42 = vsel %vm9349_vm4, %v9865_v38, %v9968_v41 }
 0x526   : > { %v9892_v29 = vpack.c.b16 %v9866_v2, %v9866_v2  ;;  %v9989_v50 = vpack.c.b16 %v9969_v42, %v9969_v42 }
 0x528   : > { %11369 = vst.msk [vmem:[%s14770_s27 + $0x10c] sm:$0x3] %vm9330_vm8, %v9892_v29  ;;  %v10049_v4 = vsel %vm14910_vm9, %v9989_v50, %v11398_v1  ;;  %v8348_v29 = vpop.f32.mrf.mxu0 }
 0x529   : > { %11399 = vst [vmem:[%s14770_s27 + $0xf8] sm:$0x7] %v10049_v4  ;;  %v8349_v45 = vadd.f32 %v16036_v32, %v8348_v29  ;;  %v8774_v29 = vld [vmem:[%s14770_s27 + $0xa0] sm:$0x7] }
 0x530   : > { %v8610_v26 = vpop.f32.mrf.mxu3 }
 0x531   : > { %v8611_v57 = vadd.f32 %v8610_v26, %v8522_v37 }
 0x533   : > { %v8648_v58 = vmax.f32 %v8611_v57, 0.0  ;;  %v8654_v57 = vld [vmem:[%s14770_s27] sm:$0x7] }
 0x535   : > { %v8952_v40 = vrot.slane %v8648_v58, 2  ;;  %v8953_v18 = vrot.slane %v8648_v58, 4  ;;  %v8954_v55 = vrot.slane %v8648_v58, 6  ;;  %v9062_v20 = vpack.c.bf16 %v8648_v58, %v8648_v58 }
 0x536   : > { %v8655_v58 = vsel %vm14787_vm14, 0, %v8654_v57  ;;  %v11354_v57 = vld [vmem:[%s14770_s27 + $0x124] sm:$0x7] }
 0x537   : > { %v9063_v35 = vpack.c.bf16 %v8952_v40, %v8952_v40  ;;  %v9064_v11 = vpack.c.bf16 %v8953_v18, %v8953_v18  ;;  %v9065_v62 = vpack.c.bf16 %v8954_v55, %v8954_v55  ;;  %v9190_v33 = vunpack.c.l.b16 %v9062_v20  ;;  %v8711_v18 = vld [vmem:[%s14770_s27 + $0x4c] sm:$0x7]  ;;  %8656 = vst [vmem:[%s14770_s27] sm:$0x7] %v8655_v58  ;;  %v8350_v20 = vpop.f32.mrf.mxu0 }
 0x538   : > { %v8612_v56 = vpop.f32.mrf.mxu3  ;;  %v8697_v40 = vsel %vm14787_vm14, 0, %v8696_v24  ;;  %v8438_v55 = vadd.f32 %v8437_v44, %v8349_v45  ;;  %v8789_v44 = vld [vmem:[%s14770_s27 + $0xb4] sm:$0x7]  ;;  %v8816_v45 = vld [vmem:[%s14770_s27 + $0xd8] sm:$0x7]  ;;  %v8775_v58 = vsel %vm14787_vm14, 0, %v8774_v29 }
 0x539   : > { %v9191_v51 = vunpack.c.l.b16 %v9063_v35  ;;  %v9192_v7 = vunpack.c.l.b16 %v9064_v11  ;;  %v9193_v49 = vunpack.c.l.b16 %v9065_v62  ;;  %v8613_v39 = vadd.f32 %v8612_v56, %v8524_v16  ;;  %8698 = vst [vmem:[%s14770_s27 + $0x38] sm:$0x7] %v8697_v40  ;;  %v8439_v62 = vpop.f32.mrf.mxu1 }
 0x53a   : > { %v8712_v16 = vsel %vm14787_vm14, 0, %v8711_v18  ;;  %8776 = vst [vmem:[%s14770_s27 + $0xa0] sm:$0x7] %v8775_v58 }
 0x53b   : > { %v9285_v23 = vrot.slane %v9191_v51, 7  ;;  %v9287_v47 = vrot.slane %v9192_v7, 6  ;;  %v8649_v36 = vmax.f32 %v8613_v39, 0.0  ;;  %v9289_v31 = vrot.slane %v9193_v49, 5  ;;  %8713 = vst [vmem:[%s14770_s27 + $0x4c] sm:$0x7] %v8712_v16 }
 0x53c   : > { %v8351_v51 = vadd.f32 %v16036_v32, %v8350_v20  ;;  %v8756_v32 = vld [vmem:[%s14770_s27 + $0x88] sm:$0x7] }
 0x53d   : > { %v9286_v25 = vsel %vm9199_vm15, %v9285_v23, %v9190_v33  ;;  %v9390_v8 = vsel %vm9202_vm0, %v9285_v23, %v9190_v33  ;;  %v9537_v19 = vrot.slane %v8649_v36, 2  ;;  %v9538_v48 = vrot.slane %v8649_v36, 4  ;;  %v8714_v33 = vld [vmem:[%s14770_s27 + $0x50] sm:$0x7] }
 0x53e   : > { %v9288_v60 = vsel %vm9202_vm0, %v9287_v47, %v9286_v25  ;;  %v9391_v34 = vsel %vm9205_vm1, %v9287_v47, %v9390_v8  ;;  %v9539_v46 = vrot.slane %v8649_v36, 6  ;;  %v9647_v27 = vpack.c.bf16 %v8649_v36, %v8649_v36 }
 0x53f   : > { %v9290_v43 = vsel %vm9205_vm1, %v9289_v31, %v9288_v60  ;;  %v9392_v5 = vsel %vm9349_vm4, %v9289_v31, %v9391_v34  ;;  %v9648_v9 = vpack.c.bf16 %v9537_v19, %v9537_v19  ;;  %v9649_v21 = vpack.c.bf16 %v9538_v48, %v9538_v48  ;;  %v8729_v31 = vld [vmem:[%s14770_s27 + $0x64] sm:$0x7] }
 0x540   : > { %v9311_v0 = vpack.c.b16 %v9290_v43, %v9290_v43  ;;  %v9410_v12 = vpack.c.b16 %v9392_v5, %v9392_v5  ;;  %v9650_v54 = vpack.c.bf16 %v9539_v46, %v9539_v46  ;;  %v9775_v14 = vunpack.c.l.b16 %v9647_v27  ;;  %v8771_v27 = vld [vmem:[%s14770_s27 + $0x9c] sm:$0x7] }
 0x541   : > { %v9776_v30 = vunpack.c.l.b16 %v9648_v9  ;;  %v9777_v15 = vunpack.c.l.b16 %v9649_v21  ;;  %v8526_v26 = vpop.f32.mrf.mxu2  ;;  %v8440_v39 = vadd.f32 %v8439_v62, %v8351_v51  ;;  %v8715_v8 = vsel %vm14787_vm14, 0, %v8714_v33 }
 0x542   : > { %11322 = vst.msk [vmem:[%s14770_s27 + $0x134] sm:$0x3] %vm9330_vm8, %v9311_v0  ;;  %v9474_v63 = vsel %vm14910_vm9, %v9410_v12, %v11352_v22  ;;  %v9778_v6 = vunpack.c.l.b16 %v9650_v54  ;;  %v8527_v35 = vadd.f32 %v8526_v26, %v8438_v55  ;;  %v8730_v19 = vsel %vm14787_vm14, 0, %v8729_v31  ;;  %v11402_v31 = vld [vmem:[%s14770_s27 + $0x100] sm:$0x7] }
 0x543   : > { %11353 = vst [vmem:[%s14770_s27 + $0x120] sm:$0x7] %v9474_v63  ;;  %v9867_v38 = vrot.slane %v9776_v30, 7  ;;  %v9869_v28 = vrot.slane %v9777_v15, 6  ;;  %v8757_v5 = vsel %vm14787_vm14, 0, %v8756_v32  ;;  %v8772_v9 = vsel %vm14787_vm14, 0, %v8771_v27 }
 0x544   : > { %v9871_v41 = vrot.slane %v9778_v6, 5  ;;  %8716 = vst [vmem:[%s14770_s27 + $0x50] sm:$0x7] %v8715_v8  ;;  %v8790_v55 = vsel %vm14787_vm14, 0, %v8789_v44  ;;  %v8832_v62 = vsel %vm14787_vm14, 0, %v8831_v61 }
 0x545   : > { %v9868_v17 = vsel %vm9199_vm15, %v9867_v38, %v9775_v14  ;;  %v9970_v59 = vsel %vm9202_vm0, %v9867_v38, %v9775_v14  ;;  %8731 = vst [vmem:[%s14770_s27 + $0x64] sm:$0x7] %v8730_v19  ;;  %v8834_v8 = vld [vmem:[%s14770_s27 + $0xf0] sm:$0x7]  ;;  %v8849_v32 = vld [vmem:[%s14770_s27 + $0x104] sm:$0x7] }
 0x546   : > { %v9870_v2 = vsel %vm9202_vm0, %v9869_v28, %v9868_v17  ;;  %v9971_v42 = vsel %vm9205_vm1, %v9869_v28, %v9970_v59  ;;  %8758 = vst [vmem:[%s14770_s27 + $0x88] sm:$0x7] %v8757_v5  ;;  %v8835_v19 = vsel %vm14787_vm14, 0, %v8834_v8 }
 0x547   : > { %v9872_v50 = vsel %vm9205_vm1, %v9871_v41, %v9870_v2  ;;  %v9972_v13 = vsel %vm9349_vm4, %v9871_v41, %v9971_v42  ;;  %8773 = vst [vmem:[%s14770_s27 + $0x9c] sm:$0x7] %v8772_v9 }
 0x548   : > { %v9893_v1 = vpack.c.b16 %v9872_v50, %v9872_v50  ;;  %v9990_v4 = vpack.c.b16 %v9972_v13, %v9972_v13  ;;  %8791 = vst [vmem:[%s14770_s27 + $0xb4] sm:$0x7] %v8790_v55 }
 0x549   : > { %v8528_v7 = vpop.f32.mrf.mxu2  ;;  %8833 = vst [vmem:[%s14770_s27 + $0xec] sm:$0x7] %v8832_v62 }
 0x54a   : > { %11370 = vst.msk [vmem:[%s14770_s27 + $0x110] sm:$0x3] %vm9330_vm8, %v9893_v1  ;;  %v10052_v37 = vsel %vm14910_vm9, %v9990_v4, %v11400_v10  ;;  %v8529_v25 = vadd.f32 %v8528_v7, %v8440_v39 }
 0x54b   : > { %11401 = vst [vmem:[%s14770_s27 + $0xfc] sm:$0x7] %v10052_v37 }
 0x54c   : > { %8836 = vst [vmem:[%s14770_s27 + $0xf0] sm:$0x7] %v8835_v19 }
 0x552   : > { %v8615_v11 = vpop.f32.mrf.mxu3 }
 0x553   : > { %v8616_v56 = vadd.f32 %v8615_v11, %v8527_v35  ;;  %v8817_v11 = vsel %vm14787_vm14, 0, %v8816_v45 }
 0x554   : > { %8818 = vst [vmem:[%s14770_s27 + $0xd8] sm:$0x7] %v8817_v11 }
 0x555   : > { %v8650_v49 = vmax.f32 %v8616_v56, 0.0 }
 0x557   : > { %v8955_v23 = vrot.slane %v8650_v49, 2  ;;  %v8956_v47 = vrot.slane %v8650_v49, 4  ;;  %v8957_v36 = vrot.slane %v8650_v49, 6  ;;  %v9066_v48 = vpack.c.bf16 %v8650_v49, %v8650_v49 }
 0x559   : > { %v9067_v60 = vpack.c.bf16 %v8955_v23, %v8955_v23  ;;  %v9068_v34 = vpack.c.bf16 %v8956_v47, %v8956_v47  ;;  %v9069_v46 = vpack.c.bf16 %v8957_v36, %v8957_v36  ;;  %v9194_v22 = vunpack.c.l.b16 %v9066_v48 }
 0x55a   : > { %v8617_v43 = vpop.f32.mrf.mxu3  ;;  %v8850_v48 = vsel %vm14787_vm14, 0, %v8849_v32 }
 0x55b   : > { %v9195_v21 = vunpack.c.l.b16 %v9067_v60  ;;  %v9196_v0 = vunpack.c.l.b16 %v9068_v34  ;;  %v9197_v12 = vunpack.c.l.b16 %v9069_v46  ;;  %v8618_v54 = vadd.f32 %v8617_v43, %v8529_v25  ;;  %v8876_v60 = vld [vmem:[%s14770_s27 + $0x128] sm:$0x7]  ;;  %8851 = vst [vmem:[%s14770_s27 + $0x104] sm:$0x7] %v8850_v48  ;;  %v8891_v46 = vld [vmem:[%s14770_s27 + $0x13c] sm:$0x7] }
 0x55c   : > { %v8877_v34 = vsel %vm14787_vm14, 0, %v8876_v60  ;;  %v8892_v3 = vsel %vm14787_vm14, 0, %v8891_v46 }
 0x55d   : > { %v9291_v30 = vrot.slane %v9195_v21, 7  ;;  %v9293_v15 = vrot.slane %v9196_v0, 6  ;;  %v8651_v63 = vmax.f32 %v8618_v54, 0.0  ;;  %v9295_v6 = vrot.slane %v9197_v12, 5  ;;  %8878 = vst [vmem:[%s14770_s27 + $0x128] sm:$0x7] %v8877_v34 }
 0x55e   : > { %8893 = vst [vmem:[%s14770_s27 + $0x13c] sm:$0x7] %v8892_v3 }
 0x55f   : > { %v9292_v14 = vsel %vm9199_vm15, %v9291_v30, %v9194_v22  ;;  %v9393_v38 = vsel %vm9202_vm0, %v9291_v30, %v9194_v22  ;;  %v9540_v28 = vrot.slane %v8651_v63, 2  ;;  %v9541_v17 = vrot.slane %v8651_v63, 4 }
 0x560   : > { %v9294_v41 = vsel %vm9202_vm0, %v9293_v15, %v9292_v14  ;;  %v9394_v59 = vsel %vm9205_vm1, %v9293_v15, %v9393_v38  ;;  %v9542_v2 = vrot.slane %v8651_v63, 6  ;;  %v9651_v42 = vpack.c.bf16 %v8651_v63, %v8651_v63 }
 0x561   : > { %v9296_v50 = vsel %vm9205_vm1, %v9295_v6, %v9294_v41  ;;  %v9395_v13 = vsel %vm9349_vm4, %v9295_v6, %v9394_v59  ;;  %v9652_v1 = vpack.c.bf16 %v9540_v28, %v9540_v28  ;;  %v9653_v4 = vpack.c.bf16 %v9541_v17, %v9541_v17 }
 0x562   : > { %v9312_v10 = vpack.c.b16 %v9296_v50, %v9296_v50  ;;  %v9411_v37 = vpack.c.b16 %v9395_v13, %v9395_v13  ;;  %v9654_v26 = vpack.c.bf16 %v9542_v2, %v9542_v2  ;;  %v9779_v16 = vunpack.c.l.b16 %v9651_v42 }
 0x563   : > { %v9780_v53 = vunpack.c.l.b16 %v9652_v1  ;;  %v9781_v24 = vunpack.c.l.b16 %v9653_v4 }
 0x564   : > { %11323 = vst.msk [vmem:[%s14770_s27 + $0x138] sm:$0x3] %vm9330_vm8, %v9312_v10  ;;  %v9477_v40 = vsel %vm14910_vm9, %v9411_v37, %v11354_v57  ;;  %v9782_v18 = vunpack.c.l.b16 %v9654_v26 }
 0x565   : > { %11355 = vst [vmem:[%s14770_s27 + $0x124] sm:$0x7] %v9477_v40  ;;  %v9873_v20 = vrot.slane %v9780_v53, 7  ;;  %v9875_v35 = vrot.slane %v9781_v24, 6 }
 0x566   : > { %v9877_v51 = vrot.slane %v9782_v18, 5 }
 0x567   : > { %v9874_v56 = vsel %vm9199_vm15, %v9873_v20, %v9779_v16  ;;  %v9973_v7 = vsel %vm9202_vm0, %v9873_v20, %v9779_v16 }
 0x568   : > { %v9876_v49 = vsel %vm9202_vm0, %v9875_v35, %v9874_v56  ;;  %v9974_v39 = vsel %vm9205_vm1, %v9875_v35, %v9973_v7 }
 0x569   : > { %v9878_v33 = vsel %vm9205_vm1, %v9877_v51, %v9876_v49  ;;  %v9975_v23 = vsel %vm9349_vm4, %v9877_v51, %v9974_v39 }
 0x56a   : > { %v9894_v47 = vpack.c.b16 %v9878_v33, %v9878_v33  ;;  %v9991_v36 = vpack.c.b16 %v9975_v23, %v9975_v23 }
 0x56c   : > { %11371 = vst.msk [vmem:[%s14770_s27 + $0x114] sm:$0x3] %vm9330_vm8, %v9894_v47  ;;  %v10055_v25 = vsel %vm14910_vm9, %v9991_v36, %v11402_v31 }
 0x56d   : > { %11403 = vst [vmem:[%s14770_s27 + $0x100] sm:$0x7] %v10055_v25 }
 0x56e PF: > { %s13_s12 = sadd.s32 1, %s11525_s12  }
 0x56f   : > { %p10_p4 = scmp.ge.s32.totalorder %s13_s12, 4  }
 0x571   :  { %12 = sbr.rel (!%p10_p4) target bundleno = 1 (0x1), region = 69 }

</bundles_post_ra>
